<compile_context>
chip_gen: v7x
topology: tpu7x:2x2x1
jax: 0.10.0
libtpu: 0.0.40
codegen_flags: <defaults>
</compile_context>

<pallas_src>
import math

import jax
import jax.numpy as jnp
from jax.experimental import pallas as pl
from jax.experimental.pallas import tpu as pltpu


# ----------------------------------------------------------------------------
# Fused MMF kernel (one grid step = one batch element).
# ----------------------------------------------------------------------------
def _make_mmf_kernel(H, W, C, dc):
    HW = H * W

    def kernel(xr_ref, xd_ref,            # (1, H, W, C) f32 activations
               down_ref,                  # (2, C, dc)          bf16
               rcuw_ref,                  # (2*2*2*9, dc, dc)   bf16
               rcub_ref,                  # (2*2, 1, dc)        f32
               up_ref,                    # (2*9, dc, C)        bf16
               poolw_ref,                 # (9, C, C)           bf16
               o_ref,                     # (1, H, W, C)
               pad_dc,                    # (H+2, W+2, dc) f32 scratch (zero halo)
               pad_c,                     # (H+2, W+2, C)  f32 scratch (zero halo)
               pad_pool):                 # (H+4, W+4, C)  f32 scratch (-inf halo)

        # Zero the conv halo buffers once per grid step; conv interior stores
        # never touch the halo, so it stays zero across every conv below.
        pad_dc[...] = jnp.zeros(pad_dc.shape, pad_dc.dtype)
        pad_c[...] = jnp.zeros(pad_c.shape, pad_c.dtype)

        def conv3x3(pad_ref, x, w_ref, base, cout, bias=None):
            """3x3 / stride-1 / same conv.  x: (H, W, cin) f32 value.
            w_ref[base + ky*3 + kx] is the (cin, cout) bf16 tap matrix."""
            cin = x.shape[-1]
            pad_ref[1:H + 1, 1:W + 1, :] = x          # interior; halo stays 0
            acc = jnp.zeros((HW, cout), jnp.float32)
            for ky in range(3):
                for kx in range(3):
                    patch = pad_ref[ky:ky + H, kx:kx + W, :].reshape(HW, cin)
                    acc = acc + jnp.dot(
                        patch.astype(jnp.bfloat16),
                        w_ref[base + ky * 3 + kx],
                        preferred_element_type=jnp.float32)
            if bias is not None:
                acc = acc + bias                      # (1, cout) broadcast
            return acc.reshape(H, W, cout)

        def branch(x, b):
            # 1x1 down-channel conv (C -> dc, no bias): a single MXU matmul.
            h = jnp.dot(x.reshape(HW, C).astype(jnp.bfloat16), down_ref[b],
                        preferred_element_type=jnp.float32).reshape(H, W, dc)
            # Two ResidualConvUnits:  h = conv2(relu(conv1(relu(h)))) + h
            for r in range(2):
                bias = rcub_ref[b * 2 + r]                         # (1, dc)
                w1 = ((b * 2 + r) * 2 + 0) * 9
                w2 = ((b * 2 + r) * 2 + 1) * 9
                t = conv3x3(pad_dc, jnp.maximum(h, 0.0), rcuw_ref, w1, dc,
                            bias=bias)
                h = conv3x3(pad_dc, jnp.maximum(t, 0.0), rcuw_ref, w2, dc) + h
            # 3x3 up-channel conv (dc -> C, no bias, no pre-ReLU).
            return conv3x3(pad_dc, h, up_ref, b * 9, C)

        fr = branch(xr_ref[0], 0)                     # rgb branch
        fd = branch(xd_ref[0], 1)                     # depth branch
        fusion = jnp.maximum(fr + fd, 0.0)            # relu(fr + fd)

        # 5x5 / stride-1 / pad-2 max-pool (PyTorch pads with -inf).
        pad_pool[...] = jnp.full(pad_pool.shape, -jnp.inf, pad_pool.dtype)
        pad_pool[2:H + 2, 2:W + 2, :] = fusion
        pooled = pad_pool[0:H, 0:W, :]
        for ky in range(5):
            for kx in range(5):
                if ky == 0 and kx == 0:
                    continue
                pooled = jnp.maximum(pooled, pad_pool[ky:ky + H, kx:kx + W, :])

        # Residual-pool conv (3x3, C -> C, no bias) + final residual add.
        px = conv3x3(pad_c, pooled, poolw_ref, 0, C)
        o_ref[0] = (fusion + px).astype(o_ref.dtype)

    return kernel


# ----------------------------------------------------------------------------
# Wrapper: pack weights into matmul-ready matrices and launch the fused kernel.
# ----------------------------------------------------------------------------
def _pack_params(params, C, dc):
    def rcu_taps(p):
        mats = []
        for r in (1, 2):
            for name in ("w1", "w2"):
                mats.append(p[f"rcu{r}_{name}"].reshape(9, dc, dc))
        return jnp.concatenate(mats, axis=0)                       # (36, dc, dc)

    rgb, dep = params["rgb"], params["depth"]
    down_w = jnp.stack([rgb["down"].reshape(C, dc),
                        dep["down"].reshape(C, dc)]).astype(jnp.bfloat16)
    rcu_w = jnp.concatenate([rcu_taps(rgb), rcu_taps(dep)],
                            axis=0).astype(jnp.bfloat16)           # (72, dc, dc)
    rcu_b = jnp.stack([rgb["rcu1_b1"], rgb["rcu2_b1"],
                       dep["rcu1_b1"], dep["rcu2_b1"]]).reshape(4, 1, dc)
    up_w = jnp.concatenate([rgb["up"].reshape(9, dc, C),
                            dep["up"].reshape(9, dc, C)],
                           axis=0).astype(jnp.bfloat16)            # (18, dc, C)
    pool_w = params["pool_conv"].reshape(9, C, C).astype(jnp.bfloat16)
    return down_w, rcu_w, rcu_b, up_w, pool_w


def mmf_forward(f_rgb, f_d, params):
    """f_rgb, f_d: (N, H, W, C) f32 NHWC.  Returns (N, H, W, C) f32."""
    N, H, W, C = f_rgb.shape
    dc = C // 2
    down_w, rcu_w, rcu_b, up_w, pool_w = _pack_params(params, C, dc)

    # TODO(synk): for production SiamMask sizes (e.g. 127x127x256) add
    # row-block spatial tiling (with 1-/2-row halos) so double-buffered blocks
    # fit v7x's 64 MiB VMEM and v5e's scoped limit; whole-image blocks are
    # fine at these shapes.
    return pl.pallas_call(
        _make_mmf_kernel(H, W, C, dc),
        out_shape=jax.ShapeDtypeStruct((N, H, W, C), f_rgb.dtype),
        grid=(N,),
        in_specs=[
            pl.BlockSpec((1, H, W, C), lambda n: (n, 0, 0, 0)),    # f_rgb
            pl.BlockSpec((1, H, W, C), lambda n: (n, 0, 0, 0)),    # f_d
            pl.BlockSpec((2, C, dc), lambda n: (0, 0, 0)),         # down_w
            pl.BlockSpec((72, dc, dc), lambda n: (0, 0, 0)),       # rcu_w
            pl.BlockSpec((4, 1, dc), lambda n: (0, 0, 0)),         # rcu_b
            pl.BlockSpec((18, dc, C), lambda n: (0, 0, 0)),        # up_w
            pl.BlockSpec((9, C, C), lambda n: (0, 0, 0)),          # pool_w
        ],
        out_specs=pl.BlockSpec((1, H, W, C), lambda n: (n, 0, 0, 0)),
        scratch_shapes=[
            pltpu.VMEM((H + 2, W + 2, dc), jnp.float32),
            pltpu.VMEM((H + 2, W + 2, C), jnp.float32),
            pltpu.VMEM((H + 4, W + 4, C), jnp.float32),
        ],
        compiler_params=pltpu.CompilerParams(
            dimension_semantics=("parallel",),
            vmem_limit_bytes=32 * 1024 * 1024),
    )(f_rgb, f_d, down_w, rcu_w, rcu_b, up_w, pool_w)


# ----------------------------------------------------------------------------
# Parameter init (deterministic, mirroring the PyTorch __init__ shapes/init).
# ----------------------------------------------------------------------------
def _kaiming_uniform(key, shape_hwio, a=1.0):
    kh, kw, cin, _ = shape_hwio
    fan_in = kh * kw * cin
    gain = math.sqrt(2.0 / (1.0 + a * a))
    bound = gain * math.sqrt(3.0 / fan_in)
    return jax.random.uniform(key, shape_hwio, jnp.float32, -bound, bound)


def init_mmf_params(key, feature_in):
    dc = feature_in // 2
    keys = iter(jax.random.split(key, 32))

    def branch():
        p = {"down": _kaiming_uniform(next(keys), (1, 1, feature_in, dc))}
        for i in (1, 2):
            p[f"rcu{i}_w1"] = _kaiming_uniform(next(keys), (3, 3, dc, dc))
            bb = 1.0 / math.sqrt(3 * 3 * dc)        # PyTorch default bias init
            p[f"rcu{i}_b1"] = jax.random.uniform(
                next(keys), (dc,), jnp.float32, -bb, bb)
            p[f"rcu{i}_w2"] = _kaiming_uniform(next(keys), (3, 3, dc, dc))
        p["up"] = _kaiming_uniform(next(keys), (3, 3, dc, feature_in))
        return p

    return {
        "rgb": branch(),
        "depth": branch(),
        "pool_conv": _kaiming_uniform(
            next(keys), (3, 3, feature_in, feature_in)),
    }


# ----------------------------------------------------------------------------
if __name__ == "__main__":
    key = jax.random.PRNGKey(0)
    k1, k2, k3 = jax.random.split(key, 3)

    # Small shapes consistent with the module (feature_in even, NCHW input).
    N, C, H, W = 2, 16, 8, 8
    f_rgb_nchw = jax.random.normal(k1, (N, C, H, W), jnp.float32)
    f_d_nchw = jax.random.normal(k2, (N, C, H, W), jnp.float32)

    params = init_mmf_params(k3, feature_in=C)

    # NCHW -> NHWC at the boundary.
    f_rgb = jnp.transpose(f_rgb_nchw, (0, 2, 3, 1))
    f_d = jnp.transpose(f_d_nchw, (0, 2, 3, 1))

    out = jax.jit(mmf_forward)(f_rgb, f_d, params)
    out = jax.block_until_ready(out)
    assert out.shape == (N, H, W, C) and out.dtype == jnp.float32
    print("KERNEL_OK")
</pallas_src>

<mosaic_0001>
module attributes {stable_mosaic.version = 11 : i64} {
  func.func @kernel(%arg0: i32, %arg1: memref<1x8x8x16xf32, #tpu.memory_space<vmem>>, %arg2: memref<1x8x8x16xf32, #tpu.memory_space<vmem>>, %arg3: memref<2x16x8xbf16, #tpu.memory_space<vmem>>, %arg4: memref<72x8x8xbf16, #tpu.memory_space<vmem>>, %arg5: memref<4x1x8xf32, #tpu.memory_space<vmem>>, %arg6: memref<18x8x16xbf16, #tpu.memory_space<vmem>>, %arg7: memref<9x16x16xbf16, #tpu.memory_space<vmem>>, %arg8: memref<1x8x8x16xf32, #tpu.memory_space<vmem>>, %arg9: memref<10x10x8xf32, #tpu.memory_space<vmem>>, %arg10: memref<10x10x16xf32, #tpu.memory_space<vmem>>, %arg11: memref<12x12x16xf32, #tpu.memory_space<vmem>>) attributes {dimension_semantics = [#tpu.dimension_semantics<parallel>], iteration_bounds = array<i64: 2>, scalar_prefetch = 0 : i64, scratch_operands = 3 : i64, tpu.core_type = #tpu.core_type<tc>, window_params = [{transform_indices = @transform_0, window_bounds = array<i64: 1, 8, 8, 16>}, {transform_indices = @transform_1, window_bounds = array<i64: 1, 8, 8, 16>}, {pipeline_mode = #tpu.pipeline_mode<synchronous>, transform_indices = @transform_2, window_bounds = array<i64: 2, 16, 8>}, {pipeline_mode = #tpu.pipeline_mode<synchronous>, transform_indices = @transform_3, window_bounds = array<i64: 72, 8, 8>}, {pipeline_mode = #tpu.pipeline_mode<synchronous>, transform_indices = @transform_4, window_bounds = array<i64: 4, 1, 8>}, {pipeline_mode = #tpu.pipeline_mode<synchronous>, transform_indices = @transform_5, window_bounds = array<i64: 18, 8, 16>}, {pipeline_mode = #tpu.pipeline_mode<synchronous>, transform_indices = @transform_6, window_bounds = array<i64: 9, 16, 16>}, {transform_indices = @transform_7, window_bounds = array<i64: 1, 8, 8, 16>}]} {
    %cst = arith.constant 0.000000e+00 : f32
    %0 = vector.broadcast %cst : f32 to vector<10x10x8xf32>
    %c0 = arith.constant 0 : index
    %c0_0 = arith.constant 0 : index
    %c0_1 = arith.constant 0 : index
    %1 = vector.load %arg9[%c0, %c0_0, %c0_1] : memref<10x10x8xf32, #tpu.memory_space<vmem>>, vector<10x10x8xf32>
    tpu.vector_store %arg9[%c0, %c0_0, %c0_1], %0 {strides = array<i32>} : memref<10x10x8xf32, #tpu.memory_space<vmem>>, vector<10x10x8xf32>,
    %cst_2 = arith.constant 0.000000e+00 : f32
    %2 = vector.broadcast %cst_2 : f32 to vector<10x10x16xf32>
    %c0_3 = arith.constant 0 : index
    %c0_4 = arith.constant 0 : index
    %c0_5 = arith.constant 0 : index
    %3 = vector.load %arg10[%c0_3, %c0_4, %c0_5] : memref<10x10x16xf32, #tpu.memory_space<vmem>>, vector<10x10x16xf32>
    tpu.vector_store %arg10[%c0_3, %c0_4, %c0_5], %2 {strides = array<i32>} : memref<10x10x16xf32, #tpu.memory_space<vmem>>, vector<10x10x16xf32>,
    %c0_6 = arith.constant 0 : index
    %c0_7 = arith.constant 0 : index
    %c0_8 = arith.constant 0 : index
    %c0_9 = arith.constant 0 : index
    %4 = vector.load %arg1[%c0_6, %c0_7, %c0_8, %c0_9] : memref<1x8x8x16xf32, #tpu.memory_space<vmem>>, vector<1x8x8x16xf32>
    %5 = vector.shape_cast %4 : vector<1x8x8x16xf32> to vector<8x8x16xf32>
    %6 = vector.shape_cast %5 : vector<8x8x16xf32> to vector<64x16xf32>
    %7 = arith.truncf %6 : vector<64x16xf32> to vector<64x16xbf16>
    %c0_10 = arith.constant 0 : index
    %c0_11 = arith.constant 0 : index
    %c0_12 = arith.constant 0 : index
    %8 = vector.load %arg3[%c0_10, %c0_11, %c0_12] : memref<2x16x8xbf16, #tpu.memory_space<vmem>>, vector<1x16x8xbf16>
    %9 = vector.shape_cast %8 : vector<1x16x8xbf16> to vector<16x8xbf16>
    %cst_13 = arith.constant dense<0.000000e+00> : vector<64x8xf32>
    %10 = tpu.matmul %7, %9, %cst_13 {dimension_numbers = #tpu.dot_dimension_numbers<[1], [0], [0], [1], [0, 0, 1, 1], [], []>} : vector<64x16xbf16>, vector<16x8xbf16>, vector<64x8xf32> -> vector<64x8xf32>
    %11 = vector.shape_cast %10 : vector<64x8xf32> to vector<8x8x8xf32>
    %c0_14 = arith.constant 0 : index
    %c0_15 = arith.constant 0 : index
    %c0_16 = arith.constant 0 : index
    %12 = vector.load %arg5[%c0_14, %c0_15, %c0_16] : memref<4x1x8xf32, #tpu.memory_space<vmem>>, vector<1x1x8xf32>
    %13 = vector.shape_cast %12 : vector<1x1x8xf32> to vector<1x8xf32>
    %cst_17 = arith.constant 0.000000e+00 : f32
    %14 = vector.broadcast %cst_17 : f32 to vector<8x8x8xf32>
    %15 = arith.maximumf %11, %14 : vector<8x8x8xf32>
    %c1 = arith.constant 1 : index
    %c1_18 = arith.constant 1 : index
    %c0_19 = arith.constant 0 : index
    %16 = vector.load %arg9[%c1, %c1_18, %c0_19] : memref<10x10x8xf32, #tpu.memory_space<vmem>>, vector<8x8x8xf32>
    tpu.vector_store %arg9[%c1, %c1_18, %c0_19], %15 {strides = array<i32>} : memref<10x10x8xf32, #tpu.memory_space<vmem>>, vector<8x8x8xf32>,
    %cst_20 = arith.constant 0.000000e+00 : f32
    %17 = vector.broadcast %cst_20 : f32 to vector<64x8xf32>
    %c0_21 = arith.constant 0 : index
    %c0_22 = arith.constant 0 : index
    %c0_23 = arith.constant 0 : index
    %18 = vector.load %arg9[%c0_21, %c0_22, %c0_23] : memref<10x10x8xf32, #tpu.memory_space<vmem>>, vector<8x8x8xf32>
    %19 = vector.shape_cast %18 : vector<8x8x8xf32> to vector<64x8xf32>
    %20 = arith.truncf %19 : vector<64x8xf32> to vector<64x8xbf16>
    %c0_24 = arith.constant 0 : index
    %c0_25 = arith.constant 0 : index
    %c0_26 = arith.constant 0 : index
    %21 = vector.load %arg4[%c0_24, %c0_25, %c0_26] : memref<72x8x8xbf16, #tpu.memory_space<vmem>>, vector<1x8x8xbf16>
    %22 = vector.shape_cast %21 : vector<1x8x8xbf16> to vector<8x8xbf16>
    %cst_27 = arith.constant dense<0.000000e+00> : vector<64x8xf32>
    %23 = tpu.matmul %20, %22, %cst_27 {dimension_numbers = #tpu.dot_dimension_numbers<[1], [0], [0], [1], [0, 0, 1, 1], [], []>} : vector<64x8xbf16>, vector<8x8xbf16>, vector<64x8xf32> -> vector<64x8xf32>
    %24 = arith.addf %17, %23 : vector<64x8xf32>
    %c0_28 = arith.constant 0 : index
    %c1_29 = arith.constant 1 : index
    %c0_30 = arith.constant 0 : index
    %25 = vector.load %arg9[%c0_28, %c1_29, %c0_30] : memref<10x10x8xf32, #tpu.memory_space<vmem>>, vector<8x8x8xf32>
    %26 = vector.shape_cast %25 : vector<8x8x8xf32> to vector<64x8xf32>
    %27 = arith.truncf %26 : vector<64x8xf32> to vector<64x8xbf16>
    %c1_31 = arith.constant 1 : index
    %c0_32 = arith.constant 0 : index
    %c0_33 = arith.constant 0 : index
    %28 = vector.load %arg4[%c1_31, %c0_32, %c0_33] : memref<72x8x8xbf16, #tpu.memory_space<vmem>>, vector<1x8x8xbf16>
    %29 = vector.shape_cast %28 : vector<1x8x8xbf16> to vector<8x8xbf16>
    %cst_34 = arith.constant dense<0.000000e+00> : vector<64x8xf32>
    %30 = tpu.matmul %27, %29, %cst_34 {dimension_numbers = #tpu.dot_dimension_numbers<[1], [0], [0], [1], [0, 0, 1, 1], [], []>} : vector<64x8xbf16>, vector<8x8xbf16>, vector<64x8xf32> -> vector<64x8xf32>
    %31 = arith.addf %24, %30 : vector<64x8xf32>
    %c0_35 = arith.constant 0 : index
    %c2 = arith.constant 2 : index
    %c0_36 = arith.constant 0 : index
    %32 = vector.load %arg9[%c0_35, %c2, %c0_36] : memref<10x10x8xf32, #tpu.memory_space<vmem>>, vector<8x8x8xf32>
    %33 = vector.shape_cast %32 : vector<8x8x8xf32> to vector<64x8xf32>
    %34 = arith.truncf %33 : vector<64x8xf32> to vector<64x8xbf16>
    %c2_37 = arith.constant 2 : index
    %c0_38 = arith.constant 0 : index
    %c0_39 = arith.constant 0 : index
    %35 = vector.load %arg4[%c2_37, %c0_38, %c0_39] : memref<72x8x8xbf16, #tpu.memory_space<vmem>>, vector<1x8x8xbf16>
    %36 = vector.shape_cast %35 : vector<1x8x8xbf16> to vector<8x8xbf16>
    %cst_40 = arith.constant dense<0.000000e+00> : vector<64x8xf32>
    %37 = tpu.matmul %34, %36, %cst_40 {dimension_numbers = #tpu.dot_dimension_numbers<[1], [0], [0], [1], [0, 0, 1, 1], [], []>} : vector<64x8xbf16>, vector<8x8xbf16>, vector<64x8xf32> -> vector<64x8xf32>
    %38 = arith.addf %31, %37 : vector<64x8xf32>
    %c1_41 = arith.constant 1 : index
    %c0_42 = arith.constant 0 : index
    %c0_43 = arith.constant 0 : index
    %39 = vector.load %arg9[%c1_41, %c0_42, %c0_43] : memref<10x10x8xf32, #tpu.memory_space<vmem>>, vector<8x8x8xf32>
    %40 = vector.shape_cast %39 : vector<8x8x8xf32> to vector<64x8xf32>
    %41 = arith.truncf %40 : vector<64x8xf32> to vector<64x8xbf16>
    %c3 = arith.constant 3 : index
    %c0_44 = arith.constant 0 : index
    %c0_45 = arith.constant 0 : index
    %42 = vector.load %arg4[%c3, %c0_44, %c0_45] : memref<72x8x8xbf16, #tpu.memory_space<vmem>>, vector<1x8x8xbf16>
    %43 = vector.shape_cast %42 : vector<1x8x8xbf16> to vector<8x8xbf16>
    %cst_46 = arith.constant dense<0.000000e+00> : vector<64x8xf32>
    %44 = tpu.matmul %41, %43, %cst_46 {dimension_numbers = #tpu.dot_dimension_numbers<[1], [0], [0], [1], [0, 0, 1, 1], [], []>} : vector<64x8xbf16>, vector<8x8xbf16>, vector<64x8xf32> -> vector<64x8xf32>
    %45 = arith.addf %38, %44 : vector<64x8xf32>
    %c1_47 = arith.constant 1 : index
    %c1_48 = arith.constant 1 : index
    %c0_49 = arith.constant 0 : index
    %46 = vector.load %arg9[%c1_47, %c1_48, %c0_49] : memref<10x10x8xf32, #tpu.memory_space<vmem>>, vector<8x8x8xf32>
    %47 = vector.shape_cast %46 : vector<8x8x8xf32> to vector<64x8xf32>
    %48 = arith.truncf %47 : vector<64x8xf32> to vector<64x8xbf16>
    %c4 = arith.constant 4 : index
    %c0_50 = arith.constant 0 : index
    %c0_51 = arith.constant 0 : index
    %49 = vector.load %arg4[%c4, %c0_50, %c0_51] : memref<72x8x8xbf16, #tpu.memory_space<vmem>>, vector<1x8x8xbf16>
    %50 = vector.shape_cast %49 : vector<1x8x8xbf16> to vector<8x8xbf16>
    %cst_52 = arith.constant dense<0.000000e+00> : vector<64x8xf32>
    %51 = tpu.matmul %48, %50, %cst_52 {dimension_numbers = #tpu.dot_dimension_numbers<[1], [0], [0], [1], [0, 0, 1, 1], [], []>} : vector<64x8xbf16>, vector<8x8xbf16>, vector<64x8xf32> -> vector<64x8xf32>
    %52 = arith.addf %45, %51 : vector<64x8xf32>
    %c1_53 = arith.constant 1 : index
    %c2_54 = arith.constant 2 : index
    %c0_55 = arith.constant 0 : index
    %53 = vector.load %arg9[%c1_53, %c2_54, %c0_55] : memref<10x10x8xf32, #tpu.memory_space<vmem>>, vector<8x8x8xf32>
    %54 = vector.shape_cast %53 : vector<8x8x8xf32> to vector<64x8xf32>
    %55 = arith.truncf %54 : vector<64x8xf32> to vector<64x8xbf16>
    %c5 = arith.constant 5 : index
    %c0_56 = arith.constant 0 : index
    %c0_57 = arith.constant 0 : index
    %56 = vector.load %arg4[%c5, %c0_56, %c0_57] : memref<72x8x8xbf16, #tpu.memory_space<vmem>>, vector<1x8x8xbf16>
    %57 = vector.shape_cast %56 : vector<1x8x8xbf16> to vector<8x8xbf16>
    %cst_58 = arith.constant dense<0.000000e+00> : vector<64x8xf32>
    %58 = tpu.matmul %55, %57, %cst_58 {dimension_numbers = #tpu.dot_dimension_numbers<[1], [0], [0], [1], [0, 0, 1, 1], [], []>} : vector<64x8xbf16>, vector<8x8xbf16>, vector<64x8xf32> -> vector<64x8xf32>
    %59 = arith.addf %52, %58 : vector<64x8xf32>
    %c2_59 = arith.constant 2 : index
    %c0_60 = arith.constant 0 : index
    %c0_61 = arith.constant 0 : index
    %60 = vector.load %arg9[%c2_59, %c0_60, %c0_61] : memref<10x10x8xf32, #tpu.memory_space<vmem>>, vector<8x8x8xf32>
    %61 = vector.shape_cast %60 : vector<8x8x8xf32> to vector<64x8xf32>
    %62 = arith.truncf %61 : vector<64x8xf32> to vector<64x8xbf16>
    %c6 = arith.constant 6 : index
    %c0_62 = arith.constant 0 : index
    %c0_63 = arith.constant 0 : index
    %63 = vector.load %arg4[%c6, %c0_62, %c0_63] : memref<72x8x8xbf16, #tpu.memory_space<vmem>>, vector<1x8x8xbf16>
    %64 = vector.shape_cast %63 : vector<1x8x8xbf16> to vector<8x8xbf16>
    %cst_64 = arith.constant dense<0.000000e+00> : vector<64x8xf32>
    %65 = tpu.matmul %62, %64, %cst_64 {dimension_numbers = #tpu.dot_dimension_numbers<[1], [0], [0], [1], [0, 0, 1, 1], [], []>} : vector<64x8xbf16>, vector<8x8xbf16>, vector<64x8xf32> -> vector<64x8xf32>
    %66 = arith.addf %59, %65 : vector<64x8xf32>
    %c2_65 = arith.constant 2 : index
    %c1_66 = arith.constant 1 : index
    %c0_67 = arith.constant 0 : index
    %67 = vector.load %arg9[%c2_65, %c1_66, %c0_67] : memref<10x10x8xf32, #tpu.memory_space<vmem>>, vector<8x8x8xf32>
    %68 = vector.shape_cast %67 : vector<8x8x8xf32> to vector<64x8xf32>
    %69 = arith.truncf %68 : vector<64x8xf32> to vector<64x8xbf16>
    %c7 = arith.constant 7 : index
    %c0_68 = arith.constant 0 : index
    %c0_69 = arith.constant 0 : index
    %70 = vector.load %arg4[%c7, %c0_68, %c0_69] : memref<72x8x8xbf16, #tpu.memory_space<vmem>>, vector<1x8x8xbf16>
    %71 = vector.shape_cast %70 : vector<1x8x8xbf16> to vector<8x8xbf16>
    %cst_70 = arith.constant dense<0.000000e+00> : vector<64x8xf32>
    %72 = tpu.matmul %69, %71, %cst_70 {dimension_numbers = #tpu.dot_dimension_numbers<[1], [0], [0], [1], [0, 0, 1, 1], [], []>} : vector<64x8xbf16>, vector<8x8xbf16>, vector<64x8xf32> -> vector<64x8xf32>
    %73 = arith.addf %66, %72 : vector<64x8xf32>
    %c2_71 = arith.constant 2 : index
    %c2_72 = arith.constant 2 : index
    %c0_73 = arith.constant 0 : index
    %74 = vector.load %arg9[%c2_71, %c2_72, %c0_73] : memref<10x10x8xf32, #tpu.memory_space<vmem>>, vector<8x8x8xf32>
    %75 = vector.shape_cast %74 : vector<8x8x8xf32> to vector<64x8xf32>
    %76 = arith.truncf %75 : vector<64x8xf32> to vector<64x8xbf16>
    %c8 = arith.constant 8 : index
    %c0_74 = arith.constant 0 : index
    %c0_75 = arith.constant 0 : index
    %77 = vector.load %arg4[%c8, %c0_74, %c0_75] : memref<72x8x8xbf16, #tpu.memory_space<vmem>>, vector<1x8x8xbf16>
    %78 = vector.shape_cast %77 : vector<1x8x8xbf16> to vector<8x8xbf16>
    %cst_76 = arith.constant dense<0.000000e+00> : vector<64x8xf32>
    %79 = tpu.matmul %76, %78, %cst_76 {dimension_numbers = #tpu.dot_dimension_numbers<[1], [0], [0], [1], [0, 0, 1, 1], [], []>} : vector<64x8xbf16>, vector<8x8xbf16>, vector<64x8xf32> -> vector<64x8xf32>
    %80 = arith.addf %73, %79 : vector<64x8xf32>
    %81 = vector.broadcast %13 : vector<1x8xf32> to vector<64x8xf32>
    %82 = arith.addf %80, %81 : vector<64x8xf32>
    %83 = vector.shape_cast %82 : vector<64x8xf32> to vector<8x8x8xf32>
    %cst_77 = arith.constant 0.000000e+00 : f32
    %84 = vector.broadcast %cst_77 : f32 to vector<8x8x8xf32>
    %85 = arith.maximumf %83, %84 : vector<8x8x8xf32>
    %c1_78 = arith.constant 1 : index
    %c1_79 = arith.constant 1 : index
    %c0_80 = arith.constant 0 : index
    %86 = vector.load %arg9[%c1_78, %c1_79, %c0_80] : memref<10x10x8xf32, #tpu.memory_space<vmem>>, vector<8x8x8xf32>
    tpu.vector_store %arg9[%c1_78, %c1_79, %c0_80], %85 {strides = array<i32>} : memref<10x10x8xf32, #tpu.memory_space<vmem>>, vector<8x8x8xf32>,
    %cst_81 = arith.constant 0.000000e+00 : f32
    %87 = vector.broadcast %cst_81 : f32 to vector<64x8xf32>
    %c0_82 = arith.constant 0 : index
    %c0_83 = arith.constant 0 : index
    %c0_84 = arith.constant 0 : index
    %88 = vector.load %arg9[%c0_82, %c0_83, %c0_84] : memref<10x10x8xf32, #tpu.memory_space<vmem>>, vector<8x8x8xf32>
    %89 = vector.shape_cast %88 : vector<8x8x8xf32> to vector<64x8xf32>
    %90 = arith.truncf %89 : vector<64x8xf32> to vector<64x8xbf16>
    %c9 = arith.constant 9 : index
    %c0_85 = arith.constant 0 : index
    %c0_86 = arith.constant 0 : index
    %91 = vector.load %arg4[%c9, %c0_85, %c0_86] : memref<72x8x8xbf16, #tpu.memory_space<vmem>>, vector<1x8x8xbf16>
    %92 = vector.shape_cast %91 : vector<1x8x8xbf16> to vector<8x8xbf16>
    %cst_87 = arith.constant dense<0.000000e+00> : vector<64x8xf32>
    %93 = tpu.matmul %90, %92, %cst_87 {dimension_numbers = #tpu.dot_dimension_numbers<[1], [0], [0], [1], [0, 0, 1, 1], [], []>} : vector<64x8xbf16>, vector<8x8xbf16>, vector<64x8xf32> -> vector<64x8xf32>
    %94 = arith.addf %87, %93 : vector<64x8xf32>
    %c0_88 = arith.constant 0 : index
    %c1_89 = arith.constant 1 : index
    %c0_90 = arith.constant 0 : index
    %95 = vector.load %arg9[%c0_88, %c1_89, %c0_90] : memref<10x10x8xf32, #tpu.memory_space<vmem>>, vector<8x8x8xf32>
    %96 = vector.shape_cast %95 : vector<8x8x8xf32> to vector<64x8xf32>
    %97 = arith.truncf %96 : vector<64x8xf32> to vector<64x8xbf16>
    %c10 = arith.constant 10 : index
    %c0_91 = arith.constant 0 : index
    %c0_92 = arith.constant 0 : index
    %98 = vector.load %arg4[%c10, %c0_91, %c0_92] : memref<72x8x8xbf16, #tpu.memory_space<vmem>>, vector<1x8x8xbf16>
    %99 = vector.shape_cast %98 : vector<1x8x8xbf16> to vector<8x8xbf16>
    %cst_93 = arith.constant dense<0.000000e+00> : vector<64x8xf32>
    %100 = tpu.matmul %97, %99, %cst_93 {dimension_numbers = #tpu.dot_dimension_numbers<[1], [0], [0], [1], [0, 0, 1, 1], [], []>} : vector<64x8xbf16>, vector<8x8xbf16>, vector<64x8xf32> -> vector<64x8xf32>
    %101 = arith.addf %94, %100 : vector<64x8xf32>
    %c0_94 = arith.constant 0 : index
    %c2_95 = arith.constant 2 : index
    %c0_96 = arith.constant 0 : index
    %102 = vector.load %arg9[%c0_94, %c2_95, %c0_96] : memref<10x10x8xf32, #tpu.memory_space<vmem>>, vector<8x8x8xf32>
    %103 = vector.shape_cast %102 : vector<8x8x8xf32> to vector<64x8xf32>
    %104 = arith.truncf %103 : vector<64x8xf32> to vector<64x8xbf16>
    %c11 = arith.constant 11 : index
    %c0_97 = arith.constant 0 : index
    %c0_98 = arith.constant 0 : index
    %105 = vector.load %arg4[%c11, %c0_97, %c0_98] : memref<72x8x8xbf16, #tpu.memory_space<vmem>>, vector<1x8x8xbf16>
    %106 = vector.shape_cast %105 : vector<1x8x8xbf16> to vector<8x8xbf16>
    %cst_99 = arith.constant dense<0.000000e+00> : vector<64x8xf32>
    %107 = tpu.matmul %104, %106, %cst_99 {dimension_numbers = #tpu.dot_dimension_numbers<[1], [0], [0], [1], [0, 0, 1, 1], [], []>} : vector<64x8xbf16>, vector<8x8xbf16>, vector<64x8xf32> -> vector<64x8xf32>
    %108 = arith.addf %101, %107 : vector<64x8xf32>
    %c1_100 = arith.constant 1 : index
    %c0_101 = arith.constant 0 : index
    %c0_102 = arith.constant 0 : index
    %109 = vector.load %arg9[%c1_100, %c0_101, %c0_102] : memref<10x10x8xf32, #tpu.memory_space<vmem>>, vector<8x8x8xf32>
    %110 = vector.shape_cast %109 : vector<8x8x8xf32> to vector<64x8xf32>
    %111 = arith.truncf %110 : vector<64x8xf32> to vector<64x8xbf16>
    %c12 = arith.constant 12 : index
    %c0_103 = arith.constant 0 : index
    %c0_104 = arith.constant 0 : index
    %112 = vector.load %arg4[%c12, %c0_103, %c0_104] : memref<72x8x8xbf16, #tpu.memory_space<vmem>>, vector<1x8x8xbf16>
    %113 = vector.shape_cast %112 : vector<1x8x8xbf16> to vector<8x8xbf16>
    %cst_105 = arith.constant dense<0.000000e+00> : vector<64x8xf32>
    %114 = tpu.matmul %111, %113, %cst_105 {dimension_numbers = #tpu.dot_dimension_numbers<[1], [0], [0], [1], [0, 0, 1, 1], [], []>} : vector<64x8xbf16>, vector<8x8xbf16>, vector<64x8xf32> -> vector<64x8xf32>
    %115 = arith.addf %108, %114 : vector<64x8xf32>
    %c1_106 = arith.constant 1 : index
    %c1_107 = arith.constant 1 : index
    %c0_108 = arith.constant 0 : index
    %116 = vector.load %arg9[%c1_106, %c1_107, %c0_108] : memref<10x10x8xf32, #tpu.memory_space<vmem>>, vector<8x8x8xf32>
    %117 = vector.shape_cast %116 : vector<8x8x8xf32> to vector<64x8xf32>
    %118 = arith.truncf %117 : vector<64x8xf32> to vector<64x8xbf16>
    %c13 = arith.constant 13 : index
    %c0_109 = arith.constant 0 : index
    %c0_110 = arith.constant 0 : index
    %119 = vector.load %arg4[%c13, %c0_109, %c0_110] : memref<72x8x8xbf16, #tpu.memory_space<vmem>>, vector<1x8x8xbf16>
    %120 = vector.shape_cast %119 : vector<1x8x8xbf16> to vector<8x8xbf16>
    %cst_111 = arith.constant dense<0.000000e+00> : vector<64x8xf32>
    %121 = tpu.matmul %118, %120, %cst_111 {dimension_numbers = #tpu.dot_dimension_numbers<[1], [0], [0], [1], [0, 0, 1, 1], [], []>} : vector<64x8xbf16>, vector<8x8xbf16>, vector<64x8xf32> -> vector<64x8xf32>
    %122 = arith.addf %115, %121 : vector<64x8xf32>
    %c1_112 = arith.constant 1 : index
    %c2_113 = arith.constant 2 : index
    %c0_114 = arith.constant 0 : index
    %123 = vector.load %arg9[%c1_112, %c2_113, %c0_114] : memref<10x10x8xf32, #tpu.memory_space<vmem>>, vector<8x8x8xf32>
    %124 = vector.shape_cast %123 : vector<8x8x8xf32> to vector<64x8xf32>
    %125 = arith.truncf %124 : vector<64x8xf32> to vector<64x8xbf16>
    %c14 = arith.constant 14 : index
    %c0_115 = arith.constant 0 : index
    %c0_116 = arith.constant 0 : index
    %126 = vector.load %arg4[%c14, %c0_115, %c0_116] : memref<72x8x8xbf16, #tpu.memory_space<vmem>>, vector<1x8x8xbf16>
    %127 = vector.shape_cast %126 : vector<1x8x8xbf16> to vector<8x8xbf16>
    %cst_117 = arith.constant dense<0.000000e+00> : vector<64x8xf32>
    %128 = tpu.matmul %125, %127, %cst_117 {dimension_numbers = #tpu.dot_dimension_numbers<[1], [0], [0], [1], [0, 0, 1, 1], [], []>} : vector<64x8xbf16>, vector<8x8xbf16>, vector<64x8xf32> -> vector<64x8xf32>
    %129 = arith.addf %122, %128 : vector<64x8xf32>
    %c2_118 = arith.constant 2 : index
    %c0_119 = arith.constant 0 : index
    %c0_120 = arith.constant 0 : index
    %130 = vector.load %arg9[%c2_118, %c0_119, %c0_120] : memref<10x10x8xf32, #tpu.memory_space<vmem>>, vector<8x8x8xf32>
    %131 = vector.shape_cast %130 : vector<8x8x8xf32> to vector<64x8xf32>
    %132 = arith.truncf %131 : vector<64x8xf32> to vector<64x8xbf16>
    %c15 = arith.constant 15 : index
    %c0_121 = arith.constant 0 : index
    %c0_122 = arith.constant 0 : index
    %133 = vector.load %arg4[%c15, %c0_121, %c0_122] : memref<72x8x8xbf16, #tpu.memory_space<vmem>>, vector<1x8x8xbf16>
    %134 = vector.shape_cast %133 : vector<1x8x8xbf16> to vector<8x8xbf16>
    %cst_123 = arith.constant dense<0.000000e+00> : vector<64x8xf32>
    %135 = tpu.matmul %132, %134, %cst_123 {dimension_numbers = #tpu.dot_dimension_numbers<[1], [0], [0], [1], [0, 0, 1, 1], [], []>} : vector<64x8xbf16>, vector<8x8xbf16>, vector<64x8xf32> -> vector<64x8xf32>
    %136 = arith.addf %129, %135 : vector<64x8xf32>
    %c2_124 = arith.constant 2 : index
    %c1_125 = arith.constant 1 : index
    %c0_126 = arith.constant 0 : index
    %137 = vector.load %arg9[%c2_124, %c1_125, %c0_126] : memref<10x10x8xf32, #tpu.memory_space<vmem>>, vector<8x8x8xf32>
    %138 = vector.shape_cast %137 : vector<8x8x8xf32> to vector<64x8xf32>
    %139 = arith.truncf %138 : vector<64x8xf32> to vector<64x8xbf16>
    %c16 = arith.constant 16 : index
    %c0_127 = arith.constant 0 : index
    %c0_128 = arith.constant 0 : index
    %140 = vector.load %arg4[%c16, %c0_127, %c0_128] : memref<72x8x8xbf16, #tpu.memory_space<vmem>>, vector<1x8x8xbf16>
    %141 = vector.shape_cast %140 : vector<1x8x8xbf16> to vector<8x8xbf16>
    %cst_129 = arith.constant dense<0.000000e+00> : vector<64x8xf32>
    %142 = tpu.matmul %139, %141, %cst_129 {dimension_numbers = #tpu.dot_dimension_numbers<[1], [0], [0], [1], [0, 0, 1, 1], [], []>} : vector<64x8xbf16>, vector<8x8xbf16>, vector<64x8xf32> -> vector<64x8xf32>
    %143 = arith.addf %136, %142 : vector<64x8xf32>
    %c2_130 = arith.constant 2 : index
    %c2_131 = arith.constant 2 : index
    %c0_132 = arith.constant 0 : index
    %144 = vector.load %arg9[%c2_130, %c2_131, %c0_132] : memref<10x10x8xf32, #tpu.memory_space<vmem>>, vector<8x8x8xf32>
    %145 = vector.shape_cast %144 : vector<8x8x8xf32> to vector<64x8xf32>
    %146 = arith.truncf %145 : vector<64x8xf32> to vector<64x8xbf16>
    %c17 = arith.constant 17 : index
    %c0_133 = arith.constant 0 : index
    %c0_134 = arith.constant 0 : index
    %147 = vector.load %arg4[%c17, %c0_133, %c0_134] : memref<72x8x8xbf16, #tpu.memory_space<vmem>>, vector<1x8x8xbf16>
    %148 = vector.shape_cast %147 : vector<1x8x8xbf16> to vector<8x8xbf16>
    %cst_135 = arith.constant dense<0.000000e+00> : vector<64x8xf32>
    %149 = tpu.matmul %146, %148, %cst_135 {dimension_numbers = #tpu.dot_dimension_numbers<[1], [0], [0], [1], [0, 0, 1, 1], [], []>} : vector<64x8xbf16>, vector<8x8xbf16>, vector<64x8xf32> -> vector<64x8xf32>
    %150 = arith.addf %143, %149 : vector<64x8xf32>
    %151 = vector.shape_cast %150 : vector<64x8xf32> to vector<8x8x8xf32>
    %152 = arith.addf %151, %11 : vector<8x8x8xf32>
    %c1_136 = arith.constant 1 : index
    %c0_137 = arith.constant 0 : index
    %c0_138 = arith.constant 0 : index
    %153 = vector.load %arg5[%c1_136, %c0_137, %c0_138] : memref<4x1x8xf32, #tpu.memory_space<vmem>>, vector<1x1x8xf32>
    %154 = vector.shape_cast %153 : vector<1x1x8xf32> to vector<1x8xf32>
    %cst_139 = arith.constant 0.000000e+00 : f32
    %155 = vector.broadcast %cst_139 : f32 to vector<8x8x8xf32>
    %156 = arith.maximumf %152, %155 : vector<8x8x8xf32>
    %c1_140 = arith.constant 1 : index
    %c1_141 = arith.constant 1 : index
    %c0_142 = arith.constant 0 : index
    %157 = vector.load %arg9[%c1_140, %c1_141, %c0_142] : memref<10x10x8xf32, #tpu.memory_space<vmem>>, vector<8x8x8xf32>
    tpu.vector_store %arg9[%c1_140, %c1_141, %c0_142], %156 {strides = array<i32>} : memref<10x10x8xf32, #tpu.memory_space<vmem>>, vector<8x8x8xf32>,
    %cst_143 = arith.constant 0.000000e+00 : f32
    %158 = vector.broadcast %cst_143 : f32 to vector<64x8xf32>
    %c0_144 = arith.constant 0 : index
    %c0_145 = arith.constant 0 : index
    %c0_146 = arith.constant 0 : index
    %159 = vector.load %arg9[%c0_144, %c0_145, %c0_146] : memref<10x10x8xf32, #tpu.memory_space<vmem>>, vector<8x8x8xf32>
    %160 = vector.shape_cast %159 : vector<8x8x8xf32> to vector<64x8xf32>
    %161 = arith.truncf %160 : vector<64x8xf32> to vector<64x8xbf16>
    %c18 = arith.constant 18 : index
    %c0_147 = arith.constant 0 : index
    %c0_148 = arith.constant 0 : index
    %162 = vector.load %arg4[%c18, %c0_147, %c0_148] : memref<72x8x8xbf16, #tpu.memory_space<vmem>>, vector<1x8x8xbf16>
    %163 = vector.shape_cast %162 : vector<1x8x8xbf16> to vector<8x8xbf16>
    %cst_149 = arith.constant dense<0.000000e+00> : vector<64x8xf32>
    %164 = tpu.matmul %161, %163, %cst_149 {dimension_numbers = #tpu.dot_dimension_numbers<[1], [0], [0], [1], [0, 0, 1, 1], [], []>} : vector<64x8xbf16>, vector<8x8xbf16>, vector<64x8xf32> -> vector<64x8xf32>
    %165 = arith.addf %158, %164 : vector<64x8xf32>
    %c0_150 = arith.constant 0 : index
    %c1_151 = arith.constant 1 : index
    %c0_152 = arith.constant 0 : index
    %166 = vector.load %arg9[%c0_150, %c1_151, %c0_152] : memref<10x10x8xf32, #tpu.memory_space<vmem>>, vector<8x8x8xf32>
    %167 = vector.shape_cast %166 : vector<8x8x8xf32> to vector<64x8xf32>
    %168 = arith.truncf %167 : vector<64x8xf32> to vector<64x8xbf16>
    %c19 = arith.constant 19 : index
    %c0_153 = arith.constant 0 : index
    %c0_154 = arith.constant 0 : index
    %169 = vector.load %arg4[%c19, %c0_153, %c0_154] : memref<72x8x8xbf16, #tpu.memory_space<vmem>>, vector<1x8x8xbf16>
    %170 = vector.shape_cast %169 : vector<1x8x8xbf16> to vector<8x8xbf16>
    %cst_155 = arith.constant dense<0.000000e+00> : vector<64x8xf32>
    %171 = tpu.matmul %168, %170, %cst_155 {dimension_numbers = #tpu.dot_dimension_numbers<[1], [0], [0], [1], [0, 0, 1, 1], [], []>} : vector<64x8xbf16>, vector<8x8xbf16>, vector<64x8xf32> -> vector<64x8xf32>
    %172 = arith.addf %165, %171 : vector<64x8xf32>
    %c0_156 = arith.constant 0 : index
    %c2_157 = arith.constant 2 : index
    %c0_158 = arith.constant 0 : index
    %173 = vector.load %arg9[%c0_156, %c2_157, %c0_158] : memref<10x10x8xf32, #tpu.memory_space<vmem>>, vector<8x8x8xf32>
    %174 = vector.shape_cast %173 : vector<8x8x8xf32> to vector<64x8xf32>
    %175 = arith.truncf %174 : vector<64x8xf32> to vector<64x8xbf16>
    %c20 = arith.constant 20 : index
    %c0_159 = arith.constant 0 : index
    %c0_160 = arith.constant 0 : index
    %176 = vector.load %arg4[%c20, %c0_159, %c0_160] : memref<72x8x8xbf16, #tpu.memory_space<vmem>>, vector<1x8x8xbf16>
    %177 = vector.shape_cast %176 : vector<1x8x8xbf16> to vector<8x8xbf16>
    %cst_161 = arith.constant dense<0.000000e+00> : vector<64x8xf32>
    %178 = tpu.matmul %175, %177, %cst_161 {dimension_numbers = #tpu.dot_dimension_numbers<[1], [0], [0], [1], [0, 0, 1, 1], [], []>} : vector<64x8xbf16>, vector<8x8xbf16>, vector<64x8xf32> -> vector<64x8xf32>
    %179 = arith.addf %172, %178 : vector<64x8xf32>
    %c1_162 = arith.constant 1 : index
    %c0_163 = arith.constant 0 : index
    %c0_164 = arith.constant 0 : index
    %180 = vector.load %arg9[%c1_162, %c0_163, %c0_164] : memref<10x10x8xf32, #tpu.memory_space<vmem>>, vector<8x8x8xf32>
    %181 = vector.shape_cast %180 : vector<8x8x8xf32> to vector<64x8xf32>
    %182 = arith.truncf %181 : vector<64x8xf32> to vector<64x8xbf16>
    %c21 = arith.constant 21 : index
    %c0_165 = arith.constant 0 : index
    %c0_166 = arith.constant 0 : index
    %183 = vector.load %arg4[%c21, %c0_165, %c0_166] : memref<72x8x8xbf16, #tpu.memory_space<vmem>>, vector<1x8x8xbf16>
    %184 = vector.shape_cast %183 : vector<1x8x8xbf16> to vector<8x8xbf16>
    %cst_167 = arith.constant dense<0.000000e+00> : vector<64x8xf32>
    %185 = tpu.matmul %182, %184, %cst_167 {dimension_numbers = #tpu.dot_dimension_numbers<[1], [0], [0], [1], [0, 0, 1, 1], [], []>} : vector<64x8xbf16>, vector<8x8xbf16>, vector<64x8xf32> -> vector<64x8xf32>
    %186 = arith.addf %179, %185 : vector<64x8xf32>
    %c1_168 = arith.constant 1 : index
    %c1_169 = arith.constant 1 : index
    %c0_170 = arith.constant 0 : index
    %187 = vector.load %arg9[%c1_168, %c1_169, %c0_170] : memref<10x10x8xf32, #tpu.memory_space<vmem>>, vector<8x8x8xf32>
    %188 = vector.shape_cast %187 : vector<8x8x8xf32> to vector<64x8xf32>
    %189 = arith.truncf %188 : vector<64x8xf32> to vector<64x8xbf16>
    %c22 = arith.constant 22 : index
    %c0_171 = arith.constant 0 : index
    %c0_172 = arith.constant 0 : index
    %190 = vector.load %arg4[%c22, %c0_171, %c0_172] : memref<72x8x8xbf16, #tpu.memory_space<vmem>>, vector<1x8x8xbf16>
    %191 = vector.shape_cast %190 : vector<1x8x8xbf16> to vector<8x8xbf16>
    %cst_173 = arith.constant dense<0.000000e+00> : vector<64x8xf32>
    %192 = tpu.matmul %189, %191, %cst_173 {dimension_numbers = #tpu.dot_dimension_numbers<[1], [0], [0], [1], [0, 0, 1, 1], [], []>} : vector<64x8xbf16>, vector<8x8xbf16>, vector<64x8xf32> -> vector<64x8xf32>
    %193 = arith.addf %186, %192 : vector<64x8xf32>
    %c1_174 = arith.constant 1 : index
    %c2_175 = arith.constant 2 : index
    %c0_176 = arith.constant 0 : index
    %194 = vector.load %arg9[%c1_174, %c2_175, %c0_176] : memref<10x10x8xf32, #tpu.memory_space<vmem>>, vector<8x8x8xf32>
    %195 = vector.shape_cast %194 : vector<8x8x8xf32> to vector<64x8xf32>
    %196 = arith.truncf %195 : vector<64x8xf32> to vector<64x8xbf16>
    %c23 = arith.constant 23 : index
    %c0_177 = arith.constant 0 : index
    %c0_178 = arith.constant 0 : index
    %197 = vector.load %arg4[%c23, %c0_177, %c0_178] : memref<72x8x8xbf16, #tpu.memory_space<vmem>>, vector<1x8x8xbf16>
    %198 = vector.shape_cast %197 : vector<1x8x8xbf16> to vector<8x8xbf16>
    %cst_179 = arith.constant dense<0.000000e+00> : vector<64x8xf32>
    %199 = tpu.matmul %196, %198, %cst_179 {dimension_numbers = #tpu.dot_dimension_numbers<[1], [0], [0], [1], [0, 0, 1, 1], [], []>} : vector<64x8xbf16>, vector<8x8xbf16>, vector<64x8xf32> -> vector<64x8xf32>
    %200 = arith.addf %193, %199 : vector<64x8xf32>
    %c2_180 = arith.constant 2 : index
    %c0_181 = arith.constant 0 : index
    %c0_182 = arith.constant 0 : index
    %201 = vector.load %arg9[%c2_180, %c0_181, %c0_182] : memref<10x10x8xf32, #tpu.memory_space<vmem>>, vector<8x8x8xf32>
    %202 = vector.shape_cast %201 : vector<8x8x8xf32> to vector<64x8xf32>
    %203 = arith.truncf %202 : vector<64x8xf32> to vector<64x8xbf16>
    %c24 = arith.constant 24 : index
    %c0_183 = arith.constant 0 : index
    %c0_184 = arith.constant 0 : index
    %204 = vector.load %arg4[%c24, %c0_183, %c0_184] : memref<72x8x8xbf16, #tpu.memory_space<vmem>>, vector<1x8x8xbf16>
    %205 = vector.shape_cast %204 : vector<1x8x8xbf16> to vector<8x8xbf16>
    %cst_185 = arith.constant dense<0.000000e+00> : vector<64x8xf32>
    %206 = tpu.matmul %203, %205, %cst_185 {dimension_numbers = #tpu.dot_dimension_numbers<[1], [0], [0], [1], [0, 0, 1, 1], [], []>} : vector<64x8xbf16>, vector<8x8xbf16>, vector<64x8xf32> -> vector<64x8xf32>
    %207 = arith.addf %200, %206 : vector<64x8xf32>
    %c2_186 = arith.constant 2 : index
    %c1_187 = arith.constant 1 : index
    %c0_188 = arith.constant 0 : index
    %208 = vector.load %arg9[%c2_186, %c1_187, %c0_188] : memref<10x10x8xf32, #tpu.memory_space<vmem>>, vector<8x8x8xf32>
    %209 = vector.shape_cast %208 : vector<8x8x8xf32> to vector<64x8xf32>
    %210 = arith.truncf %209 : vector<64x8xf32> to vector<64x8xbf16>
    %c25 = arith.constant 25 : index
    %c0_189 = arith.constant 0 : index
    %c0_190 = arith.constant 0 : index
    %211 = vector.load %arg4[%c25, %c0_189, %c0_190] : memref<72x8x8xbf16, #tpu.memory_space<vmem>>, vector<1x8x8xbf16>
    %212 = vector.shape_cast %211 : vector<1x8x8xbf16> to vector<8x8xbf16>
    %cst_191 = arith.constant dense<0.000000e+00> : vector<64x8xf32>
    %213 = tpu.matmul %210, %212, %cst_191 {dimension_numbers = #tpu.dot_dimension_numbers<[1], [0], [0], [1], [0, 0, 1, 1], [], []>} : vector<64x8xbf16>, vector<8x8xbf16>, vector<64x8xf32> -> vector<64x8xf32>
    %214 = arith.addf %207, %213 : vector<64x8xf32>
    %c2_192 = arith.constant 2 : index
    %c2_193 = arith.constant 2 : index
    %c0_194 = arith.constant 0 : index
    %215 = vector.load %arg9[%c2_192, %c2_193, %c0_194] : memref<10x10x8xf32, #tpu.memory_space<vmem>>, vector<8x8x8xf32>
    %216 = vector.shape_cast %215 : vector<8x8x8xf32> to vector<64x8xf32>
    %217 = arith.truncf %216 : vector<64x8xf32> to vector<64x8xbf16>
    %c26 = arith.constant 26 : index
    %c0_195 = arith.constant 0 : index
    %c0_196 = arith.constant 0 : index
    %218 = vector.load %arg4[%c26, %c0_195, %c0_196] : memref<72x8x8xbf16, #tpu.memory_space<vmem>>, vector<1x8x8xbf16>
    %219 = vector.shape_cast %218 : vector<1x8x8xbf16> to vector<8x8xbf16>
    %cst_197 = arith.constant dense<0.000000e+00> : vector<64x8xf32>
    %220 = tpu.matmul %217, %219, %cst_197 {dimension_numbers = #tpu.dot_dimension_numbers<[1], [0], [0], [1], [0, 0, 1, 1], [], []>} : vector<64x8xbf16>, vector<8x8xbf16>, vector<64x8xf32> -> vector<64x8xf32>
    %221 = arith.addf %214, %220 : vector<64x8xf32>
    %222 = vector.broadcast %154 : vector<1x8xf32> to vector<64x8xf32>
    %223 = arith.addf %221, %222 : vector<64x8xf32>
    %224 = vector.shape_cast %223 : vector<64x8xf32> to vector<8x8x8xf32>
    %cst_198 = arith.constant 0.000000e+00 : f32
    %225 = vector.broadcast %cst_198 : f32 to vector<8x8x8xf32>
    %226 = arith.maximumf %224, %225 : vector<8x8x8xf32>
    %c1_199 = arith.constant 1 : index
    %c1_200 = arith.constant 1 : index
    %c0_201 = arith.constant 0 : index
    %227 = vector.load %arg9[%c1_199, %c1_200, %c0_201] : memref<10x10x8xf32, #tpu.memory_space<vmem>>, vector<8x8x8xf32>
    tpu.vector_store %arg9[%c1_199, %c1_200, %c0_201], %226 {strides = array<i32>} : memref<10x10x8xf32, #tpu.memory_space<vmem>>, vector<8x8x8xf32>,
    %cst_202 = arith.constant 0.000000e+00 : f32
    %228 = vector.broadcast %cst_202 : f32 to vector<64x8xf32>
    %c0_203 = arith.constant 0 : index
    %c0_204 = arith.constant 0 : index
    %c0_205 = arith.constant 0 : index
    %229 = vector.load %arg9[%c0_203, %c0_204, %c0_205] : memref<10x10x8xf32, #tpu.memory_space<vmem>>, vector<8x8x8xf32>
    %230 = vector.shape_cast %229 : vector<8x8x8xf32> to vector<64x8xf32>
    %231 = arith.truncf %230 : vector<64x8xf32> to vector<64x8xbf16>
    %c27 = arith.constant 27 : index
    %c0_206 = arith.constant 0 : index
    %c0_207 = arith.constant 0 : index
    %232 = vector.load %arg4[%c27, %c0_206, %c0_207] : memref<72x8x8xbf16, #tpu.memory_space<vmem>>, vector<1x8x8xbf16>
    %233 = vector.shape_cast %232 : vector<1x8x8xbf16> to vector<8x8xbf16>
    %cst_208 = arith.constant dense<0.000000e+00> : vector<64x8xf32>
    %234 = tpu.matmul %231, %233, %cst_208 {dimension_numbers = #tpu.dot_dimension_numbers<[1], [0], [0], [1], [0, 0, 1, 1], [], []>} : vector<64x8xbf16>, vector<8x8xbf16>, vector<64x8xf32> -> vector<64x8xf32>
    %235 = arith.addf %228, %234 : vector<64x8xf32>
    %c0_209 = arith.constant 0 : index
    %c1_210 = arith.constant 1 : index
    %c0_211 = arith.constant 0 : index
    %236 = vector.load %arg9[%c0_209, %c1_210, %c0_211] : memref<10x10x8xf32, #tpu.memory_space<vmem>>, vector<8x8x8xf32>
    %237 = vector.shape_cast %236 : vector<8x8x8xf32> to vector<64x8xf32>
    %238 = arith.truncf %237 : vector<64x8xf32> to vector<64x8xbf16>
    %c28 = arith.constant 28 : index
    %c0_212 = arith.constant 0 : index
    %c0_213 = arith.constant 0 : index
    %239 = vector.load %arg4[%c28, %c0_212, %c0_213] : memref<72x8x8xbf16, #tpu.memory_space<vmem>>, vector<1x8x8xbf16>
    %240 = vector.shape_cast %239 : vector<1x8x8xbf16> to vector<8x8xbf16>
    %cst_214 = arith.constant dense<0.000000e+00> : vector<64x8xf32>
    %241 = tpu.matmul %238, %240, %cst_214 {dimension_numbers = #tpu.dot_dimension_numbers<[1], [0], [0], [1], [0, 0, 1, 1], [], []>} : vector<64x8xbf16>, vector<8x8xbf16>, vector<64x8xf32> -> vector<64x8xf32>
    %242 = arith.addf %235, %241 : vector<64x8xf32>
    %c0_215 = arith.constant 0 : index
    %c2_216 = arith.constant 2 : index
    %c0_217 = arith.constant 0 : index
    %243 = vector.load %arg9[%c0_215, %c2_216, %c0_217] : memref<10x10x8xf32, #tpu.memory_space<vmem>>, vector<8x8x8xf32>
    %244 = vector.shape_cast %243 : vector<8x8x8xf32> to vector<64x8xf32>
    %245 = arith.truncf %244 : vector<64x8xf32> to vector<64x8xbf16>
    %c29 = arith.constant 29 : index
    %c0_218 = arith.constant 0 : index
    %c0_219 = arith.constant 0 : index
    %246 = vector.load %arg4[%c29, %c0_218, %c0_219] : memref<72x8x8xbf16, #tpu.memory_space<vmem>>, vector<1x8x8xbf16>
    %247 = vector.shape_cast %246 : vector<1x8x8xbf16> to vector<8x8xbf16>
    %cst_220 = arith.constant dense<0.000000e+00> : vector<64x8xf32>
    %248 = tpu.matmul %245, %247, %cst_220 {dimension_numbers = #tpu.dot_dimension_numbers<[1], [0], [0], [1], [0, 0, 1, 1], [], []>} : vector<64x8xbf16>, vector<8x8xbf16>, vector<64x8xf32> -> vector<64x8xf32>
    %249 = arith.addf %242, %248 : vector<64x8xf32>
    %c1_221 = arith.constant 1 : index
    %c0_222 = arith.constant 0 : index
    %c0_223 = arith.constant 0 : index
    %250 = vector.load %arg9[%c1_221, %c0_222, %c0_223] : memref<10x10x8xf32, #tpu.memory_space<vmem>>, vector<8x8x8xf32>
    %251 = vector.shape_cast %250 : vector<8x8x8xf32> to vector<64x8xf32>
    %252 = arith.truncf %251 : vector<64x8xf32> to vector<64x8xbf16>
    %c30 = arith.constant 30 : index
    %c0_224 = arith.constant 0 : index
    %c0_225 = arith.constant 0 : index
    %253 = vector.load %arg4[%c30, %c0_224, %c0_225] : memref<72x8x8xbf16, #tpu.memory_space<vmem>>, vector<1x8x8xbf16>
    %254 = vector.shape_cast %253 : vector<1x8x8xbf16> to vector<8x8xbf16>
    %cst_226 = arith.constant dense<0.000000e+00> : vector<64x8xf32>
    %255 = tpu.matmul %252, %254, %cst_226 {dimension_numbers = #tpu.dot_dimension_numbers<[1], [0], [0], [1], [0, 0, 1, 1], [], []>} : vector<64x8xbf16>, vector<8x8xbf16>, vector<64x8xf32> -> vector<64x8xf32>
    %256 = arith.addf %249, %255 : vector<64x8xf32>
    %c1_227 = arith.constant 1 : index
    %c1_228 = arith.constant 1 : index
    %c0_229 = arith.constant 0 : index
    %257 = vector.load %arg9[%c1_227, %c1_228, %c0_229] : memref<10x10x8xf32, #tpu.memory_space<vmem>>, vector<8x8x8xf32>
    %258 = vector.shape_cast %257 : vector<8x8x8xf32> to vector<64x8xf32>
    %259 = arith.truncf %258 : vector<64x8xf32> to vector<64x8xbf16>
    %c31 = arith.constant 31 : index
    %c0_230 = arith.constant 0 : index
    %c0_231 = arith.constant 0 : index
    %260 = vector.load %arg4[%c31, %c0_230, %c0_231] : memref<72x8x8xbf16, #tpu.memory_space<vmem>>, vector<1x8x8xbf16>
    %261 = vector.shape_cast %260 : vector<1x8x8xbf16> to vector<8x8xbf16>
    %cst_232 = arith.constant dense<0.000000e+00> : vector<64x8xf32>
    %262 = tpu.matmul %259, %261, %cst_232 {dimension_numbers = #tpu.dot_dimension_numbers<[1], [0], [0], [1], [0, 0, 1, 1], [], []>} : vector<64x8xbf16>, vector<8x8xbf16>, vector<64x8xf32> -> vector<64x8xf32>
    %263 = arith.addf %256, %262 : vector<64x8xf32>
    %c1_233 = arith.constant 1 : index
    %c2_234 = arith.constant 2 : index
    %c0_235 = arith.constant 0 : index
    %264 = vector.load %arg9[%c1_233, %c2_234, %c0_235] : memref<10x10x8xf32, #tpu.memory_space<vmem>>, vector<8x8x8xf32>
    %265 = vector.shape_cast %264 : vector<8x8x8xf32> to vector<64x8xf32>
    %266 = arith.truncf %265 : vector<64x8xf32> to vector<64x8xbf16>
    %c32 = arith.constant 32 : index
    %c0_236 = arith.constant 0 : index
    %c0_237 = arith.constant 0 : index
    %267 = vector.load %arg4[%c32, %c0_236, %c0_237] : memref<72x8x8xbf16, #tpu.memory_space<vmem>>, vector<1x8x8xbf16>
    %268 = vector.shape_cast %267 : vector<1x8x8xbf16> to vector<8x8xbf16>
    %cst_238 = arith.constant dense<0.000000e+00> : vector<64x8xf32>
    %269 = tpu.matmul %266, %268, %cst_238 {dimension_numbers = #tpu.dot_dimension_numbers<[1], [0], [0], [1], [0, 0, 1, 1], [], []>} : vector<64x8xbf16>, vector<8x8xbf16>, vector<64x8xf32> -> vector<64x8xf32>
    %270 = arith.addf %263, %269 : vector<64x8xf32>
    %c2_239 = arith.constant 2 : index
    %c0_240 = arith.constant 0 : index
    %c0_241 = arith.constant 0 : index
    %271 = vector.load %arg9[%c2_239, %c0_240, %c0_241] : memref<10x10x8xf32, #tpu.memory_space<vmem>>, vector<8x8x8xf32>
    %272 = vector.shape_cast %271 : vector<8x8x8xf32> to vector<64x8xf32>
    %273 = arith.truncf %272 : vector<64x8xf32> to vector<64x8xbf16>
    %c33 = arith.constant 33 : index
    %c0_242 = arith.constant 0 : index
    %c0_243 = arith.constant 0 : index
    %274 = vector.load %arg4[%c33, %c0_242, %c0_243] : memref<72x8x8xbf16, #tpu.memory_space<vmem>>, vector<1x8x8xbf16>
    %275 = vector.shape_cast %274 : vector<1x8x8xbf16> to vector<8x8xbf16>
    %cst_244 = arith.constant dense<0.000000e+00> : vector<64x8xf32>
    %276 = tpu.matmul %273, %275, %cst_244 {dimension_numbers = #tpu.dot_dimension_numbers<[1], [0], [0], [1], [0, 0, 1, 1], [], []>} : vector<64x8xbf16>, vector<8x8xbf16>, vector<64x8xf32> -> vector<64x8xf32>
    %277 = arith.addf %270, %276 : vector<64x8xf32>
    %c2_245 = arith.constant 2 : index
    %c1_246 = arith.constant 1 : index
    %c0_247 = arith.constant 0 : index
    %278 = vector.load %arg9[%c2_245, %c1_246, %c0_247] : memref<10x10x8xf32, #tpu.memory_space<vmem>>, vector<8x8x8xf32>
    %279 = vector.shape_cast %278 : vector<8x8x8xf32> to vector<64x8xf32>
    %280 = arith.truncf %279 : vector<64x8xf32> to vector<64x8xbf16>
    %c34 = arith.constant 34 : index
    %c0_248 = arith.constant 0 : index
    %c0_249 = arith.constant 0 : index
    %281 = vector.load %arg4[%c34, %c0_248, %c0_249] : memref<72x8x8xbf16, #tpu.memory_space<vmem>>, vector<1x8x8xbf16>
    %282 = vector.shape_cast %281 : vector<1x8x8xbf16> to vector<8x8xbf16>
    %cst_250 = arith.constant dense<0.000000e+00> : vector<64x8xf32>
    %283 = tpu.matmul %280, %282, %cst_250 {dimension_numbers = #tpu.dot_dimension_numbers<[1], [0], [0], [1], [0, 0, 1, 1], [], []>} : vector<64x8xbf16>, vector<8x8xbf16>, vector<64x8xf32> -> vector<64x8xf32>
    %284 = arith.addf %277, %283 : vector<64x8xf32>
    %c2_251 = arith.constant 2 : index
    %c2_252 = arith.constant 2 : index
    %c0_253 = arith.constant 0 : index
    %285 = vector.load %arg9[%c2_251, %c2_252, %c0_253] : memref<10x10x8xf32, #tpu.memory_space<vmem>>, vector<8x8x8xf32>
    %286 = vector.shape_cast %285 : vector<8x8x8xf32> to vector<64x8xf32>
    %287 = arith.truncf %286 : vector<64x8xf32> to vector<64x8xbf16>
    %c35 = arith.constant 35 : index
    %c0_254 = arith.constant 0 : index
    %c0_255 = arith.constant 0 : index
    %288 = vector.load %arg4[%c35, %c0_254, %c0_255] : memref<72x8x8xbf16, #tpu.memory_space<vmem>>, vector<1x8x8xbf16>
    %289 = vector.shape_cast %288 : vector<1x8x8xbf16> to vector<8x8xbf16>
    %cst_256 = arith.constant dense<0.000000e+00> : vector<64x8xf32>
    %290 = tpu.matmul %287, %289, %cst_256 {dimension_numbers = #tpu.dot_dimension_numbers<[1], [0], [0], [1], [0, 0, 1, 1], [], []>} : vector<64x8xbf16>, vector<8x8xbf16>, vector<64x8xf32> -> vector<64x8xf32>
    %291 = arith.addf %284, %290 : vector<64x8xf32>
    %292 = vector.shape_cast %291 : vector<64x8xf32> to vector<8x8x8xf32>
    %293 = arith.addf %292, %152 : vector<8x8x8xf32>
    %c1_257 = arith.constant 1 : index
    %c1_258 = arith.constant 1 : index
    %c0_259 = arith.constant 0 : index
    %294 = vector.load %arg9[%c1_257, %c1_258, %c0_259] : memref<10x10x8xf32, #tpu.memory_space<vmem>>, vector<8x8x8xf32>
    tpu.vector_store %arg9[%c1_257, %c1_258, %c0_259], %293 {strides = array<i32>} : memref<10x10x8xf32, #tpu.memory_space<vmem>>, vector<8x8x8xf32>,
    %cst_260 = arith.constant 0.000000e+00 : f32
    %295 = vector.broadcast %cst_260 : f32 to vector<64x16xf32>
    %c0_261 = arith.constant 0 : index
    %c0_262 = arith.constant 0 : index
    %c0_263 = arith.constant 0 : index
    %296 = vector.load %arg9[%c0_261, %c0_262, %c0_263] : memref<10x10x8xf32, #tpu.memory_space<vmem>>, vector<8x8x8xf32>
    %297 = vector.shape_cast %296 : vector<8x8x8xf32> to vector<64x8xf32>
    %298 = arith.truncf %297 : vector<64x8xf32> to vector<64x8xbf16>
    %c0_264 = arith.constant 0 : index
    %c0_265 = arith.constant 0 : index
    %c0_266 = arith.constant 0 : index
    %299 = vector.load %arg6[%c0_264, %c0_265, %c0_266] : memref<18x8x16xbf16, #tpu.memory_space<vmem>>, vector<1x8x16xbf16>
    %300 = vector.shape_cast %299 : vector<1x8x16xbf16> to vector<8x16xbf16>
    %cst_267 = arith.constant dense<0.000000e+00> : vector<64x16xf32>
    %301 = tpu.matmul %298, %300, %cst_267 {dimension_numbers = #tpu.dot_dimension_numbers<[1], [0], [0], [1], [0, 0, 1, 1], [], []>} : vector<64x8xbf16>, vector<8x16xbf16>, vector<64x16xf32> -> vector<64x16xf32>
    %302 = arith.addf %295, %301 : vector<64x16xf32>
    %c0_268 = arith.constant 0 : index
    %c1_269 = arith.constant 1 : index
    %c0_270 = arith.constant 0 : index
    %303 = vector.load %arg9[%c0_268, %c1_269, %c0_270] : memref<10x10x8xf32, #tpu.memory_space<vmem>>, vector<8x8x8xf32>
    %304 = vector.shape_cast %303 : vector<8x8x8xf32> to vector<64x8xf32>
    %305 = arith.truncf %304 : vector<64x8xf32> to vector<64x8xbf16>
    %c1_271 = arith.constant 1 : index
    %c0_272 = arith.constant 0 : index
    %c0_273 = arith.constant 0 : index
    %306 = vector.load %arg6[%c1_271, %c0_272, %c0_273] : memref<18x8x16xbf16, #tpu.memory_space<vmem>>, vector<1x8x16xbf16>
    %307 = vector.shape_cast %306 : vector<1x8x16xbf16> to vector<8x16xbf16>
    %cst_274 = arith.constant dense<0.000000e+00> : vector<64x16xf32>
    %308 = tpu.matmul %305, %307, %cst_274 {dimension_numbers = #tpu.dot_dimension_numbers<[1], [0], [0], [1], [0, 0, 1, 1], [], []>} : vector<64x8xbf16>, vector<8x16xbf16>, vector<64x16xf32> -> vector<64x16xf32>
    %309 = arith.addf %302, %308 : vector<64x16xf32>
    %c0_275 = arith.constant 0 : index
    %c2_276 = arith.constant 2 : index
    %c0_277 = arith.constant 0 : index
    %310 = vector.load %arg9[%c0_275, %c2_276, %c0_277] : memref<10x10x8xf32, #tpu.memory_space<vmem>>, vector<8x8x8xf32>
    %311 = vector.shape_cast %310 : vector<8x8x8xf32> to vector<64x8xf32>
    %312 = arith.truncf %311 : vector<64x8xf32> to vector<64x8xbf16>
    %c2_278 = arith.constant 2 : index
    %c0_279 = arith.constant 0 : index
    %c0_280 = arith.constant 0 : index
    %313 = vector.load %arg6[%c2_278, %c0_279, %c0_280] : memref<18x8x16xbf16, #tpu.memory_space<vmem>>, vector<1x8x16xbf16>
    %314 = vector.shape_cast %313 : vector<1x8x16xbf16> to vector<8x16xbf16>
    %cst_281 = arith.constant dense<0.000000e+00> : vector<64x16xf32>
    %315 = tpu.matmul %312, %314, %cst_281 {dimension_numbers = #tpu.dot_dimension_numbers<[1], [0], [0], [1], [0, 0, 1, 1], [], []>} : vector<64x8xbf16>, vector<8x16xbf16>, vector<64x16xf32> -> vector<64x16xf32>
    %316 = arith.addf %309, %315 : vector<64x16xf32>
    %c1_282 = arith.constant 1 : index
    %c0_283 = arith.constant 0 : index
    %c0_284 = arith.constant 0 : index
    %317 = vector.load %arg9[%c1_282, %c0_283, %c0_284] : memref<10x10x8xf32, #tpu.memory_space<vmem>>, vector<8x8x8xf32>
    %318 = vector.shape_cast %317 : vector<8x8x8xf32> to vector<64x8xf32>
    %319 = arith.truncf %318 : vector<64x8xf32> to vector<64x8xbf16>
    %c3_285 = arith.constant 3 : index
    %c0_286 = arith.constant 0 : index
    %c0_287 = arith.constant 0 : index
    %320 = vector.load %arg6[%c3_285, %c0_286, %c0_287] : memref<18x8x16xbf16, #tpu.memory_space<vmem>>, vector<1x8x16xbf16>
    %321 = vector.shape_cast %320 : vector<1x8x16xbf16> to vector<8x16xbf16>
    %cst_288 = arith.constant dense<0.000000e+00> : vector<64x16xf32>
    %322 = tpu.matmul %319, %321, %cst_288 {dimension_numbers = #tpu.dot_dimension_numbers<[1], [0], [0], [1], [0, 0, 1, 1], [], []>} : vector<64x8xbf16>, vector<8x16xbf16>, vector<64x16xf32> -> vector<64x16xf32>
    %323 = arith.addf %316, %322 : vector<64x16xf32>
    %c1_289 = arith.constant 1 : index
    %c1_290 = arith.constant 1 : index
    %c0_291 = arith.constant 0 : index
    %324 = vector.load %arg9[%c1_289, %c1_290, %c0_291] : memref<10x10x8xf32, #tpu.memory_space<vmem>>, vector<8x8x8xf32>
    %325 = vector.shape_cast %324 : vector<8x8x8xf32> to vector<64x8xf32>
    %326 = arith.truncf %325 : vector<64x8xf32> to vector<64x8xbf16>
    %c4_292 = arith.constant 4 : index
    %c0_293 = arith.constant 0 : index
    %c0_294 = arith.constant 0 : index
    %327 = vector.load %arg6[%c4_292, %c0_293, %c0_294] : memref<18x8x16xbf16, #tpu.memory_space<vmem>>, vector<1x8x16xbf16>
    %328 = vector.shape_cast %327 : vector<1x8x16xbf16> to vector<8x16xbf16>
    %cst_295 = arith.constant dense<0.000000e+00> : vector<64x16xf32>
    %329 = tpu.matmul %326, %328, %cst_295 {dimension_numbers = #tpu.dot_dimension_numbers<[1], [0], [0], [1], [0, 0, 1, 1], [], []>} : vector<64x8xbf16>, vector<8x16xbf16>, vector<64x16xf32> -> vector<64x16xf32>
    %330 = arith.addf %323, %329 : vector<64x16xf32>
    %c1_296 = arith.constant 1 : index
    %c2_297 = arith.constant 2 : index
    %c0_298 = arith.constant 0 : index
    %331 = vector.load %arg9[%c1_296, %c2_297, %c0_298] : memref<10x10x8xf32, #tpu.memory_space<vmem>>, vector<8x8x8xf32>
    %332 = vector.shape_cast %331 : vector<8x8x8xf32> to vector<64x8xf32>
    %333 = arith.truncf %332 : vector<64x8xf32> to vector<64x8xbf16>
    %c5_299 = arith.constant 5 : index
    %c0_300 = arith.constant 0 : index
    %c0_301 = arith.constant 0 : index
    %334 = vector.load %arg6[%c5_299, %c0_300, %c0_301] : memref<18x8x16xbf16, #tpu.memory_space<vmem>>, vector<1x8x16xbf16>
    %335 = vector.shape_cast %334 : vector<1x8x16xbf16> to vector<8x16xbf16>
    %cst_302 = arith.constant dense<0.000000e+00> : vector<64x16xf32>
    %336 = tpu.matmul %333, %335, %cst_302 {dimension_numbers = #tpu.dot_dimension_numbers<[1], [0], [0], [1], [0, 0, 1, 1], [], []>} : vector<64x8xbf16>, vector<8x16xbf16>, vector<64x16xf32> -> vector<64x16xf32>
    %337 = arith.addf %330, %336 : vector<64x16xf32>
    %c2_303 = arith.constant 2 : index
    %c0_304 = arith.constant 0 : index
    %c0_305 = arith.constant 0 : index
    %338 = vector.load %arg9[%c2_303, %c0_304, %c0_305] : memref<10x10x8xf32, #tpu.memory_space<vmem>>, vector<8x8x8xf32>
    %339 = vector.shape_cast %338 : vector<8x8x8xf32> to vector<64x8xf32>
    %340 = arith.truncf %339 : vector<64x8xf32> to vector<64x8xbf16>
    %c6_306 = arith.constant 6 : index
    %c0_307 = arith.constant 0 : index
    %c0_308 = arith.constant 0 : index
    %341 = vector.load %arg6[%c6_306, %c0_307, %c0_308] : memref<18x8x16xbf16, #tpu.memory_space<vmem>>, vector<1x8x16xbf16>
    %342 = vector.shape_cast %341 : vector<1x8x16xbf16> to vector<8x16xbf16>
    %cst_309 = arith.constant dense<0.000000e+00> : vector<64x16xf32>
    %343 = tpu.matmul %340, %342, %cst_309 {dimension_numbers = #tpu.dot_dimension_numbers<[1], [0], [0], [1], [0, 0, 1, 1], [], []>} : vector<64x8xbf16>, vector<8x16xbf16>, vector<64x16xf32> -> vector<64x16xf32>
    %344 = arith.addf %337, %343 : vector<64x16xf32>
    %c2_310 = arith.constant 2 : index
    %c1_311 = arith.constant 1 : index
    %c0_312 = arith.constant 0 : index
    %345 = vector.load %arg9[%c2_310, %c1_311, %c0_312] : memref<10x10x8xf32, #tpu.memory_space<vmem>>, vector<8x8x8xf32>
    %346 = vector.shape_cast %345 : vector<8x8x8xf32> to vector<64x8xf32>
    %347 = arith.truncf %346 : vector<64x8xf32> to vector<64x8xbf16>
    %c7_313 = arith.constant 7 : index
    %c0_314 = arith.constant 0 : index
    %c0_315 = arith.constant 0 : index
    %348 = vector.load %arg6[%c7_313, %c0_314, %c0_315] : memref<18x8x16xbf16, #tpu.memory_space<vmem>>, vector<1x8x16xbf16>
    %349 = vector.shape_cast %348 : vector<1x8x16xbf16> to vector<8x16xbf16>
    %cst_316 = arith.constant dense<0.000000e+00> : vector<64x16xf32>
    %350 = tpu.matmul %347, %349, %cst_316 {dimension_numbers = #tpu.dot_dimension_numbers<[1], [0], [0], [1], [0, 0, 1, 1], [], []>} : vector<64x8xbf16>, vector<8x16xbf16>, vector<64x16xf32> -> vector<64x16xf32>
    %351 = arith.addf %344, %350 : vector<64x16xf32>
    %c2_317 = arith.constant 2 : index
    %c2_318 = arith.constant 2 : index
    %c0_319 = arith.constant 0 : index
    %352 = vector.load %arg9[%c2_317, %c2_318, %c0_319] : memref<10x10x8xf32, #tpu.memory_space<vmem>>, vector<8x8x8xf32>
    %353 = vector.shape_cast %352 : vector<8x8x8xf32> to vector<64x8xf32>
    %354 = arith.truncf %353 : vector<64x8xf32> to vector<64x8xbf16>
    %c8_320 = arith.constant 8 : index
    %c0_321 = arith.constant 0 : index
    %c0_322 = arith.constant 0 : index
    %355 = vector.load %arg6[%c8_320, %c0_321, %c0_322] : memref<18x8x16xbf16, #tpu.memory_space<vmem>>, vector<1x8x16xbf16>
    %356 = vector.shape_cast %355 : vector<1x8x16xbf16> to vector<8x16xbf16>
    %cst_323 = arith.constant dense<0.000000e+00> : vector<64x16xf32>
    %357 = tpu.matmul %354, %356, %cst_323 {dimension_numbers = #tpu.dot_dimension_numbers<[1], [0], [0], [1], [0, 0, 1, 1], [], []>} : vector<64x8xbf16>, vector<8x16xbf16>, vector<64x16xf32> -> vector<64x16xf32>
    %358 = arith.addf %351, %357 : vector<64x16xf32>
    %359 = vector.shape_cast %358 : vector<64x16xf32> to vector<8x8x16xf32>
    %c0_324 = arith.constant 0 : index
    %c0_325 = arith.constant 0 : index
    %c0_326 = arith.constant 0 : index
    %c0_327 = arith.constant 0 : index
    %360 = vector.load %arg2[%c0_324, %c0_325, %c0_326, %c0_327] : memref<1x8x8x16xf32, #tpu.memory_space<vmem>>, vector<1x8x8x16xf32>
    %361 = vector.shape_cast %360 : vector<1x8x8x16xf32> to vector<8x8x16xf32>
    %362 = vector.shape_cast %361 : vector<8x8x16xf32> to vector<64x16xf32>
    %363 = arith.truncf %362 : vector<64x16xf32> to vector<64x16xbf16>
    %c1_328 = arith.constant 1 : index
    %c0_329 = arith.constant 0 : index
    %c0_330 = arith.constant 0 : index
    %364 = vector.load %arg3[%c1_328, %c0_329, %c0_330] : memref<2x16x8xbf16, #tpu.memory_space<vmem>>, vector<1x16x8xbf16>
    %365 = vector.shape_cast %364 : vector<1x16x8xbf16> to vector<16x8xbf16>
    %cst_331 = arith.constant dense<0.000000e+00> : vector<64x8xf32>
    %366 = tpu.matmul %363, %365, %cst_331 {dimension_numbers = #tpu.dot_dimension_numbers<[1], [0], [0], [1], [0, 0, 1, 1], [], []>} : vector<64x16xbf16>, vector<16x8xbf16>, vector<64x8xf32> -> vector<64x8xf32>
    %367 = vector.shape_cast %366 : vector<64x8xf32> to vector<8x8x8xf32>
    %c2_332 = arith.constant 2 : index
    %c0_333 = arith.constant 0 : index
    %c0_334 = arith.constant 0 : index
    %368 = vector.load %arg5[%c2_332, %c0_333, %c0_334] : memref<4x1x8xf32, #tpu.memory_space<vmem>>, vector<1x1x8xf32>
    %369 = vector.shape_cast %368 : vector<1x1x8xf32> to vector<1x8xf32>
    %cst_335 = arith.constant 0.000000e+00 : f32
    %370 = vector.broadcast %cst_335 : f32 to vector<8x8x8xf32>
    %371 = arith.maximumf %367, %370 : vector<8x8x8xf32>
    %c1_336 = arith.constant 1 : index
    %c1_337 = arith.constant 1 : index
    %c0_338 = arith.constant 0 : index
    %372 = vector.load %arg9[%c1_336, %c1_337, %c0_338] : memref<10x10x8xf32, #tpu.memory_space<vmem>>, vector<8x8x8xf32>
    tpu.vector_store %arg9[%c1_336, %c1_337, %c0_338], %371 {strides = array<i32>} : memref<10x10x8xf32, #tpu.memory_space<vmem>>, vector<8x8x8xf32>,
    %cst_339 = arith.constant 0.000000e+00 : f32
    %373 = vector.broadcast %cst_339 : f32 to vector<64x8xf32>
    %c0_340 = arith.constant 0 : index
    %c0_341 = arith.constant 0 : index
    %c0_342 = arith.constant 0 : index
    %374 = vector.load %arg9[%c0_340, %c0_341, %c0_342] : memref<10x10x8xf32, #tpu.memory_space<vmem>>, vector<8x8x8xf32>
    %375 = vector.shape_cast %374 : vector<8x8x8xf32> to vector<64x8xf32>
    %376 = arith.truncf %375 : vector<64x8xf32> to vector<64x8xbf16>
    %c36 = arith.constant 36 : index
    %c0_343 = arith.constant 0 : index
    %c0_344 = arith.constant 0 : index
    %377 = vector.load %arg4[%c36, %c0_343, %c0_344] : memref<72x8x8xbf16, #tpu.memory_space<vmem>>, vector<1x8x8xbf16>
    %378 = vector.shape_cast %377 : vector<1x8x8xbf16> to vector<8x8xbf16>
    %cst_345 = arith.constant dense<0.000000e+00> : vector<64x8xf32>
    %379 = tpu.matmul %376, %378, %cst_345 {dimension_numbers = #tpu.dot_dimension_numbers<[1], [0], [0], [1], [0, 0, 1, 1], [], []>} : vector<64x8xbf16>, vector<8x8xbf16>, vector<64x8xf32> -> vector<64x8xf32>
    %380 = arith.addf %373, %379 : vector<64x8xf32>
    %c0_346 = arith.constant 0 : index
    %c1_347 = arith.constant 1 : index
    %c0_348 = arith.constant 0 : index
    %381 = vector.load %arg9[%c0_346, %c1_347, %c0_348] : memref<10x10x8xf32, #tpu.memory_space<vmem>>, vector<8x8x8xf32>
    %382 = vector.shape_cast %381 : vector<8x8x8xf32> to vector<64x8xf32>
    %383 = arith.truncf %382 : vector<64x8xf32> to vector<64x8xbf16>
    %c37 = arith.constant 37 : index
    %c0_349 = arith.constant 0 : index
    %c0_350 = arith.constant 0 : index
    %384 = vector.load %arg4[%c37, %c0_349, %c0_350] : memref<72x8x8xbf16, #tpu.memory_space<vmem>>, vector<1x8x8xbf16>
    %385 = vector.shape_cast %384 : vector<1x8x8xbf16> to vector<8x8xbf16>
    %cst_351 = arith.constant dense<0.000000e+00> : vector<64x8xf32>
    %386 = tpu.matmul %383, %385, %cst_351 {dimension_numbers = #tpu.dot_dimension_numbers<[1], [0], [0], [1], [0, 0, 1, 1], [], []>} : vector<64x8xbf16>, vector<8x8xbf16>, vector<64x8xf32> -> vector<64x8xf32>
    %387 = arith.addf %380, %386 : vector<64x8xf32>
    %c0_352 = arith.constant 0 : index
    %c2_353 = arith.constant 2 : index
    %c0_354 = arith.constant 0 : index
    %388 = vector.load %arg9[%c0_352, %c2_353, %c0_354] : memref<10x10x8xf32, #tpu.memory_space<vmem>>, vector<8x8x8xf32>
    %389 = vector.shape_cast %388 : vector<8x8x8xf32> to vector<64x8xf32>
    %390 = arith.truncf %389 : vector<64x8xf32> to vector<64x8xbf16>
    %c38 = arith.constant 38 : index
    %c0_355 = arith.constant 0 : index
    %c0_356 = arith.constant 0 : index
    %391 = vector.load %arg4[%c38, %c0_355, %c0_356] : memref<72x8x8xbf16, #tpu.memory_space<vmem>>, vector<1x8x8xbf16>
    %392 = vector.shape_cast %391 : vector<1x8x8xbf16> to vector<8x8xbf16>
    %cst_357 = arith.constant dense<0.000000e+00> : vector<64x8xf32>
    %393 = tpu.matmul %390, %392, %cst_357 {dimension_numbers = #tpu.dot_dimension_numbers<[1], [0], [0], [1], [0, 0, 1, 1], [], []>} : vector<64x8xbf16>, vector<8x8xbf16>, vector<64x8xf32> -> vector<64x8xf32>
    %394 = arith.addf %387, %393 : vector<64x8xf32>
    %c1_358 = arith.constant 1 : index
    %c0_359 = arith.constant 0 : index
    %c0_360 = arith.constant 0 : index
    %395 = vector.load %arg9[%c1_358, %c0_359, %c0_360] : memref<10x10x8xf32, #tpu.memory_space<vmem>>, vector<8x8x8xf32>
    %396 = vector.shape_cast %395 : vector<8x8x8xf32> to vector<64x8xf32>
    %397 = arith.truncf %396 : vector<64x8xf32> to vector<64x8xbf16>
    %c39 = arith.constant 39 : index
    %c0_361 = arith.constant 0 : index
    %c0_362 = arith.constant 0 : index
    %398 = vector.load %arg4[%c39, %c0_361, %c0_362] : memref<72x8x8xbf16, #tpu.memory_space<vmem>>, vector<1x8x8xbf16>
    %399 = vector.shape_cast %398 : vector<1x8x8xbf16> to vector<8x8xbf16>
    %cst_363 = arith.constant dense<0.000000e+00> : vector<64x8xf32>
    %400 = tpu.matmul %397, %399, %cst_363 {dimension_numbers = #tpu.dot_dimension_numbers<[1], [0], [0], [1], [0, 0, 1, 1], [], []>} : vector<64x8xbf16>, vector<8x8xbf16>, vector<64x8xf32> -> vector<64x8xf32>
    %401 = arith.addf %394, %400 : vector<64x8xf32>
    %c1_364 = arith.constant 1 : index
    %c1_365 = arith.constant 1 : index
    %c0_366 = arith.constant 0 : index
    %402 = vector.load %arg9[%c1_364, %c1_365, %c0_366] : memref<10x10x8xf32, #tpu.memory_space<vmem>>, vector<8x8x8xf32>
    %403 = vector.shape_cast %402 : vector<8x8x8xf32> to vector<64x8xf32>
    %404 = arith.truncf %403 : vector<64x8xf32> to vector<64x8xbf16>
    %c40 = arith.constant 40 : index
    %c0_367 = arith.constant 0 : index
    %c0_368 = arith.constant 0 : index
    %405 = vector.load %arg4[%c40, %c0_367, %c0_368] : memref<72x8x8xbf16, #tpu.memory_space<vmem>>, vector<1x8x8xbf16>
    %406 = vector.shape_cast %405 : vector<1x8x8xbf16> to vector<8x8xbf16>
    %cst_369 = arith.constant dense<0.000000e+00> : vector<64x8xf32>
    %407 = tpu.matmul %404, %406, %cst_369 {dimension_numbers = #tpu.dot_dimension_numbers<[1], [0], [0], [1], [0, 0, 1, 1], [], []>} : vector<64x8xbf16>, vector<8x8xbf16>, vector<64x8xf32> -> vector<64x8xf32>
    %408 = arith.addf %401, %407 : vector<64x8xf32>
    %c1_370 = arith.constant 1 : index
    %c2_371 = arith.constant 2 : index
    %c0_372 = arith.constant 0 : index
    %409 = vector.load %arg9[%c1_370, %c2_371, %c0_372] : memref<10x10x8xf32, #tpu.memory_space<vmem>>, vector<8x8x8xf32>
    %410 = vector.shape_cast %409 : vector<8x8x8xf32> to vector<64x8xf32>
    %411 = arith.truncf %410 : vector<64x8xf32> to vector<64x8xbf16>
    %c41 = arith.constant 41 : index
    %c0_373 = arith.constant 0 : index
    %c0_374 = arith.constant 0 : index
    %412 = vector.load %arg4[%c41, %c0_373, %c0_374] : memref<72x8x8xbf16, #tpu.memory_space<vmem>>, vector<1x8x8xbf16>
    %413 = vector.shape_cast %412 : vector<1x8x8xbf16> to vector<8x8xbf16>
    %cst_375 = arith.constant dense<0.000000e+00> : vector<64x8xf32>
    %414 = tpu.matmul %411, %413, %cst_375 {dimension_numbers = #tpu.dot_dimension_numbers<[1], [0], [0], [1], [0, 0, 1, 1], [], []>} : vector<64x8xbf16>, vector<8x8xbf16>, vector<64x8xf32> -> vector<64x8xf32>
    %415 = arith.addf %408, %414 : vector<64x8xf32>
    %c2_376 = arith.constant 2 : index
    %c0_377 = arith.constant 0 : index
    %c0_378 = arith.constant 0 : index
    %416 = vector.load %arg9[%c2_376, %c0_377, %c0_378] : memref<10x10x8xf32, #tpu.memory_space<vmem>>, vector<8x8x8xf32>
    %417 = vector.shape_cast %416 : vector<8x8x8xf32> to vector<64x8xf32>
    %418 = arith.truncf %417 : vector<64x8xf32> to vector<64x8xbf16>
    %c42 = arith.constant 42 : index
    %c0_379 = arith.constant 0 : index
    %c0_380 = arith.constant 0 : index
    %419 = vector.load %arg4[%c42, %c0_379, %c0_380] : memref<72x8x8xbf16, #tpu.memory_space<vmem>>, vector<1x8x8xbf16>
    %420 = vector.shape_cast %419 : vector<1x8x8xbf16> to vector<8x8xbf16>
    %cst_381 = arith.constant dense<0.000000e+00> : vector<64x8xf32>
    %421 = tpu.matmul %418, %420, %cst_381 {dimension_numbers = #tpu.dot_dimension_numbers<[1], [0], [0], [1], [0, 0, 1, 1], [], []>} : vector<64x8xbf16>, vector<8x8xbf16>, vector<64x8xf32> -> vector<64x8xf32>
    %422 = arith.addf %415, %421 : vector<64x8xf32>
    %c2_382 = arith.constant 2 : index
    %c1_383 = arith.constant 1 : index
    %c0_384 = arith.constant 0 : index
    %423 = vector.load %arg9[%c2_382, %c1_383, %c0_384] : memref<10x10x8xf32, #tpu.memory_space<vmem>>, vector<8x8x8xf32>
    %424 = vector.shape_cast %423 : vector<8x8x8xf32> to vector<64x8xf32>
    %425 = arith.truncf %424 : vector<64x8xf32> to vector<64x8xbf16>
    %c43 = arith.constant 43 : index
    %c0_385 = arith.constant 0 : index
    %c0_386 = arith.constant 0 : index
    %426 = vector.load %arg4[%c43, %c0_385, %c0_386] : memref<72x8x8xbf16, #tpu.memory_space<vmem>>, vector<1x8x8xbf16>
    %427 = vector.shape_cast %426 : vector<1x8x8xbf16> to vector<8x8xbf16>
    %cst_387 = arith.constant dense<0.000000e+00> : vector<64x8xf32>
    %428 = tpu.matmul %425, %427, %cst_387 {dimension_numbers = #tpu.dot_dimension_numbers<[1], [0], [0], [1], [0, 0, 1, 1], [], []>} : vector<64x8xbf16>, vector<8x8xbf16>, vector<64x8xf32> -> vector<64x8xf32>
    %429 = arith.addf %422, %428 : vector<64x8xf32>
    %c2_388 = arith.constant 2 : index
    %c2_389 = arith.constant 2 : index
    %c0_390 = arith.constant 0 : index
    %430 = vector.load %arg9[%c2_388, %c2_389, %c0_390] : memref<10x10x8xf32, #tpu.memory_space<vmem>>, vector<8x8x8xf32>
    %431 = vector.shape_cast %430 : vector<8x8x8xf32> to vector<64x8xf32>
    %432 = arith.truncf %431 : vector<64x8xf32> to vector<64x8xbf16>
    %c44 = arith.constant 44 : index
    %c0_391 = arith.constant 0 : index
    %c0_392 = arith.constant 0 : index
    %433 = vector.load %arg4[%c44, %c0_391, %c0_392] : memref<72x8x8xbf16, #tpu.memory_space<vmem>>, vector<1x8x8xbf16>
    %434 = vector.shape_cast %433 : vector<1x8x8xbf16> to vector<8x8xbf16>
    %cst_393 = arith.constant dense<0.000000e+00> : vector<64x8xf32>
    %435 = tpu.matmul %432, %434, %cst_393 {dimension_numbers = #tpu.dot_dimension_numbers<[1], [0], [0], [1], [0, 0, 1, 1], [], []>} : vector<64x8xbf16>, vector<8x8xbf16>, vector<64x8xf32> -> vector<64x8xf32>
    %436 = arith.addf %429, %435 : vector<64x8xf32>
    %437 = vector.broadcast %369 : vector<1x8xf32> to vector<64x8xf32>
    %438 = arith.addf %436, %437 : vector<64x8xf32>
    %439 = vector.shape_cast %438 : vector<64x8xf32> to vector<8x8x8xf32>
    %cst_394 = arith.constant 0.000000e+00 : f32
    %440 = vector.broadcast %cst_394 : f32 to vector<8x8x8xf32>
    %441 = arith.maximumf %439, %440 : vector<8x8x8xf32>
    %c1_395 = arith.constant 1 : index
    %c1_396 = arith.constant 1 : index
    %c0_397 = arith.constant 0 : index
    %442 = vector.load %arg9[%c1_395, %c1_396, %c0_397] : memref<10x10x8xf32, #tpu.memory_space<vmem>>, vector<8x8x8xf32>
    tpu.vector_store %arg9[%c1_395, %c1_396, %c0_397], %441 {strides = array<i32>} : memref<10x10x8xf32, #tpu.memory_space<vmem>>, vector<8x8x8xf32>,
    %cst_398 = arith.constant 0.000000e+00 : f32
    %443 = vector.broadcast %cst_398 : f32 to vector<64x8xf32>
    %c0_399 = arith.constant 0 : index
    %c0_400 = arith.constant 0 : index
    %c0_401 = arith.constant 0 : index
    %444 = vector.load %arg9[%c0_399, %c0_400, %c0_401] : memref<10x10x8xf32, #tpu.memory_space<vmem>>, vector<8x8x8xf32>
    %445 = vector.shape_cast %444 : vector<8x8x8xf32> to vector<64x8xf32>
    %446 = arith.truncf %445 : vector<64x8xf32> to vector<64x8xbf16>
    %c45 = arith.constant 45 : index
    %c0_402 = arith.constant 0 : index
    %c0_403 = arith.constant 0 : index
    %447 = vector.load %arg4[%c45, %c0_402, %c0_403] : memref<72x8x8xbf16, #tpu.memory_space<vmem>>, vector<1x8x8xbf16>
    %448 = vector.shape_cast %447 : vector<1x8x8xbf16> to vector<8x8xbf16>
    %cst_404 = arith.constant dense<0.000000e+00> : vector<64x8xf32>
    %449 = tpu.matmul %446, %448, %cst_404 {dimension_numbers = #tpu.dot_dimension_numbers<[1], [0], [0], [1], [0, 0, 1, 1], [], []>} : vector<64x8xbf16>, vector<8x8xbf16>, vector<64x8xf32> -> vector<64x8xf32>
    %450 = arith.addf %443, %449 : vector<64x8xf32>
    %c0_405 = arith.constant 0 : index
    %c1_406 = arith.constant 1 : index
    %c0_407 = arith.constant 0 : index
    %451 = vector.load %arg9[%c0_405, %c1_406, %c0_407] : memref<10x10x8xf32, #tpu.memory_space<vmem>>, vector<8x8x8xf32>
    %452 = vector.shape_cast %451 : vector<8x8x8xf32> to vector<64x8xf32>
    %453 = arith.truncf %452 : vector<64x8xf32> to vector<64x8xbf16>
    %c46 = arith.constant 46 : index
    %c0_408 = arith.constant 0 : index
    %c0_409 = arith.constant 0 : index
    %454 = vector.load %arg4[%c46, %c0_408, %c0_409] : memref<72x8x8xbf16, #tpu.memory_space<vmem>>, vector<1x8x8xbf16>
    %455 = vector.shape_cast %454 : vector<1x8x8xbf16> to vector<8x8xbf16>
    %cst_410 = arith.constant dense<0.000000e+00> : vector<64x8xf32>
    %456 = tpu.matmul %453, %455, %cst_410 {dimension_numbers = #tpu.dot_dimension_numbers<[1], [0], [0], [1], [0, 0, 1, 1], [], []>} : vector<64x8xbf16>, vector<8x8xbf16>, vector<64x8xf32> -> vector<64x8xf32>
    %457 = arith.addf %450, %456 : vector<64x8xf32>
    %c0_411 = arith.constant 0 : index
    %c2_412 = arith.constant 2 : index
    %c0_413 = arith.constant 0 : index
    %458 = vector.load %arg9[%c0_411, %c2_412, %c0_413] : memref<10x10x8xf32, #tpu.memory_space<vmem>>, vector<8x8x8xf32>
    %459 = vector.shape_cast %458 : vector<8x8x8xf32> to vector<64x8xf32>
    %460 = arith.truncf %459 : vector<64x8xf32> to vector<64x8xbf16>
    %c47 = arith.constant 47 : index
    %c0_414 = arith.constant 0 : index
    %c0_415 = arith.constant 0 : index
    %461 = vector.load %arg4[%c47, %c0_414, %c0_415] : memref<72x8x8xbf16, #tpu.memory_space<vmem>>, vector<1x8x8xbf16>
    %462 = vector.shape_cast %461 : vector<1x8x8xbf16> to vector<8x8xbf16>
    %cst_416 = arith.constant dense<0.000000e+00> : vector<64x8xf32>
    %463 = tpu.matmul %460, %462, %cst_416 {dimension_numbers = #tpu.dot_dimension_numbers<[1], [0], [0], [1], [0, 0, 1, 1], [], []>} : vector<64x8xbf16>, vector<8x8xbf16>, vector<64x8xf32> -> vector<64x8xf32>
    %464 = arith.addf %457, %463 : vector<64x8xf32>
    %c1_417 = arith.constant 1 : index
    %c0_418 = arith.constant 0 : index
    %c0_419 = arith.constant 0 : index
    %465 = vector.load %arg9[%c1_417, %c0_418, %c0_419] : memref<10x10x8xf32, #tpu.memory_space<vmem>>, vector<8x8x8xf32>
    %466 = vector.shape_cast %465 : vector<8x8x8xf32> to vector<64x8xf32>
    %467 = arith.truncf %466 : vector<64x8xf32> to vector<64x8xbf16>
    %c48 = arith.constant 48 : index
    %c0_420 = arith.constant 0 : index
    %c0_421 = arith.constant 0 : index
    %468 = vector.load %arg4[%c48, %c0_420, %c0_421] : memref<72x8x8xbf16, #tpu.memory_space<vmem>>, vector<1x8x8xbf16>
    %469 = vector.shape_cast %468 : vector<1x8x8xbf16> to vector<8x8xbf16>
    %cst_422 = arith.constant dense<0.000000e+00> : vector<64x8xf32>
    %470 = tpu.matmul %467, %469, %cst_422 {dimension_numbers = #tpu.dot_dimension_numbers<[1], [0], [0], [1], [0, 0, 1, 1], [], []>} : vector<64x8xbf16>, vector<8x8xbf16>, vector<64x8xf32> -> vector<64x8xf32>
    %471 = arith.addf %464, %470 : vector<64x8xf32>
    %c1_423 = arith.constant 1 : index
    %c1_424 = arith.constant 1 : index
    %c0_425 = arith.constant 0 : index
    %472 = vector.load %arg9[%c1_423, %c1_424, %c0_425] : memref<10x10x8xf32, #tpu.memory_space<vmem>>, vector<8x8x8xf32>
    %473 = vector.shape_cast %472 : vector<8x8x8xf32> to vector<64x8xf32>
    %474 = arith.truncf %473 : vector<64x8xf32> to vector<64x8xbf16>
    %c49 = arith.constant 49 : index
    %c0_426 = arith.constant 0 : index
    %c0_427 = arith.constant 0 : index
    %475 = vector.load %arg4[%c49, %c0_426, %c0_427] : memref<72x8x8xbf16, #tpu.memory_space<vmem>>, vector<1x8x8xbf16>
    %476 = vector.shape_cast %475 : vector<1x8x8xbf16> to vector<8x8xbf16>
    %cst_428 = arith.constant dense<0.000000e+00> : vector<64x8xf32>
    %477 = tpu.matmul %474, %476, %cst_428 {dimension_numbers = #tpu.dot_dimension_numbers<[1], [0], [0], [1], [0, 0, 1, 1], [], []>} : vector<64x8xbf16>, vector<8x8xbf16>, vector<64x8xf32> -> vector<64x8xf32>
    %478 = arith.addf %471, %477 : vector<64x8xf32>
    %c1_429 = arith.constant 1 : index
    %c2_430 = arith.constant 2 : index
    %c0_431 = arith.constant 0 : index
    %479 = vector.load %arg9[%c1_429, %c2_430, %c0_431] : memref<10x10x8xf32, #tpu.memory_space<vmem>>, vector<8x8x8xf32>
    %480 = vector.shape_cast %479 : vector<8x8x8xf32> to vector<64x8xf32>
    %481 = arith.truncf %480 : vector<64x8xf32> to vector<64x8xbf16>
    %c50 = arith.constant 50 : index
    %c0_432 = arith.constant 0 : index
    %c0_433 = arith.constant 0 : index
    %482 = vector.load %arg4[%c50, %c0_432, %c0_433] : memref<72x8x8xbf16, #tpu.memory_space<vmem>>, vector<1x8x8xbf16>
    %483 = vector.shape_cast %482 : vector<1x8x8xbf16> to vector<8x8xbf16>
    %cst_434 = arith.constant dense<0.000000e+00> : vector<64x8xf32>
    %484 = tpu.matmul %481, %483, %cst_434 {dimension_numbers = #tpu.dot_dimension_numbers<[1], [0], [0], [1], [0, 0, 1, 1], [], []>} : vector<64x8xbf16>, vector<8x8xbf16>, vector<64x8xf32> -> vector<64x8xf32>
    %485 = arith.addf %478, %484 : vector<64x8xf32>
    %c2_435 = arith.constant 2 : index
    %c0_436 = arith.constant 0 : index
    %c0_437 = arith.constant 0 : index
    %486 = vector.load %arg9[%c2_435, %c0_436, %c0_437] : memref<10x10x8xf32, #tpu.memory_space<vmem>>, vector<8x8x8xf32>
    %487 = vector.shape_cast %486 : vector<8x8x8xf32> to vector<64x8xf32>
    %488 = arith.truncf %487 : vector<64x8xf32> to vector<64x8xbf16>
    %c51 = arith.constant 51 : index
    %c0_438 = arith.constant 0 : index
    %c0_439 = arith.constant 0 : index
    %489 = vector.load %arg4[%c51, %c0_438, %c0_439] : memref<72x8x8xbf16, #tpu.memory_space<vmem>>, vector<1x8x8xbf16>
    %490 = vector.shape_cast %489 : vector<1x8x8xbf16> to vector<8x8xbf16>
    %cst_440 = arith.constant dense<0.000000e+00> : vector<64x8xf32>
    %491 = tpu.matmul %488, %490, %cst_440 {dimension_numbers = #tpu.dot_dimension_numbers<[1], [0], [0], [1], [0, 0, 1, 1], [], []>} : vector<64x8xbf16>, vector<8x8xbf16>, vector<64x8xf32> -> vector<64x8xf32>
    %492 = arith.addf %485, %491 : vector<64x8xf32>
    %c2_441 = arith.constant 2 : index
    %c1_442 = arith.constant 1 : index
    %c0_443 = arith.constant 0 : index
    %493 = vector.load %arg9[%c2_441, %c1_442, %c0_443] : memref<10x10x8xf32, #tpu.memory_space<vmem>>, vector<8x8x8xf32>
    %494 = vector.shape_cast %493 : vector<8x8x8xf32> to vector<64x8xf32>
    %495 = arith.truncf %494 : vector<64x8xf32> to vector<64x8xbf16>
    %c52 = arith.constant 52 : index
    %c0_444 = arith.constant 0 : index
    %c0_445 = arith.constant 0 : index
    %496 = vector.load %arg4[%c52, %c0_444, %c0_445] : memref<72x8x8xbf16, #tpu.memory_space<vmem>>, vector<1x8x8xbf16>
    %497 = vector.shape_cast %496 : vector<1x8x8xbf16> to vector<8x8xbf16>
    %cst_446 = arith.constant dense<0.000000e+00> : vector<64x8xf32>
    %498 = tpu.matmul %495, %497, %cst_446 {dimension_numbers = #tpu.dot_dimension_numbers<[1], [0], [0], [1], [0, 0, 1, 1], [], []>} : vector<64x8xbf16>, vector<8x8xbf16>, vector<64x8xf32> -> vector<64x8xf32>
    %499 = arith.addf %492, %498 : vector<64x8xf32>
    %c2_447 = arith.constant 2 : index
    %c2_448 = arith.constant 2 : index
    %c0_449 = arith.constant 0 : index
    %500 = vector.load %arg9[%c2_447, %c2_448, %c0_449] : memref<10x10x8xf32, #tpu.memory_space<vmem>>, vector<8x8x8xf32>
    %501 = vector.shape_cast %500 : vector<8x8x8xf32> to vector<64x8xf32>
    %502 = arith.truncf %501 : vector<64x8xf32> to vector<64x8xbf16>
    %c53 = arith.constant 53 : index
    %c0_450 = arith.constant 0 : index
    %c0_451 = arith.constant 0 : index
    %503 = vector.load %arg4[%c53, %c0_450, %c0_451] : memref<72x8x8xbf16, #tpu.memory_space<vmem>>, vector<1x8x8xbf16>
    %504 = vector.shape_cast %503 : vector<1x8x8xbf16> to vector<8x8xbf16>
    %cst_452 = arith.constant dense<0.000000e+00> : vector<64x8xf32>
    %505 = tpu.matmul %502, %504, %cst_452 {dimension_numbers = #tpu.dot_dimension_numbers<[1], [0], [0], [1], [0, 0, 1, 1], [], []>} : vector<64x8xbf16>, vector<8x8xbf16>, vector<64x8xf32> -> vector<64x8xf32>
    %506 = arith.addf %499, %505 : vector<64x8xf32>
    %507 = vector.shape_cast %506 : vector<64x8xf32> to vector<8x8x8xf32>
    %508 = arith.addf %507, %367 : vector<8x8x8xf32>
    %c3_453 = arith.constant 3 : index
    %c0_454 = arith.constant 0 : index
    %c0_455 = arith.constant 0 : index
    %509 = vector.load %arg5[%c3_453, %c0_454, %c0_455] : memref<4x1x8xf32, #tpu.memory_space<vmem>>, vector<1x1x8xf32>
    %510 = vector.shape_cast %509 : vector<1x1x8xf32> to vector<1x8xf32>
    %cst_456 = arith.constant 0.000000e+00 : f32
    %511 = vector.broadcast %cst_456 : f32 to vector<8x8x8xf32>
    %512 = arith.maximumf %508, %511 : vector<8x8x8xf32>
    %c1_457 = arith.constant 1 : index
    %c1_458 = arith.constant 1 : index
    %c0_459 = arith.constant 0 : index
    %513 = vector.load %arg9[%c1_457, %c1_458, %c0_459] : memref<10x10x8xf32, #tpu.memory_space<vmem>>, vector<8x8x8xf32>
    tpu.vector_store %arg9[%c1_457, %c1_458, %c0_459], %512 {strides = array<i32>} : memref<10x10x8xf32, #tpu.memory_space<vmem>>, vector<8x8x8xf32>,
    %cst_460 = arith.constant 0.000000e+00 : f32
    %514 = vector.broadcast %cst_460 : f32 to vector<64x8xf32>
    %c0_461 = arith.constant 0 : index
    %c0_462 = arith.constant 0 : index
    %c0_463 = arith.constant 0 : index
    %515 = vector.load %arg9[%c0_461, %c0_462, %c0_463] : memref<10x10x8xf32, #tpu.memory_space<vmem>>, vector<8x8x8xf32>
    %516 = vector.shape_cast %515 : vector<8x8x8xf32> to vector<64x8xf32>
    %517 = arith.truncf %516 : vector<64x8xf32> to vector<64x8xbf16>
    %c54 = arith.constant 54 : index
    %c0_464 = arith.constant 0 : index
    %c0_465 = arith.constant 0 : index
    %518 = vector.load %arg4[%c54, %c0_464, %c0_465] : memref<72x8x8xbf16, #tpu.memory_space<vmem>>, vector<1x8x8xbf16>
    %519 = vector.shape_cast %518 : vector<1x8x8xbf16> to vector<8x8xbf16>
    %cst_466 = arith.constant dense<0.000000e+00> : vector<64x8xf32>
    %520 = tpu.matmul %517, %519, %cst_466 {dimension_numbers = #tpu.dot_dimension_numbers<[1], [0], [0], [1], [0, 0, 1, 1], [], []>} : vector<64x8xbf16>, vector<8x8xbf16>, vector<64x8xf32> -> vector<64x8xf32>
    %521 = arith.addf %514, %520 : vector<64x8xf32>
    %c0_467 = arith.constant 0 : index
    %c1_468 = arith.constant 1 : index
    %c0_469 = arith.constant 0 : index
    %522 = vector.load %arg9[%c0_467, %c1_468, %c0_469] : memref<10x10x8xf32, #tpu.memory_space<vmem>>, vector<8x8x8xf32>
    %523 = vector.shape_cast %522 : vector<8x8x8xf32> to vector<64x8xf32>
    %524 = arith.truncf %523 : vector<64x8xf32> to vector<64x8xbf16>
    %c55 = arith.constant 55 : index
    %c0_470 = arith.constant 0 : index
    %c0_471 = arith.constant 0 : index
    %525 = vector.load %arg4[%c55, %c0_470, %c0_471] : memref<72x8x8xbf16, #tpu.memory_space<vmem>>, vector<1x8x8xbf16>
    %526 = vector.shape_cast %525 : vector<1x8x8xbf16> to vector<8x8xbf16>
    %cst_472 = arith.constant dense<0.000000e+00> : vector<64x8xf32>
    %527 = tpu.matmul %524, %526, %cst_472 {dimension_numbers = #tpu.dot_dimension_numbers<[1], [0], [0], [1], [0, 0, 1, 1], [], []>} : vector<64x8xbf16>, vector<8x8xbf16>, vector<64x8xf32> -> vector<64x8xf32>
    %528 = arith.addf %521, %527 : vector<64x8xf32>
    %c0_473 = arith.constant 0 : index
    %c2_474 = arith.constant 2 : index
    %c0_475 = arith.constant 0 : index
    %529 = vector.load %arg9[%c0_473, %c2_474, %c0_475] : memref<10x10x8xf32, #tpu.memory_space<vmem>>, vector<8x8x8xf32>
    %530 = vector.shape_cast %529 : vector<8x8x8xf32> to vector<64x8xf32>
    %531 = arith.truncf %530 : vector<64x8xf32> to vector<64x8xbf16>
    %c56 = arith.constant 56 : index
    %c0_476 = arith.constant 0 : index
    %c0_477 = arith.constant 0 : index
    %532 = vector.load %arg4[%c56, %c0_476, %c0_477] : memref<72x8x8xbf16, #tpu.memory_space<vmem>>, vector<1x8x8xbf16>
    %533 = vector.shape_cast %532 : vector<1x8x8xbf16> to vector<8x8xbf16>
    %cst_478 = arith.constant dense<0.000000e+00> : vector<64x8xf32>
    %534 = tpu.matmul %531, %533, %cst_478 {dimension_numbers = #tpu.dot_dimension_numbers<[1], [0], [0], [1], [0, 0, 1, 1], [], []>} : vector<64x8xbf16>, vector<8x8xbf16>, vector<64x8xf32> -> vector<64x8xf32>
    %535 = arith.addf %528, %534 : vector<64x8xf32>
    %c1_479 = arith.constant 1 : index
    %c0_480 = arith.constant 0 : index
    %c0_481 = arith.constant 0 : index
    %536 = vector.load %arg9[%c1_479, %c0_480, %c0_481] : memref<10x10x8xf32, #tpu.memory_space<vmem>>, vector<8x8x8xf32>
    %537 = vector.shape_cast %536 : vector<8x8x8xf32> to vector<64x8xf32>
    %538 = arith.truncf %537 : vector<64x8xf32> to vector<64x8xbf16>
    %c57 = arith.constant 57 : index
    %c0_482 = arith.constant 0 : index
    %c0_483 = arith.constant 0 : index
    %539 = vector.load %arg4[%c57, %c0_482, %c0_483] : memref<72x8x8xbf16, #tpu.memory_space<vmem>>, vector<1x8x8xbf16>
    %540 = vector.shape_cast %539 : vector<1x8x8xbf16> to vector<8x8xbf16>
    %cst_484 = arith.constant dense<0.000000e+00> : vector<64x8xf32>
    %541 = tpu.matmul %538, %540, %cst_484 {dimension_numbers = #tpu.dot_dimension_numbers<[1], [0], [0], [1], [0, 0, 1, 1], [], []>} : vector<64x8xbf16>, vector<8x8xbf16>, vector<64x8xf32> -> vector<64x8xf32>
    %542 = arith.addf %535, %541 : vector<64x8xf32>
    %c1_485 = arith.constant 1 : index
    %c1_486 = arith.constant 1 : index
    %c0_487 = arith.constant 0 : index
    %543 = vector.load %arg9[%c1_485, %c1_486, %c0_487] : memref<10x10x8xf32, #tpu.memory_space<vmem>>, vector<8x8x8xf32>
    %544 = vector.shape_cast %543 : vector<8x8x8xf32> to vector<64x8xf32>
    %545 = arith.truncf %544 : vector<64x8xf32> to vector<64x8xbf16>
    %c58 = arith.constant 58 : index
    %c0_488 = arith.constant 0 : index
    %c0_489 = arith.constant 0 : index
    %546 = vector.load %arg4[%c58, %c0_488, %c0_489] : memref<72x8x8xbf16, #tpu.memory_space<vmem>>, vector<1x8x8xbf16>
    %547 = vector.shape_cast %546 : vector<1x8x8xbf16> to vector<8x8xbf16>
    %cst_490 = arith.constant dense<0.000000e+00> : vector<64x8xf32>
    %548 = tpu.matmul %545, %547, %cst_490 {dimension_numbers = #tpu.dot_dimension_numbers<[1], [0], [0], [1], [0, 0, 1, 1], [], []>} : vector<64x8xbf16>, vector<8x8xbf16>, vector<64x8xf32> -> vector<64x8xf32>
    %549 = arith.addf %542, %548 : vector<64x8xf32>
    %c1_491 = arith.constant 1 : index
    %c2_492 = arith.constant 2 : index
    %c0_493 = arith.constant 0 : index
    %550 = vector.load %arg9[%c1_491, %c2_492, %c0_493] : memref<10x10x8xf32, #tpu.memory_space<vmem>>, vector<8x8x8xf32>
    %551 = vector.shape_cast %550 : vector<8x8x8xf32> to vector<64x8xf32>
    %552 = arith.truncf %551 : vector<64x8xf32> to vector<64x8xbf16>
    %c59 = arith.constant 59 : index
    %c0_494 = arith.constant 0 : index
    %c0_495 = arith.constant 0 : index
    %553 = vector.load %arg4[%c59, %c0_494, %c0_495] : memref<72x8x8xbf16, #tpu.memory_space<vmem>>, vector<1x8x8xbf16>
    %554 = vector.shape_cast %553 : vector<1x8x8xbf16> to vector<8x8xbf16>
    %cst_496 = arith.constant dense<0.000000e+00> : vector<64x8xf32>
    %555 = tpu.matmul %552, %554, %cst_496 {dimension_numbers = #tpu.dot_dimension_numbers<[1], [0], [0], [1], [0, 0, 1, 1], [], []>} : vector<64x8xbf16>, vector<8x8xbf16>, vector<64x8xf32> -> vector<64x8xf32>
    %556 = arith.addf %549, %555 : vector<64x8xf32>
    %c2_497 = arith.constant 2 : index
    %c0_498 = arith.constant 0 : index
    %c0_499 = arith.constant 0 : index
    %557 = vector.load %arg9[%c2_497, %c0_498, %c0_499] : memref<10x10x8xf32, #tpu.memory_space<vmem>>, vector<8x8x8xf32>
    %558 = vector.shape_cast %557 : vector<8x8x8xf32> to vector<64x8xf32>
    %559 = arith.truncf %558 : vector<64x8xf32> to vector<64x8xbf16>
    %c60 = arith.constant 60 : index
    %c0_500 = arith.constant 0 : index
    %c0_501 = arith.constant 0 : index
    %560 = vector.load %arg4[%c60, %c0_500, %c0_501] : memref<72x8x8xbf16, #tpu.memory_space<vmem>>, vector<1x8x8xbf16>
    %561 = vector.shape_cast %560 : vector<1x8x8xbf16> to vector<8x8xbf16>
    %cst_502 = arith.constant dense<0.000000e+00> : vector<64x8xf32>
    %562 = tpu.matmul %559, %561, %cst_502 {dimension_numbers = #tpu.dot_dimension_numbers<[1], [0], [0], [1], [0, 0, 1, 1], [], []>} : vector<64x8xbf16>, vector<8x8xbf16>, vector<64x8xf32> -> vector<64x8xf32>
    %563 = arith.addf %556, %562 : vector<64x8xf32>
    %c2_503 = arith.constant 2 : index
    %c1_504 = arith.constant 1 : index
    %c0_505 = arith.constant 0 : index
    %564 = vector.load %arg9[%c2_503, %c1_504, %c0_505] : memref<10x10x8xf32, #tpu.memory_space<vmem>>, vector<8x8x8xf32>
    %565 = vector.shape_cast %564 : vector<8x8x8xf32> to vector<64x8xf32>
    %566 = arith.truncf %565 : vector<64x8xf32> to vector<64x8xbf16>
    %c61 = arith.constant 61 : index
    %c0_506 = arith.constant 0 : index
    %c0_507 = arith.constant 0 : index
    %567 = vector.load %arg4[%c61, %c0_506, %c0_507] : memref<72x8x8xbf16, #tpu.memory_space<vmem>>, vector<1x8x8xbf16>
    %568 = vector.shape_cast %567 : vector<1x8x8xbf16> to vector<8x8xbf16>
    %cst_508 = arith.constant dense<0.000000e+00> : vector<64x8xf32>
    %569 = tpu.matmul %566, %568, %cst_508 {dimension_numbers = #tpu.dot_dimension_numbers<[1], [0], [0], [1], [0, 0, 1, 1], [], []>} : vector<64x8xbf16>, vector<8x8xbf16>, vector<64x8xf32> -> vector<64x8xf32>
    %570 = arith.addf %563, %569 : vector<64x8xf32>
    %c2_509 = arith.constant 2 : index
    %c2_510 = arith.constant 2 : index
    %c0_511 = arith.constant 0 : index
    %571 = vector.load %arg9[%c2_509, %c2_510, %c0_511] : memref<10x10x8xf32, #tpu.memory_space<vmem>>, vector<8x8x8xf32>
    %572 = vector.shape_cast %571 : vector<8x8x8xf32> to vector<64x8xf32>
    %573 = arith.truncf %572 : vector<64x8xf32> to vector<64x8xbf16>
    %c62 = arith.constant 62 : index
    %c0_512 = arith.constant 0 : index
    %c0_513 = arith.constant 0 : index
    %574 = vector.load %arg4[%c62, %c0_512, %c0_513] : memref<72x8x8xbf16, #tpu.memory_space<vmem>>, vector<1x8x8xbf16>
    %575 = vector.shape_cast %574 : vector<1x8x8xbf16> to vector<8x8xbf16>
    %cst_514 = arith.constant dense<0.000000e+00> : vector<64x8xf32>
    %576 = tpu.matmul %573, %575, %cst_514 {dimension_numbers = #tpu.dot_dimension_numbers<[1], [0], [0], [1], [0, 0, 1, 1], [], []>} : vector<64x8xbf16>, vector<8x8xbf16>, vector<64x8xf32> -> vector<64x8xf32>
    %577 = arith.addf %570, %576 : vector<64x8xf32>
    %578 = vector.broadcast %510 : vector<1x8xf32> to vector<64x8xf32>
    %579 = arith.addf %577, %578 : vector<64x8xf32>
    %580 = vector.shape_cast %579 : vector<64x8xf32> to vector<8x8x8xf32>
    %cst_515 = arith.constant 0.000000e+00 : f32
    %581 = vector.broadcast %cst_515 : f32 to vector<8x8x8xf32>
    %582 = arith.maximumf %580, %581 : vector<8x8x8xf32>
    %c1_516 = arith.constant 1 : index
    %c1_517 = arith.constant 1 : index
    %c0_518 = arith.constant 0 : index
    %583 = vector.load %arg9[%c1_516, %c1_517, %c0_518] : memref<10x10x8xf32, #tpu.memory_space<vmem>>, vector<8x8x8xf32>
    tpu.vector_store %arg9[%c1_516, %c1_517, %c0_518], %582 {strides = array<i32>} : memref<10x10x8xf32, #tpu.memory_space<vmem>>, vector<8x8x8xf32>,
    %cst_519 = arith.constant 0.000000e+00 : f32
    %584 = vector.broadcast %cst_519 : f32 to vector<64x8xf32>
    %c0_520 = arith.constant 0 : index
    %c0_521 = arith.constant 0 : index
    %c0_522 = arith.constant 0 : index
    %585 = vector.load %arg9[%c0_520, %c0_521, %c0_522] : memref<10x10x8xf32, #tpu.memory_space<vmem>>, vector<8x8x8xf32>
    %586 = vector.shape_cast %585 : vector<8x8x8xf32> to vector<64x8xf32>
    %587 = arith.truncf %586 : vector<64x8xf32> to vector<64x8xbf16>
    %c63 = arith.constant 63 : index
    %c0_523 = arith.constant 0 : index
    %c0_524 = arith.constant 0 : index
    %588 = vector.load %arg4[%c63, %c0_523, %c0_524] : memref<72x8x8xbf16, #tpu.memory_space<vmem>>, vector<1x8x8xbf16>
    %589 = vector.shape_cast %588 : vector<1x8x8xbf16> to vector<8x8xbf16>
    %cst_525 = arith.constant dense<0.000000e+00> : vector<64x8xf32>
    %590 = tpu.matmul %587, %589, %cst_525 {dimension_numbers = #tpu.dot_dimension_numbers<[1], [0], [0], [1], [0, 0, 1, 1], [], []>} : vector<64x8xbf16>, vector<8x8xbf16>, vector<64x8xf32> -> vector<64x8xf32>
    %591 = arith.addf %584, %590 : vector<64x8xf32>
    %c0_526 = arith.constant 0 : index
    %c1_527 = arith.constant 1 : index
    %c0_528 = arith.constant 0 : index
    %592 = vector.load %arg9[%c0_526, %c1_527, %c0_528] : memref<10x10x8xf32, #tpu.memory_space<vmem>>, vector<8x8x8xf32>
    %593 = vector.shape_cast %592 : vector<8x8x8xf32> to vector<64x8xf32>
    %594 = arith.truncf %593 : vector<64x8xf32> to vector<64x8xbf16>
    %c64 = arith.constant 64 : index
    %c0_529 = arith.constant 0 : index
    %c0_530 = arith.constant 0 : index
    %595 = vector.load %arg4[%c64, %c0_529, %c0_530] : memref<72x8x8xbf16, #tpu.memory_space<vmem>>, vector<1x8x8xbf16>
    %596 = vector.shape_cast %595 : vector<1x8x8xbf16> to vector<8x8xbf16>
    %cst_531 = arith.constant dense<0.000000e+00> : vector<64x8xf32>
    %597 = tpu.matmul %594, %596, %cst_531 {dimension_numbers = #tpu.dot_dimension_numbers<[1], [0], [0], [1], [0, 0, 1, 1], [], []>} : vector<64x8xbf16>, vector<8x8xbf16>, vector<64x8xf32> -> vector<64x8xf32>
    %598 = arith.addf %591, %597 : vector<64x8xf32>
    %c0_532 = arith.constant 0 : index
    %c2_533 = arith.constant 2 : index
    %c0_534 = arith.constant 0 : index
    %599 = vector.load %arg9[%c0_532, %c2_533, %c0_534] : memref<10x10x8xf32, #tpu.memory_space<vmem>>, vector<8x8x8xf32>
    %600 = vector.shape_cast %599 : vector<8x8x8xf32> to vector<64x8xf32>
    %601 = arith.truncf %600 : vector<64x8xf32> to vector<64x8xbf16>
    %c65 = arith.constant 65 : index
    %c0_535 = arith.constant 0 : index
    %c0_536 = arith.constant 0 : index
    %602 = vector.load %arg4[%c65, %c0_535, %c0_536] : memref<72x8x8xbf16, #tpu.memory_space<vmem>>, vector<1x8x8xbf16>
    %603 = vector.shape_cast %602 : vector<1x8x8xbf16> to vector<8x8xbf16>
    %cst_537 = arith.constant dense<0.000000e+00> : vector<64x8xf32>
    %604 = tpu.matmul %601, %603, %cst_537 {dimension_numbers = #tpu.dot_dimension_numbers<[1], [0], [0], [1], [0, 0, 1, 1], [], []>} : vector<64x8xbf16>, vector<8x8xbf16>, vector<64x8xf32> -> vector<64x8xf32>
    %605 = arith.addf %598, %604 : vector<64x8xf32>
    %c1_538 = arith.constant 1 : index
    %c0_539 = arith.constant 0 : index
    %c0_540 = arith.constant 0 : index
    %606 = vector.load %arg9[%c1_538, %c0_539, %c0_540] : memref<10x10x8xf32, #tpu.memory_space<vmem>>, vector<8x8x8xf32>
    %607 = vector.shape_cast %606 : vector<8x8x8xf32> to vector<64x8xf32>
    %608 = arith.truncf %607 : vector<64x8xf32> to vector<64x8xbf16>
    %c66 = arith.constant 66 : index
    %c0_541 = arith.constant 0 : index
    %c0_542 = arith.constant 0 : index
    %609 = vector.load %arg4[%c66, %c0_541, %c0_542] : memref<72x8x8xbf16, #tpu.memory_space<vmem>>, vector<1x8x8xbf16>
    %610 = vector.shape_cast %609 : vector<1x8x8xbf16> to vector<8x8xbf16>
    %cst_543 = arith.constant dense<0.000000e+00> : vector<64x8xf32>
    %611 = tpu.matmul %608, %610, %cst_543 {dimension_numbers = #tpu.dot_dimension_numbers<[1], [0], [0], [1], [0, 0, 1, 1], [], []>} : vector<64x8xbf16>, vector<8x8xbf16>, vector<64x8xf32> -> vector<64x8xf32>
    %612 = arith.addf %605, %611 : vector<64x8xf32>
    %c1_544 = arith.constant 1 : index
    %c1_545 = arith.constant 1 : index
    %c0_546 = arith.constant 0 : index
    %613 = vector.load %arg9[%c1_544, %c1_545, %c0_546] : memref<10x10x8xf32, #tpu.memory_space<vmem>>, vector<8x8x8xf32>
    %614 = vector.shape_cast %613 : vector<8x8x8xf32> to vector<64x8xf32>
    %615 = arith.truncf %614 : vector<64x8xf32> to vector<64x8xbf16>
    %c67 = arith.constant 67 : index
    %c0_547 = arith.constant 0 : index
    %c0_548 = arith.constant 0 : index
    %616 = vector.load %arg4[%c67, %c0_547, %c0_548] : memref<72x8x8xbf16, #tpu.memory_space<vmem>>, vector<1x8x8xbf16>
    %617 = vector.shape_cast %616 : vector<1x8x8xbf16> to vector<8x8xbf16>
    %cst_549 = arith.constant dense<0.000000e+00> : vector<64x8xf32>
    %618 = tpu.matmul %615, %617, %cst_549 {dimension_numbers = #tpu.dot_dimension_numbers<[1], [0], [0], [1], [0, 0, 1, 1], [], []>} : vector<64x8xbf16>, vector<8x8xbf16>, vector<64x8xf32> -> vector<64x8xf32>
    %619 = arith.addf %612, %618 : vector<64x8xf32>
    %c1_550 = arith.constant 1 : index
    %c2_551 = arith.constant 2 : index
    %c0_552 = arith.constant 0 : index
    %620 = vector.load %arg9[%c1_550, %c2_551, %c0_552] : memref<10x10x8xf32, #tpu.memory_space<vmem>>, vector<8x8x8xf32>
    %621 = vector.shape_cast %620 : vector<8x8x8xf32> to vector<64x8xf32>
    %622 = arith.truncf %621 : vector<64x8xf32> to vector<64x8xbf16>
    %c68 = arith.constant 68 : index
    %c0_553 = arith.constant 0 : index
    %c0_554 = arith.constant 0 : index
    %623 = vector.load %arg4[%c68, %c0_553, %c0_554] : memref<72x8x8xbf16, #tpu.memory_space<vmem>>, vector<1x8x8xbf16>
    %624 = vector.shape_cast %623 : vector<1x8x8xbf16> to vector<8x8xbf16>
    %cst_555 = arith.constant dense<0.000000e+00> : vector<64x8xf32>
    %625 = tpu.matmul %622, %624, %cst_555 {dimension_numbers = #tpu.dot_dimension_numbers<[1], [0], [0], [1], [0, 0, 1, 1], [], []>} : vector<64x8xbf16>, vector<8x8xbf16>, vector<64x8xf32> -> vector<64x8xf32>
    %626 = arith.addf %619, %625 : vector<64x8xf32>
    %c2_556 = arith.constant 2 : index
    %c0_557 = arith.constant 0 : index
    %c0_558 = arith.constant 0 : index
    %627 = vector.load %arg9[%c2_556, %c0_557, %c0_558] : memref<10x10x8xf32, #tpu.memory_space<vmem>>, vector<8x8x8xf32>
    %628 = vector.shape_cast %627 : vector<8x8x8xf32> to vector<64x8xf32>
    %629 = arith.truncf %628 : vector<64x8xf32> to vector<64x8xbf16>
    %c69 = arith.constant 69 : index
    %c0_559 = arith.constant 0 : index
    %c0_560 = arith.constant 0 : index
    %630 = vector.load %arg4[%c69, %c0_559, %c0_560] : memref<72x8x8xbf16, #tpu.memory_space<vmem>>, vector<1x8x8xbf16>
    %631 = vector.shape_cast %630 : vector<1x8x8xbf16> to vector<8x8xbf16>
    %cst_561 = arith.constant dense<0.000000e+00> : vector<64x8xf32>
    %632 = tpu.matmul %629, %631, %cst_561 {dimension_numbers = #tpu.dot_dimension_numbers<[1], [0], [0], [1], [0, 0, 1, 1], [], []>} : vector<64x8xbf16>, vector<8x8xbf16>, vector<64x8xf32> -> vector<64x8xf32>
    %633 = arith.addf %626, %632 : vector<64x8xf32>
    %c2_562 = arith.constant 2 : index
    %c1_563 = arith.constant 1 : index
    %c0_564 = arith.constant 0 : index
    %634 = vector.load %arg9[%c2_562, %c1_563, %c0_564] : memref<10x10x8xf32, #tpu.memory_space<vmem>>, vector<8x8x8xf32>
    %635 = vector.shape_cast %634 : vector<8x8x8xf32> to vector<64x8xf32>
    %636 = arith.truncf %635 : vector<64x8xf32> to vector<64x8xbf16>
    %c70 = arith.constant 70 : index
    %c0_565 = arith.constant 0 : index
    %c0_566 = arith.constant 0 : index
    %637 = vector.load %arg4[%c70, %c0_565, %c0_566] : memref<72x8x8xbf16, #tpu.memory_space<vmem>>, vector<1x8x8xbf16>
    %638 = vector.shape_cast %637 : vector<1x8x8xbf16> to vector<8x8xbf16>
    %cst_567 = arith.constant dense<0.000000e+00> : vector<64x8xf32>
    %639 = tpu.matmul %636, %638, %cst_567 {dimension_numbers = #tpu.dot_dimension_numbers<[1], [0], [0], [1], [0, 0, 1, 1], [], []>} : vector<64x8xbf16>, vector<8x8xbf16>, vector<64x8xf32> -> vector<64x8xf32>
    %640 = arith.addf %633, %639 : vector<64x8xf32>
    %c2_568 = arith.constant 2 : index
    %c2_569 = arith.constant 2 : index
    %c0_570 = arith.constant 0 : index
    %641 = vector.load %arg9[%c2_568, %c2_569, %c0_570] : memref<10x10x8xf32, #tpu.memory_space<vmem>>, vector<8x8x8xf32>
    %642 = vector.shape_cast %641 : vector<8x8x8xf32> to vector<64x8xf32>
    %643 = arith.truncf %642 : vector<64x8xf32> to vector<64x8xbf16>
    %c71 = arith.constant 71 : index
    %c0_571 = arith.constant 0 : index
    %c0_572 = arith.constant 0 : index
    %644 = vector.load %arg4[%c71, %c0_571, %c0_572] : memref<72x8x8xbf16, #tpu.memory_space<vmem>>, vector<1x8x8xbf16>
    %645 = vector.shape_cast %644 : vector<1x8x8xbf16> to vector<8x8xbf16>
    %cst_573 = arith.constant dense<0.000000e+00> : vector<64x8xf32>
    %646 = tpu.matmul %643, %645, %cst_573 {dimension_numbers = #tpu.dot_dimension_numbers<[1], [0], [0], [1], [0, 0, 1, 1], [], []>} : vector<64x8xbf16>, vector<8x8xbf16>, vector<64x8xf32> -> vector<64x8xf32>
    %647 = arith.addf %640, %646 : vector<64x8xf32>
    %648 = vector.shape_cast %647 : vector<64x8xf32> to vector<8x8x8xf32>
    %649 = arith.addf %648, %508 : vector<8x8x8xf32>
    %c1_574 = arith.constant 1 : index
    %c1_575 = arith.constant 1 : index
    %c0_576 = arith.constant 0 : index
    %650 = vector.load %arg9[%c1_574, %c1_575, %c0_576] : memref<10x10x8xf32, #tpu.memory_space<vmem>>, vector<8x8x8xf32>
    tpu.vector_store %arg9[%c1_574, %c1_575, %c0_576], %649 {strides = array<i32>} : memref<10x10x8xf32, #tpu.memory_space<vmem>>, vector<8x8x8xf32>,
    %cst_577 = arith.constant 0.000000e+00 : f32
    %651 = vector.broadcast %cst_577 : f32 to vector<64x16xf32>
    %c0_578 = arith.constant 0 : index
    %c0_579 = arith.constant 0 : index
    %c0_580 = arith.constant 0 : index
    %652 = vector.load %arg9[%c0_578, %c0_579, %c0_580] : memref<10x10x8xf32, #tpu.memory_space<vmem>>, vector<8x8x8xf32>
    %653 = vector.shape_cast %652 : vector<8x8x8xf32> to vector<64x8xf32>
    %654 = arith.truncf %653 : vector<64x8xf32> to vector<64x8xbf16>
    %c9_581 = arith.constant 9 : index
    %c0_582 = arith.constant 0 : index
    %c0_583 = arith.constant 0 : index
    %655 = vector.load %arg6[%c9_581, %c0_582, %c0_583] : memref<18x8x16xbf16, #tpu.memory_space<vmem>>, vector<1x8x16xbf16>
    %656 = vector.shape_cast %655 : vector<1x8x16xbf16> to vector<8x16xbf16>
    %cst_584 = arith.constant dense<0.000000e+00> : vector<64x16xf32>
    %657 = tpu.matmul %654, %656, %cst_584 {dimension_numbers = #tpu.dot_dimension_numbers<[1], [0], [0], [1], [0, 0, 1, 1], [], []>} : vector<64x8xbf16>, vector<8x16xbf16>, vector<64x16xf32> -> vector<64x16xf32>
    %658 = arith.addf %651, %657 : vector<64x16xf32>
    %c0_585 = arith.constant 0 : index
    %c1_586 = arith.constant 1 : index
    %c0_587 = arith.constant 0 : index
    %659 = vector.load %arg9[%c0_585, %c1_586, %c0_587] : memref<10x10x8xf32, #tpu.memory_space<vmem>>, vector<8x8x8xf32>
    %660 = vector.shape_cast %659 : vector<8x8x8xf32> to vector<64x8xf32>
    %661 = arith.truncf %660 : vector<64x8xf32> to vector<64x8xbf16>
    %c10_588 = arith.constant 10 : index
    %c0_589 = arith.constant 0 : index
    %c0_590 = arith.constant 0 : index
    %662 = vector.load %arg6[%c10_588, %c0_589, %c0_590] : memref<18x8x16xbf16, #tpu.memory_space<vmem>>, vector<1x8x16xbf16>
    %663 = vector.shape_cast %662 : vector<1x8x16xbf16> to vector<8x16xbf16>
    %cst_591 = arith.constant dense<0.000000e+00> : vector<64x16xf32>
    %664 = tpu.matmul %661, %663, %cst_591 {dimension_numbers = #tpu.dot_dimension_numbers<[1], [0], [0], [1], [0, 0, 1, 1], [], []>} : vector<64x8xbf16>, vector<8x16xbf16>, vector<64x16xf32> -> vector<64x16xf32>
    %665 = arith.addf %658, %664 : vector<64x16xf32>
    %c0_592 = arith.constant 0 : index
    %c2_593 = arith.constant 2 : index
    %c0_594 = arith.constant 0 : index
    %666 = vector.load %arg9[%c0_592, %c2_593, %c0_594] : memref<10x10x8xf32, #tpu.memory_space<vmem>>, vector<8x8x8xf32>
    %667 = vector.shape_cast %666 : vector<8x8x8xf32> to vector<64x8xf32>
    %668 = arith.truncf %667 : vector<64x8xf32> to vector<64x8xbf16>
    %c11_595 = arith.constant 11 : index
    %c0_596 = arith.constant 0 : index
    %c0_597 = arith.constant 0 : index
    %669 = vector.load %arg6[%c11_595, %c0_596, %c0_597] : memref<18x8x16xbf16, #tpu.memory_space<vmem>>, vector<1x8x16xbf16>
    %670 = vector.shape_cast %669 : vector<1x8x16xbf16> to vector<8x16xbf16>
    %cst_598 = arith.constant dense<0.000000e+00> : vector<64x16xf32>
    %671 = tpu.matmul %668, %670, %cst_598 {dimension_numbers = #tpu.dot_dimension_numbers<[1], [0], [0], [1], [0, 0, 1, 1], [], []>} : vector<64x8xbf16>, vector<8x16xbf16>, vector<64x16xf32> -> vector<64x16xf32>
    %672 = arith.addf %665, %671 : vector<64x16xf32>
    %c1_599 = arith.constant 1 : index
    %c0_600 = arith.constant 0 : index
    %c0_601 = arith.constant 0 : index
    %673 = vector.load %arg9[%c1_599, %c0_600, %c0_601] : memref<10x10x8xf32, #tpu.memory_space<vmem>>, vector<8x8x8xf32>
    %674 = vector.shape_cast %673 : vector<8x8x8xf32> to vector<64x8xf32>
    %675 = arith.truncf %674 : vector<64x8xf32> to vector<64x8xbf16>
    %c12_602 = arith.constant 12 : index
    %c0_603 = arith.constant 0 : index
    %c0_604 = arith.constant 0 : index
    %676 = vector.load %arg6[%c12_602, %c0_603, %c0_604] : memref<18x8x16xbf16, #tpu.memory_space<vmem>>, vector<1x8x16xbf16>
    %677 = vector.shape_cast %676 : vector<1x8x16xbf16> to vector<8x16xbf16>
    %cst_605 = arith.constant dense<0.000000e+00> : vector<64x16xf32>
    %678 = tpu.matmul %675, %677, %cst_605 {dimension_numbers = #tpu.dot_dimension_numbers<[1], [0], [0], [1], [0, 0, 1, 1], [], []>} : vector<64x8xbf16>, vector<8x16xbf16>, vector<64x16xf32> -> vector<64x16xf32>
    %679 = arith.addf %672, %678 : vector<64x16xf32>
    %c1_606 = arith.constant 1 : index
    %c1_607 = arith.constant 1 : index
    %c0_608 = arith.constant 0 : index
    %680 = vector.load %arg9[%c1_606, %c1_607, %c0_608] : memref<10x10x8xf32, #tpu.memory_space<vmem>>, vector<8x8x8xf32>
    %681 = vector.shape_cast %680 : vector<8x8x8xf32> to vector<64x8xf32>
    %682 = arith.truncf %681 : vector<64x8xf32> to vector<64x8xbf16>
    %c13_609 = arith.constant 13 : index
    %c0_610 = arith.constant 0 : index
    %c0_611 = arith.constant 0 : index
    %683 = vector.load %arg6[%c13_609, %c0_610, %c0_611] : memref<18x8x16xbf16, #tpu.memory_space<vmem>>, vector<1x8x16xbf16>
    %684 = vector.shape_cast %683 : vector<1x8x16xbf16> to vector<8x16xbf16>
    %cst_612 = arith.constant dense<0.000000e+00> : vector<64x16xf32>
    %685 = tpu.matmul %682, %684, %cst_612 {dimension_numbers = #tpu.dot_dimension_numbers<[1], [0], [0], [1], [0, 0, 1, 1], [], []>} : vector<64x8xbf16>, vector<8x16xbf16>, vector<64x16xf32> -> vector<64x16xf32>
    %686 = arith.addf %679, %685 : vector<64x16xf32>
    %c1_613 = arith.constant 1 : index
    %c2_614 = arith.constant 2 : index
    %c0_615 = arith.constant 0 : index
    %687 = vector.load %arg9[%c1_613, %c2_614, %c0_615] : memref<10x10x8xf32, #tpu.memory_space<vmem>>, vector<8x8x8xf32>
    %688 = vector.shape_cast %687 : vector<8x8x8xf32> to vector<64x8xf32>
    %689 = arith.truncf %688 : vector<64x8xf32> to vector<64x8xbf16>
    %c14_616 = arith.constant 14 : index
    %c0_617 = arith.constant 0 : index
    %c0_618 = arith.constant 0 : index
    %690 = vector.load %arg6[%c14_616, %c0_617, %c0_618] : memref<18x8x16xbf16, #tpu.memory_space<vmem>>, vector<1x8x16xbf16>
    %691 = vector.shape_cast %690 : vector<1x8x16xbf16> to vector<8x16xbf16>
    %cst_619 = arith.constant dense<0.000000e+00> : vector<64x16xf32>
    %692 = tpu.matmul %689, %691, %cst_619 {dimension_numbers = #tpu.dot_dimension_numbers<[1], [0], [0], [1], [0, 0, 1, 1], [], []>} : vector<64x8xbf16>, vector<8x16xbf16>, vector<64x16xf32> -> vector<64x16xf32>
    %693 = arith.addf %686, %692 : vector<64x16xf32>
    %c2_620 = arith.constant 2 : index
    %c0_621 = arith.constant 0 : index
    %c0_622 = arith.constant 0 : index
    %694 = vector.load %arg9[%c2_620, %c0_621, %c0_622] : memref<10x10x8xf32, #tpu.memory_space<vmem>>, vector<8x8x8xf32>
    %695 = vector.shape_cast %694 : vector<8x8x8xf32> to vector<64x8xf32>
    %696 = arith.truncf %695 : vector<64x8xf32> to vector<64x8xbf16>
    %c15_623 = arith.constant 15 : index
    %c0_624 = arith.constant 0 : index
    %c0_625 = arith.constant 0 : index
    %697 = vector.load %arg6[%c15_623, %c0_624, %c0_625] : memref<18x8x16xbf16, #tpu.memory_space<vmem>>, vector<1x8x16xbf16>
    %698 = vector.shape_cast %697 : vector<1x8x16xbf16> to vector<8x16xbf16>
    %cst_626 = arith.constant dense<0.000000e+00> : vector<64x16xf32>
    %699 = tpu.matmul %696, %698, %cst_626 {dimension_numbers = #tpu.dot_dimension_numbers<[1], [0], [0], [1], [0, 0, 1, 1], [], []>} : vector<64x8xbf16>, vector<8x16xbf16>, vector<64x16xf32> -> vector<64x16xf32>
    %700 = arith.addf %693, %699 : vector<64x16xf32>
    %c2_627 = arith.constant 2 : index
    %c1_628 = arith.constant 1 : index
    %c0_629 = arith.constant 0 : index
    %701 = vector.load %arg9[%c2_627, %c1_628, %c0_629] : memref<10x10x8xf32, #tpu.memory_space<vmem>>, vector<8x8x8xf32>
    %702 = vector.shape_cast %701 : vector<8x8x8xf32> to vector<64x8xf32>
    %703 = arith.truncf %702 : vector<64x8xf32> to vector<64x8xbf16>
    %c16_630 = arith.constant 16 : index
    %c0_631 = arith.constant 0 : index
    %c0_632 = arith.constant 0 : index
    %704 = vector.load %arg6[%c16_630, %c0_631, %c0_632] : memref<18x8x16xbf16, #tpu.memory_space<vmem>>, vector<1x8x16xbf16>
    %705 = vector.shape_cast %704 : vector<1x8x16xbf16> to vector<8x16xbf16>
    %cst_633 = arith.constant dense<0.000000e+00> : vector<64x16xf32>
    %706 = tpu.matmul %703, %705, %cst_633 {dimension_numbers = #tpu.dot_dimension_numbers<[1], [0], [0], [1], [0, 0, 1, 1], [], []>} : vector<64x8xbf16>, vector<8x16xbf16>, vector<64x16xf32> -> vector<64x16xf32>
    %707 = arith.addf %700, %706 : vector<64x16xf32>
    %c2_634 = arith.constant 2 : index
    %c2_635 = arith.constant 2 : index
    %c0_636 = arith.constant 0 : index
    %708 = vector.load %arg9[%c2_634, %c2_635, %c0_636] : memref<10x10x8xf32, #tpu.memory_space<vmem>>, vector<8x8x8xf32>
    %709 = vector.shape_cast %708 : vector<8x8x8xf32> to vector<64x8xf32>
    %710 = arith.truncf %709 : vector<64x8xf32> to vector<64x8xbf16>
    %c17_637 = arith.constant 17 : index
    %c0_638 = arith.constant 0 : index
    %c0_639 = arith.constant 0 : index
    %711 = vector.load %arg6[%c17_637, %c0_638, %c0_639] : memref<18x8x16xbf16, #tpu.memory_space<vmem>>, vector<1x8x16xbf16>
    %712 = vector.shape_cast %711 : vector<1x8x16xbf16> to vector<8x16xbf16>
    %cst_640 = arith.constant dense<0.000000e+00> : vector<64x16xf32>
    %713 = tpu.matmul %710, %712, %cst_640 {dimension_numbers = #tpu.dot_dimension_numbers<[1], [0], [0], [1], [0, 0, 1, 1], [], []>} : vector<64x8xbf16>, vector<8x16xbf16>, vector<64x16xf32> -> vector<64x16xf32>
    %714 = arith.addf %707, %713 : vector<64x16xf32>
    %715 = vector.shape_cast %714 : vector<64x16xf32> to vector<8x8x16xf32>
    %716 = arith.addf %359, %715 : vector<8x8x16xf32>
    %cst_641 = arith.constant 0.000000e+00 : f32
    %717 = vector.broadcast %cst_641 : f32 to vector<8x8x16xf32>
    %718 = arith.maximumf %716, %717 : vector<8x8x16xf32>
    %cst_642 = arith.constant 0xFF800000 : f32
    %719 = vector.broadcast %cst_642 : f32 to vector<12x12x16xf32>
    %c0_643 = arith.constant 0 : index
    %c0_644 = arith.constant 0 : index
    %c0_645 = arith.constant 0 : index
    %720 = vector.load %arg11[%c0_643, %c0_644, %c0_645] : memref<12x12x16xf32, #tpu.memory_space<vmem>>, vector<12x12x16xf32>
    tpu.vector_store %arg11[%c0_643, %c0_644, %c0_645], %719 {strides = array<i32>} : memref<12x12x16xf32, #tpu.memory_space<vmem>>, vector<12x12x16xf32>,
    %c2_646 = arith.constant 2 : index
    %c2_647 = arith.constant 2 : index
    %c0_648 = arith.constant 0 : index
    %721 = vector.load %arg11[%c2_646, %c2_647, %c0_648] : memref<12x12x16xf32, #tpu.memory_space<vmem>>, vector<8x8x16xf32>
    tpu.vector_store %arg11[%c2_646, %c2_647, %c0_648], %718 {strides = array<i32>} : memref<12x12x16xf32, #tpu.memory_space<vmem>>, vector<8x8x16xf32>,
    %c0_649 = arith.constant 0 : index
    %c0_650 = arith.constant 0 : index
    %c0_651 = arith.constant 0 : index
    %722 = vector.load %arg11[%c0_649, %c0_650, %c0_651] : memref<12x12x16xf32, #tpu.memory_space<vmem>>, vector<8x8x16xf32>
    %c0_652 = arith.constant 0 : index
    %c1_653 = arith.constant 1 : index
    %c0_654 = arith.constant 0 : index
    %723 = vector.load %arg11[%c0_652, %c1_653, %c0_654] : memref<12x12x16xf32, #tpu.memory_space<vmem>>, vector<8x8x16xf32>
    %724 = arith.maximumf %722, %723 : vector<8x8x16xf32>
    %c0_655 = arith.constant 0 : index
    %c2_656 = arith.constant 2 : index
    %c0_657 = arith.constant 0 : index
    %725 = vector.load %arg11[%c0_655, %c2_656, %c0_657] : memref<12x12x16xf32, #tpu.memory_space<vmem>>, vector<8x8x16xf32>
    %726 = arith.maximumf %724, %725 : vector<8x8x16xf32>
    %c0_658 = arith.constant 0 : index
    %c3_659 = arith.constant 3 : index
    %c0_660 = arith.constant 0 : index
    %727 = vector.load %arg11[%c0_658, %c3_659, %c0_660] : memref<12x12x16xf32, #tpu.memory_space<vmem>>, vector<8x8x16xf32>
    %728 = arith.maximumf %726, %727 : vector<8x8x16xf32>
    %c0_661 = arith.constant 0 : index
    %c4_662 = arith.constant 4 : index
    %c0_663 = arith.constant 0 : index
    %729 = vector.load %arg11[%c0_661, %c4_662, %c0_663] : memref<12x12x16xf32, #tpu.memory_space<vmem>>, vector<8x8x16xf32>
    %730 = arith.maximumf %728, %729 : vector<8x8x16xf32>
    %c1_664 = arith.constant 1 : index
    %c0_665 = arith.constant 0 : index
    %c0_666 = arith.constant 0 : index
    %731 = vector.load %arg11[%c1_664, %c0_665, %c0_666] : memref<12x12x16xf32, #tpu.memory_space<vmem>>, vector<8x8x16xf32>
    %732 = arith.maximumf %730, %731 : vector<8x8x16xf32>
    %c1_667 = arith.constant 1 : index
    %c1_668 = arith.constant 1 : index
    %c0_669 = arith.constant 0 : index
    %733 = vector.load %arg11[%c1_667, %c1_668, %c0_669] : memref<12x12x16xf32, #tpu.memory_space<vmem>>, vector<8x8x16xf32>
    %734 = arith.maximumf %732, %733 : vector<8x8x16xf32>
    %c1_670 = arith.constant 1 : index
    %c2_671 = arith.constant 2 : index
    %c0_672 = arith.constant 0 : index
    %735 = vector.load %arg11[%c1_670, %c2_671, %c0_672] : memref<12x12x16xf32, #tpu.memory_space<vmem>>, vector<8x8x16xf32>
    %736 = arith.maximumf %734, %735 : vector<8x8x16xf32>
    %c1_673 = arith.constant 1 : index
    %c3_674 = arith.constant 3 : index
    %c0_675 = arith.constant 0 : index
    %737 = vector.load %arg11[%c1_673, %c3_674, %c0_675] : memref<12x12x16xf32, #tpu.memory_space<vmem>>, vector<8x8x16xf32>
    %738 = arith.maximumf %736, %737 : vector<8x8x16xf32>
    %c1_676 = arith.constant 1 : index
    %c4_677 = arith.constant 4 : index
    %c0_678 = arith.constant 0 : index
    %739 = vector.load %arg11[%c1_676, %c4_677, %c0_678] : memref<12x12x16xf32, #tpu.memory_space<vmem>>, vector<8x8x16xf32>
    %740 = arith.maximumf %738, %739 : vector<8x8x16xf32>
    %c2_679 = arith.constant 2 : index
    %c0_680 = arith.constant 0 : index
    %c0_681 = arith.constant 0 : index
    %741 = vector.load %arg11[%c2_679, %c0_680, %c0_681] : memref<12x12x16xf32, #tpu.memory_space<vmem>>, vector<8x8x16xf32>
    %742 = arith.maximumf %740, %741 : vector<8x8x16xf32>
    %c2_682 = arith.constant 2 : index
    %c1_683 = arith.constant 1 : index
    %c0_684 = arith.constant 0 : index
    %743 = vector.load %arg11[%c2_682, %c1_683, %c0_684] : memref<12x12x16xf32, #tpu.memory_space<vmem>>, vector<8x8x16xf32>
    %744 = arith.maximumf %742, %743 : vector<8x8x16xf32>
    %c2_685 = arith.constant 2 : index
    %c2_686 = arith.constant 2 : index
    %c0_687 = arith.constant 0 : index
    %745 = vector.load %arg11[%c2_685, %c2_686, %c0_687] : memref<12x12x16xf32, #tpu.memory_space<vmem>>, vector<8x8x16xf32>
    %746 = arith.maximumf %744, %745 : vector<8x8x16xf32>
    %c2_688 = arith.constant 2 : index
    %c3_689 = arith.constant 3 : index
    %c0_690 = arith.constant 0 : index
    %747 = vector.load %arg11[%c2_688, %c3_689, %c0_690] : memref<12x12x16xf32, #tpu.memory_space<vmem>>, vector<8x8x16xf32>
    %748 = arith.maximumf %746, %747 : vector<8x8x16xf32>
    %c2_691 = arith.constant 2 : index
    %c4_692 = arith.constant 4 : index
    %c0_693 = arith.constant 0 : index
    %749 = vector.load %arg11[%c2_691, %c4_692, %c0_693] : memref<12x12x16xf32, #tpu.memory_space<vmem>>, vector<8x8x16xf32>
    %750 = arith.maximumf %748, %749 : vector<8x8x16xf32>
    %c3_694 = arith.constant 3 : index
    %c0_695 = arith.constant 0 : index
    %c0_696 = arith.constant 0 : index
    %751 = vector.load %arg11[%c3_694, %c0_695, %c0_696] : memref<12x12x16xf32, #tpu.memory_space<vmem>>, vector<8x8x16xf32>
    %752 = arith.maximumf %750, %751 : vector<8x8x16xf32>
    %c3_697 = arith.constant 3 : index
    %c1_698 = arith.constant 1 : index
    %c0_699 = arith.constant 0 : index
    %753 = vector.load %arg11[%c3_697, %c1_698, %c0_699] : memref<12x12x16xf32, #tpu.memory_space<vmem>>, vector<8x8x16xf32>
    %754 = arith.maximumf %752, %753 : vector<8x8x16xf32>
    %c3_700 = arith.constant 3 : index
    %c2_701 = arith.constant 2 : index
    %c0_702 = arith.constant 0 : index
    %755 = vector.load %arg11[%c3_700, %c2_701, %c0_702] : memref<12x12x16xf32, #tpu.memory_space<vmem>>, vector<8x8x16xf32>
    %756 = arith.maximumf %754, %755 : vector<8x8x16xf32>
    %c3_703 = arith.constant 3 : index
    %c3_704 = arith.constant 3 : index
    %c0_705 = arith.constant 0 : index
    %757 = vector.load %arg11[%c3_703, %c3_704, %c0_705] : memref<12x12x16xf32, #tpu.memory_space<vmem>>, vector<8x8x16xf32>
    %758 = arith.maximumf %756, %757 : vector<8x8x16xf32>
    %c3_706 = arith.constant 3 : index
    %c4_707 = arith.constant 4 : index
    %c0_708 = arith.constant 0 : index
    %759 = vector.load %arg11[%c3_706, %c4_707, %c0_708] : memref<12x12x16xf32, #tpu.memory_space<vmem>>, vector<8x8x16xf32>
    %760 = arith.maximumf %758, %759 : vector<8x8x16xf32>
    %c4_709 = arith.constant 4 : index
    %c0_710 = arith.constant 0 : index
    %c0_711 = arith.constant 0 : index
    %761 = vector.load %arg11[%c4_709, %c0_710, %c0_711] : memref<12x12x16xf32, #tpu.memory_space<vmem>>, vector<8x8x16xf32>
    %762 = arith.maximumf %760, %761 : vector<8x8x16xf32>
    %c4_712 = arith.constant 4 : index
    %c1_713 = arith.constant 1 : index
    %c0_714 = arith.constant 0 : index
    %763 = vector.load %arg11[%c4_712, %c1_713, %c0_714] : memref<12x12x16xf32, #tpu.memory_space<vmem>>, vector<8x8x16xf32>
    %764 = arith.maximumf %762, %763 : vector<8x8x16xf32>
    %c4_715 = arith.constant 4 : index
    %c2_716 = arith.constant 2 : index
    %c0_717 = arith.constant 0 : index
    %765 = vector.load %arg11[%c4_715, %c2_716, %c0_717] : memref<12x12x16xf32, #tpu.memory_space<vmem>>, vector<8x8x16xf32>
    %766 = arith.maximumf %764, %765 : vector<8x8x16xf32>
    %c4_718 = arith.constant 4 : index
    %c3_719 = arith.constant 3 : index
    %c0_720 = arith.constant 0 : index
    %767 = vector.load %arg11[%c4_718, %c3_719, %c0_720] : memref<12x12x16xf32, #tpu.memory_space<vmem>>, vector<8x8x16xf32>
    %768 = arith.maximumf %766, %767 : vector<8x8x16xf32>
    %c4_721 = arith.constant 4 : index
    %c4_722 = arith.constant 4 : index
    %c0_723 = arith.constant 0 : index
    %769 = vector.load %arg11[%c4_721, %c4_722, %c0_723] : memref<12x12x16xf32, #tpu.memory_space<vmem>>, vector<8x8x16xf32>
    %770 = arith.maximumf %768, %769 : vector<8x8x16xf32>
    %c1_724 = arith.constant 1 : index
    %c1_725 = arith.constant 1 : index
    %c0_726 = arith.constant 0 : index
    %771 = vector.load %arg10[%c1_724, %c1_725, %c0_726] : memref<10x10x16xf32, #tpu.memory_space<vmem>>, vector<8x8x16xf32>
    tpu.vector_store %arg10[%c1_724, %c1_725, %c0_726], %770 {strides = array<i32>} : memref<10x10x16xf32, #tpu.memory_space<vmem>>, vector<8x8x16xf32>,
    %cst_727 = arith.constant 0.000000e+00 : f32
    %772 = vector.broadcast %cst_727 : f32 to vector<64x16xf32>
    %c0_728 = arith.constant 0 : index
    %c0_729 = arith.constant 0 : index
    %c0_730 = arith.constant 0 : index
    %773 = vector.load %arg10[%c0_728, %c0_729, %c0_730] : memref<10x10x16xf32, #tpu.memory_space<vmem>>, vector<8x8x16xf32>
    %774 = vector.shape_cast %773 : vector<8x8x16xf32> to vector<64x16xf32>
    %775 = arith.truncf %774 : vector<64x16xf32> to vector<64x16xbf16>
    %c0_731 = arith.constant 0 : index
    %c0_732 = arith.constant 0 : index
    %c0_733 = arith.constant 0 : index
    %776 = vector.load %arg7[%c0_731, %c0_732, %c0_733] : memref<9x16x16xbf16, #tpu.memory_space<vmem>>, vector<1x16x16xbf16>
    %777 = vector.shape_cast %776 : vector<1x16x16xbf16> to vector<16x16xbf16>
    %cst_734 = arith.constant dense<0.000000e+00> : vector<64x16xf32>
    %778 = tpu.matmul %775, %777, %cst_734 {dimension_numbers = #tpu.dot_dimension_numbers<[1], [0], [0], [1], [0, 0, 1, 1], [], []>} : vector<64x16xbf16>, vector<16x16xbf16>, vector<64x16xf32> -> vector<64x16xf32>
    %779 = arith.addf %772, %778 : vector<64x16xf32>
    %c0_735 = arith.constant 0 : index
    %c1_736 = arith.constant 1 : index
    %c0_737 = arith.constant 0 : index
    %780 = vector.load %arg10[%c0_735, %c1_736, %c0_737] : memref<10x10x16xf32, #tpu.memory_space<vmem>>, vector<8x8x16xf32>
    %781 = vector.shape_cast %780 : vector<8x8x16xf32> to vector<64x16xf32>
    %782 = arith.truncf %781 : vector<64x16xf32> to vector<64x16xbf16>
    %c1_738 = arith.constant 1 : index
    %c0_739 = arith.constant 0 : index
    %c0_740 = arith.constant 0 : index
    %783 = vector.load %arg7[%c1_738, %c0_739, %c0_740] : memref<9x16x16xbf16, #tpu.memory_space<vmem>>, vector<1x16x16xbf16>
    %784 = vector.shape_cast %783 : vector<1x16x16xbf16> to vector<16x16xbf16>
    %cst_741 = arith.constant dense<0.000000e+00> : vector<64x16xf32>
    %785 = tpu.matmul %782, %784, %cst_741 {dimension_numbers = #tpu.dot_dimension_numbers<[1], [0], [0], [1], [0, 0, 1, 1], [], []>} : vector<64x16xbf16>, vector<16x16xbf16>, vector<64x16xf32> -> vector<64x16xf32>
    %786 = arith.addf %779, %785 : vector<64x16xf32>
    %c0_742 = arith.constant 0 : index
    %c2_743 = arith.constant 2 : index
    %c0_744 = arith.constant 0 : index
    %787 = vector.load %arg10[%c0_742, %c2_743, %c0_744] : memref<10x10x16xf32, #tpu.memory_space<vmem>>, vector<8x8x16xf32>
    %788 = vector.shape_cast %787 : vector<8x8x16xf32> to vector<64x16xf32>
    %789 = arith.truncf %788 : vector<64x16xf32> to vector<64x16xbf16>
    %c2_745 = arith.constant 2 : index
    %c0_746 = arith.constant 0 : index
    %c0_747 = arith.constant 0 : index
    %790 = vector.load %arg7[%c2_745, %c0_746, %c0_747] : memref<9x16x16xbf16, #tpu.memory_space<vmem>>, vector<1x16x16xbf16>
    %791 = vector.shape_cast %790 : vector<1x16x16xbf16> to vector<16x16xbf16>
    %cst_748 = arith.constant dense<0.000000e+00> : vector<64x16xf32>
    %792 = tpu.matmul %789, %791, %cst_748 {dimension_numbers = #tpu.dot_dimension_numbers<[1], [0], [0], [1], [0, 0, 1, 1], [], []>} : vector<64x16xbf16>, vector<16x16xbf16>, vector<64x16xf32> -> vector<64x16xf32>
    %793 = arith.addf %786, %792 : vector<64x16xf32>
    %c1_749 = arith.constant 1 : index
    %c0_750 = arith.constant 0 : index
    %c0_751 = arith.constant 0 : index
    %794 = vector.load %arg10[%c1_749, %c0_750, %c0_751] : memref<10x10x16xf32, #tpu.memory_space<vmem>>, vector<8x8x16xf32>
    %795 = vector.shape_cast %794 : vector<8x8x16xf32> to vector<64x16xf32>
    %796 = arith.truncf %795 : vector<64x16xf32> to vector<64x16xbf16>
    %c3_752 = arith.constant 3 : index
    %c0_753 = arith.constant 0 : index
    %c0_754 = arith.constant 0 : index
    %797 = vector.load %arg7[%c3_752, %c0_753, %c0_754] : memref<9x16x16xbf16, #tpu.memory_space<vmem>>, vector<1x16x16xbf16>
    %798 = vector.shape_cast %797 : vector<1x16x16xbf16> to vector<16x16xbf16>
    %cst_755 = arith.constant dense<0.000000e+00> : vector<64x16xf32>
    %799 = tpu.matmul %796, %798, %cst_755 {dimension_numbers = #tpu.dot_dimension_numbers<[1], [0], [0], [1], [0, 0, 1, 1], [], []>} : vector<64x16xbf16>, vector<16x16xbf16>, vector<64x16xf32> -> vector<64x16xf32>
    %800 = arith.addf %793, %799 : vector<64x16xf32>
    %c1_756 = arith.constant 1 : index
    %c1_757 = arith.constant 1 : index
    %c0_758 = arith.constant 0 : index
    %801 = vector.load %arg10[%c1_756, %c1_757, %c0_758] : memref<10x10x16xf32, #tpu.memory_space<vmem>>, vector<8x8x16xf32>
    %802 = vector.shape_cast %801 : vector<8x8x16xf32> to vector<64x16xf32>
    %803 = arith.truncf %802 : vector<64x16xf32> to vector<64x16xbf16>
    %c4_759 = arith.constant 4 : index
    %c0_760 = arith.constant 0 : index
    %c0_761 = arith.constant 0 : index
    %804 = vector.load %arg7[%c4_759, %c0_760, %c0_761] : memref<9x16x16xbf16, #tpu.memory_space<vmem>>, vector<1x16x16xbf16>
    %805 = vector.shape_cast %804 : vector<1x16x16xbf16> to vector<16x16xbf16>
    %cst_762 = arith.constant dense<0.000000e+00> : vector<64x16xf32>
    %806 = tpu.matmul %803, %805, %cst_762 {dimension_numbers = #tpu.dot_dimension_numbers<[1], [0], [0], [1], [0, 0, 1, 1], [], []>} : vector<64x16xbf16>, vector<16x16xbf16>, vector<64x16xf32> -> vector<64x16xf32>
    %807 = arith.addf %800, %806 : vector<64x16xf32>
    %c1_763 = arith.constant 1 : index
    %c2_764 = arith.constant 2 : index
    %c0_765 = arith.constant 0 : index
    %808 = vector.load %arg10[%c1_763, %c2_764, %c0_765] : memref<10x10x16xf32, #tpu.memory_space<vmem>>, vector<8x8x16xf32>
    %809 = vector.shape_cast %808 : vector<8x8x16xf32> to vector<64x16xf32>
    %810 = arith.truncf %809 : vector<64x16xf32> to vector<64x16xbf16>
    %c5_766 = arith.constant 5 : index
    %c0_767 = arith.constant 0 : index
    %c0_768 = arith.constant 0 : index
    %811 = vector.load %arg7[%c5_766, %c0_767, %c0_768] : memref<9x16x16xbf16, #tpu.memory_space<vmem>>, vector<1x16x16xbf16>
    %812 = vector.shape_cast %811 : vector<1x16x16xbf16> to vector<16x16xbf16>
    %cst_769 = arith.constant dense<0.000000e+00> : vector<64x16xf32>
    %813 = tpu.matmul %810, %812, %cst_769 {dimension_numbers = #tpu.dot_dimension_numbers<[1], [0], [0], [1], [0, 0, 1, 1], [], []>} : vector<64x16xbf16>, vector<16x16xbf16>, vector<64x16xf32> -> vector<64x16xf32>
    %814 = arith.addf %807, %813 : vector<64x16xf32>
    %c2_770 = arith.constant 2 : index
    %c0_771 = arith.constant 0 : index
    %c0_772 = arith.constant 0 : index
    %815 = vector.load %arg10[%c2_770, %c0_771, %c0_772] : memref<10x10x16xf32, #tpu.memory_space<vmem>>, vector<8x8x16xf32>
    %816 = vector.shape_cast %815 : vector<8x8x16xf32> to vector<64x16xf32>
    %817 = arith.truncf %816 : vector<64x16xf32> to vector<64x16xbf16>
    %c6_773 = arith.constant 6 : index
    %c0_774 = arith.constant 0 : index
    %c0_775 = arith.constant 0 : index
    %818 = vector.load %arg7[%c6_773, %c0_774, %c0_775] : memref<9x16x16xbf16, #tpu.memory_space<vmem>>, vector<1x16x16xbf16>
    %819 = vector.shape_cast %818 : vector<1x16x16xbf16> to vector<16x16xbf16>
    %cst_776 = arith.constant dense<0.000000e+00> : vector<64x16xf32>
    %820 = tpu.matmul %817, %819, %cst_776 {dimension_numbers = #tpu.dot_dimension_numbers<[1], [0], [0], [1], [0, 0, 1, 1], [], []>} : vector<64x16xbf16>, vector<16x16xbf16>, vector<64x16xf32> -> vector<64x16xf32>
    %821 = arith.addf %814, %820 : vector<64x16xf32>
    %c2_777 = arith.constant 2 : index
    %c1_778 = arith.constant 1 : index
    %c0_779 = arith.constant 0 : index
    %822 = vector.load %arg10[%c2_777, %c1_778, %c0_779] : memref<10x10x16xf32, #tpu.memory_space<vmem>>, vector<8x8x16xf32>
    %823 = vector.shape_cast %822 : vector<8x8x16xf32> to vector<64x16xf32>
    %824 = arith.truncf %823 : vector<64x16xf32> to vector<64x16xbf16>
    %c7_780 = arith.constant 7 : index
    %c0_781 = arith.constant 0 : index
    %c0_782 = arith.constant 0 : index
    %825 = vector.load %arg7[%c7_780, %c0_781, %c0_782] : memref<9x16x16xbf16, #tpu.memory_space<vmem>>, vector<1x16x16xbf16>
    %826 = vector.shape_cast %825 : vector<1x16x16xbf16> to vector<16x16xbf16>
    %cst_783 = arith.constant dense<0.000000e+00> : vector<64x16xf32>
    %827 = tpu.matmul %824, %826, %cst_783 {dimension_numbers = #tpu.dot_dimension_numbers<[1], [0], [0], [1], [0, 0, 1, 1], [], []>} : vector<64x16xbf16>, vector<16x16xbf16>, vector<64x16xf32> -> vector<64x16xf32>
    %828 = arith.addf %821, %827 : vector<64x16xf32>
    %c2_784 = arith.constant 2 : index
    %c2_785 = arith.constant 2 : index
    %c0_786 = arith.constant 0 : index
    %829 = vector.load %arg10[%c2_784, %c2_785, %c0_786] : memref<10x10x16xf32, #tpu.memory_space<vmem>>, vector<8x8x16xf32>
    %830 = vector.shape_cast %829 : vector<8x8x16xf32> to vector<64x16xf32>
    %831 = arith.truncf %830 : vector<64x16xf32> to vector<64x16xbf16>
    %c8_787 = arith.constant 8 : index
    %c0_788 = arith.constant 0 : index
    %c0_789 = arith.constant 0 : index
    %832 = vector.load %arg7[%c8_787, %c0_788, %c0_789] : memref<9x16x16xbf16, #tpu.memory_space<vmem>>, vector<1x16x16xbf16>
    %833 = vector.shape_cast %832 : vector<1x16x16xbf16> to vector<16x16xbf16>
    %cst_790 = arith.constant dense<0.000000e+00> : vector<64x16xf32>
    %834 = tpu.matmul %831, %833, %cst_790 {dimension_numbers = #tpu.dot_dimension_numbers<[1], [0], [0], [1], [0, 0, 1, 1], [], []>} : vector<64x16xbf16>, vector<16x16xbf16>, vector<64x16xf32> -> vector<64x16xf32>
    %835 = arith.addf %828, %834 : vector<64x16xf32>
    %836 = vector.shape_cast %835 : vector<64x16xf32> to vector<8x8x16xf32>
    %837 = arith.addf %718, %836 : vector<8x8x16xf32>
    %c0_791 = arith.constant 0 : index
    %c0_792 = arith.constant 0 : index
    %c0_793 = arith.constant 0 : index
    %c0_794 = arith.constant 0 : index
    %838 = vector.load %arg8[%c0_791, %c0_792, %c0_793, %c0_794] : memref<1x8x8x16xf32, #tpu.memory_space<vmem>>, vector<1x8x8x16xf32>
    %839 = vector.shape_cast %838 : vector<1x8x8x16xf32> to vector<8x8x16xf32>
    %840 = vector.shape_cast %837 : vector<8x8x16xf32> to vector<1x8x8x16xf32>
    tpu.vector_store %arg8[%c0_791, %c0_792, %c0_793, %c0_794], %840 {strides = array<i32>} : memref<1x8x8x16xf32, #tpu.memory_space<vmem>>, vector<1x8x8x16xf32>,
    return
  }
  func.func @transform_0(%arg0: i32) -> (i32, i32, i32, i32) {
    %c0_i32 = arith.constant 0 : i32
    %c0_i32_0 = arith.constant 0 : i32
    %c0_i32_1 = arith.constant 0 : i32
    %c0_i32_2 = arith.constant 0 : i32
    return %arg0, %c0_i32, %c0_i32_0, %c0_i32_1 : i32, i32, i32, i32
  }
  func.func @transform_1(%arg0: i32) -> (i32, i32, i32, i32) {
    %c0_i32 = arith.constant 0 : i32
    %c0_i32_0 = arith.constant 0 : i32
    %c0_i32_1 = arith.constant 0 : i32
    %c0_i32_2 = arith.constant 0 : i32
    return %arg0, %c0_i32, %c0_i32_0, %c0_i32_1 : i32, i32, i32, i32
  }
  func.func @transform_2(%arg0: i32) -> (i32, i32, i32) {
    %c0_i32 = arith.constant 0 : i32
    %c0_i32_0 = arith.constant 0 : i32
    %c0_i32_1 = arith.constant 0 : i32
    %c0_i32_2 = arith.constant 0 : i32
    return %c0_i32, %c0_i32_0, %c0_i32_1 : i32, i32, i32
  }
  func.func @transform_3(%arg0: i32) -> (i32, i32, i32) {
    %c0_i32 = arith.constant 0 : i32
    %c0_i32_0 = arith.constant 0 : i32
    %c0_i32_1 = arith.constant 0 : i32
    %c0_i32_2 = arith.constant 0 : i32
    return %c0_i32, %c0_i32_0, %c0_i32_1 : i32, i32, i32
  }
  func.func @transform_4(%arg0: i32) -> (i32, i32, i32) {
    %c0_i32 = arith.constant 0 : i32
    %c0_i32_0 = arith.constant 0 : i32
    %c0_i32_1 = arith.constant 0 : i32
    %c0_i32_2 = arith.constant 0 : i32
    return %c0_i32, %c0_i32_0, %c0_i32_1 : i32, i32, i32
  }
  func.func @transform_5(%arg0: i32) -> (i32, i32, i32) {
    %c0_i32 = arith.constant 0 : i32
    %c0_i32_0 = arith.constant 0 : i32
    %c0_i32_1 = arith.constant 0 : i32
    %c0_i32_2 = arith.constant 0 : i32
    return %c0_i32, %c0_i32_0, %c0_i32_1 : i32, i32, i32
  }
  func.func @transform_6(%arg0: i32) -> (i32, i32, i32) {
    %c0_i32 = arith.constant 0 : i32
    %c0_i32_0 = arith.constant 0 : i32
    %c0_i32_1 = arith.constant 0 : i32
    %c0_i32_2 = arith.constant 0 : i32
    return %c0_i32, %c0_i32_0, %c0_i32_1 : i32, i32, i32
  }
  func.func @transform_7(%arg0: i32) -> (i32, i32, i32, i32) {
    %c0_i32 = arith.constant 0 : i32
    %c0_i32_0 = arith.constant 0 : i32
    %c0_i32_1 = arith.constant 0 : i32
    %c0_i32_2 = arith.constant 0 : i32
    return %arg0, %c0_i32, %c0_i32_0, %c0_i32_1 : i32, i32, i32, i32
  }
}

</mosaic_0001>

<bundles_post_ra>
// kernel: mmf_forward.1
= control target key start
LH: loop header
LB: loop body
LE: loop exit
PB: predicated region body
PF: predicated region fallthrough
CT: control target
= control target key end

     0   :  { %12 = vsyncpa [#allocation6], 0  ;;  %s16700_s0 = inlined_call_operand.vmem [shape: f32[2,8,8,16], index: 0, kind: input, shape index: {}]   ;;  %s16701_s1 = inlined_call_operand.vmem [shape: f32[2,8,8,16], index: 1, kind: input, shape index: {}]   ;;  %s16702_s2 = inlined_call_operand.vmem [shape: bf16[2,16,8], index: 2, kind: input, shape index: {}]   ;;  %s16703_s3 = inlined_call_operand.vmem [shape: bf16[72,8,8], index: 3, kind: input, shape index: {}]   ;;  %s16704_s4 = inlined_call_operand.vmem [shape: f32[4,1,8], index: 4, kind: input, shape index: {}]   ;;  %s16705_s5 = inlined_call_operand.vmem [shape: bf16[18,8,16], index: 5, kind: input, shape index: {}]   ;;  %s16706_s6 = inlined_call_operand.vmem [shape: bf16[9,16,16], index: 6, kind: input, shape index: {}]   ;;  %s16707_s7 = inlined_call_operand.hbm [shape: f32[2,8,8,16], index: 7, kind: output, shape index: {}]  }
   0x1   :  { %14 = vsyncpa [#allocation6 + $0x1], 0  ;;  %s14321_s24 = smov 0   ;;  %s14323_s25 = smov 0  }
   0x2   :  { %s14325_s26 = smov 0   ;;  %s14327_s27 = smov 0  }
   0x3 LB: > { %s14342_s28 = sadd.s32 4294967295, %s14274_s27   ;;  %s11293_s29 = sadd.s32 4294967294, %s14274_s27   ;;  %s14274_s27 = sphi %s14327_s27, %s16750_s27   ;;  %s14270_s26 = sphi %s14325_s26, %s16749_s26   ;;  %s14266_s25 = sphi %s14323_s25, %s16748_s25   ;;  %s14262_s24 = sphi %s14321_s24, %s16747_s24  }
   0x4   : > { %s14346_s30 = sadd.s32 1, %s14274_s27   ;;  %s184_s8 = sadd.s32 1, %s14270_s26 }
   0x5   : > { %s181_s9 = ssub.s32 %s14274_s27, %s14346_s30  ;;  %p194_p0 = scmp.ne.s32.totalorder %s14270_s26, %s14266_s25 }
   0x6   : > { %p182_p1 = scmp.eq.s32.totalorder %s181_s9, 0  ;;  %p195_p2 = scmp.eq.s32.totalorder %s14342_s28, 1 }
   0x7   : > { %p200_p3 = scmp.ne.s32.totalorder %s14266_s25, %s14262_s24  ;;  %p201_p4 = scmp.eq.s32.totalorder %s11293_s29, 1 }
   0x8   : > { %s14357_s10 = scalar_select %p182_p1, %s14270_s26, %s184_s8  }
   0x9   : > { %p14359_p5 = por %p195_p2, %p194_p0  ;;  %p14363_p6 = por %p201_p4, %p200_p3 }
   0xa   : > { %p11296_p7 = scmp.ge.s32.totalorder %s14274_s27, 1  ;;  %p250_p8 = scmp.lt.s32.totalorder %s14274_s27, 3 }
   0xc   : > { %p251_p9 = pnand %p11296_p7, %p250_p8 }
   0xe   : > { %254 = sbr.rel (%p251_p9) target bundleno = 3863 (0xf17), region = 48 }
  0x15   : > { %v14201_v0 = vld [vmem:[%s16702_s2] sm:$0xff]   ;;  %p287_p10 = scmp.lt.s32.totalorder %s14342_s28, 1  ;;  %vm320_vm0 = vcmask 130048   ;;  %vm298_vm1 = vcmask 64512   ;;  %vm300_vm2 = vcmask 58368   ;;  %v16708_v1 = vmov 0.0  }
  0x16   : > { %12343 = vmatprep.subr.bf16.mxu0 %v14201_v0  ;;  %306 = vst.msk [vmem:[#allocation2 + $0x30] sm:$0xff] %vm298_vm1, %v16708_v1  ;;  %299 = vst.msk [vmem:[#allocation2] sm:$0xff] %vm298_vm1, %v16708_v1  ;;  %v11307_v14 = vld [vmem:[%s16703_s3 + $0x4] sm:$0xf]  ;;  %vm496_vm3 = vcmask 1043456   ;;  %vm9814_vm4 = vcmask 125952  }
  0x17   : > { %s14374_s15 = scalar_select %p287_p10, %s14342_s28, 1  ;;  %307 = vst.msk [vmem:[#allocation2 + $0x38] sm:$0x3] %vm300_vm2, %v16708_v1  ;;  %301 = vst.msk [vmem:[#allocation2 + $0x8] sm:$0x3] %vm300_vm2, %v16708_v1  ;;  %12344 = vmatpush3.bf16.msra.mxu0 %v14201_v0  ;;  %v498_v15 = vsel %vm496_vm3, %v11307_v14, 0 }
  0x18   : > { %302 = vst.msk [vmem:[#allocation2 + $0x10] sm:$0xff] %vm298_vm1, %v16708_v1  ;;  %304 = vst.msk [vmem:[#allocation2 + $0x20] sm:$0xff] %vm298_vm1, %v16708_v1  ;;  %14067 = vmatprep.subr.msk.bf16.mxu0 %vm496_vm3, %v11307_v14  ;;  %v14454_v16 = vld [vmem:[%s16703_s3 + $0xc] sm:$0xf]  ;;  %v11326_v18 = vld [vmem:[%s16703_s3 + $0x10] sm:$0xf] }
  0x19   : > { %303 = vst.msk [vmem:[#allocation2 + $0x18] sm:$0x3] %vm300_vm2, %v16708_v1  ;;  %305 = vst.msk [vmem:[#allocation2 + $0x28] sm:$0x3] %vm300_vm2, %v16708_v1  ;;  %s11835_s16 = sshll.u32 %s14374_s15, 6  ;;  %14071 = vmatprep.subr.msk.bf16.mxu1 %vm496_vm3, %v14454_v16  ;;  %v14460_v17 = vsel %vm496_vm3, %v14454_v16, 0 }
  0x1a   : > { %308 = vst.msk [vmem:[#allocation2 + $0x40] sm:$0xff] %vm298_vm1, %v16708_v1  ;;  %310 = vst.msk [vmem:[#allocation2 + $0x50] sm:$0xff] %vm298_vm1, %v16708_v1  ;;  %s291_s19 = scalar_lea.vmem %s16700_s0, %s11835_s16  ;;  %13354 = vmatpush3.bf16.msra.mxu1 %v14460_v17  ;;  %v469_v19 = vld [vmem:[%s16703_s3] sm:$0xf]  ;;  %v11316_v43 = vld [vmem:[%s16703_s3 + $0x8] sm:$0xf]  ;;  %s296_s14 = scalar_lea.vmem %s16701_s1, %s11835_s16 }
  0x1b   : > { %309 = vst.msk [vmem:[#allocation2 + $0x48] sm:$0x3] %vm300_vm2, %v16708_v1  ;;  %311 = vst.msk [vmem:[#allocation2 + $0x58] sm:$0x3] %vm300_vm2, %v16708_v1  ;;  %v342_v2 = vld [vmem:[%s291_s19] sm:$0xff]  ;;  %v343_v3 = vld [vmem:[%s291_s19 + $0x8] sm:$0xff]  ;;  %14072 = vmatprep.subr.msk.bf16.mxu1 %vm496_vm3, %v11326_v18 }
  0x1c   : > { %312 = vst.msk [vmem:[#allocation2 + $0x60] sm:$0xff] %vm298_vm1, %v16708_v1  ;;  %314 = vst.msk [vmem:[#allocation2 + $0x70] sm:$0xff] %vm298_vm1, %v16708_v1  ;;  %v344_v4 = vld [vmem:[%s291_s19 + $0x10] sm:$0xff]  ;;  %v350_v5 = vpack.c.bf16 %v343_v3, %v342_v2  ;;  %v345_v6 = vld [vmem:[%s291_s19 + $0x18] sm:$0xff]  ;;  %v578_v42 = vsel %vm496_vm3, %v469_v19, 0  ;;  %v876_v59 = vsel %vm496_vm3, %v11326_v18, 0 }
  0x1d   : > { %313 = vst.msk [vmem:[#allocation2 + $0x68] sm:$0x3] %vm300_vm2, %v16708_v1  ;;  %315 = vst.msk [vmem:[#allocation2 + $0x78] sm:$0x3] %vm300_vm2, %v16708_v1  ;;  %v346_v7 = vld [vmem:[%s291_s19 + $0x20] sm:$0xff]  ;;  %v347_v8 = vld [vmem:[%s291_s19 + $0x28] sm:$0xff]  ;;  %v351_v9 = vpack.c.bf16 %v345_v6, %v344_v4 }
  0x1e   : > { %316 = vst.msk [vmem:[#allocation2 + $0x80] sm:$0xff] %vm298_vm1, %v16708_v1  ;;  %318 = vst.msk [vmem:[#allocation2 + $0x90] sm:$0xff] %vm298_vm1, %v16708_v1  ;;  %v352_v10 = vpack.c.bf16 %v347_v8, %v346_v7  ;;  %12345 = vmatprep.mubr.msk.bf16.mxu0 %vm320_vm0, %v350_v5  ;;  %v348_v11 = vld [vmem:[%s291_s19 + $0x30] sm:$0xff]  ;;  %v349_v12 = vld [vmem:[%s291_s19 + $0x38] sm:$0xff]  ;;  %v672_v7 = vsel %vm496_vm3, %v11316_v43, 0  ;;  %vm322_vm5 = vcmask 123904  }
  0x1f   : > { %317 = vst.msk [vmem:[#allocation2 + $0x88] sm:$0x3] %vm300_vm2, %v16708_v1  ;;  %319 = vst.msk [vmem:[#allocation2 + $0x98] sm:$0x3] %vm300_vm2, %v16708_v1  ;;  %12346 = vmatmul.mubr.msk.bf16.vlgmr.msra.gmra.mrb[0].mxu0 %vm320_vm0, %v351_v9  ;;  %v353_v13 = vpack.c.bf16 %v349_v12, %v348_v11  ;;  %v14492_v31 = vld [vmem:[#allocation2 + $0x1] sm:$0xff]  ;;  %s284_s19 = sand.u32 1, %s14266_s25  }
  0x20   : > { %321 = vst.msk [vmem:[#allocation3] sm:$0xff] %vm320_vm0, %v16708_v1  ;;  %324 = vst.msk [vmem:[#allocation3 + $0x10] sm:$0xff] %vm320_vm0, %v16708_v1  ;;  %12349 = vmatprep.mubr.msk.bf16.mxu0 %vm320_vm0, %v352_v10  ;;  %12354 = vmatpush3.bf16.msra.mxu0 %v498_v15  ;;  %v14516_v46 = vld [vmem:[#allocation2] sm:$0xff]  ;;  %v11331_v61 = vld [vmem:[%s16703_s3 + $0x14] sm:$0xf]  ;;  %s11297_s20 = sshll.u32 %s284_s19, 6 }
  0x21   : > { %326 = vst.msk [vmem:[#allocation3 + $0x20] sm:$0xff] %vm320_vm0, %v16708_v1  ;;  %328 = vst.msk [vmem:[#allocation3 + $0x30] sm:$0xff] %vm320_vm0, %v16708_v1  ;;  %14068 = vmatprep.subr.msk.bf16.mxu0 %vm496_vm3, %v469_v19  ;;  %v978_v5 = vsel %vm496_vm3, %v11331_v61, 0  ;;  %v11336_v8 = vld [vmem:[%s16703_s3 + $0x18] sm:$0xf]  ;;  %v14552_v9 = vld [vmem:[#allocation2 + $0x2] sm:$0xff] }
  0x22   : > { %330 = vst.msk [vmem:[#allocation3 + $0x40] sm:$0xff] %vm320_vm0, %v16708_v1  ;;  %332 = vst.msk [vmem:[#allocation3 + $0x50] sm:$0xff] %vm320_vm0, %v16708_v1  ;;  %s286_s21 = scalar_lea.vmem [#allocation5], %s11297_s20  ;;  %s11837_s22 = sshll.u32 %s14342_s28, 10 }
  0x23   : > { %334 = vst.msk [vmem:[#allocation3 + $0x60] sm:$0xff] %vm320_vm0, %v16708_v1  ;;  %336 = vst.msk [vmem:[#allocation3 + $0x70] sm:$0xff] %vm320_vm0, %v16708_v1  ;;  %s11219_s23 = sshll.u32 %s286_s21, 4  ;;  %s16648_s28 = scalar_lea.hbm %s16707_s7, %s11837_s22  ;;  %s16650_s23 = int_to_ptr.vmem [resolvable:$true] %s11219_s23 }
  0x24   : > { %338 = vst.msk [vmem:[#allocation3 + $0x80] sm:$0xff] %vm320_vm0, %v16708_v1  ;;  %340 = vst.msk [vmem:[#allocation3 + $0x90] sm:$0xff] %vm320_vm0, %v16708_v1  ;;  %s16659_s9 = scalar_lea.sflag [#allocation6], %s284_s19  ;;  %s14212_s13 = scalar_lea.vmem %s16650_s23, 1024 }
  0x25   : > { %p14213_p11 = scmp.ne.s32.totalorder %s16650_s23, %s14212_s13 }
  0x27   : > { %12350 = vmatmul.mubr.msk.bf16.gmra.mrb[4].mxu0 %vm320_vm0, %v353_v13  ;;  %p14214_p12 = pnand %p14213_p11, %p14359_p5 }
  0x29   : > { %p14215_p13 = pneg %p14214_p12 }
  0xf2   : > { %v14471_v20 = vpop.f32.mrb[0].mxu0 }
  0xf3   : > { %v442_v21 = vmax.f32 %v14471_v20, 0.0  ;;  %v14474_v22 = vpop.f32.mrb[1].mxu0 }
  0xf4   : > { %v440_v23 = vmax.f32 %v14474_v22, 0.0  ;;  %v14477_v24 = vpop.f32.mrb[2].mxu0 }
  0xf5   : > { %451 = vst.msk [vmem:[#allocation2 + $0x31] sm:$0xff] %vm298_vm1, %v442_v21  ;;  %v443_v25 = vmax.f32 %v14477_v24, 0.0  ;;  %v14481_v26 = vpop.f32.mrb[3].mxu0 }
  0xf6   : > { %449 = vst.msk [vmem:[#allocation2 + $0x11] sm:$0xff] %vm298_vm1, %v440_v23  ;;  %v441_v27 = vmax.f32 %v14481_v26, 0.0 }
  0xf7   : > { %452 = vst.msk [vmem:[#allocation2 + $0x41] sm:$0xff] %vm298_vm1, %v443_v25 }
  0xf8   : > { %450 = vst.msk [vmem:[#allocation2 + $0x21] sm:$0xff] %vm298_vm1, %v441_v27 }
  0xfa   : > { %v14487_v28 = vpop.f32.mrb[4].mxu0 }
  0xfb   : > { %v446_v29 = vmax.f32 %v14487_v28, 0.0  ;;  %v14490_v30 = vpop.f32.mrb[5].mxu0 }
  0xfc   : > { %v444_v32 = vmax.f32 %v14490_v30, 0.0  ;;  %v14495_v33 = vpop.f32.mrb[6].mxu0  ;;  %v473_v40 = vld [vmem:[#allocation2 + $0x31] sm:$0xff] }
  0xfd   : > { %455 = vst.msk [vmem:[#allocation2 + $0x71] sm:$0xff] %vm298_vm1, %v446_v29  ;;  %v447_v34 = vmax.f32 %v14495_v33, 0.0  ;;  %v14499_v35 = vpop.f32.mrb[7].mxu0  ;;  %v471_v36 = vld [vmem:[#allocation2 + $0x11] sm:$0xff] }
  0xfe   : > { %453 = vst.msk [vmem:[#allocation2 + $0x51] sm:$0xff] %vm298_vm1, %v444_v32  ;;  %v445_v37 = vmax.f32 %v14499_v35, 0.0  ;;  %v478_v38 = vpack.c.bf16 %v471_v36, %v14492_v31  ;;  %v474_v44 = vld [vmem:[#allocation2 + $0x41] sm:$0xff]  ;;  %v14520_v49 = vld [vmem:[#allocation2 + $0x10] sm:$0xff]  ;;  %v1081_v32 = vsel %vm496_vm3, %v11336_v8, 0 }
  0xff   : > { %456 = vst.msk [vmem:[#allocation2 + $0x81] sm:$0xff] %vm298_vm1, %v447_v34  ;;  %v472_v39 = vld [vmem:[#allocation2 + $0x21] sm:$0xff]  ;;  %v465_v57 = vpack.c.bf16 %v14520_v49, %v14516_v46  ;;  %v460_v63 = vld [vmem:[#allocation2 + $0x30] sm:$0xff]  ;;  %v858_v4 = vpack.c.bf16 %v474_v44, %v473_v40 }
 0x100   : > { %454 = vst.msk [vmem:[#allocation2 + $0x61] sm:$0xff] %vm298_vm1, %v445_v37  ;;  %12355 = vmatprep.mubr.msk.bf16.mxu0 %vm298_vm1, %v478_v38  ;;  %v14507_v41 = vpack.c.bf16 %v473_v40, %v472_v39  ;;  %v857_v60 = vpack.c.bf16 %v472_v39, %v471_v36  ;;  %v459_v62 = vld [vmem:[#allocation2 + $0x20] sm:$0xff]  ;;  %v646_v10 = vld [vmem:[#allocation2 + $0x12] sm:$0xff]  ;;  %v11341_v36 = vld [vmem:[%s16703_s3 + $0x1c] sm:$0xf] }
 0x101   : > { %v750_v0 = vld [vmem:[#allocation2 + $0x40] sm:$0xff]  ;;  %v466_v2 = vpack.c.bf16 %v460_v63, %v459_v62  ;;  %v653_v14 = vpack.c.bf16 %v646_v10, %v14552_v9  ;;  %v648_v23 = vld [vmem:[#allocation2 + $0x32] sm:$0xff]  ;;  %v755_v40 = vpack.c.bf16 %v459_v62, %v14520_v49 }
 0x102   : > { %12356 = vmatmul.mubr.msk.bf16.vlgmr.msra.gmra.mrb[8].mxu0 %vm298_vm1, %v14507_v41  ;;  %v647_v12 = vld [vmem:[#allocation2 + $0x22] sm:$0xff] }
 0x103   : > { %12364 = vmatpush3.bf16.msra.mxu0 %v578_v42  ;;  %v959_v18 = vpack.c.bf16 %v647_v12, %v646_v10  ;;  %v954_v19 = vld [vmem:[#allocation2 + $0x42] sm:$0xff]  ;;  %v654_v27 = vpack.c.bf16 %v648_v23, %v647_v12 }
 0x104   : > { %14069 = vmatprep.subr.msk.bf16.mxu0 %vm496_vm3, %v11316_v43  ;;  %v477_v48 = vld [vmem:[#allocation2 + $0x71] sm:$0xff]  ;;  %v960_v29 = vpack.c.bf16 %v954_v19, %v648_v23  ;;  %v756_v43 = vpack.c.bf16 %v750_v0, %v460_v63  ;;  %v11351_v63 = vld [vmem:[%s16704_s4] ss:$0 sm:$0xff] }
 0x105   : > { %v475_v45 = vld [vmem:[#allocation2 + $0x51] sm:$0xff] }
 0x106   : > { %v14518_v47 = vpack.c.bf16 %v475_v45, %v474_v44  ;;  %v14522_v50 = vld [vmem:[#allocation2 + $0x80] sm:$0xff]  ;;  %v1057_v51 = vld [vmem:[#allocation2 + $0x50] sm:$0xff]  ;;  %v1183_v44 = vsel %vm496_vm3, %v11341_v36, 0 }
 0x107   : > { %v476_v52 = vld [vmem:[#allocation2 + $0x61] sm:$0xff]  ;;  %v753_v56 = vld [vmem:[#allocation2 + $0x70] sm:$0xff]  ;;  %v467_v3 = vpack.c.bf16 %v1057_v51, %v750_v0 }
 0x108   : > { %v752_v53 = vld [vmem:[#allocation2 + $0x60] sm:$0xff]  ;;  %12359 = vmatprep.mubr.msk.bf16.mxu0 %vm298_vm1, %v14518_v47  ;;  %v14526_v54 = vpack.c.bf16 %v477_v48, %v476_v52  ;;  %v758_v58 = vpack.c.bf16 %v14522_v50, %v753_v56  ;;  %v859_v6 = vpack.c.bf16 %v476_v52, %v475_v45  ;;  %v1261_v21 = vld [vmem:[#allocation2 + $0x52] sm:$0xff] }
 0x109   : > { %v757_v55 = vpack.c.bf16 %v752_v53, %v1057_v51  ;;  %v856_v11 = vld [vmem:[#allocation2 + $0x81] sm:$0xff]  ;;  %v468_v13 = vpack.c.bf16 %v753_v56, %v752_v53  ;;  %v652_v38 = vld [vmem:[#allocation2 + $0x72] sm:$0xff] }
 0x10a   : > { %12360 = vmatmul.mubr.msk.bf16.gmra.mrb[12].mxu0 %vm298_vm1, %v14526_v54  ;;  %v860_v15 = vpack.c.bf16 %v856_v11, %v477_v48  ;;  %v956_v25 = vld [vmem:[#allocation2 + $0x62] sm:$0xff]  ;;  %v14584_v45 = vld [vmem:[#allocation2 + $0x90] sm:$0xff] }
 0x10b   : > { %12389 = vmatprep.mubr.msk.bf16.mxu1 %vm298_vm1, %v757_v55  ;;  %12365 = vmatprep.mubr.msk.bf16.mxu0 %vm298_vm1, %v465_v57  ;;  %v961_v34 = vpack.c.bf16 %v956_v25, %v1261_v21  ;;  %v958_v37 = vld [vmem:[#allocation2 + $0x82] sm:$0xff]  ;;  %v656_v39 = vpack.c.bf16 %v652_v38, %v956_v25  ;;  %v1065_v48 = vpack.c.bf16 %v14584_v45, %v14522_v50  ;;  %v14596_v51 = vld [vmem:[#allocation2 + $0x91] sm:$0xff] }
 0x10c   : > { %12390 = vmatmul.mubr.msk.bf16.vlgmr.msra.gmra.mrb[0].mxu1 %vm298_vm1, %v758_v58  ;;  %v962_v42 = vpack.c.bf16 %v958_v37, %v652_v38  ;;  %v1167_v52 = vpack.c.bf16 %v14596_v51, %v856_v11  ;;  %v11353_v50 = vld [vmem:[%s16703_s3 + $0x28] sm:$0xf] }
 0x10d   : > { %12394 = vmatpush3.bf16.msra.mxu1 %v876_v59  ;;  %12395 = vmatprep.mubr.msk.bf16.mxu1 %vm298_vm1, %v857_v60  ;;  %v1431_v53 = vsel %vm496_vm3, %v11353_v50, 0 }
 0x10e   : > { %14073 = vmatprep.subr.msk.bf16.mxu1 %vm496_vm3, %v11331_v61 }
 0x112   : > { %12366 = vmatmul.mubr.msk.bf16.vlgmr.msra.gmra.mrb[8].mxu0 %vm298_vm1, %v466_v2 }
 0x113   : > { %12369 = vmatprep.mubr.msk.bf16.mxu0 %vm298_vm1, %v467_v3  ;;  %12374 = vmatpush3.bf16.msra.mxu0 %v672_v7 }
 0x114   : > { %12396 = vmatmul.mubr.msk.bf16.vlgmr.msra.gmra.mrb[4].mxu1 %vm298_vm1, %v858_v4  ;;  %14070 = vmatprep.subr.msk.bf16.mxu0 %vm496_vm3, %v14454_v16  ;;  %v655_v16 = vpack.c.bf16 %v1261_v21, %v954_v19 }
 0x115   : > { %12404 = vmatpush3.bf16.msra.mxu1 %v978_v5  ;;  %12399 = vmatprep.mubr.msk.bf16.mxu1 %vm298_vm1, %v859_v6 }
 0x116   : > { %14074 = vmatprep.subr.msk.bf16.mxu1 %vm496_vm3, %v11336_v8 }
 0x11a   : > { %12370 = vmatmul.mubr.msk.bf16.gmra.mrb[12].mxu0 %vm298_vm1, %v468_v13 }
 0x11b   : > { %12375 = vmatprep.mubr.msk.bf16.mxu0 %vm298_vm1, %v653_v14 }
 0x11c   : > { %12400 = vmatmul.mubr.msk.bf16.gmra.mrb[0].mxu1 %vm298_vm1, %v860_v15 }
 0x11d   : > { %12405 = vmatprep.mubr.msk.bf16.mxu1 %vm298_vm1, %v959_v18 }
 0x122   : > { %12376 = vmatmul.mubr.msk.bf16.vlgmr.msra.gmra.mrb[8].mxu0 %vm298_vm1, %v654_v27 }
 0x123   : > { %12379 = vmatprep.mubr.msk.bf16.mxu0 %vm298_vm1, %v655_v16  ;;  %12384 = vmatpush3.bf16.msra.mxu0 %v14460_v17  ;;  %v11346_v17 = vld [vmem:[%s16703_s3 + $0x20] sm:$0xf] }
 0x124   : > { %12406 = vmatmul.mubr.msk.bf16.vlgmr.msra.gmra.mrb[4].mxu1 %vm298_vm1, %v960_v29  ;;  %v1285_v49 = vsel %vm496_vm3, %v11346_v17, 0  ;;  %14077 = vmatprep.subr.msk.bf16.mxu0 %vm496_vm3, %v11353_v50 }
 0x125   : > { %12414 = vmatpush3.bf16.msra.mxu1 %v1081_v32  ;;  %12409 = vmatprep.mubr.msk.bf16.mxu1 %vm298_vm1, %v961_v34 }
 0x126   : > { %14075 = vmatprep.subr.msk.bf16.mxu1 %vm496_vm3, %v11341_v36 }
 0x12a   : > { %12380 = vmatmul.mubr.msk.bf16.gmra.mrb[12].mxu0 %vm298_vm1, %v656_v39 }
 0x12b   : > { %12385 = vmatprep.mubr.msk.bf16.mxu0 %vm298_vm1, %v755_v40 }
 0x12c   : > { %12410 = vmatmul.mubr.msk.bf16.gmra.mrb[0].mxu1 %vm298_vm1, %v962_v42 }
 0x12d   : > { %12415 = vmatprep.mubr.msk.bf16.mxu1 %vm298_vm1, %v466_v2 }
 0x132   : > { %12386 = vmatmul.mubr.msk.bf16.vlgmr.msra.gmra.mrb[8].mxu0 %vm298_vm1, %v756_v43 }
 0x133   : > { %12444 = vmatpush3.bf16.msra.mxu0 %v1431_v53  ;;  %v11362_v53 = vld [vmem:[%s16703_s3 + $0x2c] sm:$0xf] }
 0x134   : > { %12416 = vmatmul.mubr.msk.bf16.vlgmr.msra.gmra.mrb[4].mxu1 %vm298_vm1, %v467_v3 }
 0x135   : > { %12424 = vmatpush3.bf16.msra.mxu1 %v1183_v44  ;;  %12419 = vmatprep.mubr.msk.bf16.mxu1 %vm298_vm1, %v468_v13 }
 0x136   : > { %14076 = vmatprep.subr.msk.bf16.mxu1 %vm496_vm3, %v11346_v17 }
 0x13c   : > { %12420 = vmatmul.mubr.msk.bf16.gmra.mrb[0].mxu1 %vm298_vm1, %v1065_v48 }
 0x13d   : > { %12425 = vmatprep.mubr.msk.bf16.mxu1 %vm298_vm1, %v14507_v41  ;;  %v14603_v41 = vld [vmem:[#allocation2 + $0x92] sm:$0xff] }
 0x144   : > { %12426 = vmatmul.mubr.msk.bf16.vlgmr.msra.gmra.mrb[4].mxu1 %vm298_vm1, %v14518_v47  ;;  %v1269_v47 = vpack.c.bf16 %v14603_v41, %v958_v37 }
 0x145   : > { %12434 = vmatpush3.bf16.msra.mxu1 %v1285_v49  ;;  %12429 = vmatprep.mubr.msk.bf16.mxu1 %vm298_vm1, %v14526_v54  ;;  %v11352_v54 = vld [vmem:[%s16703_s3 + $0x24] sm:$0xf] }
 0x146   : > { %14078 = vmatprep.subr.msk.bf16.mxu0 %vm496_vm3, %v11352_v54  ;;  %v1511_v50 = vsel %vm496_vm3, %v11352_v54, 0 }
 0x14c   : > { %12430 = vmatmul.mubr.msk.bf16.gmra.mrb[0].mxu1 %vm298_vm1, %v1167_v52 }
 0x14d   : > { %12435 = vmatprep.mubr.msk.bf16.mxu1 %vm298_vm1, %v654_v27 }
 0x154   : > { %12436 = vmatmul.mubr.msk.bf16.vlgmr.msra.gmra.mrb[4].mxu1 %vm298_vm1, %v655_v16 }
 0x155   : > { %12439 = vmatprep.mubr.msk.bf16.mxu1 %vm298_vm1, %v656_v39 }
 0x15c   : > { %12440 = vmatmul.mubr.msk.bf16.gmra.mrb[0].mxu1 %vm298_vm1, %v1269_v47 }
 0x1fd   : > { %v12381_v55 = vpop.f32.mrb[12].mxu0 }
 0x1fe   : > { %v724_v56 = vpop.f32.mrb[13].mxu0 }
 0x1ff   : > { %v12382_v57 = vpop.f32.mrb[14].mxu0 }
 0x200   : > { %v727_v58 = vpop.f32.mrb[15].mxu0 }
 0x205   : > { %v12387_v59 = vpop.f32.mrb[8].mxu0 }
 0x206   : > { %v810_v60 = vpop.f32.mrb[9].mxu0 }
 0x207   : > { %v12388_v61 = vpop.f32.mrb[10].mxu0 }
 0x208   : > { %v813_v62 = vpop.f32.mrb[11].mxu0 }
 0x227   : > { %v12437_v0 = vpop.f32.mrb[4].mxu1 }
 0x228   : > { %v13355_v2 = vadd.f32 %v12437_v0, %v12387_v59  ;;  %v1321_v3 = vpop.f32.mrb[5].mxu1 }
 0x229   : > { %v13356_v4 = vadd.f32 %v1321_v3, %v810_v60  ;;  %v12438_v5 = vpop.f32.mrb[6].mxu1  ;;  %v1605_v3 = vsel %vm496_vm3, %v11362_v53, 0 }
 0x22a   : > { %v1368_v6 = vadd.f32 %v13355_v2, %v11351_v63  ;;  %v13357_v7 = vadd.f32 %v12438_v5, %v12388_v61  ;;  %v1324_v8 = vpop.f32.mrb[7].mxu1 }
 0x22b   : > { %v1366_v10 = vadd.f32 %v13356_v4, %v11351_v63  ;;  %v13358_v11 = vadd.f32 %v1324_v8, %v813_v62 }
 0x22c   : > { %v1376_v12 = vmax.f32 %v1368_v6, 0.0  ;;  %v1369_v13 = vadd.f32 %v13357_v7, %v11351_v63  ;;  %v11367_v6 = vld [vmem:[%s16703_s3 + $0x30] sm:$0xf] }
 0x22d   : > { %v1374_v14 = vmax.f32 %v1366_v10, 0.0  ;;  %v1367_v15 = vadd.f32 %v13358_v11, %v11351_v63 }
 0x22e   : > { %1384 = vst.msk [vmem:[#allocation2 + $0x31] sm:$0xff] %vm298_vm1, %v1376_v12  ;;  %v1377_v18 = vmax.f32 %v1369_v13, 0.0 }
 0x22f   : > { %1382 = vst.msk [vmem:[#allocation2 + $0x11] sm:$0xff] %vm298_vm1, %v1374_v14  ;;  %v1375_v19 = vmax.f32 %v1367_v15, 0.0  ;;  %v12441_v21 = vpop.f32.mrb[0].mxu1 }
 0x230   : > { %1385 = vst.msk [vmem:[#allocation2 + $0x41] sm:$0xff] %vm298_vm1, %v1377_v18  ;;  %v13359_v23 = vadd.f32 %v12441_v21, %v12381_v55  ;;  %v1337_v25 = vpop.f32.mrb[1].mxu1 }
 0x231   : > { %1383 = vst.msk [vmem:[#allocation2 + $0x21] sm:$0xff] %vm298_vm1, %v1375_v19  ;;  %v13360_v27 = vadd.f32 %v1337_v25, %v724_v56  ;;  %v12442_v16 = vpop.f32.mrb[2].mxu1  ;;  %v1707_v19 = vsel %vm496_vm3, %v11367_v6, 0  ;;  %v11372_v25 = vld [vmem:[%s16703_s3 + $0x34] sm:$0xf] }
 0x232   : > { %v1372_v29 = vadd.f32 %v13359_v23, %v11351_v63  ;;  %v13361_v32 = vadd.f32 %v12442_v16, %v12382_v57  ;;  %v1340_v34 = vpop.f32.mrb[3].mxu1 }
 0x233   : > { %v1370_v36 = vadd.f32 %v13360_v27, %v11351_v63  ;;  %v13362_v37 = vadd.f32 %v1340_v34, %v727_v58 }
 0x234   : > { %v1380_v38 = vmax.f32 %v1372_v29, 0.0  ;;  %v1373_v39 = vadd.f32 %v13361_v32, %v11351_v63 }
 0x235   : > { %v1378_v40 = vmax.f32 %v1370_v36, 0.0  ;;  %v1371_v42 = vadd.f32 %v13362_v37, %v11351_v63  ;;  %v14632_v52 = vld [vmem:[#allocation2 + $0x31] sm:$0xff]  ;;  %v1809_v36 = vsel %vm496_vm3, %v11372_v25, 0 }
 0x236   : > { %1388 = vst.msk [vmem:[#allocation2 + $0x71] sm:$0xff] %vm298_vm1, %v1380_v38  ;;  %v1381_v43 = vmax.f32 %v1373_v39, 0.0  ;;  %v14624_v44 = vld [vmem:[#allocation2 + $0x11] sm:$0xff] }
 0x237   : > { %1386 = vst.msk [vmem:[#allocation2 + $0x51] sm:$0xff] %vm298_vm1, %v1378_v40  ;;  %v1379_v17 = vmax.f32 %v1371_v42, 0.0  ;;  %v1412_v48 = vpack.c.bf16 %v14624_v44, %v14492_v31  ;;  %v14647_v55 = vld [vmem:[#allocation2 + $0x41] sm:$0xff]  ;;  %v1391_v58 = vld [vmem:[#allocation2 + $0x10] sm:$0xff]  ;;  %v11377_v38 = vld [vmem:[%s16703_s3 + $0x38] sm:$0xf] }
 0x238   : > { %1389 = vst.msk [vmem:[#allocation2 + $0x81] sm:$0xff] %vm298_vm1, %v1381_v43  ;;  %v14630_v49 = vld [vmem:[#allocation2 + $0x21] sm:$0xff]  ;;  %v1398_v61 = vpack.c.bf16 %v1391_v58, %v14516_v46  ;;  %v1393_v0 = vld [vmem:[#allocation2 + $0x30] sm:$0xff]  ;;  %v1791_v43 = vpack.c.bf16 %v14647_v55, %v14632_v52 }
 0x239   : > { %1387 = vst.msk [vmem:[#allocation2 + $0x61] sm:$0xff] %vm298_vm1, %v1379_v17  ;;  %12445 = vmatprep.mubr.msk.bf16.mxu0 %vm298_vm1, %v1412_v48  ;;  %v14638_v47 = vpack.c.bf16 %v14632_v52, %v14630_v49  ;;  %v1392_v62 = vld [vmem:[#allocation2 + $0x20] sm:$0xff]  ;;  %v1579_v8 = vld [vmem:[#allocation2 + $0x12] sm:$0xff]  ;;  %v1790_v42 = vpack.c.bf16 %v14630_v49, %v14624_v44  ;;  %v1911_v17 = vsel %vm496_vm3, %v11377_v38, 0 }
 0x23a   : > { %v14669_v2 = vpack.c.bf16 %v1393_v0, %v1392_v62  ;;  %v1394_v4 = vld [vmem:[#allocation2 + $0x40] sm:$0xff]  ;;  %v1586_v12 = vpack.c.bf16 %v1579_v8, %v14552_v9  ;;  %v1581_v15 = vld [vmem:[#allocation2 + $0x32] sm:$0xff]  ;;  %v1688_v32 = vpack.c.bf16 %v1392_v62, %v1391_v58 }
 0x23b   : > { %12446 = vmatmul.mubr.msk.bf16.vlgmr.msra.gmra.mrb[16].mxu0 %vm298_vm1, %v14638_v47  ;;  %v1580_v13 = vld [vmem:[#allocation2 + $0x22] sm:$0xff]  ;;  %v1689_v34 = vpack.c.bf16 %v1394_v4, %v1393_v0 }
 0x23c   : > { %12454 = vmatpush3.bf16.msra.mxu0 %v1511_v50  ;;  %v14688_v18 = vpack.c.bf16 %v1581_v15, %v1580_v13  ;;  %v1582_v21 = vld [vmem:[#allocation2 + $0x42] sm:$0xff]  ;;  %v11382_v50 = vld [vmem:[%s16703_s3 + $0x3c] sm:$0xf]  ;;  %v1892_v52 = vpack.c.bf16 %v1580_v13, %v1579_v8 }
 0x23d   : > { %14079 = vmatprep.subr.msk.bf16.mxu0 %vm496_vm3, %v11362_v53  ;;  %v14657_v59 = vld [vmem:[#allocation2 + $0x71] sm:$0xff]  ;;  %v1893_v53 = vpack.c.bf16 %v1582_v21, %v1581_v15  ;;  %v11387_v58 = vld [vmem:[%s16703_s3 + $0x40] sm:$0xf]  ;;  %v11392_v62 = vld [vmem:[%s16703_s3 + $0x44] sm:$0xf] }
 0x23e   : > { %v14649_v56 = vld [vmem:[#allocation2 + $0x51] sm:$0xff]  ;;  %v2217_v0 = vsel %vm496_vm3, %v11392_v62, 0 }
 0x23f   : > { %v14653_v57 = vpack.c.bf16 %v14649_v56, %v14647_v55  ;;  %v1395_v63 = vld [vmem:[#allocation2 + $0x50] sm:$0xff]  ;;  %v1687_v39 = vld [vmem:[#allocation2 + $0x80] sm:$0xff]  ;;  %v2013_v55 = vsel %vm496_vm3, %v11382_v50, 0 }
 0x240   : > { %v14655_v54 = vld [vmem:[#allocation2 + $0x61] sm:$0xff]  ;;  %v14672_v5 = vpack.c.bf16 %v1395_v63, %v1394_v4  ;;  %v1397_v10 = vld [vmem:[#allocation2 + $0x70] sm:$0xff] }
 0x241   : > { %12449 = vmatprep.mubr.msk.bf16.mxu0 %vm298_vm1, %v14653_v57  ;;  %v14663_v60 = vpack.c.bf16 %v14657_v59, %v14655_v54  ;;  %v1396_v7 = vld [vmem:[#allocation2 + $0x60] sm:$0xff]  ;;  %v1583_v14 = vld [vmem:[#allocation2 + $0x52] sm:$0xff]  ;;  %v1691_v40 = vpack.c.bf16 %v1687_v39, %v1397_v10  ;;  %v1792_v48 = vpack.c.bf16 %v14655_v54, %v14649_v56 }
 0x242   : > { %v14682_v11 = vpack.c.bf16 %v1397_v10, %v1396_v7  ;;  %v14691_v23 = vpack.c.bf16 %v1583_v14, %v1582_v21  ;;  %v1584_v27 = vld [vmem:[#allocation2 + $0x62] sm:$0xff]  ;;  %v1585_v16 = vld [vmem:[#allocation2 + $0x72] sm:$0xff]  ;;  %v1690_v37 = vpack.c.bf16 %v1396_v7, %v1395_v63  ;;  %v1997_v63 = vpack.c.bf16 %v14584_v45, %v1687_v39 }
 0x243   : > { %12450 = vmatmul.mubr.msk.bf16.gmra.mrb[20].mxu0 %vm298_vm1, %v14663_v60  ;;  %v1589_v29 = vpack.c.bf16 %v1585_v16, %v1584_v27  ;;  %v1789_v44 = vld [vmem:[#allocation2 + $0x81] sm:$0xff]  ;;  %v1894_v56 = vpack.c.bf16 %v1584_v27, %v1583_v14 }
 0x244   : > { %12455 = vmatprep.mubr.msk.bf16.mxu0 %vm298_vm1, %v1398_v61  ;;  %v1793_v49 = vpack.c.bf16 %v1789_v44, %v14657_v59  ;;  %v1891_v54 = vld [vmem:[#allocation2 + $0x82] sm:$0xff]  ;;  %v2115_v61 = vsel %vm496_vm3, %v11387_v58, 0 }
 0x245   : > { %v1895_v59 = vpack.c.bf16 %v1891_v54, %v1585_v16 }
 0x24b   : > { %12456 = vmatmul.mubr.msk.bf16.vlgmr.msra.gmra.mrb[16].mxu0 %vm298_vm1, %v14669_v2 }
 0x24c   : > { %12464 = vmatpush3.bf16.msra.mxu0 %v1605_v3  ;;  %12459 = vmatprep.mubr.msk.bf16.mxu0 %vm298_vm1, %v14672_v5  ;;  %v11398_v3 = vld [vmem:[%s16703_s3 + $0x48] sm:$0xf] }
 0x24d   : > { %14080 = vmatprep.subr.msk.bf16.mxu0 %vm496_vm3, %v11367_v6 }
 0x253   : > { %12460 = vmatmul.mubr.msk.bf16.gmra.mrb[20].mxu0 %vm298_vm1, %v14682_v11 }
 0x254   : > { %12465 = vmatprep.mubr.msk.bf16.mxu0 %vm298_vm1, %v1586_v12 }
 0x25b   : > { %12466 = vmatmul.mubr.msk.bf16.vlgmr.msra.gmra.mrb[16].mxu0 %vm298_vm1, %v14688_v18 }
 0x25c   : > { %12474 = vmatpush3.bf16.msra.mxu0 %v1707_v19  ;;  %12469 = vmatprep.mubr.msk.bf16.mxu0 %vm298_vm1, %v14691_v23 }
 0x25d   : > { %14081 = vmatprep.subr.msk.bf16.mxu0 %vm496_vm3, %v11372_v25 }
 0x263   : > { %12470 = vmatmul.mubr.msk.bf16.gmra.mrb[20].mxu0 %vm298_vm1, %v1589_v29 }
 0x264   : > { %12475 = vmatprep.mubr.msk.bf16.mxu0 %vm298_vm1, %v1688_v32 }
 0x26b   : > { %12476 = vmatmul.mubr.msk.bf16.vlgmr.msra.gmra.mrb[16].mxu0 %vm298_vm1, %v1689_v34 }
 0x26c   : > { %12484 = vmatpush3.bf16.msra.mxu0 %v1809_v36  ;;  %12479 = vmatprep.mubr.msk.bf16.mxu0 %vm298_vm1, %v1690_v37  ;;  %v2439_v36 = vsel %vm496_vm3, %v11398_v3, 0 }
 0x26d   : > { %14082 = vmatprep.subr.msk.bf16.mxu0 %vm496_vm3, %v11377_v38 }
 0x273   : > { %12480 = vmatmul.mubr.msk.bf16.gmra.mrb[20].mxu0 %vm298_vm1, %v1691_v40 }
 0x274   : > { %12485 = vmatprep.mubr.msk.bf16.mxu0 %vm298_vm1, %v1790_v42 }
 0x27b   : > { %12486 = vmatmul.mubr.msk.bf16.vlgmr.msra.gmra.mrb[16].mxu0 %vm298_vm1, %v1791_v43 }
 0x27c   : > { %12494 = vmatpush3.bf16.msra.mxu0 %v1911_v17  ;;  %12489 = vmatprep.mubr.msk.bf16.mxu0 %vm298_vm1, %v1792_v48 }
 0x27d   : > { %14083 = vmatprep.subr.msk.bf16.mxu0 %vm496_vm3, %v11382_v50 }
 0x283   : > { %12490 = vmatmul.mubr.msk.bf16.gmra.mrb[20].mxu0 %vm298_vm1, %v1793_v49 }
 0x284   : > { %12495 = vmatprep.mubr.msk.bf16.mxu0 %vm298_vm1, %v1892_v52 }
 0x28b   : > { %12496 = vmatmul.mubr.msk.bf16.vlgmr.msra.gmra.mrb[16].mxu0 %vm298_vm1, %v1893_v53 }
 0x28c   : > { %12504 = vmatpush3.bf16.msra.mxu0 %v2013_v55  ;;  %12499 = vmatprep.mubr.msk.bf16.mxu0 %vm298_vm1, %v1894_v56 }
 0x28d   : > { %14084 = vmatprep.subr.msk.bf16.mxu0 %vm496_vm3, %v11387_v58  ;;  %v11413_v58 = vld [vmem:[%s16703_s3 + $0x54] sm:$0xf] }
 0x293   : > { %12500 = vmatmul.mubr.msk.bf16.gmra.mrb[20].mxu0 %vm298_vm1, %v1895_v59 }
 0x294   : > { %12505 = vmatprep.mubr.msk.bf16.mxu0 %vm298_vm1, %v14669_v2  ;;  %v2099_v2 = vpack.c.bf16 %v14596_v51, %v1789_v44 }
 0x29b   : > { %12506 = vmatmul.mubr.msk.bf16.vlgmr.msra.gmra.mrb[16].mxu0 %vm298_vm1, %v14672_v5 }
 0x29c   : > { %12514 = vmatpush3.bf16.msra.mxu0 %v2115_v61  ;;  %12509 = vmatprep.mubr.msk.bf16.mxu0 %vm298_vm1, %v14682_v11 }
 0x29d   : > { %14085 = vmatprep.subr.msk.bf16.mxu0 %vm496_vm3, %v11392_v62 }
 0x2a3   : > { %12510 = vmatmul.mubr.msk.bf16.gmra.mrb[20].mxu0 %vm298_vm1, %v1997_v63 }
 0x2a4   : > { %12515 = vmatprep.mubr.msk.bf16.mxu0 %vm298_vm1, %v14638_v47  ;;  %v2201_v47 = vpack.c.bf16 %v14603_v41, %v1891_v54 }
 0x2ab   : > { %12516 = vmatmul.mubr.msk.bf16.vlgmr.msra.gmra.mrb[16].mxu0 %vm298_vm1, %v14653_v57  ;;  %v11399_v57 = vld [vmem:[%s16703_s3 + $0x4c] sm:$0xf] }
 0x2ac   : > { %12524 = vmatpush3.bf16.msra.mxu0 %v2217_v0  ;;  %12519 = vmatprep.mubr.msk.bf16.mxu0 %vm298_vm1, %v14663_v60  ;;  %v2359_v60 = vsel %vm496_vm3, %v11399_v57, 0 }
 0x2ad   : > { %14086 = vmatprep.subr.msk.bf16.mxu1 %vm496_vm3, %v11399_v57  ;;  %v2635_v57 = vsel %vm496_vm3, %v11413_v58, 0 }
 0x2ae   : > { %12534 = vmatpush3.bf16.msra.mxu1 %v2359_v60 }
 0x2af   : > { %14087 = vmatprep.subr.msk.bf16.mxu1 %vm496_vm3, %v11398_v3 }
 0x2b3   : > { %12520 = vmatmul.mubr.msk.bf16.gmra.mrb[20].mxu0 %vm298_vm1, %v2099_v2 }
 0x2b4   : > { %12525 = vmatprep.mubr.msk.bf16.mxu0 %vm298_vm1, %v14688_v18 }
 0x2bb   : > { %12526 = vmatmul.mubr.msk.bf16.vlgmr.msra.gmra.mrb[16].mxu0 %vm298_vm1, %v14691_v23 }
 0x2bc   : > { %12529 = vmatprep.mubr.msk.bf16.mxu0 %vm298_vm1, %v1589_v29 }
 0x2c3   : > { %12530 = vmatmul.mubr.msk.bf16.gmra.mrb[20].mxu0 %vm298_vm1, %v2201_v47 }
 0x38e   : > { %v12527_v4 = vpop.f32.mrb[16].mxu0 }
 0x38f   : > { %v14775_v5 = vadd.f32 %v12527_v4, %v14471_v20  ;;  %v2253_v6 = vpop.f32.mrb[17].mxu0  ;;  %v11418_v4 = vld [vmem:[%s16703_s3 + $0x58] sm:$0xf] }
 0x390   : > { %v14778_v7 = vadd.f32 %v2253_v6, %v14474_v22  ;;  %v12528_v8 = vpop.f32.mrb[18].mxu0 }
 0x391   : > { %v2304_v10 = vmax.f32 %v14775_v5, 0.0  ;;  %v14782_v11 = vadd.f32 %v12528_v8, %v14477_v24  ;;  %v2256_v12 = vpop.f32.mrb[19].mxu0 }
 0x392   : > { %v2302_v13 = vmax.f32 %v14778_v7, 0.0  ;;  %v14786_v14 = vadd.f32 %v2256_v12, %v14481_v26 }
 0x393   : > { %2312 = vst.msk [vmem:[#allocation2 + $0x31] sm:$0xff] %vm298_vm1, %v2304_v10  ;;  %v2305_v20 = vmax.f32 %v14782_v11, 0.0 }
 0x394   : > { %2310 = vst.msk [vmem:[#allocation2 + $0x11] sm:$0xff] %vm298_vm1, %v2302_v13  ;;  %v2303_v22 = vmax.f32 %v14786_v14, 0.0  ;;  %v2737_v13 = vsel %vm496_vm3, %v11418_v4, 0 }
 0x395   : > { %2313 = vst.msk [vmem:[#allocation2 + $0x41] sm:$0xff] %vm298_vm1, %v2305_v20 }
 0x396   : > { %2311 = vst.msk [vmem:[#allocation2 + $0x21] sm:$0xff] %vm298_vm1, %v2303_v22  ;;  %v12531_v24 = vpop.f32.mrb[20].mxu0  ;;  %v11423_v22 = vld [vmem:[%s16703_s3 + $0x5c] sm:$0xf] }
 0x397   : > { %v14795_v15 = vadd.f32 %v12531_v24, %v14487_v28  ;;  %v2269_v18 = vpop.f32.mrb[21].mxu0 }
 0x398   : > { %v14798_v26 = vadd.f32 %v2269_v18, %v14490_v30  ;;  %v12532_v19 = vpop.f32.mrb[22].mxu0 }
 0x399   : > { %v2308_v21 = vmax.f32 %v14795_v15, 0.0  ;;  %v14802_v23 = vadd.f32 %v12532_v19, %v14495_v33  ;;  %v2272_v25 = vpop.f32.mrb[23].mxu0 }
 0x39a   : > { %v2306_v27 = vmax.f32 %v14798_v26, 0.0  ;;  %v14806_v16 = vadd.f32 %v2272_v25, %v14499_v35  ;;  %v14819_v34 = vld [vmem:[#allocation2 + $0x31] sm:$0xff]  ;;  %v2839_v25 = vsel %vm496_vm3, %v11423_v22, 0 }
 0x39b   : > { %2316 = vst.msk [vmem:[#allocation2 + $0x71] sm:$0xff] %vm298_vm1, %v2308_v21  ;;  %v2309_v28 = vmax.f32 %v14802_v23, 0.0  ;;  %v14810_v29 = vld [vmem:[#allocation2 + $0x11] sm:$0xff] }
 0x39c   : > { %2314 = vst.msk [vmem:[#allocation2 + $0x51] sm:$0xff] %vm298_vm1, %v2306_v27  ;;  %v2307_v30 = vmax.f32 %v14806_v16, 0.0  ;;  %v2340_v33 = vpack.c.bf16 %v14810_v29, %v14492_v31  ;;  %v11408_v31 = vld [vmem:[%s16703_s3 + $0x50] sm:$0xf]  ;;  %v14834_v37 = vld [vmem:[#allocation2 + $0x41] sm:$0xff] }
 0x39d   : > { %2317 = vst.msk [vmem:[#allocation2 + $0x81] sm:$0xff] %vm298_vm1, %v2309_v28  ;;  %v14817_v32 = vld [vmem:[#allocation2 + $0x21] sm:$0xff]  ;;  %v2319_v40 = vld [vmem:[#allocation2 + $0x10] sm:$0xff]  ;;  %v2533_v53 = vsel %vm496_vm3, %v11408_v31, 0  ;;  %v2719_v21 = vpack.c.bf16 %v14834_v37, %v14819_v34 }
 0x39e   : > { %2315 = vst.msk [vmem:[#allocation2 + $0x61] sm:$0xff] %vm298_vm1, %v2307_v30  ;;  %12535 = vmatprep.mubr.msk.bf16.mxu1 %vm298_vm1, %v2340_v33  ;;  %v14825_v35 = vpack.c.bf16 %v14819_v34, %v14817_v32  ;;  %v2326_v48 = vpack.c.bf16 %v2319_v40, %v14516_v46  ;;  %v2320_v50 = vld [vmem:[#allocation2 + $0x20] sm:$0xff]  ;;  %v2321_v49 = vld [vmem:[#allocation2 + $0x30] sm:$0xff]  ;;  %v2718_v19 = vpack.c.bf16 %v14817_v32, %v14810_v29 }
 0x39f   : > { %v14856_v52 = vpack.c.bf16 %v2321_v49, %v2320_v50  ;;  %v2322_v55 = vld [vmem:[#allocation2 + $0x40] sm:$0xff]  ;;  %v2507_v54 = vld [vmem:[#allocation2 + $0x12] sm:$0xff]  ;;  %v2616_v10 = vpack.c.bf16 %v2320_v50, %v2319_v40 }
 0x3a0   : > { %12536 = vmatmul.mubr.msk.bf16.vlgmr.msra.gmra.mrb[8].mxu1 %vm298_vm1, %v14825_v35  ;;  %v2514_v62 = vpack.c.bf16 %v2507_v54, %v14552_v9  ;;  %v2508_v63 = vld [vmem:[#allocation2 + $0x22] sm:$0xff]  ;;  %v2509_v2 = vld [vmem:[#allocation2 + $0x32] sm:$0xff]  ;;  %v2617_v12 = vpack.c.bf16 %v2322_v55, %v2321_v49 }
 0x3a1   : > { %12544 = vmatpush3.bf16.msra.mxu1 %v2439_v36  ;;  %v14875_v47 = vpack.c.bf16 %v2509_v2, %v2508_v63  ;;  %v2510_v60 = vld [vmem:[#allocation2 + $0x42] sm:$0xff]  ;;  %v2820_v33 = vpack.c.bf16 %v2508_v63, %v2507_v54 }
 0x3a2   : > { %14088 = vmatprep.subr.msk.bf16.mxu1 %vm496_vm3, %v11408_v31  ;;  %v14844_v43 = vld [vmem:[#allocation2 + $0x71] sm:$0xff]  ;;  %v11428_v28 = vld [vmem:[%s16703_s3 + $0x60] sm:$0xf]  ;;  %v2821_v32 = vpack.c.bf16 %v2510_v60, %v2509_v2  ;;  %v11433_v31 = vld [vmem:[%s16703_s3 + $0x64] sm:$0xf] }
 0x3a3   : > { %v14836_v38 = vld [vmem:[#allocation2 + $0x51] sm:$0xff]  ;;  %v2941_v34 = vsel %vm496_vm3, %v11428_v28, 0  ;;  %v3043_v40 = vsel %vm496_vm3, %v11433_v31, 0 }
 0x3a4   : > { %v14840_v39 = vpack.c.bf16 %v14836_v38, %v14834_v37  ;;  %v2323_v44 = vld [vmem:[#allocation2 + $0x50] sm:$0xff]  ;;  %v2615_v24 = vld [vmem:[#allocation2 + $0x80] sm:$0xff] }
 0x3a5   : > { %v14842_v42 = vld [vmem:[#allocation2 + $0x61] sm:$0xff]  ;;  %v14859_v56 = vpack.c.bf16 %v2323_v44, %v2322_v55  ;;  %v2325_v59 = vld [vmem:[#allocation2 + $0x70] sm:$0xff] }
 0x3a6   : > { %12539 = vmatprep.mubr.msk.bf16.mxu1 %vm298_vm1, %v14840_v39  ;;  %v14850_v17 = vpack.c.bf16 %v14844_v43, %v14842_v42  ;;  %v2324_v46 = vld [vmem:[#allocation2 + $0x60] sm:$0xff]  ;;  %v2511_v0 = vld [vmem:[#allocation2 + $0x52] sm:$0xff]  ;;  %v2619_v18 = vpack.c.bf16 %v2615_v24, %v2325_v59  ;;  %v2720_v27 = vpack.c.bf16 %v14842_v42, %v14836_v38  ;;  %v11438_v42 = vld [vmem:[%s16703_s3 + $0x68] sm:$0xf] }
 0x3a7   : > { %v14869_v61 = vpack.c.bf16 %v2325_v59, %v2324_v46  ;;  %v14878_v3 = vpack.c.bf16 %v2511_v0, %v2510_v60  ;;  %v2512_v9 = vld [vmem:[#allocation2 + $0x62] sm:$0xff]  ;;  %v2513_v6 = vld [vmem:[#allocation2 + $0x72] sm:$0xff]  ;;  %v2618_v20 = vpack.c.bf16 %v2324_v46, %v2323_v44 }
 0x3a8   : > { %12540 = vmatmul.mubr.msk.bf16.gmra.mrb[12].mxu1 %vm298_vm1, %v14850_v17  ;;  %v2517_v8 = vpack.c.bf16 %v2513_v6, %v2512_v9  ;;  %v2717_v29 = vld [vmem:[#allocation2 + $0x81] sm:$0xff]  ;;  %v2822_v36 = vpack.c.bf16 %v2512_v9, %v2511_v0 }
 0x3a9   : > { %12545 = vmatprep.mubr.msk.bf16.mxu1 %vm298_vm1, %v2326_v48  ;;  %v2721_v30 = vpack.c.bf16 %v2717_v29, %v14844_v43  ;;  %v2819_v37 = vld [vmem:[#allocation2 + $0x82] sm:$0xff]  ;;  %v2925_v43 = vpack.c.bf16 %v14584_v45, %v2615_v24  ;;  %v3145_v48 = vsel %vm496_vm3, %v11438_v42, 0  ;;  %v3027_v50 = vpack.c.bf16 %v14596_v51, %v2717_v29 }
 0x3aa   : > { %v2823_v38 = vpack.c.bf16 %v2819_v37, %v2513_v6  ;;  %v3129_v45 = vpack.c.bf16 %v14603_v41, %v2819_v37  ;;  %v11443_v41 = vld [vmem:[%s16704_s4 + $0x1] ss:$0 sm:$0xff] }
 0x3b0   : > { %12546 = vmatmul.mubr.msk.bf16.vlgmr.msra.gmra.mrb[8].mxu1 %vm298_vm1, %v14856_v52 }
 0x3b1   : > { %12554 = vmatpush3.bf16.msra.mxu1 %v2533_v53  ;;  %12549 = vmatprep.mubr.msk.bf16.mxu1 %vm298_vm1, %v14859_v56 }
 0x3b2   : > { %14089 = vmatprep.subr.msk.bf16.mxu1 %vm496_vm3, %v11413_v58 }
 0x3b8   : > { %12550 = vmatmul.mubr.msk.bf16.gmra.mrb[12].mxu1 %vm298_vm1, %v14869_v61 }
 0x3b9   : > { %12555 = vmatprep.mubr.msk.bf16.mxu1 %vm298_vm1, %v2514_v62 }
 0x3c0   : > { %12556 = vmatmul.mubr.msk.bf16.vlgmr.msra.gmra.mrb[8].mxu1 %vm298_vm1, %v14875_v47 }
 0x3c1   : > { %12564 = vmatpush3.bf16.msra.mxu1 %v2635_v57  ;;  %12559 = vmatprep.mubr.msk.bf16.mxu1 %vm298_vm1, %v14878_v3 }
 0x3c2   : > { %14090 = vmatprep.subr.msk.bf16.mxu1 %vm496_vm3, %v11418_v4  ;;  %v14968_v4 = vld [vmem:[#allocation2 + $0x1] sm:$0xff] }
 0x3c8   : > { %12560 = vmatmul.mubr.msk.bf16.gmra.mrb[12].mxu1 %vm298_vm1, %v2517_v8 }
 0x3c9   : > { %12565 = vmatprep.mubr.msk.bf16.mxu1 %vm298_vm1, %v2616_v10 }
 0x3d0   : > { %12566 = vmatmul.mubr.msk.bf16.vlgmr.msra.gmra.mrb[8].mxu1 %vm298_vm1, %v2617_v12 }
 0x3d1   : > { %12574 = vmatpush3.bf16.msra.mxu1 %v2737_v13  ;;  %12569 = vmatprep.mubr.msk.bf16.mxu1 %vm298_vm1, %v2618_v20 }
 0x3d2   : > { %14091 = vmatprep.subr.msk.bf16.mxu1 %vm496_vm3, %v11423_v22 }
 0x3d8   : > { %12570 = vmatmul.mubr.msk.bf16.gmra.mrb[12].mxu1 %vm298_vm1, %v2619_v18 }
 0x3d9   : > { %12575 = vmatprep.mubr.msk.bf16.mxu1 %vm298_vm1, %v2718_v19  ;;  %v11454_v19 = vld [vmem:[%s16703_s3 + $0x74] sm:$0xf] }
 0x3e0   : > { %12576 = vmatmul.mubr.msk.bf16.vlgmr.msra.gmra.mrb[8].mxu1 %vm298_vm1, %v2719_v21 }
 0x3e1   : > { %12584 = vmatpush3.bf16.msra.mxu1 %v2839_v25  ;;  %12579 = vmatprep.mubr.msk.bf16.mxu1 %vm298_vm1, %v2720_v27 }
 0x3e2   : > { %14092 = vmatprep.subr.msk.bf16.mxu1 %vm496_vm3, %v11428_v28  ;;  %v15002_v28 = vld [vmem:[#allocation2] sm:$0xff] }
 0x3e8   : > { %12580 = vmatmul.mubr.msk.bf16.gmra.mrb[12].mxu1 %vm298_vm1, %v2721_v30 }
 0x3e9   : > { %12585 = vmatprep.mubr.msk.bf16.mxu1 %vm298_vm1, %v2820_v33 }
 0x3f0   : > { %12586 = vmatmul.mubr.msk.bf16.vlgmr.msra.gmra.mrb[8].mxu1 %vm298_vm1, %v2821_v32 }
 0x3f1   : > { %12594 = vmatpush3.bf16.msra.mxu1 %v2941_v34  ;;  %12589 = vmatprep.mubr.msk.bf16.mxu1 %vm298_vm1, %v2822_v36 }
 0x3f2   : > { %14093 = vmatprep.subr.msk.bf16.mxu1 %vm496_vm3, %v11433_v31 }
 0x3f8   : > { %12590 = vmatmul.mubr.msk.bf16.gmra.mrb[12].mxu1 %vm298_vm1, %v2823_v38 }
 0x3f9   : > { %12595 = vmatprep.mubr.msk.bf16.mxu1 %vm298_vm1, %v14856_v52 }
 0x400   : > { %12596 = vmatmul.mubr.msk.bf16.vlgmr.msra.gmra.mrb[8].mxu1 %vm298_vm1, %v14859_v56 }
 0x401   : > { %12604 = vmatpush3.bf16.msra.mxu1 %v3043_v40  ;;  %12599 = vmatprep.mubr.msk.bf16.mxu1 %vm298_vm1, %v14869_v61  ;;  %v3465_v40 = vsel %vm496_vm3, %v11454_v19, 0 }
 0x402   : > { %14094 = vmatprep.subr.msk.bf16.mxu1 %vm496_vm3, %v11438_v42 }
 0x408   : > { %12600 = vmatmul.mubr.msk.bf16.gmra.mrb[12].mxu1 %vm298_vm1, %v2925_v43 }
 0x409   : > { %12605 = vmatprep.mubr.msk.bf16.mxu1 %vm298_vm1, %v14825_v35  ;;  %v11445_v35 = vld [vmem:[%s16703_s3 + $0x70] sm:$0xf] }
 0x40a   : > { %14095 = vmatprep.subr.msk.bf16.mxu0 %vm496_vm3, %v11445_v35  ;;  %v3291_v51 = vsel %vm496_vm3, %v11445_v35, 0 }
 0x40b   : > { %12624 = vmatpush3.bf16.msra.mxu0 %v3291_v51 }
 0x410   : > { %12606 = vmatmul.mubr.msk.bf16.vlgmr.msra.gmra.mrb[8].mxu1 %vm298_vm1, %v14840_v39  ;;  %v11444_v39 = vld [vmem:[%s16703_s3 + $0x6c] sm:$0xf] }
 0x411   : > { %12614 = vmatpush3.bf16.msra.mxu1 %v3145_v48  ;;  %12609 = vmatprep.mubr.msk.bf16.mxu1 %vm298_vm1, %v14850_v17  ;;  %v3371_v18 = vsel %vm496_vm3, %v11444_v39, 0  ;;  %v11459_v48 = vld [vmem:[%s16703_s3 + $0x78] sm:$0xf] }
 0x412   : > { %14096 = vmatprep.subr.msk.bf16.mxu0 %vm496_vm3, %v11444_v39 }
 0x418   : > { %12610 = vmatmul.mubr.msk.bf16.gmra.mrb[12].mxu1 %vm298_vm1, %v3027_v50 }
 0x419   : > { %12615 = vmatprep.mubr.msk.bf16.mxu1 %vm298_vm1, %v14875_v47 }
 0x420   : > { %12616 = vmatmul.mubr.msk.bf16.vlgmr.msra.gmra.mrb[8].mxu1 %vm298_vm1, %v14878_v3 }
 0x421   : > { %12619 = vmatprep.mubr.msk.bf16.mxu1 %vm298_vm1, %v2517_v8 }
 0x428   : > { %12620 = vmatmul.mubr.msk.bf16.gmra.mrb[12].mxu1 %vm298_vm1, %v3129_v45  ;;  %v15031_v45 = vld [vmem:[#allocation2 + $0x2] sm:$0xff] }
 0x4f3   : > { %v12617_v17 = vpop.f32.mrb[8].mxu1 }
 0x4f4   : > { %v3228_v44 = vadd.f32 %v12617_v17, %v11443_v41  ;;  %v3181_v49 = vpop.f32.mrb[9].mxu1 }
 0x4f5   : > { %v3226_v52 = vadd.f32 %v11443_v41, %v3181_v49  ;;  %v12618_v53 = vpop.f32.mrb[10].mxu1 }
 0x4f6   : > { %v3236_v55 = vmax.f32 %v3228_v44, 0.0  ;;  %v3229_v56 = vadd.f32 %v12618_v53, %v11443_v41  ;;  %v3184_v58 = vpop.f32.mrb[11].mxu1  ;;  %v3567_v53 = vsel %vm496_vm3, %v11459_v48, 0 }
 0x4f7   : > { %v3234_v46 = vmax.f32 %v3226_v52, 0.0  ;;  %v3227_v54 = vadd.f32 %v11443_v41, %v3184_v58  ;;  %v11464_v58 = vld [vmem:[%s16703_s3 + $0x7c] sm:$0xf] }
 0x4f8   : > { %3244 = vst.msk [vmem:[#allocation2 + $0x31] sm:$0xff] %vm298_vm1, %v3236_v55  ;;  %v3237_v59 = vmax.f32 %v3229_v56, 0.0 }
 0x4f9   : > { %3242 = vst.msk [vmem:[#allocation2 + $0x11] sm:$0xff] %vm298_vm1, %v3234_v46  ;;  %v3235_v61 = vmax.f32 %v3227_v54, 0.0 }
 0x4fa   : > { %3245 = vst.msk [vmem:[#allocation2 + $0x41] sm:$0xff] %vm298_vm1, %v3237_v59 }
 0x4fb   : > { %3243 = vst.msk [vmem:[#allocation2 + $0x21] sm:$0xff] %vm298_vm1, %v3235_v61  ;;  %v12621_v62 = vpop.f32.mrb[12].mxu1 }
 0x4fc   : > { %v3232_v63 = vadd.f32 %v12621_v62, %v11443_v41  ;;  %v3197_v0 = vpop.f32.mrb[13].mxu1 }
 0x4fd   : > { %v3230_v2 = vadd.f32 %v11443_v41, %v3197_v0  ;;  %v12622_v47 = vpop.f32.mrb[14].mxu1 }
 0x4fe   : > { %v3240_v57 = vmax.f32 %v3232_v63, 0.0  ;;  %v3233_v60 = vadd.f32 %v12622_v47, %v11443_v41  ;;  %v3200_v3 = vpop.f32.mrb[15].mxu1  ;;  %v3669_v63 = vsel %vm496_vm3, %v11464_v58, 0 }
 0x4ff   : > { %v3238_v9 = vmax.f32 %v3230_v2, 0.0  ;;  %v3231_v6 = vadd.f32 %v11443_v41, %v3200_v3  ;;  %v14979_v22 = vld [vmem:[#allocation2 + $0x31] sm:$0xff]  ;;  %v11469_v2 = vld [vmem:[%s16703_s3 + $0x80] sm:$0xf] }
 0x500   : > { %3248 = vst.msk [vmem:[#allocation2 + $0x71] sm:$0xff] %vm298_vm1, %v3240_v57  ;;  %v3241_v8 = vmax.f32 %v3233_v60, 0.0  ;;  %v14971_v10 = vld [vmem:[#allocation2 + $0x11] sm:$0xff] }
 0x501   : > { %3246 = vst.msk [vmem:[#allocation2 + $0x51] sm:$0xff] %vm298_vm1, %v3238_v9  ;;  %v3239_v12 = vmax.f32 %v3231_v6, 0.0  ;;  %v3272_v13 = vpack.c.bf16 %v14971_v10, %v14968_v4  ;;  %v14994_v21 = vld [vmem:[#allocation2 + $0x41] sm:$0xff]  ;;  %v3251_v29 = vld [vmem:[#allocation2 + $0x10] sm:$0xff]  ;;  %v3771_v9 = vsel %vm496_vm3, %v11469_v2, 0 }
 0x502   : > { %3249 = vst.msk [vmem:[#allocation2 + $0x81] sm:$0xff] %vm298_vm1, %v3241_v8  ;;  %v14977_v20 = vld [vmem:[#allocation2 + $0x21] sm:$0xff]  ;;  %v3258_v34 = vpack.c.bf16 %v3251_v29, %v15002_v28  ;;  %v3253_v37 = vld [vmem:[#allocation2 + $0x30] sm:$0xff]  ;;  %v3651_v3 = vpack.c.bf16 %v14994_v21, %v14979_v22 }
 0x503   : > { %3247 = vst.msk [vmem:[#allocation2 + $0x61] sm:$0xff] %vm298_vm1, %v3239_v12  ;;  %12625 = vmatprep.mubr.msk.bf16.mxu0 %vm298_vm1, %v3272_v13  ;;  %v14985_v24 = vpack.c.bf16 %v14979_v22, %v14977_v20  ;;  %v3252_v36 = vld [vmem:[#allocation2 + $0x20] sm:$0xff]  ;;  %v3439_v35 = vld [vmem:[#allocation2 + $0x12] sm:$0xff]  ;;  %v3650_v60 = vpack.c.bf16 %v14977_v20, %v14971_v10 }
 0x504   : > { %v15018_v38 = vpack.c.bf16 %v3253_v37, %v3252_v36  ;;  %v3254_v42 = vld [vmem:[#allocation2 + $0x40] sm:$0xff]  ;;  %v3446_v41 = vpack.c.bf16 %v3439_v35, %v15031_v45  ;;  %v3441_v49 = vld [vmem:[#allocation2 + $0x32] sm:$0xff]  ;;  %v3548_v61 = vpack.c.bf16 %v3252_v36, %v3251_v29 }
 0x505   : > { %12626 = vmatmul.mubr.msk.bf16.vlgmr.msra.gmra.mrb[24].mxu0 %vm298_vm1, %v14985_v24  ;;  %v3440_v17 = vld [vmem:[#allocation2 + $0x22] sm:$0xff]  ;;  %v3549_v62 = vpack.c.bf16 %v3254_v42, %v3253_v37  ;;  %v15115_v37 = vld [vmem:[#allocation2 + $0x91] sm:$0xff] }
 0x506   : > { %12634 = vmatpush3.bf16.msra.mxu0 %v3371_v18  ;;  %v15039_v52 = vpack.c.bf16 %v3441_v49, %v3440_v17  ;;  %v3442_v55 = vld [vmem:[#allocation2 + $0x42] sm:$0xff]  ;;  %v3752_v13 = vpack.c.bf16 %v3440_v17, %v3439_v35  ;;  %v5076_v17 = vld [vmem:[%s296_s14 + $0x38] sm:$0xff] }
 0x507   : > { %14097 = vmatprep.subr.msk.bf16.mxu0 %vm496_vm3, %v11454_v19  ;;  %v15006_v33 = vld [vmem:[#allocation2 + $0x71] sm:$0xff]  ;;  %v11474_v8 = vld [vmem:[%s16703_s3 + $0x84] sm:$0xf]  ;;  %v3753_v20 = vpack.c.bf16 %v3442_v55, %v3441_v49  ;;  %v11479_v19 = vld [vmem:[%s16703_s3 + $0x88] sm:$0xf] }
 0x508   : > { %v14996_v25 = vld [vmem:[#allocation2 + $0x51] sm:$0xff]  ;;  %v3873_v22 = vsel %vm496_vm3, %v11474_v8, 0  ;;  %v3975_v29 = vsel %vm496_vm3, %v11479_v19, 0  ;;  %v5074_v35 = vld [vmem:[%s296_s14 + $0x28] sm:$0xff]  ;;  %v11489_v49 = vld [vmem:[%s16705_s5 + $0x4] sm:$0xf] }
 0x509   : > { %v15000_v27 = vpack.c.bf16 %v14996_v25, %v14994_v21  ;;  %v3255_v31 = vld [vmem:[#allocation2 + $0x50] sm:$0xff]  ;;  %v3547_v47 = vld [vmem:[#allocation2 + $0x80] sm:$0xff]  ;;  %14104 = vmatprep.subr.msk.bf16.mxu1 %vm496_vm3, %v11489_v49 }
 0x50a   : > { %v15004_v30 = vld [vmem:[#allocation2 + $0x61] sm:$0xff]  ;;  %v15021_v43 = vpack.c.bf16 %v3255_v31, %v3254_v42  ;;  %v3257_v51 = vld [vmem:[#allocation2 + $0x70] sm:$0xff] }
 0x50b   : > { %12629 = vmatprep.mubr.msk.bf16.mxu0 %vm298_vm1, %v15000_v27  ;;  %v15012_v32 = vpack.c.bf16 %v15006_v33, %v15004_v30  ;;  %v3256_v50 = vld [vmem:[#allocation2 + $0x60] sm:$0xff]  ;;  %v3443_v44 = vld [vmem:[#allocation2 + $0x52] sm:$0xff]  ;;  %v3551_v57 = vpack.c.bf16 %v3547_v47, %v3257_v51  ;;  %v3652_v6 = vpack.c.bf16 %v15004_v30, %v14996_v25  ;;  %v11484_v30 = vld [vmem:[%s16703_s3 + $0x8c] sm:$0xf] }
 0x50c   : > { %v15033_v39 = vpack.c.bf16 %v3257_v51, %v3256_v50  ;;  %v15042_v56 = vpack.c.bf16 %v3443_v44, %v3442_v55  ;;  %v3444_v46 = vld [vmem:[#allocation2 + $0x62] sm:$0xff]  ;;  %v3445_v54 = vld [vmem:[#allocation2 + $0x72] sm:$0xff]  ;;  %v3550_v0 = vpack.c.bf16 %v3256_v50, %v3255_v31  ;;  %v4077_v36 = vsel %vm496_vm3, %v11484_v30, 0 }
 0x50d   : > { %12630 = vmatmul.mubr.msk.bf16.gmra.mrb[28].mxu0 %vm298_vm1, %v15012_v32  ;;  %v15052_v59 = vpack.c.bf16 %v3445_v54, %v3444_v46  ;;  %v3649_v10 = vld [vmem:[#allocation2 + $0x81] sm:$0xff]  ;;  %v3754_v18 = vpack.c.bf16 %v3444_v46, %v3443_v44 }
 0x50e   : > { %12635 = vmatprep.mubr.msk.bf16.mxu0 %vm298_vm1, %v3258_v34  ;;  %v3653_v12 = vpack.c.bf16 %v3649_v10, %v15006_v33  ;;  %v3751_v21 = vld [vmem:[#allocation2 + $0x82] sm:$0xff]  ;;  %v15101_v33 = vld [vmem:[#allocation2 + $0x90] sm:$0xff] }
 0x50f   : > { %v3755_v25 = vpack.c.bf16 %v3751_v21, %v3445_v54  ;;  %v3857_v34 = vpack.c.bf16 %v15101_v33, %v3547_v47  ;;  %v14202_v31 = vld [vmem:[%s16702_s2 + $0x8] sm:$0xff]   ;;  %v5073_v50 = vld [vmem:[%s296_s14 + $0x20] sm:$0xff] }
 0x515   : > { %12636 = vmatmul.mubr.msk.bf16.vlgmr.msra.gmra.mrb[24].mxu0 %vm298_vm1, %v15018_v38 }
 0x516   : > { %12644 = vmatpush3.bf16.msra.mxu0 %v3465_v40  ;;  %12639 = vmatprep.mubr.msk.bf16.mxu0 %vm298_vm1, %v15021_v43 }
 0x517   : > { %14098 = vmatprep.subr.msk.bf16.mxu0 %vm496_vm3, %v11459_v48  ;;  %v5072_v48 = vld [vmem:[%s296_s14 + $0x18] sm:$0xff] }
 0x51d   : > { %12640 = vmatmul.mubr.msk.bf16.gmra.mrb[28].mxu0 %vm298_vm1, %v15033_v39 }
 0x51e   : > { %12645 = vmatprep.mubr.msk.bf16.mxu0 %vm298_vm1, %v3446_v41  ;;  %v5075_v41 = vld [vmem:[%s296_s14 + $0x30] sm:$0xff] }
 0x51f   : > { %v5080_v44 = vpack.c.bf16 %v5076_v17, %v5075_v41 }
 0x525   : > { %12646 = vmatmul.mubr.msk.bf16.vlgmr.msra.gmra.mrb[24].mxu0 %vm298_vm1, %v15039_v52 }
 0x526   : > { %12654 = vmatpush3.bf16.msra.mxu0 %v3567_v53  ;;  %12649 = vmatprep.mubr.msk.bf16.mxu0 %vm298_vm1, %v15042_v56  ;;  %v11542_v53 = vld [vmem:[%s16703_s3 + $0x94] sm:$0xf] }
 0x527   : > { %14099 = vmatprep.subr.msk.bf16.mxu0 %vm496_vm3, %v11464_v58  ;;  %v5226_v55 = vsel %vm496_vm3, %v11542_v53, 0  ;;  %v15155_v58 = vld [vmem:[%s16703_s3 + $0x90] sm:$0xf] }
 0x52d   : > { %12650 = vmatmul.mubr.msk.bf16.gmra.mrb[28].mxu0 %vm298_vm1, %v15052_v59 }
 0x52e   : > { %12655 = vmatprep.mubr.msk.bf16.mxu0 %vm298_vm1, %v3548_v61 }
 0x535   : > { %12656 = vmatmul.mubr.msk.bf16.vlgmr.msra.gmra.mrb[24].mxu0 %vm298_vm1, %v3549_v62 }
 0x536   : > { %12664 = vmatpush3.bf16.msra.mxu0 %v3669_v63  ;;  %12659 = vmatprep.mubr.msk.bf16.mxu0 %vm298_vm1, %v3550_v0 }
 0x537   : > { %14100 = vmatprep.subr.msk.bf16.mxu0 %vm496_vm3, %v11469_v2 }
 0x53d   : > { %12660 = vmatmul.mubr.msk.bf16.gmra.mrb[28].mxu0 %vm298_vm1, %v3551_v57 }
 0x53e   : > { %12665 = vmatprep.mubr.msk.bf16.mxu0 %vm298_vm1, %v3650_v60 }
 0x545   : > { %12666 = vmatmul.mubr.msk.bf16.vlgmr.msra.gmra.mrb[24].mxu0 %vm298_vm1, %v3651_v3 }
 0x546   : > { %12674 = vmatpush3.bf16.msra.mxu0 %v3771_v9  ;;  %12669 = vmatprep.mubr.msk.bf16.mxu0 %vm298_vm1, %v3652_v6 }
 0x547   : > { %14101 = vmatprep.subr.msk.bf16.mxu0 %vm496_vm3, %v11474_v8 }
 0x54d   : > { %12670 = vmatmul.mubr.msk.bf16.gmra.mrb[28].mxu0 %vm298_vm1, %v3653_v12 }
 0x54e   : > { %12675 = vmatprep.mubr.msk.bf16.mxu0 %vm298_vm1, %v3752_v13 }
 0x555   : > { %12676 = vmatmul.mubr.msk.bf16.vlgmr.msra.gmra.mrb[24].mxu0 %vm298_vm1, %v3753_v20 }
 0x556   : > { %12684 = vmatpush3.bf16.msra.mxu0 %v3873_v22  ;;  %12679 = vmatprep.mubr.msk.bf16.mxu0 %vm298_vm1, %v3754_v18 }
 0x557   : > { %14102 = vmatprep.subr.msk.bf16.mxu0 %vm496_vm3, %v11479_v19 }
 0x55d   : > { %12680 = vmatmul.mubr.msk.bf16.gmra.mrb[28].mxu0 %vm298_vm1, %v3755_v25 }
 0x55e   : > { %12685 = vmatprep.mubr.msk.bf16.mxu0 %vm298_vm1, %v15018_v38  ;;  %v3959_v38 = vpack.c.bf16 %v15115_v37, %v3649_v10 }
 0x565   : > { %12686 = vmatmul.mubr.msk.bf16.vlgmr.msra.gmra.mrb[24].mxu0 %vm298_vm1, %v15021_v43  ;;  %v5071_v43 = vld [vmem:[%s296_s14 + $0x10] sm:$0xff] }
 0x566   : > { %12694 = vmatpush3.bf16.msra.mxu0 %v3975_v29  ;;  %12689 = vmatprep.mubr.msk.bf16.mxu0 %vm298_vm1, %v15033_v39  ;;  %v5078_v51 = vpack.c.bf16 %v5072_v48, %v5071_v43  ;;  %v5079_v39 = vpack.c.bf16 %v5074_v35, %v5073_v50 }
 0x567   : > { %14103 = vmatprep.subr.msk.bf16.mxu0 %vm496_vm3, %v11484_v30 }
 0x56d   : > { %12690 = vmatmul.mubr.msk.bf16.gmra.mrb[28].mxu0 %vm298_vm1, %v3857_v34 }
 0x56e   : > { %12695 = vmatprep.mubr.msk.bf16.mxu0 %vm298_vm1, %v14985_v24  ;;  %v5069_v24 = vld [vmem:[%s296_s14] sm:$0xff] }
 0x575   : > { %12696 = vmatmul.mubr.msk.bf16.vlgmr.msra.gmra.mrb[24].mxu0 %vm298_vm1, %v15000_v27  ;;  %v5070_v27 = vld [vmem:[%s296_s14 + $0x8] sm:$0xff]  ;;  %s14278_s14 = smov [#allocation5]  }
 0x576   : > { %12704 = vmatpush3.bf16.msra.mxu0 %v4077_v36  ;;  %12699 = vmatprep.mubr.msk.bf16.mxu0 %vm298_vm1, %v15012_v32  ;;  %v15130_v32 = vld [vmem:[#allocation2 + $0x92] sm:$0xff]  ;;  %v5077_v40 = vpack.c.bf16 %v5070_v27, %v5069_v24  ;;  %s14216_s15 = sshll.u32 %s14278_s14, 4  ;;  %s14217_s15 = int_to_ptr.vmem [resolvable:$false] %s14216_s15 }
 0x577   : > { %12803 = vmatprep.subr.bf16.mxu0 %v14202_v31  ;;  %16724 = vst [vmem:[#allocation8_spill] sm:$0xff] %v15130_v32  ;;  %v4061_v42 = vpack.c.bf16 %v15130_v32, %v3751_v21  ;;  %s14218_s16 = scalar_lea.vmem %s14217_s15, 2048  ;;  %p14219_p0 = scmp.lt.s32.totalorder %s16650_s23, %s14217_s15 }
 0x578   : > { %p14220_p1 = scmp.lt.s32.totalorder %s14218_s16, %s14212_s13 }
 0x57a   : > { %p14221_p2 = por %p14220_p1, %p14219_p0 }
 0x57c   : > { %p14222_p3 = pnand %p14221_p2, %p14215_p13 }
 0x57d   : > { %12700 = vmatmul.mubr.msk.bf16.gmra.mrb[28].mxu0 %vm298_vm1, %v3959_v38 }
 0x57e   : > { %12705 = vmatprep.mubr.msk.bf16.mxu0 %vm298_vm1, %v15039_v52  ;;  %v4208_v52 = vsel %vm496_vm3, %v11489_v49, 0 }
 0x57f   : > { %12714 = vmatpush3.bf16.msra.mxu1 %v4208_v52 }
 0x585   : > { %12706 = vmatmul.mubr.msk.bf16.vlgmr.msra.gmra.mrb[24].mxu0 %vm298_vm1, %v15042_v56  ;;  %v4180_v56 = vld [vmem:[%s16705_s5] sm:$0xf] }
 0x586   : > { %12804 = vmatpush3.bf16.msra.mxu0 %v14202_v31  ;;  %12709 = vmatprep.mubr.msk.bf16.mxu0 %vm298_vm1, %v15052_v59  ;;  %v4288_v8 = vsel %vm496_vm3, %v4180_v56, 0 }
 0x587   : > { %14113 = vmatprep.subr.msk.bf16.mxu0 %vm496_vm3, %v11542_v53  ;;  %14105 = vmatprep.subr.msk.bf16.mxu1 %vm496_vm3, %v4180_v56 }
 0x58d   : > { %12710 = vmatmul.mubr.msk.bf16.gmra.mrb[28].mxu0 %vm298_vm1, %v4061_v42 }
 0x58e   : > { %12805 = vmatprep.mubr.msk.bf16.mxu0 %vm320_vm0, %v5077_v40 }
 0x595   : > { %12806 = vmatmul.mubr.msk.bf16.vlgmr.msra.gmra.mrb[32].mxu0 %vm320_vm0, %v5078_v51 }
 0x596   : > { %12809 = vmatprep.mubr.msk.bf16.mxu0 %vm320_vm0, %v5079_v39  ;;  %12814 = vmatpush3.bf16.msra.mxu0 %v5226_v55 }
 0x597   : > { %14114 = vmatprep.subr.msk.bf16.mxu0 %vm496_vm3, %v15155_v58 }
 0x59d   : > { %12810 = vmatmul.mubr.msk.bf16.gmra.mrb[36].mxu0 %vm320_vm0, %v5080_v44 }
 0x658   : > { %v12707_v46 = vpop.f32.mrb[24].mxu0 }
 0x659   : > { %v4154_v54 = vadd.f32 %v12707_v46, %v14775_v5  ;;  %v4113_v59 = vpop.f32.mrb[25].mxu0 }
 0x65a   : > { %v4152_v61 = vadd.f32 %v4113_v59, %v14778_v7  ;;  %v12708_v62 = vpop.f32.mrb[26].mxu0 }
 0x65b   : > { %4162 = vst.msk [vmem:[#allocation2 + $0x31] sm:$0xff] %vm298_vm1, %v4154_v54  ;;  %v4155_v63 = vadd.f32 %v12708_v62, %v14782_v11  ;;  %v4116_v0 = vpop.f32.mrb[27].mxu0 }
 0x65c   : > { %4160 = vst.msk [vmem:[#allocation2 + $0x11] sm:$0xff] %vm298_vm1, %v4152_v61  ;;  %v4153_v2 = vadd.f32 %v4116_v0, %v14786_v14 }
 0x65d   : > { %4163 = vst.msk [vmem:[#allocation2 + $0x41] sm:$0xff] %vm298_vm1, %v4155_v63 }
 0x65e   : > { %4161 = vst.msk [vmem:[#allocation2 + $0x21] sm:$0xff] %vm298_vm1, %v4153_v2 }
 0x660   : > { %v12711_v47 = vpop.f32.mrb[28].mxu0 }
 0x661   : > { %v4158_v5 = vadd.f32 %v12711_v47, %v14795_v15  ;;  %v4129_v57 = vpop.f32.mrb[29].mxu0 }
 0x662   : > { %v4156_v7 = vadd.f32 %v4129_v57, %v14798_v26  ;;  %v12712_v60 = vpop.f32.mrb[30].mxu0  ;;  %v15180_v26 = vld [vmem:[#allocation2 + $0x31] sm:$0xff] }
 0x663   : > { %4166 = vst.msk [vmem:[#allocation2 + $0x71] sm:$0xff] %vm298_vm1, %v4158_v5  ;;  %v4159_v11 = vadd.f32 %v12712_v60, %v14802_v23  ;;  %v4132_v3 = vpop.f32.mrb[31].mxu0  ;;  %v15171_v9 = vld [vmem:[#allocation2 + $0x11] sm:$0xff]  ;;  %v5306_v60 = vsel %vm496_vm3, %v15155_v58, 0  ;;  %v11503_v58 = vld [vmem:[%s16705_s5 + $0xc] sm:$0xf] }
 0x664   : > { %4164 = vst.msk [vmem:[#allocation2 + $0x51] sm:$0xff] %vm298_vm1, %v4156_v7  ;;  %v4157_v14 = vadd.f32 %v4132_v3, %v14806_v16  ;;  %v4189_v6 = vpack.c.bf16 %v15171_v9, %v14968_v4  ;;  %v15192_v16 = vld [vmem:[%s16705_s5 + $0x8] sm:$0xf]  ;;  %v15204_v18 = vld [vmem:[#allocation2 + $0x10] sm:$0xff]  ;;  %v15230_v27 = vld [vmem:[#allocation2 + $0x40] sm:$0xff] }
 0x665   : > { %4167 = vst.msk [vmem:[#allocation2 + $0x81] sm:$0xff] %vm298_vm1, %v4159_v11  ;;  %v15178_v15 = vld [vmem:[#allocation2 + $0x21] sm:$0xff]  ;;  %v15206_v19 = vld [vmem:[#allocation2 + $0x30] sm:$0xff]  ;;  %v4176_v35 = vpack.c.bf16 %v15204_v18, %v15002_v28  ;;  %v4382_v3 = vsel %vm496_vm3, %v15192_v16, 0 }
 0x666   : > { %4165 = vst.msk [vmem:[#allocation2 + $0x61] sm:$0xff] %vm298_vm1, %v4157_v14  ;;  %12715 = vmatprep.mubr.msk.bf16.mxu1 %vm298_vm1, %v4189_v6  ;;  %v15186_v23 = vpack.c.bf16 %v15180_v26, %v15178_v15  ;;  %v15208_v21 = vld [vmem:[#allocation2 + $0x32] sm:$0xff]  ;;  %v15215_v30 = vld [vmem:[#allocation2 + $0x41] sm:$0xff] }
 0x667   : > { %v15219_v36 = vld [vmem:[#allocation2 + $0x12] sm:$0xff]  ;;  %v15228_v24 = vld [vmem:[#allocation2 + $0x20] sm:$0xff] }
 0x668   : > { %12716 = vmatmul.mubr.msk.bf16.vlgmr.msra.gmra.mrb[16].mxu1 %vm298_vm1, %v15186_v23  ;;  %v15196_v10 = vpop.f32.mrb[32].mxu0  ;;  %v15232_v40 = vld [vmem:[#allocation2 + $0x42] sm:$0xff]  ;;  %v11551_v14 = vld [vmem:[%s16703_s3 + $0x98] sm:$0xf] }
 0x669   : > { %16725 = vst [vmem:[#allocation9_spill] sm:$0xff] %v15196_v10  ;;  %v5171_v12 = vmax.f32 %v15196_v10, 0.0  ;;  %v15199_v13 = vpop.f32.mrb[33].mxu0  ;;  %12724 = vmatpush3.bf16.msra.mxu1 %v4288_v8  ;;  %v15238_v48 = vld [vmem:[#allocation2 + $0x22] sm:$0xff] }
 0x66a   : > { %16726 = vst [vmem:[#allocation10_spill] sm:$0xff] %v15199_v13  ;;  %v5169_v20 = vmax.f32 %v15199_v13, 0.0  ;;  %v15202_v22 = vpop.f32.mrb[34].mxu0  ;;  %14106 = vmatprep.subr.msk.bf16.mxu1 %vm496_vm3, %v15192_v16  ;;  %v15236_v43 = vld [vmem:[#allocation2 + $0x71] sm:$0xff] }
 0x66b   : > { %16727 = vst [vmem:[#allocation11_spill] sm:$0xff] %v15202_v22  ;;  %v5172_v25 = vmax.f32 %v15202_v22, 0.0  ;;  %v15213_v29 = vpop.f32.mrb[35].mxu0  ;;  %v15217_v34 = vld [vmem:[#allocation2 + $0x51] sm:$0xff]  ;;  %5179 = vst.msk [vmem:[#allocation2 + $0x31] sm:$0xff] %vm298_vm1, %v5171_v12  ;;  %v4465_v22 = vpack.c.bf16 %v15228_v24, %v15204_v18  ;;  %v4466_v18 = vpack.c.bf16 %v15230_v27, %v15206_v19 }
 0x66c   : > { %16728 = vst [vmem:[#allocation12_spill] sm:$0xff] %v15213_v29  ;;  %v5170_v31 = vmax.f32 %v15213_v29, 0.0  ;;  %v15225_v38 = vpack.c.bf16 %v15217_v34, %v15215_v30  ;;  %5177 = vst.msk [vmem:[#allocation2 + $0x11] sm:$0xff] %vm298_vm1, %v5169_v20  ;;  %v15261_v49 = vld [vmem:[#allocation2 + $0x50] sm:$0xff]  ;;  %v15275_v59 = vld [vmem:[#allocation2 + $0x80] sm:$0xff] }
 0x66d   : > { %v15234_v42 = vld [vmem:[#allocation2 + $0x61] sm:$0xff]  ;;  %5180 = vst.msk [vmem:[#allocation2 + $0x41] sm:$0xff] %vm298_vm1, %v5172_v25  ;;  %v15263_v52 = vld [vmem:[#allocation2 + $0x70] sm:$0xff]  ;;  %v15308_v11 = vpack.c.bf16 %v15261_v49, %v15230_v27 }
 0x66e   : > { %12719 = vmatprep.mubr.msk.bf16.mxu1 %vm298_vm1, %v15225_v38  ;;  %v15245_v50 = vpack.c.bf16 %v15236_v43, %v15234_v42  ;;  %5178 = vst.msk [vmem:[#allocation2 + $0x21] sm:$0xff] %vm298_vm1, %v5170_v31  ;;  %v15265_v53 = vld [vmem:[#allocation2 + $0x72] sm:$0xff]  ;;  %v15281_v63 = vld [vmem:[#allocation2 + $0x60] sm:$0xff] }
 0x66f   : > { %v15272_v54 = vld [vmem:[#allocation2 + $0x52] sm:$0xff]  ;;  %v15283_v0 = vld [vmem:[#allocation2 + $0x81] sm:$0xff]  ;;  %v15344_v31 = vpack.c.bf16 %v15263_v52, %v15281_v63 }
 0x670   : > { %12720 = vmatmul.mubr.msk.bf16.gmra.mrb[20].mxu1 %vm298_vm1, %v15245_v50  ;;  %v15252_v51 = vpop.f32.mrb[36].mxu0  ;;  %v15285_v2 = vld [vmem:[#allocation2 + $0x82] sm:$0xff]  ;;  %v15374_v1 = vpack.c.bf16 %v15272_v54, %v15232_v40 }
 0x671   : > { %16729 = vst [vmem:[#allocation13_spill] sm:$0xff] %v15252_v51  ;;  %v5175_v39 = vmax.f32 %v15252_v51, 0.0  ;;  %12725 = vmatprep.mubr.msk.bf16.mxu1 %vm298_vm1, %v4176_v35  ;;  %v15256_v41 = vpop.f32.mrb[37].mxu0  ;;  %v15291_v57 = vld [vmem:[#allocation2 + $0x62] sm:$0xff] }
 0x672   : > { %16730 = vst [vmem:[#allocation14_spill] sm:$0xff] %v15256_v41  ;;  %v5173_v17 = vmax.f32 %v15256_v41, 0.0  ;;  %v15259_v44 = vpop.f32.mrb[38].mxu0  ;;  %v15289_v5 = vld [vmem:[#allocation2 + $0x31] sm:$0xff]  ;;  %v15400_v29 = vpack.c.bf16 %v15265_v53, %v15291_v57  ;;  %v11561_v27 = vld [vmem:[%s16703_s3 + $0xa0] sm:$0xf] }
 0x673   : > { %16731 = vst [vmem:[#allocation15_spill] sm:$0xff] %v15259_v44  ;;  %v5176_v55 = vmax.f32 %v15259_v44, 0.0  ;;  %v15268_v56 = vpop.f32.mrb[39].mxu0  ;;  %v15270_v46 = vld [vmem:[#allocation2 + $0x11] sm:$0xff]  ;;  %5183 = vst.msk [vmem:[#allocation2 + $0x71] sm:$0xff] %vm298_vm1, %v5175_v39  ;;  %v4363_v39 = vpack.c.bf16 %v15219_v36, %v15031_v45 }
 0x674   : > { %16732 = vst [vmem:[#allocation16_spill] sm:$0xff] %v15268_v56  ;;  %v5174_v61 = vmax.f32 %v15268_v56, 0.0  ;;  %v5207_v62 = vpack.c.bf16 %v15270_v46, %v14968_v4  ;;  %5181 = vst.msk [vmem:[#allocation2 + $0x51] sm:$0xff] %vm298_vm1, %v5173_v17  ;;  %v15297_v4 = vpack.c.bf16 %v15206_v19, %v15228_v24  ;;  %v15325_v6 = vld [vmem:[#allocation2 + $0x41] sm:$0xff]  ;;  %v15334_v12 = vld [vmem:[#allocation2 + $0x10] sm:$0xff] }
 0x675   : > { %v15287_v47 = vld [vmem:[#allocation2 + $0x21] sm:$0xff]  ;;  %5184 = vst.msk [vmem:[#allocation2 + $0x81] sm:$0xff] %vm298_vm1, %v5176_v55  ;;  %v5193_v17 = vpack.c.bf16 %v15334_v12, %v15002_v28  ;;  %v11508_v44 = vld [vmem:[%s16705_s5 + $0x10] sm:$0xf] }
 0x676   : > { %12815 = vmatprep.mubr.msk.bf16.mxu0 %vm298_vm1, %v5207_v62  ;;  %v15301_v7 = vpack.c.bf16 %v15289_v5, %v15287_v47  ;;  %5182 = vst.msk [vmem:[#allocation2 + $0x61] sm:$0xff] %vm298_vm1, %v5174_v61  ;;  %v5187_v55 = vld [vmem:[#allocation2 + $0x20] sm:$0xff]  ;;  %v15360_v61 = vld [vmem:[#allocation2 + $0x30] sm:$0xff] }
 0x677   : > { %v15369_v28 = vpack.c.bf16 %v15360_v61, %v5187_v55  ;;  %v15396_v41 = vld [vmem:[#allocation2 + $0x12] sm:$0xff]  ;;  %v15414_v13 = vld [vmem:[#allocation2 + $0x22] sm:$0xff] }
 0x678   : > { %12726 = vmatmul.mubr.msk.bf16.vlgmr.msra.gmra.mrb[16].mxu1 %vm298_vm1, %v15297_v4  ;;  %12816 = vmatmul.mubr.msk.bf16.vlgmr.msra.gmra.mrb[40].mxu0 %vm298_vm1, %v15301_v7  ;;  %v15416_v10 = vld [vmem:[#allocation2 + $0x32] sm:$0xff] }
 0x679   : > { %12824 = vmatpush3.bf16.msra.mxu0 %v5306_v60  ;;  %12729 = vmatprep.mubr.msk.bf16.mxu1 %vm298_vm1, %v15308_v11  ;;  %v15366_v60 = vpack.c.bf16 %v15208_v21, %v15238_v48 }
 0x67a   : > { %12734 = vmatpush3.bf16.msra.mxu1 %v4382_v3  ;;  %14115 = vmatprep.subr.msk.bf16.mxu0 %vm496_vm3, %v11551_v14  ;;  %v15338_v25 = vld [vmem:[#allocation2 + $0x71] sm:$0xff]  ;;  %v5400_v3 = vsel %vm496_vm3, %v11551_v14, 0  ;;  %v11556_v14 = vld [vmem:[%s16703_s3 + $0x9c] sm:$0xf] }
 0x67b   : > { %v15327_v8 = vld [vmem:[#allocation2 + $0x51] sm:$0xff]  ;;  %14107 = vmatprep.subr.msk.bf16.mxu1 %vm496_vm3, %v11503_v58  ;;  %v5502_v24 = vsel %vm496_vm3, %v11556_v14, 0 }
 0x67c   : > { %v15332_v16 = vpack.c.bf16 %v15327_v8, %v15325_v6  ;;  %v15362_v62 = vld [vmem:[#allocation2 + $0x50] sm:$0xff] }
 0x67d   : > { %v15336_v20 = vld [vmem:[#allocation2 + $0x61] sm:$0xff]  ;;  %v5192_v51 = vld [vmem:[#allocation2 + $0x70] sm:$0xff] }
 0x67e   : > { %12819 = vmatprep.mubr.msk.bf16.mxu0 %vm298_vm1, %v15332_v16  ;;  %v15348_v35 = vpack.c.bf16 %v15338_v25, %v15336_v20  ;;  %v15418_v32 = vld [vmem:[#allocation2 + $0x52] sm:$0xff] }
 0x680   : > { %16733 = vst [vmem:[#allocation17_spill] sm:$0xff] %v15348_v35  ;;  %12730 = vmatmul.mubr.msk.bf16.gmra.mrb[20].mxu1 %vm298_vm1, %v15344_v31  ;;  %12820 = vmatmul.mubr.msk.bf16.gmra.mrb[44].mxu0 %vm298_vm1, %v15348_v35  ;;  %v15429_v35 = vld [vmem:[#allocation2 + $0x42] sm:$0xff] }
 0x681   : > { %12735 = vmatprep.mubr.msk.bf16.mxu1 %vm298_vm1, %v4363_v39  ;;  %12825 = vmatprep.mubr.msk.bf16.mxu0 %vm298_vm1, %v5193_v17  ;;  %v5189_v39 = vld [vmem:[#allocation2 + $0x40] sm:$0xff]  ;;  %v4484_v17 = vsel %vm496_vm3, %v11503_v58, 0  ;;  %v15437_v19 = vpack.c.bf16 %v15418_v32, %v15429_v35 }
 0x682   : > { %v15382_v56 = vpack.c.bf16 %v15362_v62, %v5189_v39  ;;  %v5191_v58 = vld [vmem:[#allocation2 + $0x60] sm:$0xff] }
 0x683   : > { %16734 = vst [vmem:[#allocation18_spill] sm:$0xff] %v15437_v19 }
 0x688   : > { %12736 = vmatmul.mubr.msk.bf16.vlgmr.msra.gmra.mrb[16].mxu1 %vm298_vm1, %v15366_v60  ;;  %12826 = vmatmul.mubr.msk.bf16.vlgmr.msra.gmra.mrb[40].mxu0 %vm298_vm1, %v15369_v28 }
 0x689   : > { %12834 = vmatpush3.bf16.msra.mxu0 %v5400_v3  ;;  %12739 = vmatprep.mubr.msk.bf16.mxu1 %vm298_vm1, %v15374_v1  ;;  %v15402_v3 = vpack.c.bf16 %v5192_v51, %v5191_v58 }
 0x68a   : > { %12829 = vmatprep.mubr.msk.bf16.mxu0 %vm298_vm1, %v15382_v56  ;;  %12744 = vmatpush3.bf16.msra.mxu1 %v4484_v17  ;;  %v5381_v17 = vpack.c.bf16 %v15396_v41, %v15031_v45  ;;  %v15424_v45 = vpack.c.bf16 %v15416_v10, %v15414_v13 }
 0x68b   : > { %14116 = vmatprep.subr.msk.bf16.mxu0 %vm496_vm3, %v11556_v14  ;;  %14108 = vmatprep.subr.msk.bf16.mxu1 %vm496_vm3, %v11508_v44  ;;  %v4468_v14 = vpack.c.bf16 %v15275_v59, %v15263_v52  ;;  %v4568_v52 = vpack.c.bf16 %v15215_v30, %v15180_v26  ;;  %v11518_v26 = vld [vmem:[%s16705_s5 + $0x18] sm:$0xf]  ;;  %v15486_v30 = vld [vmem:[#allocation2 + $0x80] sm:$0xff] }
 0x690   : > { %12740 = vmatmul.mubr.msk.bf16.gmra.mrb[20].mxu1 %vm298_vm1, %v15400_v29  ;;  %12830 = vmatmul.mubr.msk.bf16.gmra.mrb[44].mxu0 %vm298_vm1, %v15402_v3 }
 0x691   : > { %12745 = vmatprep.mubr.msk.bf16.mxu1 %vm298_vm1, %v4465_v22  ;;  %12835 = vmatprep.mubr.msk.bf16.mxu0 %vm298_vm1, %v5381_v17  ;;  %v4467_v22 = vpack.c.bf16 %v15281_v63, %v15261_v49  ;;  %v4586_v17 = vsel %vm496_vm3, %v11508_v44, 0  ;;  %v11513_v49 = vld [vmem:[%s16705_s5 + $0x14] sm:$0xf]  ;;  %v15448_v44 = vld [vmem:[#allocation2 + $0x62] sm:$0xff] }
 0x692   : > { %v15452_v63 = vld [vmem:[#allocation2 + $0x72] sm:$0xff] }
 0x698   : > { %12746 = vmatmul.mubr.msk.bf16.vlgmr.msra.gmra.mrb[16].mxu1 %vm298_vm1, %v4466_v18  ;;  %12836 = vmatmul.mubr.msk.bf16.vlgmr.msra.gmra.mrb[40].mxu0 %vm298_vm1, %v15424_v45  ;;  %v15458_v18 = vpack.c.bf16 %v15452_v63, %v15448_v44 }
 0x699   : > { %12844 = vmatpush3.bf16.msra.mxu0 %v5502_v24  ;;  %12749 = vmatprep.mubr.msk.bf16.mxu1 %vm298_vm1, %v4467_v22  ;;  %v4567_v24 = vpack.c.bf16 %v15178_v15, %v15171_v9  ;;  %v5483_v22 = vpack.c.bf16 %v5187_v55, %v15334_v12  ;;  %v4569_v9 = vpack.c.bf16 %v15234_v42, %v15217_v34  ;;  %v4688_v15 = vsel %vm496_vm3, %v11513_v49, 0  ;;  %v11566_v55 = vld [vmem:[%s16703_s3 + $0xa4] sm:$0xf] }
 0x69a   : > { %12839 = vmatprep.mubr.msk.bf16.mxu0 %vm298_vm1, %v15437_v19  ;;  %12754 = vmatpush3.bf16.msra.mxu1 %v4586_v17  ;;  %v5484_v17 = vpack.c.bf16 %v5189_v39, %v15360_v61  ;;  %v5604_v19 = vsel %vm496_vm3, %v11561_v27, 0  ;;  %v5485_v12 = vpack.c.bf16 %v5191_v58, %v15362_v62  ;;  %v4570_v34 = vpack.c.bf16 %v15283_v0, %v15236_v43 }
 0x69b   : > { %14117 = vmatprep.subr.msk.bf16.mxu0 %vm496_vm3, %v11561_v27  ;;  %14109 = vmatprep.subr.msk.bf16.mxu1 %vm496_vm3, %v11513_v49  ;;  %v5486_v42 = vpack.c.bf16 %v15486_v30, %v5192_v51  ;;  %v4669_v61 = vpack.c.bf16 %v15238_v48, %v15219_v36  ;;  %v5585_v62 = vpack.c.bf16 %v15287_v47, %v15270_v46  ;;  %v5706_v51 = vsel %vm496_vm3, %v11566_v55, 0 }
 0x69c   : > { %v4670_v39 = vpack.c.bf16 %v15232_v40, %v15208_v21  ;;  %v5586_v43 = vpack.c.bf16 %v15325_v6, %v15289_v5  ;;  %v4671_v36 = vpack.c.bf16 %v15291_v57, %v15272_v54  ;;  %v4790_v48 = vsel %vm496_vm3, %v11518_v26, 0  ;;  %v11571_v21 = vld [vmem:[%s16703_s3 + $0xa8] sm:$0xf]  ;;  %v11523_v40 = vld [vmem:[%s16705_s5 + $0x1c] sm:$0xf] }
 0x69d   : > { %v5587_v46 = vpack.c.bf16 %v15336_v20, %v15327_v8  ;;  %v5584_v54 = vld [vmem:[#allocation2 + $0x81] sm:$0xff]  ;;  %v4672_v47 = vpack.c.bf16 %v15285_v2, %v15265_v53  ;;  %v5687_v57 = vpack.c.bf16 %v15414_v13, %v15396_v41  ;;  %v5688_v6 = vpack.c.bf16 %v15429_v35, %v15416_v10  ;;  %v11576_v41 = vld [vmem:[%s16703_s3 + $0xac] sm:$0xf] }
 0x69e   : > { %v5588_v5 = vpack.c.bf16 %v5584_v54, %v15338_v25  ;;  %v5808_v8 = vsel %vm496_vm3, %v11571_v21, 0  ;;  %v4892_v53 = vsel %vm496_vm3, %v11523_v40, 0  ;;  %v5689_v13 = vpack.c.bf16 %v15448_v44, %v15418_v32  ;;  %v11528_v10 = vld [vmem:[%s16705_s5 + $0x20] sm:$0xf] }
 0x69f   : > { %v4774_v32 = vpack.c.bf16 %v15101_v33, %v15275_v59  ;;  %v5910_v20 = vsel %vm496_vm3, %v11576_v41, 0  ;;  %v4994_v25 = vsel %vm496_vm3, %v11528_v10, 0  ;;  %v11581_v59 = vld [vmem:[%s16703_s3 + $0xb0] sm:$0xf] }
 0x6a0   : > { %12750 = vmatmul.mubr.msk.bf16.gmra.mrb[20].mxu1 %vm298_vm1, %v4468_v14  ;;  %12840 = vmatmul.mubr.msk.bf16.gmra.mrb[44].mxu0 %vm298_vm1, %v15458_v18 }
 0x6a1   : > { %12755 = vmatprep.mubr.msk.bf16.mxu1 %vm298_vm1, %v4567_v24  ;;  %12845 = vmatprep.mubr.msk.bf16.mxu0 %vm298_vm1, %v5483_v22 }
 0x6a8   : > { %12756 = vmatmul.mubr.msk.bf16.vlgmr.msra.gmra.mrb[16].mxu1 %vm298_vm1, %v4568_v52  ;;  %12846 = vmatmul.mubr.msk.bf16.vlgmr.msra.gmra.mrb[40].mxu0 %vm298_vm1, %v5484_v17 }
 0x6a9   : > { %12854 = vmatpush3.bf16.msra.mxu0 %v5604_v19  ;;  %12759 = vmatprep.mubr.msk.bf16.mxu1 %vm298_vm1, %v4569_v9 }
 0x6aa   : > { %12849 = vmatprep.mubr.msk.bf16.mxu0 %vm298_vm1, %v5485_v12  ;;  %12764 = vmatpush3.bf16.msra.mxu1 %v4688_v15 }
 0x6ab   : > { %14118 = vmatprep.subr.msk.bf16.mxu0 %vm496_vm3, %v11566_v55  ;;  %14110 = vmatprep.subr.msk.bf16.mxu1 %vm496_vm3, %v11518_v26  ;;  %v15624_v55 = vld [vmem:[#allocation2 + $0x1] sm:$0xff] }
 0x6b0   : > { %12760 = vmatmul.mubr.msk.bf16.gmra.mrb[20].mxu1 %vm298_vm1, %v4570_v34  ;;  %12850 = vmatmul.mubr.msk.bf16.gmra.mrb[44].mxu0 %vm298_vm1, %v5486_v42 }
 0x6b1   : > { %12765 = vmatprep.mubr.msk.bf16.mxu1 %vm298_vm1, %v4669_v61  ;;  %12855 = vmatprep.mubr.msk.bf16.mxu0 %vm298_vm1, %v5585_v62 }
 0x6b8   : > { %12766 = vmatmul.mubr.msk.bf16.vlgmr.msra.gmra.mrb[16].mxu1 %vm298_vm1, %v4670_v39  ;;  %12856 = vmatmul.mubr.msk.bf16.vlgmr.msra.gmra.mrb[40].mxu0 %vm298_vm1, %v5586_v43 }
 0x6b9   : > { %12864 = vmatpush3.bf16.msra.mxu0 %v5706_v51  ;;  %12769 = vmatprep.mubr.msk.bf16.mxu1 %vm298_vm1, %v4671_v36 }
 0x6ba   : > { %12859 = vmatprep.mubr.msk.bf16.mxu0 %vm298_vm1, %v5587_v46  ;;  %12774 = vmatpush3.bf16.msra.mxu1 %v4790_v48  ;;  %v11597_v48 = vld [vmem:[%s16703_s3 + $0xbc] sm:$0xf] }
 0x6bb   : > { %14119 = vmatprep.subr.msk.bf16.mxu0 %vm496_vm3, %v11571_v21  ;;  %14111 = vmatprep.subr.msk.bf16.mxu1 %vm496_vm3, %v11523_v40 }
 0x6c0   : > { %12770 = vmatmul.mubr.msk.bf16.gmra.mrb[20].mxu1 %vm298_vm1, %v4672_v47  ;;  %12860 = vmatmul.mubr.msk.bf16.gmra.mrb[44].mxu0 %vm298_vm1, %v5588_v5 }
 0x6c1   : > { %12775 = vmatprep.mubr.msk.bf16.mxu1 %vm298_vm1, %v15297_v4  ;;  %12865 = vmatprep.mubr.msk.bf16.mxu0 %vm298_vm1, %v5687_v57  ;;  %v5686_v4 = vld [vmem:[#allocation2 + $0x82] sm:$0xff] }
 0x6c8   : > { %12776 = vmatmul.mubr.msk.bf16.vlgmr.msra.gmra.mrb[16].mxu1 %vm298_vm1, %v15308_v11  ;;  %12866 = vmatmul.mubr.msk.bf16.vlgmr.msra.gmra.mrb[40].mxu0 %vm298_vm1, %v5688_v6  ;;  %v5690_v11 = vpack.c.bf16 %v5686_v4, %v15452_v63 }
 0x6c9   : > { %12874 = vmatpush3.bf16.msra.mxu0 %v5808_v8  ;;  %12779 = vmatprep.mubr.msk.bf16.mxu1 %vm298_vm1, %v15344_v31  ;;  %v11586_v31 = vld [vmem:[%s16704_s4 + $0x2] ss:$0 sm:$0xff] }
 0x6ca   : > { %12869 = vmatprep.mubr.msk.bf16.mxu0 %vm298_vm1, %v5689_v13  ;;  %12784 = vmatpush3.bf16.msra.mxu1 %v4892_v53 }
 0x6cb   : > { %14120 = vmatprep.subr.msk.bf16.mxu0 %vm496_vm3, %v11576_v41  ;;  %14112 = vmatprep.subr.msk.bf16.mxu1 %vm496_vm3, %v11528_v10 }
 0x6d0   : > { %12780 = vmatmul.mubr.msk.bf16.gmra.mrb[20].mxu1 %vm298_vm1, %v4774_v32  ;;  %12870 = vmatmul.mubr.msk.bf16.gmra.mrb[44].mxu0 %vm298_vm1, %v5690_v11 }
 0x6d1   : > { %12785 = vmatprep.mubr.msk.bf16.mxu1 %vm298_vm1, %v15186_v23  ;;  %12875 = vmatprep.mubr.msk.bf16.mxu0 %vm298_vm1, %v15369_v28  ;;  %v4876_v23 = vpack.c.bf16 %v15115_v37, %v15283_v0 }
 0x6d8   : > { %12786 = vmatmul.mubr.msk.bf16.vlgmr.msra.gmra.mrb[16].mxu1 %vm298_vm1, %v15225_v38  ;;  %12876 = vmatmul.mubr.msk.bf16.vlgmr.msra.gmra.mrb[40].mxu0 %vm298_vm1, %v15382_v56  ;;  %v5792_v38 = vpack.c.bf16 %v15101_v33, %v15486_v30  ;;  %v16735_v33 = vld [vmem:[#allocation17_spill] sm:$0xff]  ;;  %v16736_v56 = vld [vmem:[#allocation8_spill] sm:$0xff] }
 0x6d9   : > { %12884 = vmatpush3.bf16.msra.mxu0 %v5910_v20  ;;  %12789 = vmatprep.mubr.msk.bf16.mxu1 %vm298_vm1, %v15245_v50  ;;  %v6012_v50 = vsel %vm496_vm3, %v11581_v59, 0  ;;  %v4978_v0 = vpack.c.bf16 %v16736_v56, %v15285_v2  ;;  %v11602_v20 = vld [vmem:[%s16703_s3 + $0xc0] sm:$0xf] }
 0x6da   : > { %12879 = vmatprep.mubr.msk.bf16.mxu0 %vm298_vm1, %v15402_v3  ;;  %12794 = vmatpush3.bf16.msra.mxu1 %v4994_v25 }
 0x6db   : > { %14121 = vmatprep.subr.msk.bf16.mxu0 %vm496_vm3, %v11581_v59  ;;  %v15687_v59 = vld [vmem:[#allocation2 + $0x2] sm:$0xff] }
 0x6e0   : > { %12790 = vmatmul.mubr.msk.bf16.gmra.mrb[20].mxu1 %vm298_vm1, %v4876_v23  ;;  %12880 = vmatmul.mubr.msk.bf16.gmra.mrb[44].mxu0 %vm298_vm1, %v5792_v38 }
 0x6e1   : > { %12795 = vmatprep.mubr.msk.bf16.mxu1 %vm298_vm1, %v15366_v60  ;;  %12885 = vmatprep.mubr.msk.bf16.mxu0 %vm298_vm1, %v15301_v7  ;;  %v5894_v7 = vpack.c.bf16 %v15115_v37, %v5584_v54  ;;  %v11588_v37 = vld [vmem:[%s16703_s3 + $0xb8] sm:$0xf]  ;;  %v15658_v54 = vld [vmem:[#allocation2] sm:$0xff] }
 0x6e2   : > { %14122 = vmatprep.subr.msk.bf16.mxu1 %vm496_vm3, %v11588_v37  ;;  %v6158_v2 = vsel %vm496_vm3, %v11588_v37, 0 }
 0x6e8   : > { %12796 = vmatmul.mubr.msk.bf16.vlgmr.msra.gmra.mrb[16].mxu1 %vm298_vm1, %v15374_v1  ;;  %12886 = vmatmul.mubr.msk.bf16.vlgmr.msra.gmra.mrb[40].mxu0 %vm298_vm1, %v15332_v16  ;;  %v16737_v1 = vld [vmem:[#allocation18_spill] sm:$0xff] }
 0x6e9   : > { %12894 = vmatpush3.bf16.msra.mxu0 %v6012_v50  ;;  %12799 = vmatprep.mubr.msk.bf16.mxu1 %vm298_vm1, %v15400_v29  ;;  %v5996_v29 = vpack.c.bf16 %v16736_v56, %v5686_v4  ;;  %v11587_v16 = vld [vmem:[%s16703_s3 + $0xb4] sm:$0xf]  ;;  %v6332_v4 = vsel %vm496_vm3, %v11597_v48, 0 }
 0x6ea   : > { %12889 = vmatprep.mubr.msk.bf16.mxu0 %vm298_vm1, %v16735_v33  ;;  %12904 = vmatpush3.bf16.msra.mxu1 %v6158_v2  ;;  %v6238_v36 = vsel %vm496_vm3, %v11587_v16, 0 }
 0x6eb   : > { %14123 = vmatprep.subr.msk.bf16.mxu1 %vm496_vm3, %v11587_v16  ;;  %v11607_v16 = vld [vmem:[%s16703_s3 + $0xc4] sm:$0xf] }
 0x6f0   : > { %12800 = vmatmul.mubr.msk.bf16.gmra.mrb[20].mxu1 %vm298_vm1, %v4978_v0  ;;  %12890 = vmatmul.mubr.msk.bf16.gmra.mrb[44].mxu0 %vm298_vm1, %v5894_v7 }
 0x6f1   : > { %12895 = vmatprep.mubr.msk.bf16.mxu0 %vm298_vm1, %v15424_v45 }
 0x6f8   : > { %12896 = vmatmul.mubr.msk.bf16.vlgmr.msra.gmra.mrb[40].mxu0 %vm298_vm1, %v16737_v1 }
 0x6f9   : > { %12899 = vmatprep.mubr.msk.bf16.mxu0 %vm298_vm1, %v15458_v18 }
 0x700   : > { %12900 = vmatmul.mubr.msk.bf16.gmra.mrb[44].mxu0 %vm298_vm1, %v5996_v29  ;;  %v6434_v29 = vsel %vm496_vm3, %v11602_v20, 0 }
 0x7cb   : > { %v12897_v35 = vpop.f32.mrb[40].mxu0 }
 0x7cc   : > { %v6095_v60 = vadd.f32 %v12897_v35, %v11586_v31  ;;  %v6048_v28 = vpop.f32.mrb[41].mxu0 }
 0x7cd   : > { %v6093_v58 = vadd.f32 %v11586_v31, %v6048_v28  ;;  %v12898_v3 = vpop.f32.mrb[42].mxu0 }
 0x7ce   : > { %v6103_v45 = vmax.f32 %v6095_v60, 0.0  ;;  %v6096_v19 = vadd.f32 %v12898_v3, %v11586_v31  ;;  %v6051_v27 = vpop.f32.mrb[43].mxu0  ;;  %v6536_v3 = vsel %vm496_vm3, %v11607_v16, 0 }
 0x7cf   : > { %v6101_v49 = vmax.f32 %v6093_v58, 0.0  ;;  %v6094_v44 = vadd.f32 %v11586_v31, %v6051_v27 }
 0x7d0   : > { %6111 = vst.msk [vmem:[#allocation2 + $0x31] sm:$0xff] %vm298_vm1, %v6103_v45  ;;  %v6104_v63 = vmax.f32 %v6096_v19, 0.0  ;;  %v11612_v19 = vld [vmem:[%s16703_s3 + $0xc8] sm:$0xf] }
 0x7d1   : > { %6109 = vst.msk [vmem:[#allocation2 + $0x11] sm:$0xff] %vm298_vm1, %v6101_v49  ;;  %v6102_v14 = vmax.f32 %v6094_v44, 0.0 }
 0x7d2   : > { %6112 = vst.msk [vmem:[#allocation2 + $0x41] sm:$0xff] %vm298_vm1, %v6104_v63 }
 0x7d3   : > { %6110 = vst.msk [vmem:[#allocation2 + $0x21] sm:$0xff] %vm298_vm1, %v6102_v14  ;;  %v12901_v18 = vpop.f32.mrb[44].mxu0  ;;  %v6638_v14 = vsel %vm496_vm3, %v11612_v19, 0 }
 0x7d4   : > { %v6099_v24 = vadd.f32 %v12901_v18, %v11586_v31  ;;  %v6064_v22 = vpop.f32.mrb[45].mxu0 }
 0x7d5   : > { %v6097_v52 = vadd.f32 %v11586_v31, %v6064_v22  ;;  %v12902_v17 = vpop.f32.mrb[46].mxu0 }
 0x7d6   : > { %v6107_v9 = vmax.f32 %v6099_v24, 0.0  ;;  %v6100_v15 = vadd.f32 %v12902_v17, %v11586_v31  ;;  %v6067_v12 = vpop.f32.mrb[47].mxu0  ;;  %v11617_v24 = vld [vmem:[%s16703_s3 + $0xcc] sm:$0xf] }
 0x7d7   : > { %v6105_v26 = vmax.f32 %v6097_v52, 0.0  ;;  %v6098_v30 = vadd.f32 %v11586_v31, %v6067_v12  ;;  %v15635_v43 = vld [vmem:[#allocation2 + $0x31] sm:$0xff] }
 0x7d8   : > { %6115 = vst.msk [vmem:[#allocation2 + $0x71] sm:$0xff] %vm298_vm1, %v6107_v9  ;;  %v6108_v34 = vmax.f32 %v6100_v15, 0.0  ;;  %v15627_v42 = vld [vmem:[#allocation2 + $0x11] sm:$0xff]  ;;  %v6740_v15 = vsel %vm496_vm3, %v11617_v24, 0 }
 0x7d9   : > { %6113 = vst.msk [vmem:[#allocation2 + $0x51] sm:$0xff] %vm298_vm1, %v6105_v26  ;;  %v6106_v61 = vmax.f32 %v6098_v30, 0.0  ;;  %v6139_v62 = vpack.c.bf16 %v15627_v42, %v15624_v55  ;;  %v15650_v46 = vld [vmem:[#allocation2 + $0x41] sm:$0xff]  ;;  %v6118_v47 = vld [vmem:[#allocation2 + $0x10] sm:$0xff] }
 0x7da   : > { %6116 = vst.msk [vmem:[#allocation2 + $0x81] sm:$0xff] %vm298_vm1, %v6108_v34  ;;  %v15633_v39 = vld [vmem:[#allocation2 + $0x21] sm:$0xff]  ;;  %v6125_v8 = vpack.c.bf16 %v6118_v47, %v15658_v54  ;;  %v6120_v41 = vld [vmem:[#allocation2 + $0x30] sm:$0xff]  ;;  %v6518_v63 = vpack.c.bf16 %v15650_v46, %v15635_v43 }
 0x7db   : > { %6114 = vst.msk [vmem:[#allocation2 + $0x61] sm:$0xff] %vm298_vm1, %v6106_v61  ;;  %12905 = vmatprep.mubr.msk.bf16.mxu1 %vm298_vm1, %v6139_v62  ;;  %v15641_v51 = vpack.c.bf16 %v15635_v43, %v15633_v39  ;;  %v6119_v53 = vld [vmem:[#allocation2 + $0x20] sm:$0xff]  ;;  %v6306_v23 = vld [vmem:[#allocation2 + $0x12] sm:$0xff]  ;;  %v6517_v44 = vpack.c.bf16 %v15633_v39, %v15627_v42 }
 0x7dc   : > { %v15674_v10 = vpack.c.bf16 %v6120_v41, %v6119_v53  ;;  %v6121_v32 = vld [vmem:[#allocation2 + $0x40] sm:$0xff]  ;;  %v6313_v33 = vpack.c.bf16 %v6306_v23, %v15687_v59  ;;  %v6308_v7 = vld [vmem:[#allocation2 + $0x32] sm:$0xff]  ;;  %v6415_v28 = vpack.c.bf16 %v6119_v53, %v6118_v47 }
 0x7dd   : > { %12906 = vmatmul.mubr.msk.bf16.vlgmr.msra.gmra.mrb[24].mxu1 %vm298_vm1, %v15641_v51  ;;  %v6307_v56 = vld [vmem:[#allocation2 + $0x22] sm:$0xff]  ;;  %v6416_v58 = vpack.c.bf16 %v6121_v32, %v6120_v41  ;;  %v11622_v26 = vld [vmem:[%s16703_s3 + $0xd0] sm:$0xf]  ;;  %v11627_v61 = vld [vmem:[%s16703_s3 + $0xd4] sm:$0xf] }
 0x7de   : > { %12914 = vmatpush3.bf16.msra.mxu1 %v6238_v36  ;;  %v15695_v1 = vpack.c.bf16 %v6308_v7, %v6307_v56  ;;  %v6309_v37 = vld [vmem:[#allocation2 + $0x42] sm:$0xff]  ;;  %v6619_v17 = vpack.c.bf16 %v6307_v56, %v6306_v23  ;;  %v6842_v42 = vsel %vm496_vm3, %v11622_v26, 0  ;;  %v15754_v62 = vld [vmem:[#allocation2 + $0x90] sm:$0xff]  ;;  %v6944_v43 = vsel %vm496_vm3, %v11627_v61, 0  ;;  %v11633_v47 = vld [vmem:[%s16703_s3 + $0xd8] sm:$0xf] }
 0x7df   : > { %14124 = vmatprep.subr.msk.bf16.mxu1 %vm496_vm3, %v11597_v48  ;;  %v15662_v57 = vld [vmem:[#allocation2 + $0x71] sm:$0xff]  ;;  %v6620_v9 = vpack.c.bf16 %v6309_v37, %v6308_v7  ;;  %v16742_v56 = vld [vmem:[#allocation13_spill] sm:$0xff] }
 0x7e0   : > { %v15652_v21 = vld [vmem:[#allocation2 + $0x51] sm:$0xff] }
 0x7e1   : > { %v15656_v40 = vpack.c.bf16 %v15652_v21, %v15650_v46  ;;  %v6122_v13 = vld [vmem:[#allocation2 + $0x50] sm:$0xff]  ;;  %v6414_v27 = vld [vmem:[#allocation2 + $0x80] sm:$0xff] }
 0x7e2   : > { %v15660_v5 = vld [vmem:[#allocation2 + $0x61] sm:$0xff]  ;;  %v15677_v11 = vpack.c.bf16 %v6122_v13, %v6121_v32  ;;  %v6124_v38 = vld [vmem:[#allocation2 + $0x70] sm:$0xff]  ;;  %v6724_v39 = vpack.c.bf16 %v15754_v62, %v6414_v27 }
 0x7e3   : > { %12909 = vmatprep.mubr.msk.bf16.mxu1 %vm298_vm1, %v15656_v40  ;;  %v15668_v6 = vpack.c.bf16 %v15662_v57, %v15660_v5  ;;  %v6123_v25 = vld [vmem:[#allocation2 + $0x60] sm:$0xff]  ;;  %v6310_v0 = vld [vmem:[#allocation2 + $0x52] sm:$0xff]  ;;  %v6418_v49 = vpack.c.bf16 %v6414_v27, %v6124_v38  ;;  %v6519_v18 = vpack.c.bf16 %v15660_v5, %v15652_v21  ;;  %v11634_v21 = vld [vmem:[%s16703_s3 + $0xdc] sm:$0xf] }
 0x7e4   : > { %v15689_v50 = vpack.c.bf16 %v6124_v38, %v6123_v25  ;;  %v15698_v2 = vpack.c.bf16 %v6310_v0, %v6309_v37  ;;  %v6311_v31 = vld [vmem:[#allocation2 + $0x62] sm:$0xff]  ;;  %v6312_v35 = vld [vmem:[#allocation2 + $0x72] sm:$0xff]  ;;  %v6417_v45 = vpack.c.bf16 %v6123_v25, %v6122_v13  ;;  %14131 = vmatprep.subr.msk.bf16.mxu0 %vm496_vm3, %v11634_v21 }
 0x7e5   : > { %12910 = vmatmul.mubr.msk.bf16.gmra.mrb[28].mxu1 %vm298_vm1, %v15668_v6  ;;  %v6316_v60 = vpack.c.bf16 %v6312_v35, %v6311_v31  ;;  %v6516_v22 = vld [vmem:[#allocation2 + $0x81] sm:$0xff]  ;;  %v6621_v12 = vpack.c.bf16 %v6311_v31, %v6310_v0  ;;  %v15765_v36 = vld [vmem:[#allocation2 + $0x91] sm:$0xff] }
 0x7e6   : > { %12915 = vmatprep.mubr.msk.bf16.mxu1 %vm298_vm1, %v6125_v8  ;;  %v6520_v52 = vpack.c.bf16 %v6516_v22, %v15662_v57  ;;  %v6618_v30 = vld [vmem:[#allocation2 + $0x82] sm:$0xff]  ;;  %v6826_v48 = vpack.c.bf16 %v15765_v36, %v6516_v22  ;;  %v16739_v53 = vld [vmem:[#allocation10_spill] sm:$0xff] }
 0x7e7   : > { %v6622_v34 = vpack.c.bf16 %v6618_v30, %v6312_v35  ;;  %v16738_v57 = vld [vmem:[#allocation9_spill] sm:$0xff]  ;;  %v16741_v25 = vld [vmem:[#allocation12_spill] sm:$0xff] }
 0x7ed   : > { %12916 = vmatmul.mubr.msk.bf16.vlgmr.msra.gmra.mrb[24].mxu1 %vm298_vm1, %v15674_v10 }
 0x7ee   : > { %12924 = vmatpush3.bf16.msra.mxu1 %v6332_v4  ;;  %12919 = vmatprep.mubr.msk.bf16.mxu1 %vm298_vm1, %v15677_v11  ;;  %v16740_v4 = vld [vmem:[#allocation11_spill] sm:$0xff] }
 0x7ef   : > { %14125 = vmatprep.subr.msk.bf16.mxu1 %vm496_vm3, %v11602_v20 }
 0x7f5   : > { %12920 = vmatmul.mubr.msk.bf16.gmra.mrb[28].mxu1 %vm298_vm1, %v15689_v50 }
 0x7f6   : > { %12925 = vmatprep.mubr.msk.bf16.mxu1 %vm298_vm1, %v6313_v33 }
 0x7fd   : > { %12926 = vmatmul.mubr.msk.bf16.vlgmr.msra.gmra.mrb[24].mxu1 %vm298_vm1, %v15695_v1 }
 0x7fe   : > { %12934 = vmatpush3.bf16.msra.mxu1 %v6434_v29  ;;  %12929 = vmatprep.mubr.msk.bf16.mxu1 %vm298_vm1, %v15698_v2 }
 0x7ff   : > { %14126 = vmatprep.subr.msk.bf16.mxu1 %vm496_vm3, %v11607_v16  ;;  %v16744_v16 = vld [vmem:[#allocation15_spill] sm:$0xff] }
 0x805   : > { %12930 = vmatmul.mubr.msk.bf16.gmra.mrb[28].mxu1 %vm298_vm1, %v6316_v60 }
 0x806   : > { %12935 = vmatprep.mubr.msk.bf16.mxu1 %vm298_vm1, %v6415_v28  ;;  %v16745_v28 = vld [vmem:[#allocation16_spill] sm:$0xff] }
 0x80d   : > { %12936 = vmatmul.mubr.msk.bf16.vlgmr.msra.gmra.mrb[24].mxu1 %vm298_vm1, %v6416_v58 }
 0x80e   : > { %12944 = vmatpush3.bf16.msra.mxu1 %v6536_v3  ;;  %12939 = vmatprep.mubr.msk.bf16.mxu1 %vm298_vm1, %v6417_v45 }
 0x80f   : > { %14127 = vmatprep.subr.msk.bf16.mxu1 %vm496_vm3, %v11612_v19 }
 0x815   : > { %12940 = vmatmul.mubr.msk.bf16.gmra.mrb[28].mxu1 %vm298_vm1, %v6418_v49 }
 0x816   : > { %12945 = vmatprep.mubr.msk.bf16.mxu1 %vm298_vm1, %v6517_v44 }
 0x81d   : > { %12946 = vmatmul.mubr.msk.bf16.vlgmr.msra.gmra.mrb[24].mxu1 %vm298_vm1, %v6518_v63 }
 0x81e   : > { %12954 = vmatpush3.bf16.msra.mxu1 %v6638_v14  ;;  %12949 = vmatprep.mubr.msk.bf16.mxu1 %vm298_vm1, %v6519_v18  ;;  %v7166_v14 = vsel %vm496_vm3, %v11633_v47, 0  ;;  %v11643_v18 = vld [vmem:[%s16703_s3 + $0xe0] sm:$0xf] }
 0x81f   : > { %14128 = vmatprep.subr.msk.bf16.mxu1 %vm496_vm3, %v11617_v24 }
 0x825   : > { %12950 = vmatmul.mubr.msk.bf16.gmra.mrb[28].mxu1 %vm298_vm1, %v6520_v52 }
 0x826   : > { %12955 = vmatprep.mubr.msk.bf16.mxu1 %vm298_vm1, %v6619_v17 }
 0x82d   : > { %12956 = vmatmul.mubr.msk.bf16.vlgmr.msra.gmra.mrb[24].mxu1 %vm298_vm1, %v6620_v9 }
 0x82e   : > { %12964 = vmatpush3.bf16.msra.mxu1 %v6740_v15  ;;  %12959 = vmatprep.mubr.msk.bf16.mxu1 %vm298_vm1, %v6621_v12 }
 0x82f   : > { %14129 = vmatprep.subr.msk.bf16.mxu1 %vm496_vm3, %v11622_v26 }
 0x835   : > { %12960 = vmatmul.mubr.msk.bf16.gmra.mrb[28].mxu1 %vm298_vm1, %v6622_v34 }
 0x836   : > { %12965 = vmatprep.mubr.msk.bf16.mxu1 %vm298_vm1, %v15674_v10 }
 0x83d   : > { %12966 = vmatmul.mubr.msk.bf16.vlgmr.msra.gmra.mrb[24].mxu1 %vm298_vm1, %v15677_v11 }
 0x83e   : > { %12974 = vmatpush3.bf16.msra.mxu1 %v6842_v42  ;;  %12969 = vmatprep.mubr.msk.bf16.mxu1 %vm298_vm1, %v15689_v50 }
 0x83f   : > { %14130 = vmatprep.subr.msk.bf16.mxu1 %vm496_vm3, %v11627_v61 }
 0x845   : > { %12970 = vmatmul.mubr.msk.bf16.gmra.mrb[28].mxu1 %vm298_vm1, %v6724_v39  ;;  %v7260_v39 = vsel %vm496_vm3, %v11643_v18, 0 }
 0x846   : > { %12975 = vmatprep.mubr.msk.bf16.mxu1 %vm298_vm1, %v15641_v51  ;;  %v15774_v51 = vld [vmem:[#allocation2 + $0x92] sm:$0xff] }
 0x847   : > { %v6928_v46 = vpack.c.bf16 %v15774_v51, %v6618_v30 }
 0x84d   : > { %12976 = vmatmul.mubr.msk.bf16.vlgmr.msra.gmra.mrb[24].mxu1 %vm298_vm1, %v15656_v40  ;;  %v7086_v40 = vsel %vm496_vm3, %v11634_v21, 0 }
 0x84e   : > { %12984 = vmatpush3.bf16.msra.mxu1 %v6944_v43  ;;  %12979 = vmatprep.mubr.msk.bf16.mxu1 %vm298_vm1, %v15668_v6 }
 0x84f   : > { %12994 = vmatpush3.bf16.msra.mxu0 %v7086_v40 }
 0x850   : > { %14132 = vmatprep.subr.msk.bf16.mxu0 %vm496_vm3, %v11633_v47 }
 0x855   : > { %12980 = vmatmul.mubr.msk.bf16.gmra.mrb[28].mxu1 %vm298_vm1, %v6826_v48 }
 0x856   : > { %12985 = vmatprep.mubr.msk.bf16.mxu1 %vm298_vm1, %v15695_v1  ;;  %v16743_v1 = vld [vmem:[#allocation14_spill] sm:$0xff] }
 0x85d   : > { %12986 = vmatmul.mubr.msk.bf16.vlgmr.msra.gmra.mrb[24].mxu1 %vm298_vm1, %v15698_v2 }
 0x85e   : > { %12989 = vmatprep.mubr.msk.bf16.mxu1 %vm298_vm1, %v6316_v60 }
 0x865   : > { %12990 = vmatmul.mubr.msk.bf16.gmra.mrb[28].mxu1 %vm298_vm1, %v6928_v46  ;;  %v11648_v46 = vld [vmem:[%s16703_s3 + $0xe4] sm:$0xf] }
 0x930   : > { %v12987_v5 = vpop.f32.mrb[24].mxu1 }
 0x931   : > { %v15788_v6 = vadd.f32 %v12987_v5, %v16738_v57  ;;  %v6980_v8 = vpop.f32.mrb[25].mxu1 }
 0x932   : > { %v15791_v13 = vadd.f32 %v6980_v8, %v16739_v53  ;;  %v12988_v41 = vpop.f32.mrb[26].mxu1 }
 0x933   : > { %v7031_v10 = vmax.f32 %v15788_v6, 0.0  ;;  %v15795_v32 = vadd.f32 %v12988_v41, %v16740_v4  ;;  %v6983_v11 = vpop.f32.mrb[27].mxu1  ;;  %v7362_v4 = vsel %vm496_vm3, %v11648_v46, 0 }
 0x934   : > { %v7029_v20 = vmax.f32 %v15791_v13, 0.0  ;;  %v15799_v23 = vadd.f32 %v6983_v11, %v16741_v25  ;;  %v11653_v25 = vld [vmem:[%s16703_s3 + $0xe8] sm:$0xf] }
 0x935   : > { %7039 = vst.msk [vmem:[#allocation2 + $0x31] sm:$0xff] %vm298_vm1, %v7031_v10  ;;  %v7032_v38 = vmax.f32 %v15795_v32, 0.0 }
 0x936   : > { %7037 = vst.msk [vmem:[#allocation2 + $0x11] sm:$0xff] %vm298_vm1, %v7029_v20  ;;  %v7030_v50 = vmax.f32 %v15799_v23, 0.0 }
 0x937   : > { %7040 = vst.msk [vmem:[#allocation2 + $0x41] sm:$0xff] %vm298_vm1, %v7032_v38 }
 0x938   : > { %7038 = vst.msk [vmem:[#allocation2 + $0x21] sm:$0xff] %vm298_vm1, %v7030_v50  ;;  %v12991_v33 = vpop.f32.mrb[28].mxu1 }
 0x939   : > { %v15808_v0 = vadd.f32 %v12991_v33, %v16742_v56  ;;  %v6996_v7 = vpop.f32.mrb[29].mxu1 }
 0x93a   : > { %v15811_v29 = vadd.f32 %v6996_v7, %v16743_v1  ;;  %v12992_v37 = vpop.f32.mrb[30].mxu1  ;;  %v7464_v1 = vsel %vm496_vm3, %v11653_v25, 0 }
 0x93b   : > { %v7035_v2 = vmax.f32 %v15808_v0, 0.0  ;;  %v15815_v31 = vadd.f32 %v12992_v37, %v16744_v16  ;;  %v6999_v35 = vpop.f32.mrb[31].mxu1 }
 0x93c   : > { %v7033_v60 = vmax.f32 %v15811_v29, 0.0  ;;  %v15819_v58 = vadd.f32 %v6999_v35, %v16745_v28  ;;  %v15832_v44 = vld [vmem:[#allocation2 + $0x31] sm:$0xff] }
 0x93d   : > { %7043 = vst.msk [vmem:[#allocation2 + $0x71] sm:$0xff] %vm298_vm1, %v7035_v2  ;;  %v7036_v3 = vmax.f32 %v15815_v31, 0.0  ;;  %v15823_v45 = vld [vmem:[#allocation2 + $0x11] sm:$0xff]  ;;  %v11658_v2 = vld [vmem:[%s16703_s3 + $0xec] sm:$0xf] }
 0x93e   : > { %7041 = vst.msk [vmem:[#allocation2 + $0x51] sm:$0xff] %vm298_vm1, %v7033_v60  ;;  %v7034_v19 = vmax.f32 %v15819_v58, 0.0  ;;  %v7067_v27 = vpack.c.bf16 %v15823_v45, %v15624_v55  ;;  %v15847_v24 = vld [vmem:[#allocation2 + $0x41] sm:$0xff]  ;;  %v7046_v17 = vld [vmem:[#allocation2 + $0x10] sm:$0xff] }
 0x93f   : > { %7044 = vst.msk [vmem:[#allocation2 + $0x81] sm:$0xff] %vm298_vm1, %v7036_v3  ;;  %v15830_v49 = vld [vmem:[#allocation2 + $0x21] sm:$0xff]  ;;  %v7053_v26 = vpack.c.bf16 %v7046_v17, %v15658_v54  ;;  %v7048_v42 = vld [vmem:[#allocation2 + $0x30] sm:$0xff]  ;;  %v7446_v28 = vpack.c.bf16 %v15847_v24, %v15832_v44  ;;  %v7566_v3 = vsel %vm496_vm3, %v11658_v2, 0 }
 0x940   : > { %7042 = vst.msk [vmem:[#allocation2 + $0x61] sm:$0xff] %vm298_vm1, %v7034_v19  ;;  %12995 = vmatprep.mubr.msk.bf16.mxu0 %vm298_vm1, %v7067_v27  ;;  %v15838_v63 = vpack.c.bf16 %v15832_v44, %v15830_v49  ;;  %v7047_v30 = vld [vmem:[#allocation2 + $0x20] sm:$0xff]  ;;  %v7234_v40 = vld [vmem:[#allocation2 + $0x12] sm:$0xff]  ;;  %v7445_v60 = vpack.c.bf16 %v15830_v49, %v15823_v45 }
 0x941   : > { %v15869_v61 = vpack.c.bf16 %v7048_v42, %v7047_v30  ;;  %v7049_v43 = vld [vmem:[#allocation2 + $0x40] sm:$0xff]  ;;  %v7241_v57 = vpack.c.bf16 %v7234_v40, %v15687_v59  ;;  %v7236_v41 = vld [vmem:[#allocation2 + $0x32] sm:$0xff]  ;;  %v7343_v56 = vpack.c.bf16 %v7047_v30, %v7046_v17 }
 0x942   : > { %12996 = vmatmul.mubr.msk.bf16.vlgmr.msra.gmra.mrb[48].mxu0 %vm298_vm1, %v15838_v63  ;;  %v7235_v8 = vld [vmem:[#allocation2 + $0x22] sm:$0xff]  ;;  %v7344_v7 = vpack.c.bf16 %v7049_v43, %v7048_v42  ;;  %v11663_v27 = vld [vmem:[%s16703_s3 + $0xf0] sm:$0xf] }
 0x943   : > { %13004 = vmatpush3.bf16.msra.mxu0 %v7166_v14  ;;  %v15888_v10 = vpack.c.bf16 %v7236_v41, %v7235_v8  ;;  %v7237_v11 = vld [vmem:[#allocation2 + $0x42] sm:$0xff]  ;;  %v7547_v44 = vpack.c.bf16 %v7235_v8, %v7234_v40 }
 0x944   : > { %14133 = vmatprep.subr.msk.bf16.mxu0 %vm496_vm3, %v11643_v18  ;;  %v15857_v15 = vld [vmem:[#allocation2 + $0x71] sm:$0xff]  ;;  %v7548_v14 = vpack.c.bf16 %v7237_v11, %v7236_v41  ;;  %v7668_v18 = vsel %vm496_vm3, %v11663_v27, 0 }
 0x945   : > { %v15849_v22 = vld [vmem:[#allocation2 + $0x51] sm:$0xff] }
 0x946   : > { %v15853_v52 = vpack.c.bf16 %v15849_v22, %v15847_v24  ;;  %v7050_v34 = vld [vmem:[#allocation2 + $0x50] sm:$0xff]  ;;  %v7342_v16 = vld [vmem:[#allocation2 + $0x80] sm:$0xff] }
 0x947   : > { %v15855_v9 = vld [vmem:[#allocation2 + $0x61] sm:$0xff]  ;;  %v15872_v48 = vpack.c.bf16 %v7050_v34, %v7049_v43  ;;  %v7052_v47 = vld [vmem:[#allocation2 + $0x70] sm:$0xff]  ;;  %v7652_v30 = vpack.c.bf16 %v15754_v62, %v7342_v16 }
 0x948   : > { %12999 = vmatprep.mubr.msk.bf16.mxu0 %vm298_vm1, %v15853_v52  ;;  %v15863_v12 = vpack.c.bf16 %v15857_v15, %v15855_v9  ;;  %v7051_v21 = vld [vmem:[#allocation2 + $0x60] sm:$0xff]  ;;  %v7238_v53 = vld [vmem:[#allocation2 + $0x52] sm:$0xff]  ;;  %v7346_v35 = vpack.c.bf16 %v7342_v16, %v7052_v47  ;;  %v7447_v19 = vpack.c.bf16 %v15855_v9, %v15849_v22 }
 0x949   : > { %v15882_v5 = vpack.c.bf16 %v7052_v47, %v7051_v21  ;;  %v15891_v20 = vpack.c.bf16 %v7238_v53, %v7237_v11  ;;  %v7239_v38 = vld [vmem:[#allocation2 + $0x62] sm:$0xff]  ;;  %v7240_v50 = vld [vmem:[#allocation2 + $0x72] sm:$0xff]  ;;  %v7345_v37 = vpack.c.bf16 %v7051_v21, %v7050_v34 }
 0x94a   : > { %13000 = vmatmul.mubr.msk.bf16.gmra.mrb[52].mxu0 %vm298_vm1, %v15863_v12  ;;  %v7244_v33 = vpack.c.bf16 %v7240_v50, %v7239_v38  ;;  %v7444_v45 = vld [vmem:[#allocation2 + $0x81] sm:$0xff]  ;;  %v7549_v24 = vpack.c.bf16 %v7239_v38, %v7238_v53  ;;  %v11668_v22 = vld [vmem:[%s16703_s3 + $0xf4] sm:$0xf] }
 0x94b   : > { %13005 = vmatprep.mubr.msk.bf16.mxu0 %vm298_vm1, %v7053_v26  ;;  %v7448_v49 = vpack.c.bf16 %v7444_v45, %v15857_v15  ;;  %v7546_v17 = vld [vmem:[#allocation2 + $0x82] sm:$0xff]  ;;  %v7770_v15 = vsel %vm496_vm3, %v11668_v22, 0  ;;  %v11673_v26 = vld [vmem:[%s16703_s3 + $0xf8] sm:$0xf]  ;;  %v7754_v42 = vpack.c.bf16 %v15765_v36, %v7444_v45 }
 0x94c   : > { %v7550_v9 = vpack.c.bf16 %v7546_v17, %v7240_v50  ;;  %v7872_v34 = vsel %vm496_vm3, %v11673_v26, 0 }
 0x952   : > { %13006 = vmatmul.mubr.msk.bf16.vlgmr.msra.gmra.mrb[48].mxu0 %vm298_vm1, %v15869_v61 }
 0x953   : > { %13014 = vmatpush3.bf16.msra.mxu0 %v7260_v39  ;;  %13009 = vmatprep.mubr.msk.bf16.mxu0 %vm298_vm1, %v15872_v48  ;;  %v11678_v39 = vld [vmem:[%s16704_s4 + $0x3] ss:$0 sm:$0xff] }
 0x954   : > { %14134 = vmatprep.subr.msk.bf16.mxu0 %vm496_vm3, %v11648_v46 }
 0x95a   : > { %13010 = vmatmul.mubr.msk.bf16.gmra.mrb[52].mxu0 %vm298_vm1, %v15882_v5 }
 0x95b   : > { %13015 = vmatprep.mubr.msk.bf16.mxu0 %vm298_vm1, %v7241_v57 }
 0x962   : > { %13016 = vmatmul.mubr.msk.bf16.vlgmr.msra.gmra.mrb[48].mxu0 %vm298_vm1, %v15888_v10 }
 0x963   : > { %13024 = vmatpush3.bf16.msra.mxu0 %v7362_v4  ;;  %13019 = vmatprep.mubr.msk.bf16.mxu0 %vm298_vm1, %v15891_v20 }
 0x964   : > { %14135 = vmatprep.subr.msk.bf16.mxu0 %vm496_vm3, %v11653_v25 }
 0x96a   : > { %13020 = vmatmul.mubr.msk.bf16.gmra.mrb[52].mxu0 %vm298_vm1, %v7244_v33 }
 0x96b   : > { %13025 = vmatprep.mubr.msk.bf16.mxu0 %vm298_vm1, %v7343_v56 }
 0x972   : > { %13026 = vmatmul.mubr.msk.bf16.vlgmr.msra.gmra.mrb[48].mxu0 %vm298_vm1, %v7344_v7 }
 0x973   : > { %13034 = vmatpush3.bf16.msra.mxu0 %v7464_v1  ;;  %13029 = vmatprep.mubr.msk.bf16.mxu0 %vm298_vm1, %v7345_v37 }
 0x974   : > { %14136 = vmatprep.subr.msk.bf16.mxu0 %vm496_vm3, %v11658_v2 }
 0x97a   : > { %13030 = vmatmul.mubr.msk.bf16.gmra.mrb[52].mxu0 %vm298_vm1, %v7346_v35 }
 0x97b   : > { %13035 = vmatprep.mubr.msk.bf16.mxu0 %vm298_vm1, %v7445_v60 }
 0x982   : > { %13036 = vmatmul.mubr.msk.bf16.vlgmr.msra.gmra.mrb[48].mxu0 %vm298_vm1, %v7446_v28 }
 0x983   : > { %13044 = vmatpush3.bf16.msra.mxu0 %v7566_v3  ;;  %13039 = vmatprep.mubr.msk.bf16.mxu0 %vm298_vm1, %v7447_v19 }
 0x984   : > { %14137 = vmatprep.subr.msk.bf16.mxu0 %vm496_vm3, %v11663_v27 }
 0x98a   : > { %13040 = vmatmul.mubr.msk.bf16.gmra.mrb[52].mxu0 %vm298_vm1, %v7448_v49 }
 0x98b   : > { %13045 = vmatprep.mubr.msk.bf16.mxu0 %vm298_vm1, %v7547_v44 }
 0x992   : > { %13046 = vmatmul.mubr.msk.bf16.vlgmr.msra.gmra.mrb[48].mxu0 %vm298_vm1, %v7548_v14 }
 0x993   : > { %13054 = vmatpush3.bf16.msra.mxu0 %v7668_v18  ;;  %13049 = vmatprep.mubr.msk.bf16.mxu0 %vm298_vm1, %v7549_v24 }
 0x994   : > { %14138 = vmatprep.subr.msk.bf16.mxu0 %vm496_vm3, %v11668_v22 }
 0x99a   : > { %13050 = vmatmul.mubr.msk.bf16.gmra.mrb[52].mxu0 %vm298_vm1, %v7550_v9 }
 0x99b   : > { %13055 = vmatprep.mubr.msk.bf16.mxu0 %vm298_vm1, %v15869_v61  ;;  %v11679_v61 = vld [vmem:[%s16703_s3 + $0xfc] sm:$0xf] }
 0x99c   : > { %v8098_v19 = vsel %vm496_vm3, %v11679_v61, 0 }
 0x9a2   : > { %13056 = vmatmul.mubr.msk.bf16.vlgmr.msra.gmra.mrb[48].mxu0 %vm298_vm1, %v15872_v48 }
 0x9a3   : > { %13064 = vmatpush3.bf16.msra.mxu0 %v7770_v15  ;;  %13059 = vmatprep.mubr.msk.bf16.mxu0 %vm298_vm1, %v15882_v5 }
 0x9a4   : > { %14139 = vmatprep.subr.msk.bf16.mxu0 %vm496_vm3, %v11673_v26 }
 0x9aa   : > { %13060 = vmatmul.mubr.msk.bf16.gmra.mrb[52].mxu0 %vm298_vm1, %v7652_v30 }
 0x9ab   : > { %13065 = vmatprep.mubr.msk.bf16.mxu0 %vm298_vm1, %v15838_v63  ;;  %v7856_v63 = vpack.c.bf16 %v15774_v51, %v7546_v17 }
 0x9b2   : > { %13066 = vmatmul.mubr.msk.bf16.vlgmr.msra.gmra.mrb[48].mxu0 %vm298_vm1, %v15853_v52  ;;  %v11680_v52 = vld [vmem:[%s16703_s3 + $0x100] sm:$0xf] }
 0x9b3   : > { %13074 = vmatpush3.bf16.msra.mxu0 %v7872_v34  ;;  %13069 = vmatprep.mubr.msk.bf16.mxu0 %vm298_vm1, %v15863_v12  ;;  %v8018_v12 = vsel %vm496_vm3, %v11680_v52, 0 }
 0x9b4   : > { %14140 = vmatprep.subr.msk.bf16.mxu1 %vm496_vm3, %v11680_v52 }
 0x9b5   : > { %13084 = vmatpush3.bf16.msra.mxu1 %v8018_v12 }
 0x9b6   : > { %14141 = vmatprep.subr.msk.bf16.mxu1 %vm496_vm3, %v11679_v61 }
 0x9ba   : > { %13070 = vmatmul.mubr.msk.bf16.gmra.mrb[52].mxu0 %vm298_vm1, %v7754_v42 }
 0x9bb   : > { %13075 = vmatprep.mubr.msk.bf16.mxu0 %vm298_vm1, %v15888_v10 }
 0x9c2   : > { %13076 = vmatmul.mubr.msk.bf16.vlgmr.msra.gmra.mrb[48].mxu0 %vm298_vm1, %v15891_v20 }
 0x9c3   : > { %13079 = vmatprep.mubr.msk.bf16.mxu0 %vm298_vm1, %v7244_v33 }
 0x9ca   : > { %13080 = vmatmul.mubr.msk.bf16.gmra.mrb[52].mxu0 %vm298_vm1, %v7856_v63  ;;  %v11694_v63 = vld [vmem:[%s16703_s3 + $0x108] sm:$0xf] }
 0xa95   : > { %v13077_v43 = vpop.f32.mrb[48].mxu0 }
 0xa96   : > { %v7955_v48 = vadd.f32 %v13077_v43, %v11678_v39  ;;  %v7908_v46 = vpop.f32.mrb[49].mxu0 }
 0xa97   : > { %v7953_v21 = vadd.f32 %v11678_v39, %v7908_v46  ;;  %v13078_v40 = vpop.f32.mrb[50].mxu0 }
 0xa98   : > { %v7963_v47 = vmax.f32 %v7955_v48, 0.0  ;;  %v7956_v5 = vadd.f32 %v13078_v40, %v11678_v39  ;;  %v7911_v57 = vpop.f32.mrb[51].mxu0  ;;  %v8294_v40 = vsel %vm496_vm3, %v11694_v63, 0 }
 0xa99   : > { %v7961_v8 = vmax.f32 %v7953_v21, 0.0  ;;  %v7954_v53 = vadd.f32 %v11678_v39, %v7911_v57  ;;  %v11699_v57 = vld [vmem:[%s16703_s3 + $0x10c] sm:$0xf] }
 0xa9a   : > { %7971 = vst.msk [vmem:[#allocation2 + $0x31] sm:$0xff] %vm298_vm1, %v7963_v47  ;;  %v7964_v41 = vmax.f32 %v7956_v5, 0.0 }
 0xa9b   : > { %7969 = vst.msk [vmem:[#allocation2 + $0x11] sm:$0xff] %vm298_vm1, %v7961_v8  ;;  %v7962_v10 = vmax.f32 %v7954_v53, 0.0 }
 0xa9c   : > { %7972 = vst.msk [vmem:[#allocation2 + $0x41] sm:$0xff] %vm298_vm1, %v7964_v41 }
 0xa9d   : > { %7970 = vst.msk [vmem:[#allocation2 + $0x21] sm:$0xff] %vm298_vm1, %v7962_v10  ;;  %v13081_v4 = vpop.f32.mrb[52].mxu0 }
 0xa9e   : > { %v7959_v11 = vadd.f32 %v13081_v4, %v11678_v39  ;;  %v7924_v20 = vpop.f32.mrb[53].mxu0  ;;  %v8396_v4 = vsel %vm496_vm3, %v11699_v57, 0 }
 0xa9f   : > { %v7957_v25 = vadd.f32 %v11678_v39, %v7924_v20  ;;  %v13082_v38 = vpop.f32.mrb[54].mxu0  ;;  %v11704_v20 = vld [vmem:[%s16703_s3 + $0x110] sm:$0xf] }
 0xaa0   : > { %v7967_v50 = vmax.f32 %v7959_v11, 0.0  ;;  %v7960_v33 = vadd.f32 %v13082_v38, %v11678_v39  ;;  %v7927_v56 = vpop.f32.mrb[55].mxu0 }
 0xaa1   : > { %v7965_v7 = vmax.f32 %v7957_v25, 0.0  ;;  %v7958_v1 = vadd.f32 %v11678_v39, %v7927_v56  ;;  %v15990_v28 = vld [vmem:[#allocation2 + $0x31] sm:$0xff]  ;;  %v8498_v56 = vsel %vm496_vm3, %v11704_v20, 0 }
 0xaa2   : > { %7975 = vst.msk [vmem:[#allocation2 + $0x71] sm:$0xff] %vm298_vm1, %v7967_v50  ;;  %v7968_v37 = vmax.f32 %v7960_v33, 0.0  ;;  %v15982_v2 = vld [vmem:[#allocation2 + $0x11] sm:$0xff] }
 0xaa3   : > { %7973 = vst.msk [vmem:[#allocation2 + $0x51] sm:$0xff] %vm298_vm1, %v7965_v7  ;;  %v7966_v16 = vmax.f32 %v7958_v1, 0.0  ;;  %v7999_v35 = vpack.c.bf16 %v15982_v2, %v15624_v55  ;;  %v11689_v55 = vld [vmem:[%s16703_s3 + $0x104] sm:$0xf]  ;;  %v7978_v44 = vld [vmem:[#allocation2 + $0x10] sm:$0xff] }
 0xaa4   : > { %7976 = vst.msk [vmem:[#allocation2 + $0x81] sm:$0xff] %vm298_vm1, %v7968_v37  ;;  %v15988_v60 = vld [vmem:[#allocation2 + $0x21] sm:$0xff]  ;;  %v7985_v22 = vpack.c.bf16 %v7978_v44, %v15658_v54  ;;  %v7980_v15 = vld [vmem:[#allocation2 + $0x30] sm:$0xff]  ;;  %v8192_v30 = vsel %vm496_vm3, %v11689_v55, 0 }
 0xaa5   : > { %7974 = vst.msk [vmem:[#allocation2 + $0x61] sm:$0xff] %vm298_vm1, %v7966_v16  ;;  %13085 = vmatprep.mubr.msk.bf16.mxu1 %vm298_vm1, %v7999_v35  ;;  %v15996_v3 = vpack.c.bf16 %v15990_v28, %v15988_v60  ;;  %v16005_v27 = vld [vmem:[#allocation2 + $0x41] sm:$0xff]  ;;  %v8166_v52 = vld [vmem:[#allocation2 + $0x12] sm:$0xff]  ;;  %v8377_v50 = vpack.c.bf16 %v15988_v60, %v15982_v2 }
 0xaa6   : > { %v7979_v17 = vld [vmem:[#allocation2 + $0x20] sm:$0xff]  ;;  %v8173_v39 = vpack.c.bf16 %v8166_v52, %v15687_v59  ;;  %v8168_v46 = vld [vmem:[#allocation2 + $0x32] sm:$0xff]  ;;  %v8378_v33 = vpack.c.bf16 %v16005_v27, %v15990_v28 }
 0xaa7   : > { %13086 = vmatmul.mubr.msk.bf16.vlgmr.msra.gmra.mrb[32].mxu1 %vm298_vm1, %v15996_v3  ;;  %v16027_v26 = vpack.c.bf16 %v7980_v15, %v7979_v17  ;;  %v7981_v34 = vld [vmem:[#allocation2 + $0x40] sm:$0xff]  ;;  %v8275_v41 = vpack.c.bf16 %v7979_v17, %v7978_v44  ;;  %v11709_v1 = vld [vmem:[%s16703_s3 + $0x114] sm:$0xf]  ;;  %v11719_v44 = vld [vmem:[%s16703_s3 + $0x11c] sm:$0xf] }
 0xaa8   : > { %13094 = vmatpush3.bf16.msra.mxu1 %v8098_v19  ;;  %v8167_v43 = vld [vmem:[#allocation2 + $0x22] sm:$0xff]  ;;  %v8276_v10 = vpack.c.bf16 %v7981_v34, %v7980_v15  ;;  %v8600_v60 = vsel %vm496_vm3, %v11709_v1, 0  ;;  %v11714_v19 = vld [vmem:[%s16703_s3 + $0x118] sm:$0xf] }
 0xaa9   : > { %14142 = vmatprep.subr.msk.bf16.mxu1 %vm496_vm3, %v11689_v55  ;;  %v16015_v18 = vld [vmem:[#allocation2 + $0x71] sm:$0xff]  ;;  %v16046_v21 = vpack.c.bf16 %v8168_v46, %v8167_v43  ;;  %v8169_v47 = vld [vmem:[#allocation2 + $0x42] sm:$0xff]  ;;  %v8479_v16 = vpack.c.bf16 %v8167_v43, %v8166_v52 }
 0xaaa   : > { %v16007_v45 = vld [vmem:[#allocation2 + $0x51] sm:$0xff]  ;;  %v8480_v35 = vpack.c.bf16 %v8169_v47, %v8168_v46 }
 0xaab   : > { %v16011_v49 = vpack.c.bf16 %v16007_v45, %v16005_v27  ;;  %v7982_v9 = vld [vmem:[#allocation2 + $0x50] sm:$0xff]  ;;  %v8274_v25 = vld [vmem:[#allocation2 + $0x80] sm:$0xff] }
 0xaac   : > { %v16013_v14 = vld [vmem:[#allocation2 + $0x61] sm:$0xff]  ;;  %v16030_v42 = vpack.c.bf16 %v7982_v9, %v7981_v34  ;;  %v7984_v12 = vld [vmem:[#allocation2 + $0x70] sm:$0xff] }
 0xaad   : > { %13089 = vmatprep.mubr.msk.bf16.mxu1 %vm298_vm1, %v16011_v49  ;;  %v16021_v24 = vpack.c.bf16 %v16015_v18, %v16013_v14  ;;  %v7983_v54 = vld [vmem:[#allocation2 + $0x60] sm:$0xff]  ;;  %v8170_v48 = vld [vmem:[#allocation2 + $0x52] sm:$0xff]  ;;  %v8278_v38 = vpack.c.bf16 %v8274_v25, %v7984_v12  ;;  %v8379_v7 = vpack.c.bf16 %v16013_v14, %v16007_v45  ;;  %v8702_v45 = vsel %vm496_vm3, %v11714_v19, 0 }
 0xaae   : > { %v16040_v61 = vpack.c.bf16 %v7984_v12, %v7983_v54  ;;  %v16049_v5 = vpack.c.bf16 %v8170_v48, %v8169_v47  ;;  %v8171_v59 = vld [vmem:[#allocation2 + $0x62] sm:$0xff]  ;;  %v8172_v8 = vld [vmem:[#allocation2 + $0x72] sm:$0xff]  ;;  %v8277_v11 = vpack.c.bf16 %v7983_v54, %v7982_v9  ;;  %v8584_v14 = vpack.c.bf16 %v15754_v62, %v8274_v25 }
 0xaaf   : > { %13090 = vmatmul.mubr.msk.bf16.gmra.mrb[36].mxu1 %vm298_vm1, %v16021_v24  ;;  %v8176_v53 = vpack.c.bf16 %v8172_v8, %v8171_v59  ;;  %v8376_v37 = vld [vmem:[#allocation2 + $0x81] sm:$0xff]  ;;  %v8481_v28 = vpack.c.bf16 %v8171_v59, %v8170_v48 }
 0xab0   : > { %13095 = vmatprep.mubr.msk.bf16.mxu1 %vm298_vm1, %v7985_v22  ;;  %v8380_v2 = vpack.c.bf16 %v8376_v37, %v16015_v18  ;;  %v8478_v55 = vld [vmem:[#allocation2 + $0x82] sm:$0xff]  ;;  %v8804_v18 = vsel %vm496_vm3, %v11719_v44, 0  ;;  %v8686_v62 = vpack.c.bf16 %v15765_v36, %v8376_v37 }
 0xab1   : > { %v8482_v27 = vpack.c.bf16 %v8478_v55, %v8172_v8  ;;  %v11725_v22 = vld [vmem:[%s16705_s5 + $0x28] sm:$0xf]  ;;  %v11724_v36 = vld [vmem:[%s16705_s5 + $0x24] sm:$0xf] }
 0xab2   : > { %v8909_v54 = vld [vmem:[#allocation2 + $0x1] sm:$0xff] }
 0xab7   : > { %13096 = vmatmul.mubr.msk.bf16.vlgmr.msra.gmra.mrb[32].mxu1 %vm298_vm1, %v16027_v26 }
 0xab8   : > { %13104 = vmatpush3.bf16.msra.mxu1 %v8192_v30  ;;  %13099 = vmatprep.mubr.msk.bf16.mxu1 %vm298_vm1, %v16030_v42 }
 0xab9   : > { %14143 = vmatprep.subr.msk.bf16.mxu1 %vm496_vm3, %v11694_v63 }
 0xabf   : > { %13100 = vmatmul.mubr.msk.bf16.gmra.mrb[36].mxu1 %vm298_vm1, %v16040_v61 }
 0xac0   : > { %13105 = vmatprep.mubr.msk.bf16.mxu1 %vm298_vm1, %v8173_v39 }
 0xac7   : > { %13106 = vmatmul.mubr.msk.bf16.vlgmr.msra.gmra.mrb[32].mxu1 %vm298_vm1, %v16046_v21 }
 0xac8   : > { %13114 = vmatpush3.bf16.msra.mxu1 %v8294_v40  ;;  %13109 = vmatprep.mubr.msk.bf16.mxu1 %vm298_vm1, %v16049_v5  ;;  %v8895_v40 = vld [vmem:[#allocation2] sm:$0xff] }
 0xac9   : > { %14144 = vmatprep.subr.msk.bf16.mxu1 %vm496_vm3, %v11699_v57 }
 0xacf   : > { %13110 = vmatmul.mubr.msk.bf16.gmra.mrb[36].mxu1 %vm298_vm1, %v8176_v53 }
 0xad0   : > { %13115 = vmatprep.mubr.msk.bf16.mxu1 %vm298_vm1, %v8275_v41 }
 0xad7   : > { %13116 = vmatmul.mubr.msk.bf16.vlgmr.msra.gmra.mrb[32].mxu1 %vm298_vm1, %v8276_v10 }
 0xad8   : > { %13124 = vmatpush3.bf16.msra.mxu1 %v8396_v4  ;;  %13119 = vmatprep.mubr.msk.bf16.mxu1 %vm298_vm1, %v8277_v11 }
 0xad9   : > { %14145 = vmatprep.subr.msk.bf16.mxu1 %vm496_vm3, %v11704_v20 }
 0xadf   : > { %13120 = vmatmul.mubr.msk.bf16.gmra.mrb[36].mxu1 %vm298_vm1, %v8278_v38  ;;  %v11739_v38 = vld [vmem:[%s16705_s5 + $0x30] sm:$0xf] }
 0xae0   : > { %13125 = vmatprep.mubr.msk.bf16.mxu1 %vm298_vm1, %v8377_v50 }
 0xae7   : > { %13126 = vmatmul.mubr.msk.bf16.vlgmr.msra.gmra.mrb[32].mxu1 %vm298_vm1, %v8378_v33  ;;  %v9083_v33 = vld [vmem:[#allocation2 + $0x2] sm:$0xff] }
 0xae8   : > { %13134 = vmatpush3.bf16.msra.mxu1 %v8498_v56  ;;  %13129 = vmatprep.mubr.msk.bf16.mxu1 %vm298_vm1, %v8379_v7 }
 0xae9   : > { %14146 = vmatprep.subr.msk.bf16.mxu1 %vm496_vm3, %v11709_v1 }
 0xaef   : > { %13130 = vmatmul.mubr.msk.bf16.gmra.mrb[36].mxu1 %vm298_vm1, %v8380_v2 }
 0xaf0   : > { %13135 = vmatprep.mubr.msk.bf16.mxu1 %vm298_vm1, %v8479_v16 }
 0xaf7   : > { %13136 = vmatmul.mubr.msk.bf16.vlgmr.msra.gmra.mrb[32].mxu1 %vm298_vm1, %v8480_v35 }
 0xaf8   : > { %13144 = vmatpush3.bf16.msra.mxu1 %v8600_v60  ;;  %13139 = vmatprep.mubr.msk.bf16.mxu1 %vm298_vm1, %v8481_v28  ;;  %v9212_v28 = vsel %vm496_vm3, %v11739_v38, 0 }
 0xaf9   : > { %14147 = vmatprep.subr.msk.bf16.mxu1 %vm496_vm3, %v11714_v19 }
 0xaff   : > { %13140 = vmatmul.mubr.msk.bf16.gmra.mrb[36].mxu1 %vm298_vm1, %v8482_v27  ;;  %v11744_v27 = vld [vmem:[%s16705_s5 + $0x34] sm:$0xf] }
 0xb00   : > { %13145 = vmatprep.mubr.msk.bf16.mxu1 %vm298_vm1, %v16027_v26 }
 0xb07   : > { %13146 = vmatmul.mubr.msk.bf16.vlgmr.msra.gmra.mrb[32].mxu1 %vm298_vm1, %v16030_v42 }
 0xb08   : > { %13154 = vmatpush3.bf16.msra.mxu1 %v8702_v45  ;;  %13149 = vmatprep.mubr.msk.bf16.mxu1 %vm298_vm1, %v16040_v61 }
 0xb09   : > { %14148 = vmatprep.subr.msk.bf16.mxu1 %vm496_vm3, %v11719_v44 }
 0xb0f   : > { %13150 = vmatmul.mubr.msk.bf16.gmra.mrb[36].mxu1 %vm298_vm1, %v8584_v14 }
 0xb10   : > { %13155 = vmatprep.mubr.msk.bf16.mxu1 %vm298_vm1, %v15996_v3  ;;  %v8788_v3 = vpack.c.bf16 %v15774_v51, %v8478_v55 }
 0xb17   : > { %13156 = vmatmul.mubr.msk.bf16.vlgmr.msra.gmra.mrb[32].mxu1 %vm298_vm1, %v16011_v49  ;;  %v8936_v49 = vsel %vm496_vm3, %v11725_v22, 0 }
 0xb18   : > { %13164 = vmatpush3.bf16.msra.mxu1 %v8804_v18  ;;  %13159 = vmatprep.mubr.msk.bf16.mxu1 %vm298_vm1, %v16021_v24 }
 0xb19   : > { %14149 = vmatprep.subr.msk.bf16.mxu1 %vm496_vm3, %v11725_v22 }
 0xb1f   : > { %13160 = vmatmul.mubr.msk.bf16.gmra.mrb[36].mxu1 %vm298_vm1, %v8686_v62  ;;  %v9314_v62 = vsel %vm496_vm3, %v11744_v27, 0 }
 0xb20   : > { %13165 = vmatprep.mubr.msk.bf16.mxu1 %vm298_vm1, %v16046_v21 }
 0xb27   : > { %13166 = vmatmul.mubr.msk.bf16.vlgmr.msra.gmra.mrb[32].mxu1 %vm298_vm1, %v16049_v5 }
 0xb28   : > { %13169 = vmatprep.mubr.msk.bf16.mxu1 %vm298_vm1, %v8176_v53  ;;  %13174 = vmatpush3.bf16.msra.mxu1 %v8936_v49  ;;  %v11749_v49 = vld [vmem:[%s16705_s5 + $0x38] sm:$0xf] }
 0xb29   : > { %14150 = vmatprep.subr.msk.bf16.mxu1 %vm496_vm3, %v11724_v36 }
 0xb2f   : > { %13170 = vmatmul.mubr.msk.bf16.gmra.mrb[36].mxu1 %vm298_vm1, %v8788_v3 }
 0xbfa   : > { %v13167_v24 = vpop.f32.mrb[32].mxu1 }
 0xbfb   : > { %v8881_v17 = vadd.f32 %v13167_v24, %v15788_v6  ;;  %v8840_v9 = vpop.f32.mrb[33].mxu1 }
 0xbfc   : > { %v8879_v15 = vadd.f32 %v8840_v9, %v15791_v13  ;;  %v13168_v26 = vpop.f32.mrb[34].mxu1 }
 0xbfd   : > { %8889 = vst.msk [vmem:[#allocation2 + $0x31] sm:$0xff] %vm298_vm1, %v8881_v17  ;;  %v8882_v51 = vadd.f32 %v13168_v26, %v15795_v32  ;;  %v8843_v30 = vpop.f32.mrb[35].mxu1 }
 0xbfe   : > { %8887 = vst.msk [vmem:[#allocation2 + $0x11] sm:$0xff] %vm298_vm1, %v8879_v15  ;;  %v8880_v34 = vadd.f32 %v8843_v30, %v15799_v23  ;;  %v9416_v15 = vsel %vm496_vm3, %v11749_v49, 0 }
 0xbff   : > { %8890 = vst.msk [vmem:[#allocation2 + $0x41] sm:$0xff] %vm298_vm1, %v8882_v51  ;;  %v11754_v51 = vld [vmem:[%s16705_s5 + $0x3c] sm:$0xf] }
 0xc00   : > { %8888 = vst.msk [vmem:[#allocation2 + $0x21] sm:$0xff] %vm298_vm1, %v8880_v34 }
 0xc02   : > { %v13171_v42 = vpop.f32.mrb[36].mxu1 }
 0xc03   : > { %v8885_v6 = vadd.f32 %v13171_v42, %v15808_v0  ;;  %v8856_v63 = vpop.f32.mrb[37].mxu1 }
 0xc04   : > { %v8883_v13 = vadd.f32 %v8856_v63, %v15811_v29  ;;  %v13172_v52 = vpop.f32.mrb[38].mxu1  ;;  %v16152_v43 = vld [vmem:[#allocation2 + $0x31] sm:$0xff]  ;;  %v9518_v63 = vsel %vm496_vm3, %v11754_v51, 0 }
 0xc05   : > { %8893 = vst.msk [vmem:[#allocation2 + $0x71] sm:$0xff] %vm298_vm1, %v8885_v6  ;;  %v8886_v32 = vadd.f32 %v13172_v52, %v15815_v31  ;;  %v8859_v12 = vpop.f32.mrb[39].mxu1  ;;  %v16144_v61 = vld [vmem:[#allocation2 + $0x11] sm:$0xff]  ;;  %v9016_v31 = vsel %vm496_vm3, %v11724_v36, 0 }
 0xc06   : > { %8891 = vst.msk [vmem:[#allocation2 + $0x51] sm:$0xff] %vm298_vm1, %v8883_v13  ;;  %v8884_v23 = vadd.f32 %v8859_v12, %v15819_v58  ;;  %v8917_v39 = vpack.c.bf16 %v16144_v61, %v8909_v54  ;;  %v11734_v58 = vld [vmem:[%s16705_s5 + $0x2c] sm:$0xf]  ;;  %v16167_v48 = vld [vmem:[#allocation2 + $0x41] sm:$0xff]  ;;  %v8896_v47 = vld [vmem:[#allocation2 + $0x10] sm:$0xff] }
 0xc07   : > { %8894 = vst.msk [vmem:[#allocation2 + $0x81] sm:$0xff] %vm298_vm1, %v8886_v32  ;;  %v16150_v0 = vld [vmem:[#allocation2 + $0x21] sm:$0xff]  ;;  %v8903_v8 = vpack.c.bf16 %v8896_v47, %v8895_v40  ;;  %v8898_v10 = vld [vmem:[#allocation2 + $0x30] sm:$0xff]  ;;  %v9110_v11 = vsel %vm496_vm3, %v11734_v58, 0  ;;  %v9296_v9 = vpack.c.bf16 %v16167_v48, %v16152_v43 }
 0xc08   : > { %8892 = vst.msk [vmem:[#allocation2 + $0x61] sm:$0xff] %vm298_vm1, %v8884_v23  ;;  %13175 = vmatprep.mubr.msk.bf16.mxu1 %vm298_vm1, %v8917_v39  ;;  %v16158_v29 = vpack.c.bf16 %v16152_v43, %v16150_v0  ;;  %v8897_v53 = vld [vmem:[#allocation2 + $0x20] sm:$0xff]  ;;  %v9084_v56 = vld [vmem:[#allocation2 + $0x12] sm:$0xff]  ;;  %v9295_v17 = vpack.c.bf16 %v16150_v0, %v16144_v61 }
 0xc09   : > { %v16188_v4 = vpack.c.bf16 %v8898_v10, %v8897_v53  ;;  %v8899_v20 = vld [vmem:[#allocation2 + $0x40] sm:$0xff]  ;;  %v9091_v37 = vpack.c.bf16 %v9084_v56, %v9083_v33  ;;  %v9086_v35 = vld [vmem:[#allocation2 + $0x32] sm:$0xff]  ;;  %v9193_v18 = vpack.c.bf16 %v8897_v53, %v8896_v47 }
 0xc0a   : > { %13176 = vmatmul.mubr.msk.bf16.vlgmr.msra.gmra.mrb[16].mxu1 %vm298_vm1, %v16158_v29  ;;  %v9085_v2 = vld [vmem:[#allocation2 + $0x22] sm:$0xff]  ;;  %v9194_v22 = vpack.c.bf16 %v8899_v20, %v8898_v10  ;;  %v9498_v23 = vld [vmem:[#allocation2 + $0x90] sm:$0xff] }
 0xc0b   : > { %13184 = vmatpush3.bf16.msra.mxu1 %v9016_v31  ;;  %v16206_v60 = vpack.c.bf16 %v9086_v35, %v9085_v2  ;;  %v9087_v19 = vld [vmem:[#allocation2 + $0x42] sm:$0xff]  ;;  %v9397_v42 = vpack.c.bf16 %v9085_v2, %v9084_v56  ;;  %v9600_v43 = vld [vmem:[#allocation2 + $0x91] sm:$0xff] }
 0xc0c   : > { %14151 = vmatprep.subr.msk.bf16.mxu1 %vm496_vm3, %v11734_v58  ;;  %v16177_v57 = vld [vmem:[#allocation2 + $0x71] sm:$0xff]  ;;  %v9398_v6 = vpack.c.bf16 %v9087_v19, %v9086_v35  ;;  %v11759_v13 = vld [vmem:[%s16705_s5 + $0x40] sm:$0xf]  ;;  %v11764_v61 = vld [vmem:[%s16705_s5 + $0x44] sm:$0xf] }
 0xc0d   : > { %v16169_v46 = vld [vmem:[#allocation2 + $0x51] sm:$0xff]  ;;  %v9620_v12 = vsel %vm496_vm3, %v11759_v13, 0  ;;  %v9722_v0 = vsel %vm496_vm3, %v11764_v61, 0  ;;  %v16320_v40 = vld [vmem:[%s16706_s6] sm:$0xff]  }
 0xc0e   : > { %v16173_v21 = vpack.c.bf16 %v16169_v46, %v16167_v48  ;;  %v8900_v41 = vld [vmem:[#allocation2 + $0x50] sm:$0xff]  ;;  %v9192_v36 = vld [vmem:[#allocation2 + $0x80] sm:$0xff]  ;;  %v14277_v48 = vmov -inf  }
 0xc0f   : > { %v16175_v5 = vld [vmem:[#allocation2 + $0x61] sm:$0xff]  ;;  %v16191_v25 = vpack.c.bf16 %v8900_v41, %v8899_v20  ;;  %v8902_v7 = vld [vmem:[#allocation2 + $0x70] sm:$0xff]  ;;  %v9502_v39 = vpack.c.bf16 %v9498_v23, %v9192_v36  ;;  %9822 = vst.msk [vmem:[#allocation4 + $0x40] sm:$0xff] %vm320_vm0, %v14277_v48  ;;  %9813 = vst.msk [vmem:[#allocation4] sm:$0xff] %vm320_vm0, %v14277_v48 }
 0xc10   : > { %13179 = vmatprep.mubr.msk.bf16.mxu1 %vm298_vm1, %v16173_v21  ;;  %v16183_v59 = vpack.c.bf16 %v16177_v57, %v16175_v5  ;;  %v8901_v50 = vld [vmem:[#allocation2 + $0x60] sm:$0xff]  ;;  %v9088_v16 = vld [vmem:[#allocation2 + $0x52] sm:$0xff]  ;;  %v9196_v24 = vpack.c.bf16 %v9192_v36, %v8902_v7  ;;  %v9297_v26 = vpack.c.bf16 %v16175_v5, %v16169_v46  ;;  %9823 = vst.msk [vmem:[#allocation4 + $0x48] sm:$0xf] %vm9814_vm4, %v14277_v48  ;;  %9815 = vst.msk [vmem:[#allocation4 + $0x8] sm:$0xf] %vm9814_vm4, %v14277_v48 }
 0xc11   : > { %v16201_v1 = vpack.c.bf16 %v8902_v7, %v8901_v50  ;;  %v16209_v55 = vpack.c.bf16 %v9088_v16, %v9087_v19  ;;  %v9089_v45 = vld [vmem:[#allocation2 + $0x62] sm:$0xff]  ;;  %v9090_v44 = vld [vmem:[#allocation2 + $0x72] sm:$0xff]  ;;  %v9195_v3 = vpack.c.bf16 %v8901_v50, %v8900_v41  ;;  %9816 = vst.msk [vmem:[#allocation4 + $0x10] sm:$0xff] %vm320_vm0, %v14277_v48  ;;  %9818 = vst.msk [vmem:[#allocation4 + $0x20] sm:$0xff] %vm320_vm0, %v14277_v48  ;;  %v16746_v46 = vmov 0.0  }
 0xc12   : > { %13180 = vmatmul.mubr.msk.bf16.gmra.mrb[20].mxu1 %vm298_vm1, %v16183_v59  ;;  %v9094_v14 = vpack.c.bf16 %v9090_v44, %v9089_v45  ;;  %v9294_v30 = vld [vmem:[#allocation2 + $0x81] sm:$0xff]  ;;  %v9399_v54 = vpack.c.bf16 %v9089_v45, %v9088_v16  ;;  %9817 = vst.msk [vmem:[#allocation4 + $0x18] sm:$0xf] %vm9814_vm4, %v14277_v48  ;;  %9819 = vst.msk [vmem:[#allocation4 + $0x28] sm:$0xf] %vm9814_vm4, %v14277_v48 }
 0xc13   : > { %13185 = vmatprep.mubr.msk.bf16.mxu1 %vm298_vm1, %v8903_v8  ;;  %v9298_v34 = vpack.c.bf16 %v9294_v30, %v16177_v57  ;;  %v9396_v52 = vld [vmem:[#allocation2 + $0x82] sm:$0xff]  ;;  %v9604_v31 = vpack.c.bf16 %v9600_v43, %v9294_v30  ;;  %9820 = vst.msk [vmem:[#allocation4 + $0x30] sm:$0xff] %vm320_vm0, %v14277_v48  ;;  %9824 = vst.msk [vmem:[#allocation4 + $0x50] sm:$0xff] %vm320_vm0, %v14277_v48 }
 0xc14   : > { %v9400_v32 = vpack.c.bf16 %v9396_v52, %v9090_v44  ;;  %9821 = vst.msk [vmem:[#allocation4 + $0x38] sm:$0xf] %vm9814_vm4, %v14277_v48  ;;  %9825 = vst.msk [vmem:[#allocation4 + $0x58] sm:$0xf] %vm9814_vm4, %v14277_v48 }
 0xc15   : > { %9826 = vst.msk [vmem:[#allocation4 + $0x60] sm:$0xff] %vm320_vm0, %v14277_v48  ;;  %9828 = vst.msk [vmem:[#allocation4 + $0x70] sm:$0xff] %vm320_vm0, %v14277_v48 }
 0xc16   : > { %9827 = vst.msk [vmem:[#allocation4 + $0x68] sm:$0xf] %vm9814_vm4, %v14277_v48  ;;  %9829 = vst.msk [vmem:[#allocation4 + $0x78] sm:$0xf] %vm9814_vm4, %v14277_v48  ;;  %v9847_v47 = vld [vmem:[#allocation4] sm:$0xff] }
 0xc17   : > { %9830 = vst.msk [vmem:[#allocation4 + $0x80] sm:$0xff] %vm320_vm0, %v14277_v48  ;;  %9832 = vst.msk [vmem:[#allocation4 + $0x90] sm:$0xff] %vm320_vm0, %v14277_v48  ;;  %v9855_v5 = vld [vmem:[#allocation4 + $0x1] sm:$0xff] }
 0xc18   : > { %9831 = vst.msk [vmem:[#allocation4 + $0x88] sm:$0xf] %vm9814_vm4, %v14277_v48  ;;  %9833 = vst.msk [vmem:[#allocation4 + $0x98] sm:$0xf] %vm9814_vm4, %v14277_v48  ;;  %v9863_v57 = vmax.f32 %v9847_v47, %v9855_v5  ;;  %v9887_v53 = vld [vmem:[#allocation4 + $0x3] sm:$0xff] }
 0xc19   : > { %9834 = vst.msk [vmem:[#allocation4 + $0xa0] sm:$0xff] %vm320_vm0, %v14277_v48  ;;  %9836 = vst.msk [vmem:[#allocation4 + $0xb0] sm:$0xff] %vm320_vm0, %v14277_v48  ;;  %v9903_v10 = vld [vmem:[#allocation4 + $0x4] sm:$0xff]  ;;  %v9872_v33 = vld [vmem:[#allocation4 + $0x12] sm:$0xff] }
 0xc1a   : > { %13186 = vmatmul.mubr.msk.bf16.vlgmr.msra.gmra.mrb[16].mxu1 %vm298_vm1, %v16188_v4  ;;  %9835 = vst.msk [vmem:[#allocation4 + $0xa8] sm:$0xf] %vm9814_vm4, %v14277_v48  ;;  %9837 = vst.msk [vmem:[#allocation4 + $0xb8] sm:$0xf] %vm9814_vm4, %v14277_v48  ;;  %v9888_v16 = vld [vmem:[#allocation4 + $0x13] sm:$0xff] }
 0xc1b   : > { %13194 = vmatpush3.bf16.msra.mxu1 %v9110_v11  ;;  %13189 = vmatprep.mubr.msk.bf16.mxu1 %vm298_vm1, %v16191_v25  ;;  %329 = vst.msk [vmem:[#allocation3 + $0x38] sm:$0x3] %vm322_vm5, %v16746_v46  ;;  %323 = vst.msk [vmem:[#allocation3 + $0x8] sm:$0x3] %vm322_vm5, %v16746_v46  ;;  %v9848_v11 = vld [vmem:[#allocation4 + $0x10] sm:$0xff] }
 0xc1c   : > { %14152 = vmatprep.subr.msk.bf16.mxu1 %vm496_vm3, %v11739_v38  ;;  %325 = vst.msk [vmem:[#allocation3 + $0x18] sm:$0x3] %vm322_vm5, %v16746_v46  ;;  %327 = vst.msk [vmem:[#allocation3 + $0x28] sm:$0x3] %vm322_vm5, %v16746_v46  ;;  %v9904_v44 = vld [vmem:[#allocation4 + $0x14] sm:$0xff] }
 0xc1d   : > { %331 = vst.msk [vmem:[#allocation3 + $0x48] sm:$0x3] %vm322_vm5, %v16746_v46  ;;  %333 = vst.msk [vmem:[#allocation3 + $0x58] sm:$0x3] %vm322_vm5, %v16746_v46 }
 0xc1e   : > { %335 = vst.msk [vmem:[#allocation3 + $0x68] sm:$0x3] %vm322_vm5, %v16746_v46  ;;  %337 = vst.msk [vmem:[#allocation3 + $0x78] sm:$0x3] %vm322_vm5, %v16746_v46 }
 0xc1f   : > { %339 = vst.msk [vmem:[#allocation3 + $0x88] sm:$0x3] %vm322_vm5, %v16746_v46  ;;  %341 = vst.msk [vmem:[#allocation3 + $0x98] sm:$0x3] %vm322_vm5, %v16746_v46 }
 0xc22   : > { %13190 = vmatmul.mubr.msk.bf16.gmra.mrb[20].mxu1 %vm298_vm1, %v16201_v1 }
 0xc23   : > { %13195 = vmatprep.mubr.msk.bf16.mxu1 %vm298_vm1, %v9091_v37 }
 0xc2a   : > { %13196 = vmatmul.mubr.msk.bf16.vlgmr.msra.gmra.mrb[16].mxu1 %vm298_vm1, %v16206_v60 }
 0xc2b   : > { %13204 = vmatpush3.bf16.msra.mxu1 %v9212_v28  ;;  %13199 = vmatprep.mubr.msk.bf16.mxu1 %vm298_vm1, %v16209_v55 }
 0xc2c   : > { %14153 = vmatprep.subr.msk.bf16.mxu1 %vm496_vm3, %v11744_v27 }
 0xc32   : > { %13200 = vmatmul.mubr.msk.bf16.gmra.mrb[20].mxu1 %vm298_vm1, %v9094_v14 }
 0xc33   : > { %13205 = vmatprep.mubr.msk.bf16.mxu1 %vm298_vm1, %v9193_v18 }
 0xc3a   : > { %13206 = vmatmul.mubr.msk.bf16.vlgmr.msra.gmra.mrb[16].mxu1 %vm298_vm1, %v9194_v22 }
 0xc3b   : > { %13214 = vmatpush3.bf16.msra.mxu1 %v9314_v62  ;;  %13209 = vmatprep.mubr.msk.bf16.mxu1 %vm298_vm1, %v9195_v3 }
 0xc3c   : > { %14154 = vmatprep.subr.msk.bf16.mxu1 %vm496_vm3, %v11749_v49 }
 0xc42   : > { %13210 = vmatmul.mubr.msk.bf16.gmra.mrb[20].mxu1 %vm298_vm1, %v9196_v24 }
 0xc43   : > { %13215 = vmatprep.mubr.msk.bf16.mxu1 %vm298_vm1, %v9295_v17 }
 0xc4a   : > { %13216 = vmatmul.mubr.msk.bf16.vlgmr.msra.gmra.mrb[16].mxu1 %vm298_vm1, %v9296_v9 }
 0xc4b   : > { %13224 = vmatpush3.bf16.msra.mxu1 %v9416_v15  ;;  %13219 = vmatprep.mubr.msk.bf16.mxu1 %vm298_vm1, %v9297_v26 }
 0xc4c   : > { %14155 = vmatprep.subr.msk.bf16.mxu1 %vm496_vm3, %v11754_v51 }
 0xc52   : > { %13220 = vmatmul.mubr.msk.bf16.gmra.mrb[20].mxu1 %vm298_vm1, %v9298_v34 }
 0xc53   : > { %13225 = vmatprep.mubr.msk.bf16.mxu1 %vm298_vm1, %v9397_v42 }
 0xc5a   : > { %13226 = vmatmul.mubr.msk.bf16.vlgmr.msra.gmra.mrb[16].mxu1 %vm298_vm1, %v9398_v6 }
 0xc5b   : > { %13234 = vmatpush3.bf16.msra.mxu1 %v9518_v63  ;;  %13229 = vmatprep.mubr.msk.bf16.mxu1 %vm298_vm1, %v9399_v54 }
 0xc5c   : > { %14156 = vmatprep.subr.msk.bf16.mxu1 %vm496_vm3, %v11759_v13 }
 0xc62   : > { %13230 = vmatmul.mubr.msk.bf16.gmra.mrb[20].mxu1 %vm298_vm1, %v9400_v32 }
 0xc63   : > { %13235 = vmatprep.mubr.msk.bf16.mxu1 %vm298_vm1, %v16188_v4 }
 0xc6a   : > { %13236 = vmatmul.mubr.msk.bf16.vlgmr.msra.gmra.mrb[16].mxu1 %vm298_vm1, %v16191_v25  ;;  %v9856_v25 = vld [vmem:[#allocation4 + $0x11] sm:$0xff] }
 0xc6b   : > { %13244 = vmatpush3.bf16.msra.mxu1 %v9620_v12  ;;  %13239 = vmatprep.mubr.msk.bf16.mxu1 %vm298_vm1, %v16201_v1  ;;  %v9864_v38 = vmax.f32 %v9848_v11, %v9856_v25 }
 0xc6c   : > { %14157 = vmatprep.subr.msk.bf16.mxu1 %vm496_vm3, %v11764_v61 }
 0xc6d   : > { %v9880_v7 = vmax.f32 %v9864_v38, %v9872_v33 }
 0xc72   : > { %13240 = vmatmul.mubr.msk.bf16.gmra.mrb[20].mxu1 %vm298_vm1, %v9502_v39 }
 0xc73   : > { %13245 = vmatprep.mubr.msk.bf16.mxu1 %vm298_vm1, %v16158_v29  ;;  %v9702_v29 = vld [vmem:[#allocation2 + $0x92] sm:$0xff] }
 0xc74   : > { %v9706_v58 = vpack.c.bf16 %v9702_v29, %v9396_v52 }
 0xc7a   : > { %13246 = vmatmul.mubr.msk.bf16.vlgmr.msra.gmra.mrb[16].mxu1 %vm298_vm1, %v16173_v21  ;;  %v14203_v21 = vld [vmem:[%s16706_s6 + $0x8] sm:$0xff]  }
 0xc7b   : > { %13254 = vmatpush3.bf16.msra.mxu1 %v9722_v0  ;;  %13249 = vmatprep.mubr.msk.bf16.mxu1 %vm298_vm1, %v16183_v59  ;;  %v9871_v59 = vld [vmem:[#allocation4 + $0x2] sm:$0xff] }
 0xc7c   : > { %13263 = vmatprep.subr.bf16.mxu0 %v14203_v21  ;;  %v9879_v8 = vmax.f32 %v9863_v57, %v9871_v59 }
 0xc7d   : > { %13264 = vmatpush3.bf16.msra.mxu0 %v14203_v21 }
 0xc7e   : > { %13273 = vmatprep.subr.bf16.mxu0 %v16320_v40  ;;  %v9895_v41 = vmax.f32 %v9879_v8, %v9887_v53 }
 0xc80   : > { %v9911_v4 = vmax.f32 %v9895_v41, %v9903_v10 }
 0xc82   : > { %13250 = vmatmul.mubr.msk.bf16.gmra.mrb[20].mxu1 %vm298_vm1, %v9604_v31  ;;  %v9928_v20 = vmax.f32 %v9911_v4, %v9848_v11 }
 0xc83   : > { %13255 = vmatprep.mubr.msk.bf16.mxu1 %vm298_vm1, %v16206_v60 }
 0xc84   : > { %v9944_v50 = vmax.f32 %v9928_v20, %v9856_v25 }
 0xc86   : > { %v9960_v1 = vmax.f32 %v9944_v50, %v9872_v33 }
 0xc88   : > { %v9976_v27 = vmax.f32 %v9960_v1, %v9888_v16 }
 0xc8a   : > { %13256 = vmatmul.mubr.msk.bf16.vlgmr.msra.gmra.mrb[16].mxu1 %vm298_vm1, %v16209_v55  ;;  %v9896_v55 = vmax.f32 %v9880_v7, %v9888_v16  ;;  %v9992_v18 = vmax.f32 %v9976_v27, %v9904_v44 }
 0xc8b   : > { %13259 = vmatprep.mubr.msk.bf16.mxu1 %vm298_vm1, %v9094_v14 }
 0xc8c   : > { %v9912_v14 = vmax.f32 %v9896_v55, %v9904_v44 }
 0xc92   : > { %13260 = vmatmul.mubr.msk.bf16.gmra.mrb[20].mxu1 %vm298_vm1, %v9706_v58 }
 0xd5d   : > { %v16323_v56 = vpop.f32.mrb[16].mxu1 }
 0xd5e   : > { %v9807_v37 = vmax.f32 %v16323_v56, 0.0  ;;  %v16326_v2 = vpop.f32.mrb[17].mxu1 }
 0xd5f   : > { %v9805_v35 = vmax.f32 %v16326_v2, 0.0  ;;  %v16329_v60 = vpop.f32.mrb[18].mxu1 }
 0xd60   : > { %9841 = vst.msk [vmem:[#allocation4 + $0x42] sm:$0xff] %vm320_vm0, %v9807_v37  ;;  %v9808_v28 = vmax.f32 %v16329_v60, 0.0  ;;  %v16335_v19 = vpop.f32.mrb[19].mxu1 }
 0xd61   : > { %9839 = vst.msk [vmem:[#allocation4 + $0x22] sm:$0xff] %vm320_vm0, %v9805_v35  ;;  %v9806_v45 = vmax.f32 %v16335_v19, 0.0 }
 0xd62   : > { %9842 = vst.msk [vmem:[#allocation4 + $0x52] sm:$0xff] %vm320_vm0, %v9808_v28 }
 0xd63   : > { %9840 = vst.msk [vmem:[#allocation4 + $0x32] sm:$0xff] %vm320_vm0, %v9806_v45 }
 0xd65   : > { %v16347_v22 = vpop.f32.mrb[20].mxu1 }
 0xd66   : > { %v9811_v62 = vmax.f32 %v16347_v22, 0.0  ;;  %v16350_v3 = vpop.f32.mrb[21].mxu1 }
 0xd67   : > { %v16352_v49 = vld [vmem:[#allocation4 + $0x40] sm:$0xff]  ;;  %v9809_v24 = vmax.f32 %v16350_v3, 0.0  ;;  %v16357_v17 = vpop.f32.mrb[22].mxu1 }
 0xd68   : > { %v16354_v36 = vld [vmem:[#allocation4 + $0x41] sm:$0xff]  ;;  %9845 = vst.msk [vmem:[#allocation4 + $0x82] sm:$0xff] %vm320_vm0, %v9811_v62  ;;  %v9812_v51 = vmax.f32 %v16357_v17, 0.0  ;;  %v16367_v30 = vpop.f32.mrb[23].mxu1 }
 0xd69   : > { %v9931_v9 = vmax.f32 %v16354_v36, %v16352_v49  ;;  %v9867_v15 = vmax.f32 %v16352_v49, %v16354_v36  ;;  %v9849_v26 = vld [vmem:[#allocation4 + $0x20] sm:$0xff]  ;;  %9843 = vst.msk [vmem:[#allocation4 + $0x62] sm:$0xff] %vm320_vm0, %v9809_v24  ;;  %v9810_v54 = vmax.f32 %v16367_v30, 0.0  ;;  %v16377_v12 = vld [vmem:[#allocation4 + $0x50] sm:$0xff] }
 0xd6a   : > { %v16369_v34 = vld [vmem:[#allocation4 + $0x42] sm:$0xff]  ;;  %v9929_v6 = vmax.f32 %v9912_v14, %v9849_v26  ;;  %v10008_v63 = vmax.f32 %v9992_v18, %v9849_v26  ;;  %v16379_v61 = vld [vmem:[#allocation4 + $0x51] sm:$0xff]  ;;  %9846 = vst.msk [vmem:[#allocation4 + $0x92] sm:$0xff] %vm320_vm0, %v9812_v51 }
 0xd6b   : > { %v9857_v42 = vld [vmem:[#allocation4 + $0x21] sm:$0xff]  ;;  %v9947_v13 = vmax.f32 %v9931_v9, %v16369_v34  ;;  %v9883_v52 = vmax.f32 %v9867_v15, %v16369_v34  ;;  %v9868_v31 = vmax.f32 %v16377_v12, %v16379_v61  ;;  %9844 = vst.msk [vmem:[#allocation4 + $0x72] sm:$0xff] %vm320_vm0, %v9810_v54  ;;  %v16393_v46 = vld [vmem:[#allocation4 + $0x52] sm:$0xff] }
 0xd6c   : > { %v9865_v32 = vmax.f32 %v9849_v26, %v9857_v42  ;;  %v16384_v23 = vld [vmem:[#allocation4 + $0x43] sm:$0xff]  ;;  %v9945_v0 = vmax.f32 %v9929_v6, %v9857_v42  ;;  %v10024_v43 = vmax.f32 %v10008_v63, %v9857_v42  ;;  %v9850_v21 = vld [vmem:[#allocation4 + $0x30] sm:$0xff] }
 0xd6d   : > { %v9873_v39 = vld [vmem:[#allocation4 + $0x22] sm:$0xff]  ;;  %v9963_v29 = vmax.f32 %v9947_v13, %v16384_v23  ;;  %v9899_v58 = vmax.f32 %v9883_v52, %v16384_v23  ;;  %v9858_v47 = vld [vmem:[#allocation4 + $0x31] sm:$0xff]  ;;  %v9884_v53 = vmax.f32 %v9868_v31, %v16393_v46 }
 0xd6e   : > { %v9881_v48 = vmax.f32 %v9865_v32, %v9873_v39  ;;  %v16395_v5 = vld [vmem:[#allocation4 + $0x44] sm:$0xff]  ;;  %v9961_v59 = vmax.f32 %v9945_v0, %v9873_v39  ;;  %v10040_v8 = vmax.f32 %v10024_v43, %v9873_v39  ;;  %v9866_v41 = vmax.f32 %v9850_v21, %v9858_v47  ;;  %v16400_v20 = vld [vmem:[#allocation4 + $0x53] sm:$0xff] }
 0xd6f   : > { %v9889_v57 = vld [vmem:[#allocation4 + $0x23] sm:$0xff]  ;;  %v9979_v10 = vmax.f32 %v9963_v29, %v16395_v5  ;;  %v9915_v4 = vmax.f32 %v9899_v58, %v16395_v5  ;;  %v9874_v25 = vld [vmem:[#allocation4 + $0x32] sm:$0xff]  ;;  %v9900_v7 = vmax.f32 %v9884_v53, %v16400_v20 }
 0xd70   : > { %v9897_v11 = vmax.f32 %v9881_v48, %v9889_v57  ;;  %v9905_v38 = vld [vmem:[#allocation4 + $0x24] sm:$0xff]  ;;  %v9977_v50 = vmax.f32 %v9961_v59, %v9889_v57  ;;  %v10056_v33 = vmax.f32 %v10040_v8, %v9889_v57  ;;  %v9882_v1 = vmax.f32 %v9866_v41, %v9874_v25  ;;  %v16404_v27 = vld [vmem:[#allocation4 + $0x54] sm:$0xff] }
 0xd71   : > { %v9995_v55 = vmax.f32 %v9979_v10, %v16377_v12  ;;  %v9932_v44 = vmax.f32 %v9915_v4, %v16377_v12  ;;  %v9890_v14 = vld [vmem:[#allocation4 + $0x33] sm:$0xff]  ;;  %v9916_v15 = vmax.f32 %v9900_v7, %v16404_v27  ;;  %v16410_v52 = vld [vmem:[#allocation4 + $0x80] sm:$0xff] }
 0xd72   : > { %v9913_v16 = vmax.f32 %v9897_v11, %v9905_v38  ;;  %v9993_v18 = vmax.f32 %v9977_v50, %v9905_v38  ;;  %v10072_v9 = vmax.f32 %v10056_v33, %v9905_v38  ;;  %v9898_v26 = vmax.f32 %v9882_v1, %v9890_v14  ;;  %v9906_v42 = vld [vmem:[#allocation4 + $0x34] sm:$0xff]  ;;  %v16412_v32 = vld [vmem:[#allocation4 + $0x60] sm:$0xff] }
 0xd73   : > { %v10011_v6 = vmax.f32 %v9995_v55, %v16379_v61  ;;  %v9948_v63 = vmax.f32 %v9932_v44, %v16379_v61  ;;  %v16414_v39 = vld [vmem:[#allocation4 + $0x61] sm:$0xff]  ;;  %v9933_v29 = vmax.f32 %v9916_v15, %v16410_v52  ;;  %v16429_v55 = vld [vmem:[#allocation4 + $0x70] sm:$0xff] }
 0xd74   : > { %v9930_v13 = vmax.f32 %v9913_v16, %v9850_v21  ;;  %v9914_v0 = vmax.f32 %v9898_v26, %v9906_v42  ;;  %v10009_v43 = vmax.f32 %v9993_v18, %v9850_v21  ;;  %v10089_v31 = vmax.f32 %v10072_v9, %v9850_v21  ;;  %v16419_v59 = vld [vmem:[#allocation4 + $0x81] sm:$0xff] }
 0xd75   : > { %v10027_v58 = vmax.f32 %v10011_v6, %v16393_v46  ;;  %v9964_v48 = vmax.f32 %v9948_v63, %v16393_v46  ;;  %v9949_v41 = vmax.f32 %v9933_v29, %v16419_v59  ;;  %v9869_v10 = vmax.f32 %v16412_v32, %v16414_v39  ;;  %v16426_v38 = vld [vmem:[#allocation4 + $0x82] sm:$0xff] }
 0xd76   : > { %v9946_v57 = vmax.f32 %v9930_v13, %v9858_v47  ;;  %v10025_v8 = vmax.f32 %v10009_v43, %v9858_v47  ;;  %v10105_v53 = vmax.f32 %v10089_v31, %v9858_v47  ;;  %v9877_v50 = vld [vmem:[#allocation4 + $0x62] sm:$0xff]  ;;  %v16431_v47 = vld [vmem:[#allocation4 + $0x71] sm:$0xff] }
 0xd77   : > { %v10043_v4 = vmax.f32 %v10027_v58, %v16400_v20  ;;  %v9980_v21 = vmax.f32 %v9964_v48, %v16400_v20  ;;  %v9965_v1 = vmax.f32 %v9949_v41, %v16426_v38  ;;  %v9885_v16 = vmax.f32 %v9869_v10, %v9877_v50  ;;  %v16435_v15 = vld [vmem:[#allocation4 + $0x83] sm:$0xff] }
 0xd78   : > { %v9962_v11 = vmax.f32 %v9946_v57, %v9874_v25  ;;  %v10041_v33 = vmax.f32 %v10025_v8, %v9874_v25  ;;  %v10121_v7 = vmax.f32 %v10105_v53, %v9874_v25  ;;  %v9893_v26 = vld [vmem:[#allocation4 + $0x63] sm:$0xff]  ;;  %v9870_v57 = vmax.f32 %v16429_v55, %v16431_v47 }
 0xd79   : > { %v10059_v44 = vmax.f32 %v10043_v4, %v16404_v27  ;;  %v9996_v18 = vmax.f32 %v9980_v21, %v16404_v27  ;;  %v9981_v13 = vmax.f32 %v9965_v1, %v16435_v15  ;;  %v9901_v25 = vmax.f32 %v9885_v16, %v9893_v26  ;;  %v16438_v29 = vld [vmem:[#allocation4 + $0x84] sm:$0xff]  ;;  %v16444_v4 = vld [vmem:[#allocation4 + $0x72] sm:$0xff] }
 0xd7a   : > { %v9978_v9 = vmax.f32 %v9962_v11, %v9890_v14  ;;  %v10057_v6 = vmax.f32 %v10041_v33, %v9890_v14  ;;  %v10137_v63 = vmax.f32 %v10121_v7, %v9890_v14  ;;  %v9909_v58 = vld [vmem:[#allocation4 + $0x64] sm:$0xff]  ;;  %v9886_v11 = vmax.f32 %v9870_v57, %v16444_v4  ;;  %v16452_v16 = vld [vmem:[#allocation4 + $0x73] sm:$0xff] }
 0xd7b   : > { %v10075_v43 = vmax.f32 %v10059_v44, %v9914_v0  ;;  %v10012_v48 = vmax.f32 %v9996_v18, %v16412_v32  ;;  %v9997_v41 = vmax.f32 %v9981_v13, %v16438_v29  ;;  %v9917_v10 = vmax.f32 %v9901_v25, %v9909_v58 }
 0xd7c   : > { %v9994_v31 = vmax.f32 %v9978_v9, %v9906_v42  ;;  %v10073_v8 = vmax.f32 %v10057_v6, %v9906_v42  ;;  %v10153_v53 = vmax.f32 %v10137_v63, %v9906_v42  ;;  %v9902_v6 = vmax.f32 %v9886_v11, %v16452_v16 }
 0xd7d   : > { %v10092_v21 = vmax.f32 %v10075_v43, %v16412_v32  ;;  %v10028_v0 = vmax.f32 %v10012_v48, %v16414_v39  ;;  %v10013_v1 = vmax.f32 %v9997_v41, %v16412_v32  ;;  %v9934_v42 = vmax.f32 %v9917_v10, %v16429_v55 }
 0xd7e   : > { %v10155_v14 = vmax.f32 %v10059_v44, %v9994_v31  ;;  %v10090_v33 = vmax.f32 %v10073_v8, %v16352_v49  ;;  %v10170_v7 = vmax.f32 %v10153_v53, %v16352_v49  ;;  %v16461_v49 = vld [vmem:[#allocation4 + $0x74] sm:$0xff] }
 0xd7f   : > { %v10108_v44 = vmax.f32 %v10092_v21, %v16414_v39  ;;  %v10044_v9 = vmax.f32 %v10028_v0, %v9877_v50  ;;  %v10029_v25 = vmax.f32 %v10013_v1, %v16414_v39  ;;  %v9950_v43 = vmax.f32 %v9934_v42, %v16431_v47 }
 0xd80   : > { %v10172_v18 = vmax.f32 %v10155_v14, %v16412_v32  ;;  %v10106_v63 = vmax.f32 %v10090_v33, %v16354_v36  ;;  %v10186_v13 = vmax.f32 %v10170_v7, %v16354_v36  ;;  %v9918_v32 = vmax.f32 %v9902_v6, %v16461_v49 }
 0xd81   : > { %v10124_v48 = vmax.f32 %v10108_v44, %v9877_v50  ;;  %v10060_v57 = vmax.f32 %v10044_v9, %v9893_v26  ;;  %v10045_v41 = vmax.f32 %v10029_v25, %v9877_v50  ;;  %v9966_v10 = vmax.f32 %v9950_v43, %v16444_v4 }
 0xd82   : > { %v10188_v31 = vmax.f32 %v10172_v18, %v16414_v39  ;;  %v10122_v8 = vmax.f32 %v10106_v63, %v16369_v34  ;;  %v10202_v53 = vmax.f32 %v10186_v13, %v16369_v34  ;;  %v9935_v0 = vmax.f32 %v9918_v32, %v16410_v52  ;;  %v10007_v13 = vld [vmem:[#allocation4 + $0x90] sm:$0xff] }
 0xd83   : > { %v10140_v14 = vmax.f32 %v10124_v48, %v9893_v26  ;;  %v10076_v21 = vmax.f32 %v10060_v57, %v9909_v58  ;;  %v10061_v33 = vmax.f32 %v10045_v41, %v9893_v26  ;;  %v9982_v7 = vmax.f32 %v9966_v10, %v16452_v16  ;;  %v10023_v57 = vld [vmem:[#allocation4 + $0x91] sm:$0xff] }
 0xd84   : > { %v10204_v36 = vmax.f32 %v10188_v31, %v9877_v50  ;;  %v10138_v11 = vmax.f32 %v10122_v8, %v16384_v23  ;;  %v10218_v39 = vmax.f32 %v10202_v53, %v16384_v23  ;;  %v9951_v18 = vmax.f32 %v9935_v0, %v16419_v59 }
 0xd85   : > { %v10156_v42 = vmax.f32 %v10140_v14, %v9909_v58  ;;  %v10093_v34 = vmax.f32 %v10076_v21, %v16429_v55  ;;  %v10077_v50 = vmax.f32 %v10061_v33, %v9909_v58  ;;  %v9998_v9 = vmax.f32 %v9982_v7, %v16461_v49 }
 0xd86   : > { %v10220_v1 = vmax.f32 %v10204_v36, %v9893_v26  ;;  %v10154_v44 = vmax.f32 %v10138_v11, %v16395_v5  ;;  %v10234_v6 = vmax.f32 %v10218_v39, %v16395_v5  ;;  %v9967_v25 = vmax.f32 %v9951_v18, %v16426_v38  ;;  %v10055_v39 = vld [vmem:[#allocation4 + $0x93] sm:$0xff] }
 0xd87   : > { %v10173_v23 = vmax.f32 %v10156_v42, %v16429_v55  ;;  %v10109_v26 = vmax.f32 %v10093_v34, %v16431_v47  ;;  %v10094_v31 = vmax.f32 %v10077_v50, %v10007_v13  ;;  %v10014_v48 = vmax.f32 %v9998_v9, %v16410_v52 }
 0xd88   : > { %v10236_v63 = vmax.f32 %v10220_v1, %v9909_v58  ;;  %v10171_v43 = vmax.f32 %v10154_v44, %v16377_v12  ;;  %10243 = vst.msk [vmem:[#allocation3 + $0x11] sm:$0xff] %vm320_vm0, %v10234_v6  ;;  %v9983_v58 = vmax.f32 %v9967_v25, %v16435_v15  ;;  %v10039_v12 = vld [vmem:[#allocation4 + $0x92] sm:$0xff]  ;;  %v10265_v1 = vld [vmem:[#allocation3 + $0x1] sm:$0xff] }
 0xd89   : > { %v10189_v5 = vmax.f32 %v10173_v23, %v16431_v47  ;;  %v10125_v32 = vmax.f32 %v10109_v26, %v16444_v4  ;;  %v10110_v53 = vmax.f32 %v10094_v31, %v10023_v57  ;;  %v10030_v41 = vmax.f32 %v10014_v48, %v16419_v59  ;;  %v10071_v44 = vld [vmem:[#allocation4 + $0x94] sm:$0xff] }
 0xd8a   : > { %10245 = vst.msk [vmem:[#allocation3 + $0x31] sm:$0xff] %vm320_vm0, %v10236_v63  ;;  %v10187_v8 = vmax.f32 %v10171_v43, %v16379_v61  ;;  %v9999_v36 = vmax.f32 %v9983_v58, %v16438_v29 }
 0xd8b   : > { %v10205_v10 = vmax.f32 %v10189_v5, %v16444_v4  ;;  %v10141_v14 = vmax.f32 %v10125_v32, %v16452_v16  ;;  %v10126_v0 = vmax.f32 %v10110_v53, %v10039_v12  ;;  %v10046_v11 = vmax.f32 %v10030_v41, %v16426_v38  ;;  %v10088_v32 = vld [vmem:[#allocation4 + $0xa0] sm:$0xff] }
 0xd8c   : > { %v10203_v21 = vmax.f32 %v10187_v8, %v16393_v46  ;;  %v10015_v7 = vmax.f32 %v9999_v36, %v10007_v13 }
 0xd8d   : > { %v10221_v33 = vmax.f32 %v10205_v10, %v16452_v16  ;;  %v10157_v61 = vmax.f32 %v10141_v14, %v16461_v49  ;;  %v10142_v18 = vmax.f32 %v10126_v0, %v10055_v39  ;;  %v10062_v34 = vmax.f32 %v10046_v11, %v16435_v15  ;;  %v10184_v10 = vld [vmem:[#allocation4 + $0xa1] sm:$0xff]  ;;  %v14205_v11 = vld [vmem:[%s16706_s6 + $0x10] sm:$0xff]  }
 0xd8e   : > { %v10219_v42 = vmax.f32 %v10203_v21, %v16400_v20  ;;  %v10031_v9 = vmax.f32 %v10015_v7, %v10023_v57 }
 0xd8f   : > { %v10237_v50 = vmax.f32 %v10221_v33, %v16461_v49  ;;  %v10174_v46 = vmax.f32 %v10157_v61, %v16410_v52  ;;  %v16501_v6 = vld [vmem:[#allocation3 + $0x11] sm:$0xff]  ;;  %v10158_v63 = vmax.f32 %v10142_v18, %v10071_v44  ;;  %v10078_v23 = vmax.f32 %v10062_v34, %v16438_v29  ;;  %v10232_v61 = vld [vmem:[#allocation4 + $0xa4] sm:$0xff] }
 0xd90   : > { %v10273_v25 = vpack.c.bf16 %v16501_v6, %v10265_v1  ;;  %v10235_v26 = vmax.f32 %v10219_v42, %v16404_v27  ;;  %v10047_v43 = vmax.f32 %v10031_v9, %v10039_v12  ;;  %v10169_v42 = vld [vmem:[#allocation4 + $0xb0] sm:$0xff] }
 0xd91   : > { %v10190_v20 = vmax.f32 %v10174_v46, %v16419_v59  ;;  %10246 = vst.msk [vmem:[#allocation3 + $0x41] sm:$0xff] %vm320_vm0, %v10237_v50  ;;  %v10175_v31 = vmax.f32 %v10158_v63, %v16429_v55  ;;  %v10095_v48 = vmax.f32 %v10078_v23, %v10007_v13  ;;  %v16517_v21 = vld [vmem:[#allocation3 + $0x31] sm:$0xff] }
 0xd92   : > { %13265 = vmatprep.mubr.msk.bf16.mxu0 %vm320_vm0, %v10273_v25  ;;  %10244 = vst.msk [vmem:[#allocation3 + $0x21] sm:$0xff] %vm320_vm0, %v10235_v26  ;;  %v10063_v52 = vmax.f32 %v10047_v43, %v10055_v39  ;;  %v10185_v50 = vld [vmem:[#allocation4 + $0xb1] sm:$0xff] }
 0xd93   : > { %v10206_v5 = vmax.f32 %v10190_v20, %v16426_v38  ;;  %v10191_v58 = vmax.f32 %v10175_v31, %v16431_v47  ;;  %v10111_v8 = vmax.f32 %v10095_v48, %v10023_v57  ;;  %v10200_v47 = vld [vmem:[#allocation4 + $0xa2] sm:$0xff]  ;;  %v10201_v23 = vld [vmem:[#allocation4 + $0xb2] sm:$0xff] }
 0xd94   : > { %v10079_v27 = vmax.f32 %v10063_v52, %v10071_v44  ;;  %v10217_v26 = vld [vmem:[#allocation4 + $0xb3] sm:$0xff]  ;;  %v10251_v52 = vld [vmem:[#allocation3] sm:$0xff] }
 0xd95   : > { %v10222_v53 = vmax.f32 %v10206_v5, %v16435_v15  ;;  %v10207_v59 = vmax.f32 %v10191_v58, %v16444_v4  ;;  %v10127_v41 = vmax.f32 %v10111_v8, %v10039_v12  ;;  %v10216_v12 = vld [vmem:[#allocation4 + $0xa3] sm:$0xff]  ;;  %v10233_v20 = vld [vmem:[#allocation4 + $0xb4] sm:$0xff] }
 0xd96   : > { %v10096_v55 = vmax.f32 %v10079_v27, %v10088_v32  ;;  %v10252_v5 = vld [vmem:[#allocation3 + $0x10] sm:$0xff] }
 0xd97   : > { %v10238_v13 = vmax.f32 %v10222_v53, %v16438_v29  ;;  %v10223_v36 = vmax.f32 %v10207_v59, %v16452_v16  ;;  %v10143_v14 = vmax.f32 %v10127_v41, %v10055_v39  ;;  %v10259_v27 = vpack.c.bf16 %v10252_v5, %v10251_v52  ;;  %v10254_v41 = vld [vmem:[#allocation3 + $0x30] sm:$0xff] }
 0xd98   : > { %v16519_v38 = vld [vmem:[#allocation3 + $0x41] sm:$0xff]  ;;  %v10112_v15 = vmax.f32 %v10096_v55, %v10184_v10  ;;  %v10878_v52 = vld [vmem:[#allocation3 + $0x90] sm:$0xff] }
 0xd99   : > { %v16521_v0 = vld [vmem:[#allocation3 + $0x21] sm:$0xff]  ;;  %10247 = vst.msk [vmem:[#allocation3 + $0x51] sm:$0xff] %vm320_vm0, %v10238_v13  ;;  %v10667_v4 = vpack.c.bf16 %v16519_v38, %v16517_v21  ;;  %v10239_v57 = vmax.f32 %v10223_v36, %v16461_v49  ;;  %v10159_v16 = vmax.f32 %v10143_v14, %v10071_v44  ;;  %v14206_v13 = vld [vmem:[%s16706_s6 + $0x18] sm:$0xff]  }
 0xd9a   : > { %v16529_v29 = vpack.c.bf16 %v16517_v21, %v16521_v0  ;;  %v10128_v39 = vmax.f32 %v10112_v15, %v10200_v47  ;;  %v10666_v33 = vpack.c.bf16 %v16521_v0, %v16501_v6  ;;  %v10253_v53 = vld [vmem:[#allocation3 + $0x20] sm:$0xff]  ;;  %v10447_v15 = vld [vmem:[#allocation3 + $0x12] sm:$0xff] }
 0xd9b   : > { %v10176_v7 = vmax.f32 %v10159_v16, %v10088_v32  ;;  %10248 = vst.msk [vmem:[#allocation3 + $0x61] sm:$0xff] %vm320_vm0, %v10239_v57  ;;  %v10255_v55 = vld [vmem:[#allocation3 + $0x40] sm:$0xff] }
 0xd9c   : > { %13266 = vmatmul.mubr.msk.bf16.vlgmr.msra.gmra.mrb[56].mxu0 %vm320_vm0, %v16529_v29  ;;  %v10144_v49 = vmax.f32 %v10128_v39, %v10216_v12  ;;  %v10448_v39 = vld [vmem:[#allocation3 + $0x22] sm:$0xff] }
 0xd9d   : > { %13274 = vmatpush3.bf16.msra.mxu0 %v16320_v40  ;;  %v10192_v1 = vmax.f32 %v10176_v7, %v10184_v10  ;;  %v16555_v10 = vpack.c.bf16 %v10254_v41, %v10253_v53  ;;  %v10772_v6 = vpack.c.bf16 %v10448_v39, %v10447_v15 }
 0xd9e   : > { %13283 = vmatprep.subr.bf16.mxu0 %v14205_v11  ;;  %v10160_v18 = vmax.f32 %v10144_v49, %v10232_v61 }
 0xd9f   : > { %v10208_v44 = vmax.f32 %v10192_v1, %v10200_v47  ;;  %v10446_v47 = vld [vmem:[#allocation3 + $0x2] sm:$0xff] }
 0xda0   : > { %v16540_v34 = vld [vmem:[#allocation3 + $0x51] sm:$0xff]  ;;  %v10177_v46 = vmax.f32 %v10160_v18, %v10169_v42  ;;  %v10450_v1 = vld [vmem:[#allocation3 + $0x42] sm:$0xff] }
 0xda1   : > { %v16544_v9 = vpack.c.bf16 %v16540_v34, %v16519_v38  ;;  %v10224_v63 = vmax.f32 %v10208_v44, %v10216_v12  ;;  %v10256_v59 = vld [vmem:[#allocation3 + $0x50] sm:$0xff]  ;;  %v10454_v12 = vpack.c.bf16 %v10447_v15, %v10446_v47 }
 0xda2   : > { %v10193_v40 = vmax.f32 %v10177_v46, %v10185_v50  ;;  %v10271_v58 = vld [vmem:[#allocation3 + $0x61] sm:$0xff]  ;;  %v16560_v36 = vpack.c.bf16 %v10256_v59, %v10255_v55  ;;  %v10451_v7 = vld [vmem:[#allocation3 + $0x52] sm:$0xff]  ;;  %v10560_v46 = vpack.c.bf16 %v10253_v53, %v10252_v5 }
 0xda3   : > { %13269 = vmatprep.mubr.msk.bf16.mxu0 %vm320_vm0, %v16544_v9  ;;  %v10240_v25 = vmax.f32 %v10224_v63, %v10232_v61  ;;  %v10257_v57 = vld [vmem:[#allocation3 + $0x60] sm:$0xff]  ;;  %v10449_v61 = vld [vmem:[#allocation3 + $0x32] sm:$0xff]  ;;  %v10456_v42 = vpack.c.bf16 %v10451_v7, %v10450_v1  ;;  %v10561_v63 = vpack.c.bf16 %v10255_v55, %v10254_v41 }
 0xda4   : > { %v10209_v43 = vmax.f32 %v10193_v40, %v10201_v23  ;;  %v10455_v49 = vpack.c.bf16 %v10449_v61, %v10448_v39  ;;  %v10452_v44 = vld [vmem:[#allocation3 + $0x62] sm:$0xff]  ;;  %v10562_v40 = vpack.c.bf16 %v10257_v57, %v10256_v59  ;;  %v10773_v0 = vpack.c.bf16 %v10450_v1, %v10449_v61 }
 0xda5   : > { %10249 = vst.msk [vmem:[#allocation3 + $0x71] sm:$0xff] %vm320_vm0, %v10240_v25  ;;  %v14208_v23 = vld [vmem:[%s16706_s6 + $0x28] sm:$0xff]  }
 0xda6   : > { %v10225_v31 = vmax.f32 %v10209_v43, %v10217_v26  ;;  %v14209_v43 = vld [vmem:[%s16706_s6 + $0x30] sm:$0xff]  }
 0xda8   : > { %v10241_v48 = vmax.f32 %v10225_v31, %v10233_v20  ;;  %v10668_v20 = vpack.c.bf16 %v10271_v58, %v16540_v34  ;;  %v10774_v34 = vpack.c.bf16 %v10452_v44, %v10451_v7 }
 0xdaa   : > { %10250 = vst.msk [vmem:[#allocation3 + $0x81] sm:$0xff] %vm320_vm0, %v10241_v48 }
 0xdac   : > { %v10272_v32 = vld [vmem:[#allocation3 + $0x71] sm:$0xff] }
 0xdad   : > { %v16550_v8 = vpack.c.bf16 %v10272_v32, %v10271_v58  ;;  %v10258_v14 = vld [vmem:[#allocation3 + $0x70] sm:$0xff] }
 0xdae   : > { %v10262_v16 = vpack.c.bf16 %v10258_v14, %v10257_v57  ;;  %v10453_v18 = vld [vmem:[#allocation3 + $0x72] sm:$0xff] }
 0xdaf   : > { %13270 = vmatmul.mubr.msk.bf16.gmra.mrb[60].mxu0 %vm320_vm0, %v16550_v8  ;;  %v10457_v50 = vpack.c.bf16 %v10453_v18, %v10452_v44  ;;  %v10984_v58 = vld [vmem:[#allocation3 + $0x91] sm:$0xff] }
 0xdb0   : > { %13275 = vmatprep.mubr.msk.bf16.mxu0 %vm320_vm0, %v10259_v27  ;;  %v11090_v27 = vld [vmem:[#allocation3 + $0x92] sm:$0xff] }
 0xdb1   : > { %v10559_v25 = vld [vmem:[#allocation3 + $0x80] sm:$0xff] }
 0xdb2   : > { %v10563_v26 = vpack.c.bf16 %v10559_v25, %v10258_v14  ;;  %v10665_v31 = vld [vmem:[#allocation3 + $0x81] sm:$0xff]  ;;  %v10882_v5 = vpack.c.bf16 %v10878_v52, %v10559_v25 }
 0xdb3   : > { %v10669_v48 = vpack.c.bf16 %v10665_v31, %v10272_v32  ;;  %v10771_v21 = vld [vmem:[#allocation3 + $0x82] sm:$0xff]  ;;  %v10988_v32 = vpack.c.bf16 %v10984_v58, %v10665_v31 }
 0xdb4   : > { %v10775_v38 = vpack.c.bf16 %v10771_v21, %v10453_v18  ;;  %v11094_v53 = vpack.c.bf16 %v11090_v27, %v10771_v21 }
 0xdb7   : > { %13276 = vmatmul.mubr.msk.bf16.vlgmr.msra.gmra.mrb[56].mxu0 %vm320_vm0, %v16555_v10 }
 0xdb8   : > { %13284 = vmatpush3.bf16.msra.mxu0 %v14205_v11  ;;  %13279 = vmatprep.mubr.msk.bf16.mxu0 %vm320_vm0, %v16560_v36  ;;  %v14207_v11 = vld [vmem:[%s16706_s6 + $0x20] sm:$0xff]  }
 0xdb9   : > { %13293 = vmatprep.subr.bf16.mxu0 %v14206_v13 }
 0xdbf   : > { %13280 = vmatmul.mubr.msk.bf16.gmra.mrb[60].mxu0 %vm320_vm0, %v10262_v16 }
 0xdc0   : > { %13285 = vmatprep.mubr.msk.bf16.mxu0 %vm320_vm0, %v10454_v12 }
 0xdc7   : > { %13286 = vmatmul.mubr.msk.bf16.vlgmr.msra.gmra.mrb[56].mxu0 %vm320_vm0, %v10455_v49 }
 0xdc8   : > { %13294 = vmatpush3.bf16.msra.mxu0 %v14206_v13  ;;  %13289 = vmatprep.mubr.msk.bf16.mxu0 %vm320_vm0, %v10456_v42 }
 0xdc9   : > { %13303 = vmatprep.subr.bf16.mxu0 %v14207_v11 }
 0xdcf   : > { %13290 = vmatmul.mubr.msk.bf16.gmra.mrb[60].mxu0 %vm320_vm0, %v10457_v50 }
 0xdd0   : > { %13295 = vmatprep.mubr.msk.bf16.mxu0 %vm320_vm0, %v10560_v46 }
 0xdd7   : > { %13296 = vmatmul.mubr.msk.bf16.vlgmr.msra.gmra.mrb[56].mxu0 %vm320_vm0, %v10561_v63 }
 0xdd8   : > { %13304 = vmatpush3.bf16.msra.mxu0 %v14207_v11  ;;  %13299 = vmatprep.mubr.msk.bf16.mxu0 %vm320_vm0, %v10562_v40 }
 0xdd9   : > { %13313 = vmatprep.subr.bf16.mxu0 %v14208_v23 }
 0xddf   : > { %13300 = vmatmul.mubr.msk.bf16.gmra.mrb[60].mxu0 %vm320_vm0, %v10563_v26 }
 0xde0   : > { %13305 = vmatprep.mubr.msk.bf16.mxu0 %vm320_vm0, %v10666_v33  ;;  %v14210_v33 = vld [vmem:[%s16706_s6 + $0x38] sm:$0xff]  }
 0xde7   : > { %13306 = vmatmul.mubr.msk.bf16.vlgmr.msra.gmra.mrb[56].mxu0 %vm320_vm0, %v10667_v4  ;;  %v14211_v4 = vld [vmem:[%s16706_s6 + $0x40] sm:$0xff]  }
 0xde8   : > { %13314 = vmatpush3.bf16.msra.mxu0 %v14208_v23  ;;  %13309 = vmatprep.mubr.msk.bf16.mxu0 %vm320_vm0, %v10668_v20 }
 0xde9   : > { %13323 = vmatprep.subr.bf16.mxu0 %v14209_v43 }
 0xdef   : > { %13310 = vmatmul.mubr.msk.bf16.gmra.mrb[60].mxu0 %vm320_vm0, %v10669_v48 }
 0xdf0   : > { %13315 = vmatprep.mubr.msk.bf16.mxu0 %vm320_vm0, %v10772_v6 }
 0xdf7   : > { %13316 = vmatmul.mubr.msk.bf16.vlgmr.msra.gmra.mrb[56].mxu0 %vm320_vm0, %v10773_v0 }
 0xdf8   : > { %13324 = vmatpush3.bf16.msra.mxu0 %v14209_v43  ;;  %13319 = vmatprep.mubr.msk.bf16.mxu0 %vm320_vm0, %v10774_v34 }
 0xdf9   : > { %13333 = vmatprep.subr.bf16.mxu0 %v14210_v33 }
 0xdff   : > { %13320 = vmatmul.mubr.msk.bf16.gmra.mrb[60].mxu0 %vm320_vm0, %v10775_v38 }
 0xe00   : > { %13325 = vmatprep.mubr.msk.bf16.mxu0 %vm320_vm0, %v16555_v10 }
 0xe07   : > { %13326 = vmatmul.mubr.msk.bf16.vlgmr.msra.gmra.mrb[56].mxu0 %vm320_vm0, %v16560_v36 }
 0xe08   : > { %13334 = vmatpush3.bf16.msra.mxu0 %v14210_v33  ;;  %13329 = vmatprep.mubr.msk.bf16.mxu0 %vm320_vm0, %v10262_v16 }
 0xe09   : > { %13343 = vmatprep.subr.bf16.mxu0 %v14211_v4 }
 0xe0f   : > { %13330 = vmatmul.mubr.msk.bf16.gmra.mrb[60].mxu0 %vm320_vm0, %v10882_v5 }
 0xe10   : > { %13335 = vmatprep.mubr.msk.bf16.mxu0 %vm320_vm0, %v16529_v29 }
 0xe17   : > { %13336 = vmatmul.mubr.msk.bf16.vlgmr.msra.gmra.mrb[56].mxu0 %vm320_vm0, %v16544_v9 }
 0xe18   : > { %13344 = vmatpush3.bf16.msra.mxu0 %v14211_v4  ;;  %13339 = vmatprep.mubr.msk.bf16.mxu0 %vm320_vm0, %v16550_v8 }
 0xe1f   : > { %13340 = vmatmul.mubr.msk.bf16.gmra.mrb[60].mxu0 %vm320_vm0, %v10988_v32 }
 0xe20   : > { %13345 = vmatprep.mubr.msk.bf16.mxu0 %vm320_vm0, %v10455_v49 }
 0xe27   : > { %13346 = vmatmul.mubr.msk.bf16.vlgmr.msra.gmra.mrb[56].mxu0 %vm320_vm0, %v10456_v42 }
 0xe28   : > { %13349 = vmatprep.mubr.msk.bf16.mxu0 %vm320_vm0, %v10457_v50 }
 0xe2f   : > { %13350 = vmatmul.mubr.msk.bf16.gmra.mrb[60].mxu0 %vm320_vm0, %v11094_v53 }
 0xefa   : > { %v13347_v29 = vpop.f32.mrb[56].mxu0 }
 0xefb   : > { %v11191_v9 = vadd.f32 %v13347_v29, %v9807_v37  ;;  %v11150_v8 = vpop.f32.mrb[57].mxu0 }
 0xefc   : > { %v11189_v59 = vadd.f32 %v11150_v8, %v9805_v35  ;;  %v13348_v41 = vpop.f32.mrb[58].mxu0 }
 0xefd   : > { %11199 = vst.msk [vmem:[%s286_s21 + $0x10] sm:$0xff] %vm320_vm0, %v11191_v9  ;;  %v11192_v10 = vadd.f32 %v13348_v41, %v9808_v28  ;;  %v11153_v55 = vpop.f32.mrb[59].mxu0 }
 0xefe   : > { %11197 = vst.msk [vmem:[%s286_s21] sm:$0xff] %vm320_vm0, %v11189_v59  ;;  %v11190_v13 = vadd.f32 %v11153_v55, %v9806_v45 }
 0xeff   : > { %11200 = vst.msk [vmem:[%s286_s21 + $0x18] sm:$0xff] %vm320_vm0, %v11192_v10 }
 0xf00   : > { %11198 = vst.msk [vmem:[%s286_s21 + $0x8] sm:$0xff] %vm320_vm0, %v11190_v13 }
 0xf02   : > { %v13351_v56 = vpop.f32.mrb[60].mxu0 }
 0xf03   : > { %v11195_v37 = vadd.f32 %v13351_v56, %v9811_v62  ;;  %v11166_v2 = vpop.f32.mrb[61].mxu0 }
 0xf04   : > { %v11193_v35 = vadd.f32 %v11166_v2, %v9809_v24  ;;  %v13352_v60 = vpop.f32.mrb[62].mxu0 }
 0xf05   : > { %11203 = vst.msk [vmem:[%s286_s21 + $0x30] sm:$0xff] %vm320_vm0, %v11195_v37  ;;  %v11196_v28 = vadd.f32 %v13352_v60, %v9812_v51  ;;  %v11169_v19 = vpop.f32.mrb[63].mxu0 }
 0xf06   : > { %11201 = vst.msk [vmem:[%s286_s21 + $0x20] sm:$0xff] %vm320_vm0, %v11193_v35  ;;  %v11194_v45 = vadd.f32 %v11169_v19, %v9810_v54 }
 0xf07   : > { %11204 = vst.msk [vmem:[%s286_s21 + $0x38] sm:$0xff] %vm320_vm0, %v11196_v28 }
 0xf08   : > { %11202 = vst.msk [vmem:[%s286_s21 + $0x28] sm:$0xff] %vm320_vm0, %v11194_v45 }
 0xf09   : > { %14225 = shalt.err (!%p14222_p3)
}
 0xf0a   : > { %s14226_s17 = scalar_lea.hbm %s16648_s28, 1024  ;;  %s14230_s20 = scalar_lea.hbm %s16707_s7, 2048 }
 0xf0b   : > { %p14227_p4 = scmp.ne.s32.totalorder %s16648_s28, %s14226_s17  ;;  %p14231_p9 = scmp.lt.u32.totalorder %s16648_s28, %s16707_s7 }
 0xf0c   : > { %p14232_p10 = scmp.lt.u32.totalorder %s14230_s20, %s14226_s17  ;;  %p14234_p12 = scmp.lt.u32.totalorder %s14226_s17, %s16648_s28 }
 0xf0d   : > { %p14228_p7 = pnand %p14227_p4, %p14359_p5 }
 0xf0e   : > { %p14233_p11 = por %p14232_p10, %p14231_p9 }
 0xf0f   : > { %p14229_p8 = pneg %p14228_p7 }
 0xf10   : > { %p14235_p13 = por %p14234_p12, %p14233_p11 }
 0xf12   : > { %p14236_p0 = pnand %p14235_p13, %p14229_p8 }
 0xf14   : > { %14239 = shalt.err (!%p14236_p0)
}
 0xf15   : > { %s14279_s29 = smov 128   ;;  %s14280_s8 = smov 8  }
 0xf16   : > { %14158 = dma.vmem_to_hbm [thread:$0]  (%p14359_p5), %s16650_s23, 1024, %s16648_s28, %s16659_s9, %s14279_s29, %s14279_s29, %s14280_s8  }
 0xf17 PF: > { %p14164_p1 = scmp.ge.s32.totalorder %s14274_s27, 2  ;;  %s11234_s13 = sand.u32 1, %s14262_s24  }
 0xf18   : > { %s11235_s14 = scalar_lea.sflag [#allocation6], %s11234_s13 }
 0xf19   : > { %p14161_p2 = pnand %p14164_p1, %p14363_p6 }
 0xf1b   : > { %14257 = dma.done.wait (!%p14161_p2), %s11235_s14, 1024  }
 0xf1c   : > { %14259 = vsyncadd (!%p14161_p2), %s11235_s14, 4294966272  ;;  %p17_p3 = scmp.ge.s32.totalorder %s14346_s30, 4   ;;  %s16747_s24 = smov %s14266_s25 }
 0xf1d   : > { %s16748_s25 = smov %s14270_s26  ;;  %s16749_s26 = smov %s14357_s10 }
 0xf1e   : > { %s16750_s27 = smov %s14346_s30  ;;  %19 = sbr.rel (!%p17_p3) target bundleno = 3 (0x3), region = 194 }
 0xf25   :  { %11240 = vsyncpa [#allocation6], 1 }
 0xf26   :  { %11242 = vsyncpa [#allocation6 + $0x1], 1 }

</bundles_post_ra>
